<compile_context>
chip_gen: v7x
topology: tpu7x:2x2x1
jax: 0.10.0
libtpu: 0.0.40
codegen_flags: <defaults>
</compile_context>

<pallas_src>
import functools

import numpy as np
import jax
import jax.numpy as jnp
from jax.experimental import pallas as pl
from jax.experimental.pallas import tpu as pltpu  # noqa: F401  (TPU backend)

_EPS = 1e-5  # torch BatchNorm2d default eps


# ----------------------------------------------------------------------------
# Host-side constant builders (selection matrices & 7x7 im2col gather indices)
# ----------------------------------------------------------------------------

def _reflect(i, n):
    if i < 0:
        return -i
    if i >= n:
        return 2 * (n - 1) - i
    return i


def _conv_selection(N, H, W, k, stride, pad, mode):
    """S[t, m_in, m_out] = 1 iff tap t at output position m_out reads input
    position m_in (reflect / zero padding folded in).  m = n*H*W + y*W + x."""
    Ho = (H + 2 * pad - k) // stride + 1
    Wo = (W + 2 * pad - k) // stride + 1
    S = np.zeros((k * k, N * H * W, N * Ho * Wo), np.float32)
    for i in range(k):
        for j in range(k):
            t = i * k + j
            for n in range(N):
                for oy in range(Ho):
                    for ox in range(Wo):
                        iy = oy * stride + i - pad
                        ix = ox * stride + j - pad
                        if mode == "reflect":
                            iy, ix = _reflect(iy, H), _reflect(ix, W)
                        elif not (0 <= iy < H and 0 <= ix < W):
                            continue  # zero padding -> no contribution
                        S[t, n * H * W + iy * W + ix,
                          n * Ho * Wo + oy * Wo + ox] = 1.0
    return S


def _convT_selection(N, H, W):
    """ConvTranspose2d(k=3, s=2, p=1, output_padding=1) selection matrices.
    Dilation zeros simply have no entry (polyphase structure folded in)."""
    k, Ho, Wo = 3, 2 * H, 2 * W
    S = np.zeros((k * k, N * H * W, N * Ho * Wo), np.float32)
    for i in range(k):
        for j in range(k):
            t = i * k + j
            for n in range(N):
                for oy in range(Ho):
                    for ox in range(Wo):
                        dy, dx = oy + i - 1, ox + j - 1
                        if not (0 <= dy <= 2 * (H - 1) and 0 <= dx <= 2 * (W - 1)):
                            continue
                        if dy % 2 or dx % 2:
                            continue
                        S[t, n * H * W + (dy // 2) * W + (dx // 2),
                          n * Ho * Wo + oy * Wo + ox] = 1.0
    return S


def _im2col_indices_7x7_reflect(H, W):
    """idx[t, o]: flattened source index (reflect pad 3) for tap t at output o."""
    k, pad = 7, 3
    idx = np.zeros((k * k, H * W), np.int32)
    for i in range(k):
        for j in range(k):
            t = i * k + j
            for oy in range(H):
                for ox in range(W):
                    iy = _reflect(oy + i - pad, H)
                    ix = _reflect(ox + j - pad, W)
                    idx[t, oy * W + ox] = iy * W + ix
    return idx


# ----------------------------------------------------------------------------
# In-kernel helpers (traced inside the Pallas kernels)
# ----------------------------------------------------------------------------

def _bn(acc, g, b):
    """BatchNorm2d (training-mode batch stats) over the M axis, one-pass stats."""
    mean = jnp.mean(acc, axis=1, keepdims=True)
    var = jnp.mean(acc * acc, axis=1, keepdims=True) - mean * mean
    var = jnp.maximum(var, 0.0)
    return (acc - mean) * (g * jax.lax.rsqrt(var + _EPS)) + b


def _conv_taps(x_bf16, w_stack, s_ref, cout):
    """y = sum_t (W_t @ x) @ S_t.
    x_bf16: [Cin, Min] bf16, w_stack: [taps*Cout, Cin] bf16,
    s_ref: [taps, Min, Mout] bf16 ref (0/1 selection).  Returns f32 [Cout, Mout]."""
    taps = s_ref.shape[0]
    mout = s_ref.shape[2]
    z = jnp.dot(w_stack, x_bf16, preferred_element_type=jnp.float32)  # [taps*Cout, Min]
    acc = jnp.zeros((cout, mout), jnp.float32)
    for t in range(taps):
        zt = z[t * cout:(t + 1) * cout, :].astype(jnp.bfloat16)
        acc = acc + jnp.dot(zt, s_ref[t], preferred_element_type=jnp.float32)
    return acc


# ----------------------------------------------------------------------------
# Pallas kernels
# ----------------------------------------------------------------------------

def _net_kernel(p_stem_ref, ws_ref, gs_ref, bs_ref,
                wd0_ref, gd0_ref, bd0_ref, sd0_ref,
                wd1_ref, gd1_ref, bd1_ref, sd1_ref,
                sres_ref, wres_ref, gres_ref, bres_ref,
                wu0_ref, gu0_ref, bu0_ref, su0_ref,
                wu1_ref, gu1_ref, bu1_ref, su1_ref,
                o_ref):
    """Stem + 2 downsamples + 3 ResnetBlocks + 2 upsamples, fully fused."""
    relu = lambda v: jnp.maximum(v, 0.0)

    # ---- stem: 7x7 conv (pre-gathered patches) + BN + ReLU ----
    acc = jnp.dot(ws_ref[...], p_stem_ref[...], preferred_element_type=jnp.float32)
    h = relu(_bn(acc, gs_ref[...], bs_ref[...]))                       # [8, 512] f32

    # ---- downsampling: 3x3 stride-2 conv + BN + ReLU ----
    h = relu(_bn(_conv_taps(h.astype(jnp.bfloat16), wd0_ref[...], sd0_ref,
                            gd0_ref.shape[0]), gd0_ref[...], bd0_ref[...]))  # [16,128]
    h = relu(_bn(_conv_taps(h.astype(jnp.bfloat16), wd1_ref[...], sd1_ref,
                            gd1_ref.shape[0]), gd1_ref[...], bd1_ref[...]))  # [32, 32]

    # ---- resnet blocks (reflect pad folded into sres; all VMEM-resident) ----
    dim = gd1_ref.shape[0]
    n_blocks = wres_ref.shape[0] // 2
    for blk in range(n_blocks):
        res = h
        a = relu(_bn(_conv_taps(h.astype(jnp.bfloat16), wres_ref[2 * blk],
                                sres_ref, dim),
                     gres_ref[2 * blk], bres_ref[2 * blk]))
        h = res + _bn(_conv_taps(a.astype(jnp.bfloat16), wres_ref[2 * blk + 1],
                                 sres_ref, dim),
                      gres_ref[2 * blk + 1], bres_ref[2 * blk + 1])

    # ---- upsampling: ConvTranspose (polyphase selection) + BN + ReLU ----
    h = relu(_bn(_conv_taps(h.astype(jnp.bfloat16), wu0_ref[...], su0_ref,
                            gu0_ref.shape[0]), gu0_ref[...], bu0_ref[...]))  # [16,128]
    h = relu(_bn(_conv_taps(h.astype(jnp.bfloat16), wu1_ref[...], su1_ref,
                            gu1_ref.shape[0]), gu1_ref[...], bu1_ref[...]))  # [8, 512]

    o_ref[...] = h


def _final_kernel(w_ref, p_ref, b_ref, o_ref, *, lb, ub):
    """Final 7x7 conv (with bias) + Hardtanh, fully in f32 (no BN to renorm)."""
    acc = jnp.dot(w_ref[...], p_ref[...], preferred_element_type=jnp.float32)
    o_ref[...] = jnp.clip(acc + b_ref[...], lb, ub)


# ----------------------------------------------------------------------------
# DeformationNet config / params / parameter packing
# ----------------------------------------------------------------------------

class Cfg:
    input_nc = 3
    output_nc = 2
    ngf = 8
    n_blocks = 3
    n_down = 2
    lb = 0.0
    ub = 0.1
    # vf=False (torch default) -> base_grid is not added in forward.


def init_params(key, cfg):
    params = {}
    keys = iter(jax.random.split(key, 64))

    def conv_w(cout, cin, k):
        return 0.02 * jax.random.normal(next(keys), (cout, cin, k, k), jnp.float32)

    def bn(c):
        g = 1.0 + 0.02 * jax.random.normal(next(keys), (c,), jnp.float32)
        return g, jnp.zeros((c,), jnp.float32)

    ngf = cfg.ngf
    params["c0_w"] = conv_w(ngf, cfg.input_nc, 7)           # stem (no bias with BN)
    params["c0_g"], params["c0_b"] = bn(ngf)
    for i in range(cfg.n_down):
        mult = 2 ** i
        params[f"d{i}_w"] = conv_w(ngf * mult * 2, ngf * mult, 3)
        params[f"d{i}_g"], params[f"d{i}_b"] = bn(ngf * mult * 2)
    dim = ngf * (2 ** cfg.n_down)
    for i in range(cfg.n_blocks):
        params[f"r{i}_w1"] = conv_w(dim, dim, 3)
        params[f"r{i}_g1"], params[f"r{i}_b1"] = bn(dim)
        params[f"r{i}_w2"] = conv_w(dim, dim, 3)
        params[f"r{i}_g2"], params[f"r{i}_b2"] = bn(dim)
    for i in range(cfg.n_down):                              # torch-style [Cin,Cout,k,k]
        mult = 2 ** (cfg.n_down - i)
        cin, cout = ngf * mult, ngf * mult // 2
        params[f"u{i}_w"] = 0.02 * jax.random.normal(
            next(keys), (cin, cout, 3, 3), jnp.float32)
        params[f"u{i}_g"], params[f"u{i}_b"] = bn(cout)
    params["f_w"] = conv_w(cfg.output_nc, ngf, 7)            # final conv has bias
    params["f_b"] = jnp.zeros((cfg.output_nc,), jnp.float32)
    return params


def prepare(params, cfg, N, H, W):
    """One-time parameter packing + constant (selection / gather) tables."""
    ngf = cfg.ngf

    def pack_taps(w):  # [Cout, Cin, kh, kw] -> [kh*kw*Cout, Cin] bf16 (tap-major)
        cout, cin, kh, kw = w.shape
        return jnp.transpose(w, (2, 3, 0, 1)).reshape(kh * kw * cout, cin).astype(jnp.bfloat16)

    def col(v):
        return v.reshape(-1, 1).astype(jnp.float32)

    prep = {"idx7": jnp.asarray(_im2col_indices_7x7_reflect(H, W))}

    # stem
    prep["w_stem"] = params["c0_w"].reshape(ngf, cfg.input_nc * 49).astype(jnp.bfloat16)
    prep["g_stem"], prep["b_stem"] = col(params["c0_g"]), col(params["c0_b"])

    # downsampling (zero pad 1, stride 2)
    h, w = H, W
    for i in range(cfg.n_down):
        prep[f"w_d{i}"] = pack_taps(params[f"d{i}_w"])
        prep[f"g_d{i}"], prep[f"b_d{i}"] = col(params[f"d{i}_g"]), col(params[f"d{i}_b"])
        prep[f"s_d{i}"] = jnp.asarray(_conv_selection(N, h, w, 3, 2, 1, "zero"),
                                      jnp.bfloat16)
        h, w = h // 2, w // 2

    # resnet blocks (reflect pad 1, shared geometry)
    prep["s_res"] = jnp.asarray(_conv_selection(N, h, w, 3, 1, 1, "reflect"),
                                jnp.bfloat16)
    wr, gr, br = [], [], []
    for i in range(cfg.n_blocks):
        wr += [pack_taps(params[f"r{i}_w1"]), pack_taps(params[f"r{i}_w2"])]
        gr += [col(params[f"r{i}_g1"]), col(params[f"r{i}_g2"])]
        br += [col(params[f"r{i}_b1"]), col(params[f"r{i}_b2"])]
    prep["w_res"] = jnp.stack(wr)   # [2*n_blocks, 9*dim, dim]
    prep["g_res"] = jnp.stack(gr)   # [2*n_blocks, dim, 1]
    prep["b_res"] = jnp.stack(br)

    # upsampling (ConvTranspose k3 s2 p1 op1)
    for i in range(cfg.n_down):
        wt = params[f"u{i}_w"]                                    # [Cin, Cout, 3, 3]
        wflip = jnp.flip(wt, axis=(2, 3)).transpose(1, 0, 2, 3)   # [Cout, Cin, 3, 3]
        prep[f"w_u{i}"] = pack_taps(wflip)
        prep[f"g_u{i}"], prep[f"b_u{i}"] = col(params[f"u{i}_g"]), col(params[f"u{i}_b"])
        prep[f"s_u{i}"] = jnp.asarray(_convT_selection(N, h, w), jnp.bfloat16)
        h, w = h * 2, w * 2

    # final 7x7 conv (kept f32 for parity)
    prep["w_f"] = params["f_w"].reshape(cfg.output_nc, ngf * 49).astype(jnp.float32)
    prep["b_f"] = col(params["f_b"])
    return prep


# ----------------------------------------------------------------------------
# Forward
# ----------------------------------------------------------------------------

def deformation_net_forward(x, prep, cfg=Cfg):
    N, Cin, H, W = x.shape
    M = N * H * W
    ngf = cfg.ngf

    def im2col7(xc):  # xc: [C, N, H*W] -> [C*49, N*H*W] (reflect pad 3 folded in)
        p = xc[:, :, prep["idx7"]]                         # [C, N, 49, H*W]
        return jnp.transpose(p, (0, 2, 1, 3)).reshape(xc.shape[0] * 49, M)

    xc = jnp.transpose(x, (1, 0, 2, 3)).reshape(Cin, N, H * W).astype(jnp.float32)
    p_stem = im2col7(xc).astype(jnp.bfloat16)

    # ---- kernel A: stem + down x2 + 3 resnet blocks + up x2 (fully fused) ----
    h = pl.pallas_call(
        _net_kernel,
        out_shape=jax.ShapeDtypeStruct((ngf, M), jnp.float32),
    )(p_stem,
      prep["w_stem"], prep["g_stem"], prep["b_stem"],
      prep["w_d0"], prep["g_d0"], prep["b_d0"], prep["s_d0"],
      prep["w_d1"], prep["g_d1"], prep["b_d1"], prep["s_d1"],
      prep["s_res"], prep["w_res"], prep["g_res"], prep["b_res"],
      prep["w_u0"], prep["g_u0"], prep["b_u0"], prep["s_u0"],
      prep["w_u1"], prep["g_u1"], prep["b_u1"], prep["s_u1"])

    # ---- kernel B: ReflectionPad(3) + Conv7x7 (bias) + Hardtanh, f32 ----
    p_f = im2col7(h.reshape(ngf, N, H * W))
    out = pl.pallas_call(
        functools.partial(_final_kernel, lb=cfg.lb, ub=cfg.ub),
        out_shape=jax.ShapeDtypeStruct((cfg.output_nc, M), jnp.float32),
    )(prep["w_f"], p_f, prep["b_f"])

    return jnp.transpose(out.reshape(cfg.output_nc, N, H, W), (1, 0, 2, 3))


# ----------------------------------------------------------------------------
# main
# ----------------------------------------------------------------------------

if __name__ == "__main__":
    key = jax.random.PRNGKey(0)
    k_in, k_par = jax.random.split(key)

    cfg = Cfg
    N, H, W = 2, 16, 16
    x = jax.random.normal(k_in, (N, cfg.input_nc, H, W), jnp.float32)   # NCHW

    params = init_params(k_par, cfg)
    prep = prepare(params, cfg, N, H, W)                 # one-time packing

    fwd = jax.jit(functools.partial(deformation_net_forward, cfg=cfg))
    out = jax.block_until_ready(fwd(x, prep))

    assert out.shape == (N, cfg.output_nc, H, W), out.shape
    assert bool(jnp.all(out >= cfg.lb - 1e-6)) and bool(jnp.all(out <= cfg.ub + 1e-6))
    print("KERNEL_OK")
</pallas_src>

<mosaic_0001>
module attributes {stable_mosaic.version = 11 : i64} {
  func.func @_net_kernel(%arg0: memref<147x512xbf16, #tpu.memory_space<vmem>>, %arg1: memref<8x147xbf16, #tpu.memory_space<vmem>>, %arg2: memref<8x1xf32, #tpu.memory_space<vmem>>, %arg3: memref<8x1xf32, #tpu.memory_space<vmem>>, %arg4: memref<144x8xbf16, #tpu.memory_space<vmem>>, %arg5: memref<16x1xf32, #tpu.memory_space<vmem>>, %arg6: memref<16x1xf32, #tpu.memory_space<vmem>>, %arg7: memref<9x512x128xbf16, #tpu.memory_space<vmem>>, %arg8: memref<288x16xbf16, #tpu.memory_space<vmem>>, %arg9: memref<32x1xf32, #tpu.memory_space<vmem>>, %arg10: memref<32x1xf32, #tpu.memory_space<vmem>>, %arg11: memref<9x128x32xbf16, #tpu.memory_space<vmem>>, %arg12: memref<9x32x32xbf16, #tpu.memory_space<vmem>>, %arg13: memref<6x288x32xbf16, #tpu.memory_space<vmem>>, %arg14: memref<6x32x1xf32, #tpu.memory_space<vmem>>, %arg15: memref<6x32x1xf32, #tpu.memory_space<vmem>>, %arg16: memref<144x32xbf16, #tpu.memory_space<vmem>>, %arg17: memref<16x1xf32, #tpu.memory_space<vmem>>, %arg18: memref<16x1xf32, #tpu.memory_space<vmem>>, %arg19: memref<9x32x128xbf16, #tpu.memory_space<vmem>>, %arg20: memref<72x16xbf16, #tpu.memory_space<vmem>>, %arg21: memref<8x1xf32, #tpu.memory_space<vmem>>, %arg22: memref<8x1xf32, #tpu.memory_space<vmem>>, %arg23: memref<9x128x512xbf16, #tpu.memory_space<vmem>>, %arg24: memref<8x512xf32, #tpu.memory_space<vmem>>) attributes {dimension_semantics = [], scalar_prefetch = 0 : i64, scratch_operands = 0 : i64, tpu.core_type = #tpu.core_type<tc>} {
    %c0 = arith.constant 0 : index
    %c0_0 = arith.constant 0 : index
    %0 = vector.load %arg1[%c0, %c0_0] : memref<8x147xbf16, #tpu.memory_space<vmem>>, vector<8x147xbf16>
    %c0_1 = arith.constant 0 : index
    %c0_2 = arith.constant 0 : index
    %1 = vector.load %arg0[%c0_1, %c0_2] : memref<147x512xbf16, #tpu.memory_space<vmem>>, vector<147x512xbf16>
    %cst = arith.constant dense<0.000000e+00> : vector<8x512xf32>
    %2 = tpu.matmul %0, %1, %cst {dimension_numbers = #tpu.dot_dimension_numbers<[1], [0], [0], [1], [0, 0, 1, 1], [], []>} : vector<8x147xbf16>, vector<147x512xbf16>, vector<8x512xf32> -> vector<8x512xf32>
    %c0_3 = arith.constant 0 : index
    %c0_4 = arith.constant 0 : index
    %3 = vector.load %arg2[%c0_3, %c0_4] : memref<8x1xf32, #tpu.memory_space<vmem>>, vector<8x1xf32>
    %c0_5 = arith.constant 0 : index
    %c0_6 = arith.constant 0 : index
    %4 = vector.load %arg3[%c0_5, %c0_6] : memref<8x1xf32, #tpu.memory_space<vmem>>, vector<8x1xf32>
    %cst_7 = arith.constant dense<0.000000e+00> : vector<8xf32>
    %5 = vector.multi_reduction <add>, %2, %cst_7 [1] : vector<8x512xf32> to vector<8xf32>
    %6 = vector.shape_cast %5 : vector<8xf32> to vector<8x1xf32>
    %cst_8 = arith.constant 5.120000e+02 : f32
    %7 = vector.broadcast %cst_8 : f32 to vector<8x1xf32>
    %8 = arith.divf %6, %7 : vector<8x1xf32>
    %9 = arith.mulf %2, %2 : vector<8x512xf32>
    %cst_9 = arith.constant dense<0.000000e+00> : vector<8xf32>
    %10 = vector.multi_reduction <add>, %9, %cst_9 [1] : vector<8x512xf32> to vector<8xf32>
    %11 = vector.shape_cast %10 : vector<8xf32> to vector<8x1xf32>
    %cst_10 = arith.constant 5.120000e+02 : f32
    %12 = vector.broadcast %cst_10 : f32 to vector<8x1xf32>
    %13 = arith.divf %11, %12 : vector<8x1xf32>
    %14 = arith.mulf %8, %8 : vector<8x1xf32>
    %15 = arith.subf %13, %14 : vector<8x1xf32>
    %cst_11 = arith.constant 0.000000e+00 : f32
    %16 = vector.broadcast %cst_11 : f32 to vector<8x1xf32>
    %17 = arith.maximumf %15, %16 : vector<8x1xf32>
    %18 = vector.broadcast %8 : vector<8x1xf32> to vector<8x512xf32>
    %19 = arith.subf %2, %18 : vector<8x512xf32>
    %cst_12 = arith.constant 9.99999974E-6 : f32
    %20 = vector.broadcast %cst_12 : f32 to vector<8x1xf32>
    %21 = arith.addf %17, %20 : vector<8x1xf32>
    %22 = math.rsqrt %21 : vector<8x1xf32>
    %23 = arith.mulf %3, %22 : vector<8x1xf32>
    %24 = vector.broadcast %23 : vector<8x1xf32> to vector<8x512xf32>
    %25 = arith.mulf %19, %24 : vector<8x512xf32>
    %26 = vector.broadcast %4 : vector<8x1xf32> to vector<8x512xf32>
    %27 = arith.addf %25, %26 : vector<8x512xf32>
    %cst_13 = arith.constant 0.000000e+00 : f32
    %28 = vector.broadcast %cst_13 : f32 to vector<8x512xf32>
    %29 = arith.maximumf %27, %28 : vector<8x512xf32>
    %30 = arith.truncf %29 : vector<8x512xf32> to vector<8x512xbf16>
    %c0_14 = arith.constant 0 : index
    %c0_15 = arith.constant 0 : index
    %31 = vector.load %arg4[%c0_14, %c0_15] : memref<144x8xbf16, #tpu.memory_space<vmem>>, vector<144x8xbf16>
    %cst_16 = arith.constant dense<0.000000e+00> : vector<144x512xf32>
    %32 = tpu.matmul %31, %30, %cst_16 {dimension_numbers = #tpu.dot_dimension_numbers<[1], [0], [0], [1], [0, 0, 1, 1], [], []>} : vector<144x8xbf16>, vector<8x512xbf16>, vector<144x512xf32> -> vector<144x512xf32>
    %cst_17 = arith.constant 0.000000e+00 : f32
    %33 = vector.broadcast %cst_17 : f32 to vector<16x128xf32>
    %34 = vector.extract_strided_slice %32 {offsets = [0, 0], sizes = [16, 512], strides = [1, 1]} : vector<144x512xf32> to vector<16x512xf32>
    %35 = arith.truncf %34 : vector<16x512xf32> to vector<16x512xbf16>
    %c0_18 = arith.constant 0 : index
    %c0_19 = arith.constant 0 : index
    %c0_20 = arith.constant 0 : index
    %36 = vector.load %arg7[%c0_18, %c0_19, %c0_20] : memref<9x512x128xbf16, #tpu.memory_space<vmem>>, vector<1x512x128xbf16>
    %37 = vector.shape_cast %36 : vector<1x512x128xbf16> to vector<512x128xbf16>
    %cst_21 = arith.constant dense<0.000000e+00> : vector<16x128xf32>
    %38 = tpu.matmul %35, %37, %cst_21 {dimension_numbers = #tpu.dot_dimension_numbers<[1], [0], [0], [1], [0, 0, 1, 1], [], []>} : vector<16x512xbf16>, vector<512x128xbf16>, vector<16x128xf32> -> vector<16x128xf32>
    %39 = arith.addf %33, %38 : vector<16x128xf32>
    %40 = vector.extract_strided_slice %32 {offsets = [16, 0], sizes = [16, 512], strides = [1, 1]} : vector<144x512xf32> to vector<16x512xf32>
    %41 = arith.truncf %40 : vector<16x512xf32> to vector<16x512xbf16>
    %c1 = arith.constant 1 : index
    %c0_22 = arith.constant 0 : index
    %c0_23 = arith.constant 0 : index
    %42 = vector.load %arg7[%c1, %c0_22, %c0_23] : memref<9x512x128xbf16, #tpu.memory_space<vmem>>, vector<1x512x128xbf16>
    %43 = vector.shape_cast %42 : vector<1x512x128xbf16> to vector<512x128xbf16>
    %cst_24 = arith.constant dense<0.000000e+00> : vector<16x128xf32>
    %44 = tpu.matmul %41, %43, %cst_24 {dimension_numbers = #tpu.dot_dimension_numbers<[1], [0], [0], [1], [0, 0, 1, 1], [], []>} : vector<16x512xbf16>, vector<512x128xbf16>, vector<16x128xf32> -> vector<16x128xf32>
    %45 = arith.addf %39, %44 : vector<16x128xf32>
    %46 = vector.extract_strided_slice %32 {offsets = [32, 0], sizes = [16, 512], strides = [1, 1]} : vector<144x512xf32> to vector<16x512xf32>
    %47 = arith.truncf %46 : vector<16x512xf32> to vector<16x512xbf16>
    %c2 = arith.constant 2 : index
    %c0_25 = arith.constant 0 : index
    %c0_26 = arith.constant 0 : index
    %48 = vector.load %arg7[%c2, %c0_25, %c0_26] : memref<9x512x128xbf16, #tpu.memory_space<vmem>>, vector<1x512x128xbf16>
    %49 = vector.shape_cast %48 : vector<1x512x128xbf16> to vector<512x128xbf16>
    %cst_27 = arith.constant dense<0.000000e+00> : vector<16x128xf32>
    %50 = tpu.matmul %47, %49, %cst_27 {dimension_numbers = #tpu.dot_dimension_numbers<[1], [0], [0], [1], [0, 0, 1, 1], [], []>} : vector<16x512xbf16>, vector<512x128xbf16>, vector<16x128xf32> -> vector<16x128xf32>
    %51 = arith.addf %45, %50 : vector<16x128xf32>
    %52 = vector.extract_strided_slice %32 {offsets = [48, 0], sizes = [16, 512], strides = [1, 1]} : vector<144x512xf32> to vector<16x512xf32>
    %53 = arith.truncf %52 : vector<16x512xf32> to vector<16x512xbf16>
    %c3 = arith.constant 3 : index
    %c0_28 = arith.constant 0 : index
    %c0_29 = arith.constant 0 : index
    %54 = vector.load %arg7[%c3, %c0_28, %c0_29] : memref<9x512x128xbf16, #tpu.memory_space<vmem>>, vector<1x512x128xbf16>
    %55 = vector.shape_cast %54 : vector<1x512x128xbf16> to vector<512x128xbf16>
    %cst_30 = arith.constant dense<0.000000e+00> : vector<16x128xf32>
    %56 = tpu.matmul %53, %55, %cst_30 {dimension_numbers = #tpu.dot_dimension_numbers<[1], [0], [0], [1], [0, 0, 1, 1], [], []>} : vector<16x512xbf16>, vector<512x128xbf16>, vector<16x128xf32> -> vector<16x128xf32>
    %57 = arith.addf %51, %56 : vector<16x128xf32>
    %58 = vector.extract_strided_slice %32 {offsets = [64, 0], sizes = [16, 512], strides = [1, 1]} : vector<144x512xf32> to vector<16x512xf32>
    %59 = arith.truncf %58 : vector<16x512xf32> to vector<16x512xbf16>
    %c4 = arith.constant 4 : index
    %c0_31 = arith.constant 0 : index
    %c0_32 = arith.constant 0 : index
    %60 = vector.load %arg7[%c4, %c0_31, %c0_32] : memref<9x512x128xbf16, #tpu.memory_space<vmem>>, vector<1x512x128xbf16>
    %61 = vector.shape_cast %60 : vector<1x512x128xbf16> to vector<512x128xbf16>
    %cst_33 = arith.constant dense<0.000000e+00> : vector<16x128xf32>
    %62 = tpu.matmul %59, %61, %cst_33 {dimension_numbers = #tpu.dot_dimension_numbers<[1], [0], [0], [1], [0, 0, 1, 1], [], []>} : vector<16x512xbf16>, vector<512x128xbf16>, vector<16x128xf32> -> vector<16x128xf32>
    %63 = arith.addf %57, %62 : vector<16x128xf32>
    %64 = vector.extract_strided_slice %32 {offsets = [80, 0], sizes = [16, 512], strides = [1, 1]} : vector<144x512xf32> to vector<16x512xf32>
    %65 = arith.truncf %64 : vector<16x512xf32> to vector<16x512xbf16>
    %c5 = arith.constant 5 : index
    %c0_34 = arith.constant 0 : index
    %c0_35 = arith.constant 0 : index
    %66 = vector.load %arg7[%c5, %c0_34, %c0_35] : memref<9x512x128xbf16, #tpu.memory_space<vmem>>, vector<1x512x128xbf16>
    %67 = vector.shape_cast %66 : vector<1x512x128xbf16> to vector<512x128xbf16>
    %cst_36 = arith.constant dense<0.000000e+00> : vector<16x128xf32>
    %68 = tpu.matmul %65, %67, %cst_36 {dimension_numbers = #tpu.dot_dimension_numbers<[1], [0], [0], [1], [0, 0, 1, 1], [], []>} : vector<16x512xbf16>, vector<512x128xbf16>, vector<16x128xf32> -> vector<16x128xf32>
    %69 = arith.addf %63, %68 : vector<16x128xf32>
    %70 = vector.extract_strided_slice %32 {offsets = [96, 0], sizes = [16, 512], strides = [1, 1]} : vector<144x512xf32> to vector<16x512xf32>
    %71 = arith.truncf %70 : vector<16x512xf32> to vector<16x512xbf16>
    %c6 = arith.constant 6 : index
    %c0_37 = arith.constant 0 : index
    %c0_38 = arith.constant 0 : index
    %72 = vector.load %arg7[%c6, %c0_37, %c0_38] : memref<9x512x128xbf16, #tpu.memory_space<vmem>>, vector<1x512x128xbf16>
    %73 = vector.shape_cast %72 : vector<1x512x128xbf16> to vector<512x128xbf16>
    %cst_39 = arith.constant dense<0.000000e+00> : vector<16x128xf32>
    %74 = tpu.matmul %71, %73, %cst_39 {dimension_numbers = #tpu.dot_dimension_numbers<[1], [0], [0], [1], [0, 0, 1, 1], [], []>} : vector<16x512xbf16>, vector<512x128xbf16>, vector<16x128xf32> -> vector<16x128xf32>
    %75 = arith.addf %69, %74 : vector<16x128xf32>
    %76 = vector.extract_strided_slice %32 {offsets = [112, 0], sizes = [16, 512], strides = [1, 1]} : vector<144x512xf32> to vector<16x512xf32>
    %77 = arith.truncf %76 : vector<16x512xf32> to vector<16x512xbf16>
    %c7 = arith.constant 7 : index
    %c0_40 = arith.constant 0 : index
    %c0_41 = arith.constant 0 : index
    %78 = vector.load %arg7[%c7, %c0_40, %c0_41] : memref<9x512x128xbf16, #tpu.memory_space<vmem>>, vector<1x512x128xbf16>
    %79 = vector.shape_cast %78 : vector<1x512x128xbf16> to vector<512x128xbf16>
    %cst_42 = arith.constant dense<0.000000e+00> : vector<16x128xf32>
    %80 = tpu.matmul %77, %79, %cst_42 {dimension_numbers = #tpu.dot_dimension_numbers<[1], [0], [0], [1], [0, 0, 1, 1], [], []>} : vector<16x512xbf16>, vector<512x128xbf16>, vector<16x128xf32> -> vector<16x128xf32>
    %81 = arith.addf %75, %80 : vector<16x128xf32>
    %82 = vector.extract_strided_slice %32 {offsets = [128, 0], sizes = [16, 512], strides = [1, 1]} : vector<144x512xf32> to vector<16x512xf32>
    %83 = arith.truncf %82 : vector<16x512xf32> to vector<16x512xbf16>
    %c8 = arith.constant 8 : index
    %c0_43 = arith.constant 0 : index
    %c0_44 = arith.constant 0 : index
    %84 = vector.load %arg7[%c8, %c0_43, %c0_44] : memref<9x512x128xbf16, #tpu.memory_space<vmem>>, vector<1x512x128xbf16>
    %85 = vector.shape_cast %84 : vector<1x512x128xbf16> to vector<512x128xbf16>
    %cst_45 = arith.constant dense<0.000000e+00> : vector<16x128xf32>
    %86 = tpu.matmul %83, %85, %cst_45 {dimension_numbers = #tpu.dot_dimension_numbers<[1], [0], [0], [1], [0, 0, 1, 1], [], []>} : vector<16x512xbf16>, vector<512x128xbf16>, vector<16x128xf32> -> vector<16x128xf32>
    %87 = arith.addf %81, %86 : vector<16x128xf32>
    %c0_46 = arith.constant 0 : index
    %c0_47 = arith.constant 0 : index
    %88 = vector.load %arg5[%c0_46, %c0_47] : memref<16x1xf32, #tpu.memory_space<vmem>>, vector<16x1xf32>
    %c0_48 = arith.constant 0 : index
    %c0_49 = arith.constant 0 : index
    %89 = vector.load %arg6[%c0_48, %c0_49] : memref<16x1xf32, #tpu.memory_space<vmem>>, vector<16x1xf32>
    %cst_50 = arith.constant dense<0.000000e+00> : vector<16xf32>
    %90 = vector.multi_reduction <add>, %87, %cst_50 [1] : vector<16x128xf32> to vector<16xf32>
    %91 = vector.shape_cast %90 : vector<16xf32> to vector<16x1xf32>
    %cst_51 = arith.constant 1.280000e+02 : f32
    %92 = vector.broadcast %cst_51 : f32 to vector<16x1xf32>
    %93 = arith.divf %91, %92 : vector<16x1xf32>
    %94 = arith.mulf %87, %87 : vector<16x128xf32>
    %cst_52 = arith.constant dense<0.000000e+00> : vector<16xf32>
    %95 = vector.multi_reduction <add>, %94, %cst_52 [1] : vector<16x128xf32> to vector<16xf32>
    %96 = vector.shape_cast %95 : vector<16xf32> to vector<16x1xf32>
    %cst_53 = arith.constant 1.280000e+02 : f32
    %97 = vector.broadcast %cst_53 : f32 to vector<16x1xf32>
    %98 = arith.divf %96, %97 : vector<16x1xf32>
    %99 = arith.mulf %93, %93 : vector<16x1xf32>
    %100 = arith.subf %98, %99 : vector<16x1xf32>
    %cst_54 = arith.constant 0.000000e+00 : f32
    %101 = vector.broadcast %cst_54 : f32 to vector<16x1xf32>
    %102 = arith.maximumf %100, %101 : vector<16x1xf32>
    %103 = vector.broadcast %93 : vector<16x1xf32> to vector<16x128xf32>
    %104 = arith.subf %87, %103 : vector<16x128xf32>
    %cst_55 = arith.constant 9.99999974E-6 : f32
    %105 = vector.broadcast %cst_55 : f32 to vector<16x1xf32>
    %106 = arith.addf %102, %105 : vector<16x1xf32>
    %107 = math.rsqrt %106 : vector<16x1xf32>
    %108 = arith.mulf %88, %107 : vector<16x1xf32>
    %109 = vector.broadcast %108 : vector<16x1xf32> to vector<16x128xf32>
    %110 = arith.mulf %104, %109 : vector<16x128xf32>
    %111 = vector.broadcast %89 : vector<16x1xf32> to vector<16x128xf32>
    %112 = arith.addf %110, %111 : vector<16x128xf32>
    %cst_56 = arith.constant 0.000000e+00 : f32
    %113 = vector.broadcast %cst_56 : f32 to vector<16x128xf32>
    %114 = arith.maximumf %112, %113 : vector<16x128xf32>
    %115 = arith.truncf %114 : vector<16x128xf32> to vector<16x128xbf16>
    %c0_57 = arith.constant 0 : index
    %c0_58 = arith.constant 0 : index
    %116 = vector.load %arg8[%c0_57, %c0_58] : memref<288x16xbf16, #tpu.memory_space<vmem>>, vector<288x16xbf16>
    %cst_59 = arith.constant dense<0.000000e+00> : vector<288x128xf32>
    %117 = tpu.matmul %116, %115, %cst_59 {dimension_numbers = #tpu.dot_dimension_numbers<[1], [0], [0], [1], [0, 0, 1, 1], [], []>} : vector<288x16xbf16>, vector<16x128xbf16>, vector<288x128xf32> -> vector<288x128xf32>
    %cst_60 = arith.constant 0.000000e+00 : f32
    %118 = vector.broadcast %cst_60 : f32 to vector<32x32xf32>
    %119 = vector.extract_strided_slice %117 {offsets = [0, 0], sizes = [32, 128], strides = [1, 1]} : vector<288x128xf32> to vector<32x128xf32>
    %120 = arith.truncf %119 : vector<32x128xf32> to vector<32x128xbf16>
    %c0_61 = arith.constant 0 : index
    %c0_62 = arith.constant 0 : index
    %c0_63 = arith.constant 0 : index
    %121 = vector.load %arg11[%c0_61, %c0_62, %c0_63] : memref<9x128x32xbf16, #tpu.memory_space<vmem>>, vector<1x128x32xbf16>
    %122 = vector.shape_cast %121 : vector<1x128x32xbf16> to vector<128x32xbf16>
    %cst_64 = arith.constant dense<0.000000e+00> : vector<32x32xf32>
    %123 = tpu.matmul %120, %122, %cst_64 {dimension_numbers = #tpu.dot_dimension_numbers<[1], [0], [0], [1], [0, 0, 1, 1], [], []>} : vector<32x128xbf16>, vector<128x32xbf16>, vector<32x32xf32> -> vector<32x32xf32>
    %124 = arith.addf %118, %123 : vector<32x32xf32>
    %125 = vector.extract_strided_slice %117 {offsets = [32, 0], sizes = [32, 128], strides = [1, 1]} : vector<288x128xf32> to vector<32x128xf32>
    %126 = arith.truncf %125 : vector<32x128xf32> to vector<32x128xbf16>
    %c1_65 = arith.constant 1 : index
    %c0_66 = arith.constant 0 : index
    %c0_67 = arith.constant 0 : index
    %127 = vector.load %arg11[%c1_65, %c0_66, %c0_67] : memref<9x128x32xbf16, #tpu.memory_space<vmem>>, vector<1x128x32xbf16>
    %128 = vector.shape_cast %127 : vector<1x128x32xbf16> to vector<128x32xbf16>
    %cst_68 = arith.constant dense<0.000000e+00> : vector<32x32xf32>
    %129 = tpu.matmul %126, %128, %cst_68 {dimension_numbers = #tpu.dot_dimension_numbers<[1], [0], [0], [1], [0, 0, 1, 1], [], []>} : vector<32x128xbf16>, vector<128x32xbf16>, vector<32x32xf32> -> vector<32x32xf32>
    %130 = arith.addf %124, %129 : vector<32x32xf32>
    %131 = vector.extract_strided_slice %117 {offsets = [64, 0], sizes = [32, 128], strides = [1, 1]} : vector<288x128xf32> to vector<32x128xf32>
    %132 = arith.truncf %131 : vector<32x128xf32> to vector<32x128xbf16>
    %c2_69 = arith.constant 2 : index
    %c0_70 = arith.constant 0 : index
    %c0_71 = arith.constant 0 : index
    %133 = vector.load %arg11[%c2_69, %c0_70, %c0_71] : memref<9x128x32xbf16, #tpu.memory_space<vmem>>, vector<1x128x32xbf16>
    %134 = vector.shape_cast %133 : vector<1x128x32xbf16> to vector<128x32xbf16>
    %cst_72 = arith.constant dense<0.000000e+00> : vector<32x32xf32>
    %135 = tpu.matmul %132, %134, %cst_72 {dimension_numbers = #tpu.dot_dimension_numbers<[1], [0], [0], [1], [0, 0, 1, 1], [], []>} : vector<32x128xbf16>, vector<128x32xbf16>, vector<32x32xf32> -> vector<32x32xf32>
    %136 = arith.addf %130, %135 : vector<32x32xf32>
    %137 = vector.extract_strided_slice %117 {offsets = [96, 0], sizes = [32, 128], strides = [1, 1]} : vector<288x128xf32> to vector<32x128xf32>
    %138 = arith.truncf %137 : vector<32x128xf32> to vector<32x128xbf16>
    %c3_73 = arith.constant 3 : index
    %c0_74 = arith.constant 0 : index
    %c0_75 = arith.constant 0 : index
    %139 = vector.load %arg11[%c3_73, %c0_74, %c0_75] : memref<9x128x32xbf16, #tpu.memory_space<vmem>>, vector<1x128x32xbf16>
    %140 = vector.shape_cast %139 : vector<1x128x32xbf16> to vector<128x32xbf16>
    %cst_76 = arith.constant dense<0.000000e+00> : vector<32x32xf32>
    %141 = tpu.matmul %138, %140, %cst_76 {dimension_numbers = #tpu.dot_dimension_numbers<[1], [0], [0], [1], [0, 0, 1, 1], [], []>} : vector<32x128xbf16>, vector<128x32xbf16>, vector<32x32xf32> -> vector<32x32xf32>
    %142 = arith.addf %136, %141 : vector<32x32xf32>
    %143 = vector.extract_strided_slice %117 {offsets = [128, 0], sizes = [32, 128], strides = [1, 1]} : vector<288x128xf32> to vector<32x128xf32>
    %144 = arith.truncf %143 : vector<32x128xf32> to vector<32x128xbf16>
    %c4_77 = arith.constant 4 : index
    %c0_78 = arith.constant 0 : index
    %c0_79 = arith.constant 0 : index
    %145 = vector.load %arg11[%c4_77, %c0_78, %c0_79] : memref<9x128x32xbf16, #tpu.memory_space<vmem>>, vector<1x128x32xbf16>
    %146 = vector.shape_cast %145 : vector<1x128x32xbf16> to vector<128x32xbf16>
    %cst_80 = arith.constant dense<0.000000e+00> : vector<32x32xf32>
    %147 = tpu.matmul %144, %146, %cst_80 {dimension_numbers = #tpu.dot_dimension_numbers<[1], [0], [0], [1], [0, 0, 1, 1], [], []>} : vector<32x128xbf16>, vector<128x32xbf16>, vector<32x32xf32> -> vector<32x32xf32>
    %148 = arith.addf %142, %147 : vector<32x32xf32>
    %149 = vector.extract_strided_slice %117 {offsets = [160, 0], sizes = [32, 128], strides = [1, 1]} : vector<288x128xf32> to vector<32x128xf32>
    %150 = arith.truncf %149 : vector<32x128xf32> to vector<32x128xbf16>
    %c5_81 = arith.constant 5 : index
    %c0_82 = arith.constant 0 : index
    %c0_83 = arith.constant 0 : index
    %151 = vector.load %arg11[%c5_81, %c0_82, %c0_83] : memref<9x128x32xbf16, #tpu.memory_space<vmem>>, vector<1x128x32xbf16>
    %152 = vector.shape_cast %151 : vector<1x128x32xbf16> to vector<128x32xbf16>
    %cst_84 = arith.constant dense<0.000000e+00> : vector<32x32xf32>
    %153 = tpu.matmul %150, %152, %cst_84 {dimension_numbers = #tpu.dot_dimension_numbers<[1], [0], [0], [1], [0, 0, 1, 1], [], []>} : vector<32x128xbf16>, vector<128x32xbf16>, vector<32x32xf32> -> vector<32x32xf32>
    %154 = arith.addf %148, %153 : vector<32x32xf32>
    %155 = vector.extract_strided_slice %117 {offsets = [192, 0], sizes = [32, 128], strides = [1, 1]} : vector<288x128xf32> to vector<32x128xf32>
    %156 = arith.truncf %155 : vector<32x128xf32> to vector<32x128xbf16>
    %c6_85 = arith.constant 6 : index
    %c0_86 = arith.constant 0 : index
    %c0_87 = arith.constant 0 : index
    %157 = vector.load %arg11[%c6_85, %c0_86, %c0_87] : memref<9x128x32xbf16, #tpu.memory_space<vmem>>, vector<1x128x32xbf16>
    %158 = vector.shape_cast %157 : vector<1x128x32xbf16> to vector<128x32xbf16>
    %cst_88 = arith.constant dense<0.000000e+00> : vector<32x32xf32>
    %159 = tpu.matmul %156, %158, %cst_88 {dimension_numbers = #tpu.dot_dimension_numbers<[1], [0], [0], [1], [0, 0, 1, 1], [], []>} : vector<32x128xbf16>, vector<128x32xbf16>, vector<32x32xf32> -> vector<32x32xf32>
    %160 = arith.addf %154, %159 : vector<32x32xf32>
    %161 = vector.extract_strided_slice %117 {offsets = [224, 0], sizes = [32, 128], strides = [1, 1]} : vector<288x128xf32> to vector<32x128xf32>
    %162 = arith.truncf %161 : vector<32x128xf32> to vector<32x128xbf16>
    %c7_89 = arith.constant 7 : index
    %c0_90 = arith.constant 0 : index
    %c0_91 = arith.constant 0 : index
    %163 = vector.load %arg11[%c7_89, %c0_90, %c0_91] : memref<9x128x32xbf16, #tpu.memory_space<vmem>>, vector<1x128x32xbf16>
    %164 = vector.shape_cast %163 : vector<1x128x32xbf16> to vector<128x32xbf16>
    %cst_92 = arith.constant dense<0.000000e+00> : vector<32x32xf32>
    %165 = tpu.matmul %162, %164, %cst_92 {dimension_numbers = #tpu.dot_dimension_numbers<[1], [0], [0], [1], [0, 0, 1, 1], [], []>} : vector<32x128xbf16>, vector<128x32xbf16>, vector<32x32xf32> -> vector<32x32xf32>
    %166 = arith.addf %160, %165 : vector<32x32xf32>
    %167 = vector.extract_strided_slice %117 {offsets = [256, 0], sizes = [32, 128], strides = [1, 1]} : vector<288x128xf32> to vector<32x128xf32>
    %168 = arith.truncf %167 : vector<32x128xf32> to vector<32x128xbf16>
    %c8_93 = arith.constant 8 : index
    %c0_94 = arith.constant 0 : index
    %c0_95 = arith.constant 0 : index
    %169 = vector.load %arg11[%c8_93, %c0_94, %c0_95] : memref<9x128x32xbf16, #tpu.memory_space<vmem>>, vector<1x128x32xbf16>
    %170 = vector.shape_cast %169 : vector<1x128x32xbf16> to vector<128x32xbf16>
    %cst_96 = arith.constant dense<0.000000e+00> : vector<32x32xf32>
    %171 = tpu.matmul %168, %170, %cst_96 {dimension_numbers = #tpu.dot_dimension_numbers<[1], [0], [0], [1], [0, 0, 1, 1], [], []>} : vector<32x128xbf16>, vector<128x32xbf16>, vector<32x32xf32> -> vector<32x32xf32>
    %172 = arith.addf %166, %171 : vector<32x32xf32>
    %c0_97 = arith.constant 0 : index
    %c0_98 = arith.constant 0 : index
    %173 = vector.load %arg9[%c0_97, %c0_98] : memref<32x1xf32, #tpu.memory_space<vmem>>, vector<32x1xf32>
    %c0_99 = arith.constant 0 : index
    %c0_100 = arith.constant 0 : index
    %174 = vector.load %arg10[%c0_99, %c0_100] : memref<32x1xf32, #tpu.memory_space<vmem>>, vector<32x1xf32>
    %cst_101 = arith.constant dense<0.000000e+00> : vector<32xf32>
    %175 = vector.multi_reduction <add>, %172, %cst_101 [1] : vector<32x32xf32> to vector<32xf32>
    %176 = vector.shape_cast %175 : vector<32xf32> to vector<32x1xf32>
    %cst_102 = arith.constant 3.200000e+01 : f32
    %177 = vector.broadcast %cst_102 : f32 to vector<32x1xf32>
    %178 = arith.divf %176, %177 : vector<32x1xf32>
    %179 = arith.mulf %172, %172 : vector<32x32xf32>
    %cst_103 = arith.constant dense<0.000000e+00> : vector<32xf32>
    %180 = vector.multi_reduction <add>, %179, %cst_103 [1] : vector<32x32xf32> to vector<32xf32>
    %181 = vector.shape_cast %180 : vector<32xf32> to vector<32x1xf32>
    %cst_104 = arith.constant 3.200000e+01 : f32
    %182 = vector.broadcast %cst_104 : f32 to vector<32x1xf32>
    %183 = arith.divf %181, %182 : vector<32x1xf32>
    %184 = arith.mulf %178, %178 : vector<32x1xf32>
    %185 = arith.subf %183, %184 : vector<32x1xf32>
    %cst_105 = arith.constant 0.000000e+00 : f32
    %186 = vector.broadcast %cst_105 : f32 to vector<32x1xf32>
    %187 = arith.maximumf %185, %186 : vector<32x1xf32>
    %188 = vector.broadcast %178 : vector<32x1xf32> to vector<32x32xf32>
    %189 = arith.subf %172, %188 : vector<32x32xf32>
    %cst_106 = arith.constant 9.99999974E-6 : f32
    %190 = vector.broadcast %cst_106 : f32 to vector<32x1xf32>
    %191 = arith.addf %187, %190 : vector<32x1xf32>
    %192 = math.rsqrt %191 : vector<32x1xf32>
    %193 = arith.mulf %173, %192 : vector<32x1xf32>
    %194 = vector.broadcast %193 : vector<32x1xf32> to vector<32x32xf32>
    %195 = arith.mulf %189, %194 : vector<32x32xf32>
    %196 = vector.broadcast %174 : vector<32x1xf32> to vector<32x32xf32>
    %197 = arith.addf %195, %196 : vector<32x32xf32>
    %cst_107 = arith.constant 0.000000e+00 : f32
    %198 = vector.broadcast %cst_107 : f32 to vector<32x32xf32>
    %199 = arith.maximumf %197, %198 : vector<32x32xf32>
    %200 = arith.truncf %199 : vector<32x32xf32> to vector<32x32xbf16>
    %c0_108 = arith.constant 0 : index
    %c0_109 = arith.constant 0 : index
    %c0_110 = arith.constant 0 : index
    %201 = vector.load %arg13[%c0_108, %c0_109, %c0_110] : memref<6x288x32xbf16, #tpu.memory_space<vmem>>, vector<1x288x32xbf16>
    %202 = vector.shape_cast %201 : vector<1x288x32xbf16> to vector<288x32xbf16>
    %cst_111 = arith.constant dense<0.000000e+00> : vector<288x32xf32>
    %203 = tpu.matmul %202, %200, %cst_111 {dimension_numbers = #tpu.dot_dimension_numbers<[1], [0], [0], [1], [0, 0, 1, 1], [], []>} : vector<288x32xbf16>, vector<32x32xbf16>, vector<288x32xf32> -> vector<288x32xf32>
    %cst_112 = arith.constant 0.000000e+00 : f32
    %204 = vector.broadcast %cst_112 : f32 to vector<32x32xf32>
    %205 = vector.extract_strided_slice %203 {offsets = [0, 0], sizes = [32, 32], strides = [1, 1]} : vector<288x32xf32> to vector<32x32xf32>
    %206 = arith.truncf %205 : vector<32x32xf32> to vector<32x32xbf16>
    %c0_113 = arith.constant 0 : index
    %c0_114 = arith.constant 0 : index
    %c0_115 = arith.constant 0 : index
    %207 = vector.load %arg12[%c0_113, %c0_114, %c0_115] : memref<9x32x32xbf16, #tpu.memory_space<vmem>>, vector<1x32x32xbf16>
    %208 = vector.shape_cast %207 : vector<1x32x32xbf16> to vector<32x32xbf16>
    %cst_116 = arith.constant dense<0.000000e+00> : vector<32x32xf32>
    %209 = tpu.matmul %206, %208, %cst_116 {dimension_numbers = #tpu.dot_dimension_numbers<[1], [0], [0], [1], [0, 0, 1, 1], [], []>} : vector<32x32xbf16>, vector<32x32xbf16>, vector<32x32xf32> -> vector<32x32xf32>
    %210 = arith.addf %204, %209 : vector<32x32xf32>
    %211 = vector.extract_strided_slice %203 {offsets = [32, 0], sizes = [32, 32], strides = [1, 1]} : vector<288x32xf32> to vector<32x32xf32>
    %212 = arith.truncf %211 : vector<32x32xf32> to vector<32x32xbf16>
    %c1_117 = arith.constant 1 : index
    %c0_118 = arith.constant 0 : index
    %c0_119 = arith.constant 0 : index
    %213 = vector.load %arg12[%c1_117, %c0_118, %c0_119] : memref<9x32x32xbf16, #tpu.memory_space<vmem>>, vector<1x32x32xbf16>
    %214 = vector.shape_cast %213 : vector<1x32x32xbf16> to vector<32x32xbf16>
    %cst_120 = arith.constant dense<0.000000e+00> : vector<32x32xf32>
    %215 = tpu.matmul %212, %214, %cst_120 {dimension_numbers = #tpu.dot_dimension_numbers<[1], [0], [0], [1], [0, 0, 1, 1], [], []>} : vector<32x32xbf16>, vector<32x32xbf16>, vector<32x32xf32> -> vector<32x32xf32>
    %216 = arith.addf %210, %215 : vector<32x32xf32>
    %217 = vector.extract_strided_slice %203 {offsets = [64, 0], sizes = [32, 32], strides = [1, 1]} : vector<288x32xf32> to vector<32x32xf32>
    %218 = arith.truncf %217 : vector<32x32xf32> to vector<32x32xbf16>
    %c2_121 = arith.constant 2 : index
    %c0_122 = arith.constant 0 : index
    %c0_123 = arith.constant 0 : index
    %219 = vector.load %arg12[%c2_121, %c0_122, %c0_123] : memref<9x32x32xbf16, #tpu.memory_space<vmem>>, vector<1x32x32xbf16>
    %220 = vector.shape_cast %219 : vector<1x32x32xbf16> to vector<32x32xbf16>
    %cst_124 = arith.constant dense<0.000000e+00> : vector<32x32xf32>
    %221 = tpu.matmul %218, %220, %cst_124 {dimension_numbers = #tpu.dot_dimension_numbers<[1], [0], [0], [1], [0, 0, 1, 1], [], []>} : vector<32x32xbf16>, vector<32x32xbf16>, vector<32x32xf32> -> vector<32x32xf32>
    %222 = arith.addf %216, %221 : vector<32x32xf32>
    %223 = vector.extract_strided_slice %203 {offsets = [96, 0], sizes = [32, 32], strides = [1, 1]} : vector<288x32xf32> to vector<32x32xf32>
    %224 = arith.truncf %223 : vector<32x32xf32> to vector<32x32xbf16>
    %c3_125 = arith.constant 3 : index
    %c0_126 = arith.constant 0 : index
    %c0_127 = arith.constant 0 : index
    %225 = vector.load %arg12[%c3_125, %c0_126, %c0_127] : memref<9x32x32xbf16, #tpu.memory_space<vmem>>, vector<1x32x32xbf16>
    %226 = vector.shape_cast %225 : vector<1x32x32xbf16> to vector<32x32xbf16>
    %cst_128 = arith.constant dense<0.000000e+00> : vector<32x32xf32>
    %227 = tpu.matmul %224, %226, %cst_128 {dimension_numbers = #tpu.dot_dimension_numbers<[1], [0], [0], [1], [0, 0, 1, 1], [], []>} : vector<32x32xbf16>, vector<32x32xbf16>, vector<32x32xf32> -> vector<32x32xf32>
    %228 = arith.addf %222, %227 : vector<32x32xf32>
    %229 = vector.extract_strided_slice %203 {offsets = [128, 0], sizes = [32, 32], strides = [1, 1]} : vector<288x32xf32> to vector<32x32xf32>
    %230 = arith.truncf %229 : vector<32x32xf32> to vector<32x32xbf16>
    %c4_129 = arith.constant 4 : index
    %c0_130 = arith.constant 0 : index
    %c0_131 = arith.constant 0 : index
    %231 = vector.load %arg12[%c4_129, %c0_130, %c0_131] : memref<9x32x32xbf16, #tpu.memory_space<vmem>>, vector<1x32x32xbf16>
    %232 = vector.shape_cast %231 : vector<1x32x32xbf16> to vector<32x32xbf16>
    %cst_132 = arith.constant dense<0.000000e+00> : vector<32x32xf32>
    %233 = tpu.matmul %230, %232, %cst_132 {dimension_numbers = #tpu.dot_dimension_numbers<[1], [0], [0], [1], [0, 0, 1, 1], [], []>} : vector<32x32xbf16>, vector<32x32xbf16>, vector<32x32xf32> -> vector<32x32xf32>
    %234 = arith.addf %228, %233 : vector<32x32xf32>
    %235 = vector.extract_strided_slice %203 {offsets = [160, 0], sizes = [32, 32], strides = [1, 1]} : vector<288x32xf32> to vector<32x32xf32>
    %236 = arith.truncf %235 : vector<32x32xf32> to vector<32x32xbf16>
    %c5_133 = arith.constant 5 : index
    %c0_134 = arith.constant 0 : index
    %c0_135 = arith.constant 0 : index
    %237 = vector.load %arg12[%c5_133, %c0_134, %c0_135] : memref<9x32x32xbf16, #tpu.memory_space<vmem>>, vector<1x32x32xbf16>
    %238 = vector.shape_cast %237 : vector<1x32x32xbf16> to vector<32x32xbf16>
    %cst_136 = arith.constant dense<0.000000e+00> : vector<32x32xf32>
    %239 = tpu.matmul %236, %238, %cst_136 {dimension_numbers = #tpu.dot_dimension_numbers<[1], [0], [0], [1], [0, 0, 1, 1], [], []>} : vector<32x32xbf16>, vector<32x32xbf16>, vector<32x32xf32> -> vector<32x32xf32>
    %240 = arith.addf %234, %239 : vector<32x32xf32>
    %241 = vector.extract_strided_slice %203 {offsets = [192, 0], sizes = [32, 32], strides = [1, 1]} : vector<288x32xf32> to vector<32x32xf32>
    %242 = arith.truncf %241 : vector<32x32xf32> to vector<32x32xbf16>
    %c6_137 = arith.constant 6 : index
    %c0_138 = arith.constant 0 : index
    %c0_139 = arith.constant 0 : index
    %243 = vector.load %arg12[%c6_137, %c0_138, %c0_139] : memref<9x32x32xbf16, #tpu.memory_space<vmem>>, vector<1x32x32xbf16>
    %244 = vector.shape_cast %243 : vector<1x32x32xbf16> to vector<32x32xbf16>
    %cst_140 = arith.constant dense<0.000000e+00> : vector<32x32xf32>
    %245 = tpu.matmul %242, %244, %cst_140 {dimension_numbers = #tpu.dot_dimension_numbers<[1], [0], [0], [1], [0, 0, 1, 1], [], []>} : vector<32x32xbf16>, vector<32x32xbf16>, vector<32x32xf32> -> vector<32x32xf32>
    %246 = arith.addf %240, %245 : vector<32x32xf32>
    %247 = vector.extract_strided_slice %203 {offsets = [224, 0], sizes = [32, 32], strides = [1, 1]} : vector<288x32xf32> to vector<32x32xf32>
    %248 = arith.truncf %247 : vector<32x32xf32> to vector<32x32xbf16>
    %c7_141 = arith.constant 7 : index
    %c0_142 = arith.constant 0 : index
    %c0_143 = arith.constant 0 : index
    %249 = vector.load %arg12[%c7_141, %c0_142, %c0_143] : memref<9x32x32xbf16, #tpu.memory_space<vmem>>, vector<1x32x32xbf16>
    %250 = vector.shape_cast %249 : vector<1x32x32xbf16> to vector<32x32xbf16>
    %cst_144 = arith.constant dense<0.000000e+00> : vector<32x32xf32>
    %251 = tpu.matmul %248, %250, %cst_144 {dimension_numbers = #tpu.dot_dimension_numbers<[1], [0], [0], [1], [0, 0, 1, 1], [], []>} : vector<32x32xbf16>, vector<32x32xbf16>, vector<32x32xf32> -> vector<32x32xf32>
    %252 = arith.addf %246, %251 : vector<32x32xf32>
    %253 = vector.extract_strided_slice %203 {offsets = [256, 0], sizes = [32, 32], strides = [1, 1]} : vector<288x32xf32> to vector<32x32xf32>
    %254 = arith.truncf %253 : vector<32x32xf32> to vector<32x32xbf16>
    %c8_145 = arith.constant 8 : index
    %c0_146 = arith.constant 0 : index
    %c0_147 = arith.constant 0 : index
    %255 = vector.load %arg12[%c8_145, %c0_146, %c0_147] : memref<9x32x32xbf16, #tpu.memory_space<vmem>>, vector<1x32x32xbf16>
    %256 = vector.shape_cast %255 : vector<1x32x32xbf16> to vector<32x32xbf16>
    %cst_148 = arith.constant dense<0.000000e+00> : vector<32x32xf32>
    %257 = tpu.matmul %254, %256, %cst_148 {dimension_numbers = #tpu.dot_dimension_numbers<[1], [0], [0], [1], [0, 0, 1, 1], [], []>} : vector<32x32xbf16>, vector<32x32xbf16>, vector<32x32xf32> -> vector<32x32xf32>
    %258 = arith.addf %252, %257 : vector<32x32xf32>
    %c0_149 = arith.constant 0 : index
    %c0_150 = arith.constant 0 : index
    %c0_151 = arith.constant 0 : index
    %259 = vector.load %arg14[%c0_149, %c0_150, %c0_151] : memref<6x32x1xf32, #tpu.memory_space<vmem>>, vector<1x32x1xf32>
    %260 = vector.shape_cast %259 : vector<1x32x1xf32> to vector<32x1xf32>
    %c0_152 = arith.constant 0 : index
    %c0_153 = arith.constant 0 : index
    %c0_154 = arith.constant 0 : index
    %261 = vector.load %arg15[%c0_152, %c0_153, %c0_154] : memref<6x32x1xf32, #tpu.memory_space<vmem>>, vector<1x32x1xf32>
    %262 = vector.shape_cast %261 : vector<1x32x1xf32> to vector<32x1xf32>
    %cst_155 = arith.constant dense<0.000000e+00> : vector<32xf32>
    %263 = vector.multi_reduction <add>, %258, %cst_155 [1] : vector<32x32xf32> to vector<32xf32>
    %264 = vector.shape_cast %263 : vector<32xf32> to vector<32x1xf32>
    %cst_156 = arith.constant 3.200000e+01 : f32
    %265 = vector.broadcast %cst_156 : f32 to vector<32x1xf32>
    %266 = arith.divf %264, %265 : vector<32x1xf32>
    %267 = arith.mulf %258, %258 : vector<32x32xf32>
    %cst_157 = arith.constant dense<0.000000e+00> : vector<32xf32>
    %268 = vector.multi_reduction <add>, %267, %cst_157 [1] : vector<32x32xf32> to vector<32xf32>
    %269 = vector.shape_cast %268 : vector<32xf32> to vector<32x1xf32>
    %cst_158 = arith.constant 3.200000e+01 : f32
    %270 = vector.broadcast %cst_158 : f32 to vector<32x1xf32>
    %271 = arith.divf %269, %270 : vector<32x1xf32>
    %272 = arith.mulf %266, %266 : vector<32x1xf32>
    %273 = arith.subf %271, %272 : vector<32x1xf32>
    %cst_159 = arith.constant 0.000000e+00 : f32
    %274 = vector.broadcast %cst_159 : f32 to vector<32x1xf32>
    %275 = arith.maximumf %273, %274 : vector<32x1xf32>
    %276 = vector.broadcast %266 : vector<32x1xf32> to vector<32x32xf32>
    %277 = arith.subf %258, %276 : vector<32x32xf32>
    %cst_160 = arith.constant 9.99999974E-6 : f32
    %278 = vector.broadcast %cst_160 : f32 to vector<32x1xf32>
    %279 = arith.addf %275, %278 : vector<32x1xf32>
    %280 = math.rsqrt %279 : vector<32x1xf32>
    %281 = arith.mulf %260, %280 : vector<32x1xf32>
    %282 = vector.broadcast %281 : vector<32x1xf32> to vector<32x32xf32>
    %283 = arith.mulf %277, %282 : vector<32x32xf32>
    %284 = vector.broadcast %262 : vector<32x1xf32> to vector<32x32xf32>
    %285 = arith.addf %283, %284 : vector<32x32xf32>
    %cst_161 = arith.constant 0.000000e+00 : f32
    %286 = vector.broadcast %cst_161 : f32 to vector<32x32xf32>
    %287 = arith.maximumf %285, %286 : vector<32x32xf32>
    %288 = arith.truncf %287 : vector<32x32xf32> to vector<32x32xbf16>
    %c1_162 = arith.constant 1 : index
    %c0_163 = arith.constant 0 : index
    %c0_164 = arith.constant 0 : index
    %289 = vector.load %arg13[%c1_162, %c0_163, %c0_164] : memref<6x288x32xbf16, #tpu.memory_space<vmem>>, vector<1x288x32xbf16>
    %290 = vector.shape_cast %289 : vector<1x288x32xbf16> to vector<288x32xbf16>
    %cst_165 = arith.constant dense<0.000000e+00> : vector<288x32xf32>
    %291 = tpu.matmul %290, %288, %cst_165 {dimension_numbers = #tpu.dot_dimension_numbers<[1], [0], [0], [1], [0, 0, 1, 1], [], []>} : vector<288x32xbf16>, vector<32x32xbf16>, vector<288x32xf32> -> vector<288x32xf32>
    %cst_166 = arith.constant 0.000000e+00 : f32
    %292 = vector.broadcast %cst_166 : f32 to vector<32x32xf32>
    %293 = vector.extract_strided_slice %291 {offsets = [0, 0], sizes = [32, 32], strides = [1, 1]} : vector<288x32xf32> to vector<32x32xf32>
    %294 = arith.truncf %293 : vector<32x32xf32> to vector<32x32xbf16>
    %c0_167 = arith.constant 0 : index
    %c0_168 = arith.constant 0 : index
    %c0_169 = arith.constant 0 : index
    %295 = vector.load %arg12[%c0_167, %c0_168, %c0_169] : memref<9x32x32xbf16, #tpu.memory_space<vmem>>, vector<1x32x32xbf16>
    %296 = vector.shape_cast %295 : vector<1x32x32xbf16> to vector<32x32xbf16>
    %cst_170 = arith.constant dense<0.000000e+00> : vector<32x32xf32>
    %297 = tpu.matmul %294, %296, %cst_170 {dimension_numbers = #tpu.dot_dimension_numbers<[1], [0], [0], [1], [0, 0, 1, 1], [], []>} : vector<32x32xbf16>, vector<32x32xbf16>, vector<32x32xf32> -> vector<32x32xf32>
    %298 = arith.addf %292, %297 : vector<32x32xf32>
    %299 = vector.extract_strided_slice %291 {offsets = [32, 0], sizes = [32, 32], strides = [1, 1]} : vector<288x32xf32> to vector<32x32xf32>
    %300 = arith.truncf %299 : vector<32x32xf32> to vector<32x32xbf16>
    %c1_171 = arith.constant 1 : index
    %c0_172 = arith.constant 0 : index
    %c0_173 = arith.constant 0 : index
    %301 = vector.load %arg12[%c1_171, %c0_172, %c0_173] : memref<9x32x32xbf16, #tpu.memory_space<vmem>>, vector<1x32x32xbf16>
    %302 = vector.shape_cast %301 : vector<1x32x32xbf16> to vector<32x32xbf16>
    %cst_174 = arith.constant dense<0.000000e+00> : vector<32x32xf32>
    %303 = tpu.matmul %300, %302, %cst_174 {dimension_numbers = #tpu.dot_dimension_numbers<[1], [0], [0], [1], [0, 0, 1, 1], [], []>} : vector<32x32xbf16>, vector<32x32xbf16>, vector<32x32xf32> -> vector<32x32xf32>
    %304 = arith.addf %298, %303 : vector<32x32xf32>
    %305 = vector.extract_strided_slice %291 {offsets = [64, 0], sizes = [32, 32], strides = [1, 1]} : vector<288x32xf32> to vector<32x32xf32>
    %306 = arith.truncf %305 : vector<32x32xf32> to vector<32x32xbf16>
    %c2_175 = arith.constant 2 : index
    %c0_176 = arith.constant 0 : index
    %c0_177 = arith.constant 0 : index
    %307 = vector.load %arg12[%c2_175, %c0_176, %c0_177] : memref<9x32x32xbf16, #tpu.memory_space<vmem>>, vector<1x32x32xbf16>
    %308 = vector.shape_cast %307 : vector<1x32x32xbf16> to vector<32x32xbf16>
    %cst_178 = arith.constant dense<0.000000e+00> : vector<32x32xf32>
    %309 = tpu.matmul %306, %308, %cst_178 {dimension_numbers = #tpu.dot_dimension_numbers<[1], [0], [0], [1], [0, 0, 1, 1], [], []>} : vector<32x32xbf16>, vector<32x32xbf16>, vector<32x32xf32> -> vector<32x32xf32>
    %310 = arith.addf %304, %309 : vector<32x32xf32>
    %311 = vector.extract_strided_slice %291 {offsets = [96, 0], sizes = [32, 32], strides = [1, 1]} : vector<288x32xf32> to vector<32x32xf32>
    %312 = arith.truncf %311 : vector<32x32xf32> to vector<32x32xbf16>
    %c3_179 = arith.constant 3 : index
    %c0_180 = arith.constant 0 : index
    %c0_181 = arith.constant 0 : index
    %313 = vector.load %arg12[%c3_179, %c0_180, %c0_181] : memref<9x32x32xbf16, #tpu.memory_space<vmem>>, vector<1x32x32xbf16>
    %314 = vector.shape_cast %313 : vector<1x32x32xbf16> to vector<32x32xbf16>
    %cst_182 = arith.constant dense<0.000000e+00> : vector<32x32xf32>
    %315 = tpu.matmul %312, %314, %cst_182 {dimension_numbers = #tpu.dot_dimension_numbers<[1], [0], [0], [1], [0, 0, 1, 1], [], []>} : vector<32x32xbf16>, vector<32x32xbf16>, vector<32x32xf32> -> vector<32x32xf32>
    %316 = arith.addf %310, %315 : vector<32x32xf32>
    %317 = vector.extract_strided_slice %291 {offsets = [128, 0], sizes = [32, 32], strides = [1, 1]} : vector<288x32xf32> to vector<32x32xf32>
    %318 = arith.truncf %317 : vector<32x32xf32> to vector<32x32xbf16>
    %c4_183 = arith.constant 4 : index
    %c0_184 = arith.constant 0 : index
    %c0_185 = arith.constant 0 : index
    %319 = vector.load %arg12[%c4_183, %c0_184, %c0_185] : memref<9x32x32xbf16, #tpu.memory_space<vmem>>, vector<1x32x32xbf16>
    %320 = vector.shape_cast %319 : vector<1x32x32xbf16> to vector<32x32xbf16>
    %cst_186 = arith.constant dense<0.000000e+00> : vector<32x32xf32>
    %321 = tpu.matmul %318, %320, %cst_186 {dimension_numbers = #tpu.dot_dimension_numbers<[1], [0], [0], [1], [0, 0, 1, 1], [], []>} : vector<32x32xbf16>, vector<32x32xbf16>, vector<32x32xf32> -> vector<32x32xf32>
    %322 = arith.addf %316, %321 : vector<32x32xf32>
    %323 = vector.extract_strided_slice %291 {offsets = [160, 0], sizes = [32, 32], strides = [1, 1]} : vector<288x32xf32> to vector<32x32xf32>
    %324 = arith.truncf %323 : vector<32x32xf32> to vector<32x32xbf16>
    %c5_187 = arith.constant 5 : index
    %c0_188 = arith.constant 0 : index
    %c0_189 = arith.constant 0 : index
    %325 = vector.load %arg12[%c5_187, %c0_188, %c0_189] : memref<9x32x32xbf16, #tpu.memory_space<vmem>>, vector<1x32x32xbf16>
    %326 = vector.shape_cast %325 : vector<1x32x32xbf16> to vector<32x32xbf16>
    %cst_190 = arith.constant dense<0.000000e+00> : vector<32x32xf32>
    %327 = tpu.matmul %324, %326, %cst_190 {dimension_numbers = #tpu.dot_dimension_numbers<[1], [0], [0], [1], [0, 0, 1, 1], [], []>} : vector<32x32xbf16>, vector<32x32xbf16>, vector<32x32xf32> -> vector<32x32xf32>
    %328 = arith.addf %322, %327 : vector<32x32xf32>
    %329 = vector.extract_strided_slice %291 {offsets = [192, 0], sizes = [32, 32], strides = [1, 1]} : vector<288x32xf32> to vector<32x32xf32>
    %330 = arith.truncf %329 : vector<32x32xf32> to vector<32x32xbf16>
    %c6_191 = arith.constant 6 : index
    %c0_192 = arith.constant 0 : index
    %c0_193 = arith.constant 0 : index
    %331 = vector.load %arg12[%c6_191, %c0_192, %c0_193] : memref<9x32x32xbf16, #tpu.memory_space<vmem>>, vector<1x32x32xbf16>
    %332 = vector.shape_cast %331 : vector<1x32x32xbf16> to vector<32x32xbf16>
    %cst_194 = arith.constant dense<0.000000e+00> : vector<32x32xf32>
    %333 = tpu.matmul %330, %332, %cst_194 {dimension_numbers = #tpu.dot_dimension_numbers<[1], [0], [0], [1], [0, 0, 1, 1], [], []>} : vector<32x32xbf16>, vector<32x32xbf16>, vector<32x32xf32> -> vector<32x32xf32>
    %334 = arith.addf %328, %333 : vector<32x32xf32>
    %335 = vector.extract_strided_slice %291 {offsets = [224, 0], sizes = [32, 32], strides = [1, 1]} : vector<288x32xf32> to vector<32x32xf32>
    %336 = arith.truncf %335 : vector<32x32xf32> to vector<32x32xbf16>
    %c7_195 = arith.constant 7 : index
    %c0_196 = arith.constant 0 : index
    %c0_197 = arith.constant 0 : index
    %337 = vector.load %arg12[%c7_195, %c0_196, %c0_197] : memref<9x32x32xbf16, #tpu.memory_space<vmem>>, vector<1x32x32xbf16>
    %338 = vector.shape_cast %337 : vector<1x32x32xbf16> to vector<32x32xbf16>
    %cst_198 = arith.constant dense<0.000000e+00> : vector<32x32xf32>
    %339 = tpu.matmul %336, %338, %cst_198 {dimension_numbers = #tpu.dot_dimension_numbers<[1], [0], [0], [1], [0, 0, 1, 1], [], []>} : vector<32x32xbf16>, vector<32x32xbf16>, vector<32x32xf32> -> vector<32x32xf32>
    %340 = arith.addf %334, %339 : vector<32x32xf32>
    %341 = vector.extract_strided_slice %291 {offsets = [256, 0], sizes = [32, 32], strides = [1, 1]} : vector<288x32xf32> to vector<32x32xf32>
    %342 = arith.truncf %341 : vector<32x32xf32> to vector<32x32xbf16>
    %c8_199 = arith.constant 8 : index
    %c0_200 = arith.constant 0 : index
    %c0_201 = arith.constant 0 : index
    %343 = vector.load %arg12[%c8_199, %c0_200, %c0_201] : memref<9x32x32xbf16, #tpu.memory_space<vmem>>, vector<1x32x32xbf16>
    %344 = vector.shape_cast %343 : vector<1x32x32xbf16> to vector<32x32xbf16>
    %cst_202 = arith.constant dense<0.000000e+00> : vector<32x32xf32>
    %345 = tpu.matmul %342, %344, %cst_202 {dimension_numbers = #tpu.dot_dimension_numbers<[1], [0], [0], [1], [0, 0, 1, 1], [], []>} : vector<32x32xbf16>, vector<32x32xbf16>, vector<32x32xf32> -> vector<32x32xf32>
    %346 = arith.addf %340, %345 : vector<32x32xf32>
    %c1_203 = arith.constant 1 : index
    %c0_204 = arith.constant 0 : index
    %c0_205 = arith.constant 0 : index
    %347 = vector.load %arg14[%c1_203, %c0_204, %c0_205] : memref<6x32x1xf32, #tpu.memory_space<vmem>>, vector<1x32x1xf32>
    %348 = vector.shape_cast %347 : vector<1x32x1xf32> to vector<32x1xf32>
    %c1_206 = arith.constant 1 : index
    %c0_207 = arith.constant 0 : index
    %c0_208 = arith.constant 0 : index
    %349 = vector.load %arg15[%c1_206, %c0_207, %c0_208] : memref<6x32x1xf32, #tpu.memory_space<vmem>>, vector<1x32x1xf32>
    %350 = vector.shape_cast %349 : vector<1x32x1xf32> to vector<32x1xf32>
    %cst_209 = arith.constant dense<0.000000e+00> : vector<32xf32>
    %351 = vector.multi_reduction <add>, %346, %cst_209 [1] : vector<32x32xf32> to vector<32xf32>
    %352 = vector.shape_cast %351 : vector<32xf32> to vector<32x1xf32>
    %cst_210 = arith.constant 3.200000e+01 : f32
    %353 = vector.broadcast %cst_210 : f32 to vector<32x1xf32>
    %354 = arith.divf %352, %353 : vector<32x1xf32>
    %355 = arith.mulf %346, %346 : vector<32x32xf32>
    %cst_211 = arith.constant dense<0.000000e+00> : vector<32xf32>
    %356 = vector.multi_reduction <add>, %355, %cst_211 [1] : vector<32x32xf32> to vector<32xf32>
    %357 = vector.shape_cast %356 : vector<32xf32> to vector<32x1xf32>
    %cst_212 = arith.constant 3.200000e+01 : f32
    %358 = vector.broadcast %cst_212 : f32 to vector<32x1xf32>
    %359 = arith.divf %357, %358 : vector<32x1xf32>
    %360 = arith.mulf %354, %354 : vector<32x1xf32>
    %361 = arith.subf %359, %360 : vector<32x1xf32>
    %cst_213 = arith.constant 0.000000e+00 : f32
    %362 = vector.broadcast %cst_213 : f32 to vector<32x1xf32>
    %363 = arith.maximumf %361, %362 : vector<32x1xf32>
    %364 = vector.broadcast %354 : vector<32x1xf32> to vector<32x32xf32>
    %365 = arith.subf %346, %364 : vector<32x32xf32>
    %cst_214 = arith.constant 9.99999974E-6 : f32
    %366 = vector.broadcast %cst_214 : f32 to vector<32x1xf32>
    %367 = arith.addf %363, %366 : vector<32x1xf32>
    %368 = math.rsqrt %367 : vector<32x1xf32>
    %369 = arith.mulf %348, %368 : vector<32x1xf32>
    %370 = vector.broadcast %369 : vector<32x1xf32> to vector<32x32xf32>
    %371 = arith.mulf %365, %370 : vector<32x32xf32>
    %372 = vector.broadcast %350 : vector<32x1xf32> to vector<32x32xf32>
    %373 = arith.addf %371, %372 : vector<32x32xf32>
    %374 = arith.addf %199, %373 : vector<32x32xf32>
    %375 = arith.truncf %374 : vector<32x32xf32> to vector<32x32xbf16>
    %c2_215 = arith.constant 2 : index
    %c0_216 = arith.constant 0 : index
    %c0_217 = arith.constant 0 : index
    %376 = vector.load %arg13[%c2_215, %c0_216, %c0_217] : memref<6x288x32xbf16, #tpu.memory_space<vmem>>, vector<1x288x32xbf16>
    %377 = vector.shape_cast %376 : vector<1x288x32xbf16> to vector<288x32xbf16>
    %cst_218 = arith.constant dense<0.000000e+00> : vector<288x32xf32>
    %378 = tpu.matmul %377, %375, %cst_218 {dimension_numbers = #tpu.dot_dimension_numbers<[1], [0], [0], [1], [0, 0, 1, 1], [], []>} : vector<288x32xbf16>, vector<32x32xbf16>, vector<288x32xf32> -> vector<288x32xf32>
    %cst_219 = arith.constant 0.000000e+00 : f32
    %379 = vector.broadcast %cst_219 : f32 to vector<32x32xf32>
    %380 = vector.extract_strided_slice %378 {offsets = [0, 0], sizes = [32, 32], strides = [1, 1]} : vector<288x32xf32> to vector<32x32xf32>
    %381 = arith.truncf %380 : vector<32x32xf32> to vector<32x32xbf16>
    %c0_220 = arith.constant 0 : index
    %c0_221 = arith.constant 0 : index
    %c0_222 = arith.constant 0 : index
    %382 = vector.load %arg12[%c0_220, %c0_221, %c0_222] : memref<9x32x32xbf16, #tpu.memory_space<vmem>>, vector<1x32x32xbf16>
    %383 = vector.shape_cast %382 : vector<1x32x32xbf16> to vector<32x32xbf16>
    %cst_223 = arith.constant dense<0.000000e+00> : vector<32x32xf32>
    %384 = tpu.matmul %381, %383, %cst_223 {dimension_numbers = #tpu.dot_dimension_numbers<[1], [0], [0], [1], [0, 0, 1, 1], [], []>} : vector<32x32xbf16>, vector<32x32xbf16>, vector<32x32xf32> -> vector<32x32xf32>
    %385 = arith.addf %379, %384 : vector<32x32xf32>
    %386 = vector.extract_strided_slice %378 {offsets = [32, 0], sizes = [32, 32], strides = [1, 1]} : vector<288x32xf32> to vector<32x32xf32>
    %387 = arith.truncf %386 : vector<32x32xf32> to vector<32x32xbf16>
    %c1_224 = arith.constant 1 : index
    %c0_225 = arith.constant 0 : index
    %c0_226 = arith.constant 0 : index
    %388 = vector.load %arg12[%c1_224, %c0_225, %c0_226] : memref<9x32x32xbf16, #tpu.memory_space<vmem>>, vector<1x32x32xbf16>
    %389 = vector.shape_cast %388 : vector<1x32x32xbf16> to vector<32x32xbf16>
    %cst_227 = arith.constant dense<0.000000e+00> : vector<32x32xf32>
    %390 = tpu.matmul %387, %389, %cst_227 {dimension_numbers = #tpu.dot_dimension_numbers<[1], [0], [0], [1], [0, 0, 1, 1], [], []>} : vector<32x32xbf16>, vector<32x32xbf16>, vector<32x32xf32> -> vector<32x32xf32>
    %391 = arith.addf %385, %390 : vector<32x32xf32>
    %392 = vector.extract_strided_slice %378 {offsets = [64, 0], sizes = [32, 32], strides = [1, 1]} : vector<288x32xf32> to vector<32x32xf32>
    %393 = arith.truncf %392 : vector<32x32xf32> to vector<32x32xbf16>
    %c2_228 = arith.constant 2 : index
    %c0_229 = arith.constant 0 : index
    %c0_230 = arith.constant 0 : index
    %394 = vector.load %arg12[%c2_228, %c0_229, %c0_230] : memref<9x32x32xbf16, #tpu.memory_space<vmem>>, vector<1x32x32xbf16>
    %395 = vector.shape_cast %394 : vector<1x32x32xbf16> to vector<32x32xbf16>
    %cst_231 = arith.constant dense<0.000000e+00> : vector<32x32xf32>
    %396 = tpu.matmul %393, %395, %cst_231 {dimension_numbers = #tpu.dot_dimension_numbers<[1], [0], [0], [1], [0, 0, 1, 1], [], []>} : vector<32x32xbf16>, vector<32x32xbf16>, vector<32x32xf32> -> vector<32x32xf32>
    %397 = arith.addf %391, %396 : vector<32x32xf32>
    %398 = vector.extract_strided_slice %378 {offsets = [96, 0], sizes = [32, 32], strides = [1, 1]} : vector<288x32xf32> to vector<32x32xf32>
    %399 = arith.truncf %398 : vector<32x32xf32> to vector<32x32xbf16>
    %c3_232 = arith.constant 3 : index
    %c0_233 = arith.constant 0 : index
    %c0_234 = arith.constant 0 : index
    %400 = vector.load %arg12[%c3_232, %c0_233, %c0_234] : memref<9x32x32xbf16, #tpu.memory_space<vmem>>, vector<1x32x32xbf16>
    %401 = vector.shape_cast %400 : vector<1x32x32xbf16> to vector<32x32xbf16>
    %cst_235 = arith.constant dense<0.000000e+00> : vector<32x32xf32>
    %402 = tpu.matmul %399, %401, %cst_235 {dimension_numbers = #tpu.dot_dimension_numbers<[1], [0], [0], [1], [0, 0, 1, 1], [], []>} : vector<32x32xbf16>, vector<32x32xbf16>, vector<32x32xf32> -> vector<32x32xf32>
    %403 = arith.addf %397, %402 : vector<32x32xf32>
    %404 = vector.extract_strided_slice %378 {offsets = [128, 0], sizes = [32, 32], strides = [1, 1]} : vector<288x32xf32> to vector<32x32xf32>
    %405 = arith.truncf %404 : vector<32x32xf32> to vector<32x32xbf16>
    %c4_236 = arith.constant 4 : index
    %c0_237 = arith.constant 0 : index
    %c0_238 = arith.constant 0 : index
    %406 = vector.load %arg12[%c4_236, %c0_237, %c0_238] : memref<9x32x32xbf16, #tpu.memory_space<vmem>>, vector<1x32x32xbf16>
    %407 = vector.shape_cast %406 : vector<1x32x32xbf16> to vector<32x32xbf16>
    %cst_239 = arith.constant dense<0.000000e+00> : vector<32x32xf32>
    %408 = tpu.matmul %405, %407, %cst_239 {dimension_numbers = #tpu.dot_dimension_numbers<[1], [0], [0], [1], [0, 0, 1, 1], [], []>} : vector<32x32xbf16>, vector<32x32xbf16>, vector<32x32xf32> -> vector<32x32xf32>
    %409 = arith.addf %403, %408 : vector<32x32xf32>
    %410 = vector.extract_strided_slice %378 {offsets = [160, 0], sizes = [32, 32], strides = [1, 1]} : vector<288x32xf32> to vector<32x32xf32>
    %411 = arith.truncf %410 : vector<32x32xf32> to vector<32x32xbf16>
    %c5_240 = arith.constant 5 : index
    %c0_241 = arith.constant 0 : index
    %c0_242 = arith.constant 0 : index
    %412 = vector.load %arg12[%c5_240, %c0_241, %c0_242] : memref<9x32x32xbf16, #tpu.memory_space<vmem>>, vector<1x32x32xbf16>
    %413 = vector.shape_cast %412 : vector<1x32x32xbf16> to vector<32x32xbf16>
    %cst_243 = arith.constant dense<0.000000e+00> : vector<32x32xf32>
    %414 = tpu.matmul %411, %413, %cst_243 {dimension_numbers = #tpu.dot_dimension_numbers<[1], [0], [0], [1], [0, 0, 1, 1], [], []>} : vector<32x32xbf16>, vector<32x32xbf16>, vector<32x32xf32> -> vector<32x32xf32>
    %415 = arith.addf %409, %414 : vector<32x32xf32>
    %416 = vector.extract_strided_slice %378 {offsets = [192, 0], sizes = [32, 32], strides = [1, 1]} : vector<288x32xf32> to vector<32x32xf32>
    %417 = arith.truncf %416 : vector<32x32xf32> to vector<32x32xbf16>
    %c6_244 = arith.constant 6 : index
    %c0_245 = arith.constant 0 : index
    %c0_246 = arith.constant 0 : index
    %418 = vector.load %arg12[%c6_244, %c0_245, %c0_246] : memref<9x32x32xbf16, #tpu.memory_space<vmem>>, vector<1x32x32xbf16>
    %419 = vector.shape_cast %418 : vector<1x32x32xbf16> to vector<32x32xbf16>
    %cst_247 = arith.constant dense<0.000000e+00> : vector<32x32xf32>
    %420 = tpu.matmul %417, %419, %cst_247 {dimension_numbers = #tpu.dot_dimension_numbers<[1], [0], [0], [1], [0, 0, 1, 1], [], []>} : vector<32x32xbf16>, vector<32x32xbf16>, vector<32x32xf32> -> vector<32x32xf32>
    %421 = arith.addf %415, %420 : vector<32x32xf32>
    %422 = vector.extract_strided_slice %378 {offsets = [224, 0], sizes = [32, 32], strides = [1, 1]} : vector<288x32xf32> to vector<32x32xf32>
    %423 = arith.truncf %422 : vector<32x32xf32> to vector<32x32xbf16>
    %c7_248 = arith.constant 7 : index
    %c0_249 = arith.constant 0 : index
    %c0_250 = arith.constant 0 : index
    %424 = vector.load %arg12[%c7_248, %c0_249, %c0_250] : memref<9x32x32xbf16, #tpu.memory_space<vmem>>, vector<1x32x32xbf16>
    %425 = vector.shape_cast %424 : vector<1x32x32xbf16> to vector<32x32xbf16>
    %cst_251 = arith.constant dense<0.000000e+00> : vector<32x32xf32>
    %426 = tpu.matmul %423, %425, %cst_251 {dimension_numbers = #tpu.dot_dimension_numbers<[1], [0], [0], [1], [0, 0, 1, 1], [], []>} : vector<32x32xbf16>, vector<32x32xbf16>, vector<32x32xf32> -> vector<32x32xf32>
    %427 = arith.addf %421, %426 : vector<32x32xf32>
    %428 = vector.extract_strided_slice %378 {offsets = [256, 0], sizes = [32, 32], strides = [1, 1]} : vector<288x32xf32> to vector<32x32xf32>
    %429 = arith.truncf %428 : vector<32x32xf32> to vector<32x32xbf16>
    %c8_252 = arith.constant 8 : index
    %c0_253 = arith.constant 0 : index
    %c0_254 = arith.constant 0 : index
    %430 = vector.load %arg12[%c8_252, %c0_253, %c0_254] : memref<9x32x32xbf16, #tpu.memory_space<vmem>>, vector<1x32x32xbf16>
    %431 = vector.shape_cast %430 : vector<1x32x32xbf16> to vector<32x32xbf16>
    %cst_255 = arith.constant dense<0.000000e+00> : vector<32x32xf32>
    %432 = tpu.matmul %429, %431, %cst_255 {dimension_numbers = #tpu.dot_dimension_numbers<[1], [0], [0], [1], [0, 0, 1, 1], [], []>} : vector<32x32xbf16>, vector<32x32xbf16>, vector<32x32xf32> -> vector<32x32xf32>
    %433 = arith.addf %427, %432 : vector<32x32xf32>
    %c2_256 = arith.constant 2 : index
    %c0_257 = arith.constant 0 : index
    %c0_258 = arith.constant 0 : index
    %434 = vector.load %arg14[%c2_256, %c0_257, %c0_258] : memref<6x32x1xf32, #tpu.memory_space<vmem>>, vector<1x32x1xf32>
    %435 = vector.shape_cast %434 : vector<1x32x1xf32> to vector<32x1xf32>
    %c2_259 = arith.constant 2 : index
    %c0_260 = arith.constant 0 : index
    %c0_261 = arith.constant 0 : index
    %436 = vector.load %arg15[%c2_259, %c0_260, %c0_261] : memref<6x32x1xf32, #tpu.memory_space<vmem>>, vector<1x32x1xf32>
    %437 = vector.shape_cast %436 : vector<1x32x1xf32> to vector<32x1xf32>
    %cst_262 = arith.constant dense<0.000000e+00> : vector<32xf32>
    %438 = vector.multi_reduction <add>, %433, %cst_262 [1] : vector<32x32xf32> to vector<32xf32>
    %439 = vector.shape_cast %438 : vector<32xf32> to vector<32x1xf32>
    %cst_263 = arith.constant 3.200000e+01 : f32
    %440 = vector.broadcast %cst_263 : f32 to vector<32x1xf32>
    %441 = arith.divf %439, %440 : vector<32x1xf32>
    %442 = arith.mulf %433, %433 : vector<32x32xf32>
    %cst_264 = arith.constant dense<0.000000e+00> : vector<32xf32>
    %443 = vector.multi_reduction <add>, %442, %cst_264 [1] : vector<32x32xf32> to vector<32xf32>
    %444 = vector.shape_cast %443 : vector<32xf32> to vector<32x1xf32>
    %cst_265 = arith.constant 3.200000e+01 : f32
    %445 = vector.broadcast %cst_265 : f32 to vector<32x1xf32>
    %446 = arith.divf %444, %445 : vector<32x1xf32>
    %447 = arith.mulf %441, %441 : vector<32x1xf32>
    %448 = arith.subf %446, %447 : vector<32x1xf32>
    %cst_266 = arith.constant 0.000000e+00 : f32
    %449 = vector.broadcast %cst_266 : f32 to vector<32x1xf32>
    %450 = arith.maximumf %448, %449 : vector<32x1xf32>
    %451 = vector.broadcast %441 : vector<32x1xf32> to vector<32x32xf32>
    %452 = arith.subf %433, %451 : vector<32x32xf32>
    %cst_267 = arith.constant 9.99999974E-6 : f32
    %453 = vector.broadcast %cst_267 : f32 to vector<32x1xf32>
    %454 = arith.addf %450, %453 : vector<32x1xf32>
    %455 = math.rsqrt %454 : vector<32x1xf32>
    %456 = arith.mulf %435, %455 : vector<32x1xf32>
    %457 = vector.broadcast %456 : vector<32x1xf32> to vector<32x32xf32>
    %458 = arith.mulf %452, %457 : vector<32x32xf32>
    %459 = vector.broadcast %437 : vector<32x1xf32> to vector<32x32xf32>
    %460 = arith.addf %458, %459 : vector<32x32xf32>
    %cst_268 = arith.constant 0.000000e+00 : f32
    %461 = vector.broadcast %cst_268 : f32 to vector<32x32xf32>
    %462 = arith.maximumf %460, %461 : vector<32x32xf32>
    %463 = arith.truncf %462 : vector<32x32xf32> to vector<32x32xbf16>
    %c3_269 = arith.constant 3 : index
    %c0_270 = arith.constant 0 : index
    %c0_271 = arith.constant 0 : index
    %464 = vector.load %arg13[%c3_269, %c0_270, %c0_271] : memref<6x288x32xbf16, #tpu.memory_space<vmem>>, vector<1x288x32xbf16>
    %465 = vector.shape_cast %464 : vector<1x288x32xbf16> to vector<288x32xbf16>
    %cst_272 = arith.constant dense<0.000000e+00> : vector<288x32xf32>
    %466 = tpu.matmul %465, %463, %cst_272 {dimension_numbers = #tpu.dot_dimension_numbers<[1], [0], [0], [1], [0, 0, 1, 1], [], []>} : vector<288x32xbf16>, vector<32x32xbf16>, vector<288x32xf32> -> vector<288x32xf32>
    %cst_273 = arith.constant 0.000000e+00 : f32
    %467 = vector.broadcast %cst_273 : f32 to vector<32x32xf32>
    %468 = vector.extract_strided_slice %466 {offsets = [0, 0], sizes = [32, 32], strides = [1, 1]} : vector<288x32xf32> to vector<32x32xf32>
    %469 = arith.truncf %468 : vector<32x32xf32> to vector<32x32xbf16>
    %c0_274 = arith.constant 0 : index
    %c0_275 = arith.constant 0 : index
    %c0_276 = arith.constant 0 : index
    %470 = vector.load %arg12[%c0_274, %c0_275, %c0_276] : memref<9x32x32xbf16, #tpu.memory_space<vmem>>, vector<1x32x32xbf16>
    %471 = vector.shape_cast %470 : vector<1x32x32xbf16> to vector<32x32xbf16>
    %cst_277 = arith.constant dense<0.000000e+00> : vector<32x32xf32>
    %472 = tpu.matmul %469, %471, %cst_277 {dimension_numbers = #tpu.dot_dimension_numbers<[1], [0], [0], [1], [0, 0, 1, 1], [], []>} : vector<32x32xbf16>, vector<32x32xbf16>, vector<32x32xf32> -> vector<32x32xf32>
    %473 = arith.addf %467, %472 : vector<32x32xf32>
    %474 = vector.extract_strided_slice %466 {offsets = [32, 0], sizes = [32, 32], strides = [1, 1]} : vector<288x32xf32> to vector<32x32xf32>
    %475 = arith.truncf %474 : vector<32x32xf32> to vector<32x32xbf16>
    %c1_278 = arith.constant 1 : index
    %c0_279 = arith.constant 0 : index
    %c0_280 = arith.constant 0 : index
    %476 = vector.load %arg12[%c1_278, %c0_279, %c0_280] : memref<9x32x32xbf16, #tpu.memory_space<vmem>>, vector<1x32x32xbf16>
    %477 = vector.shape_cast %476 : vector<1x32x32xbf16> to vector<32x32xbf16>
    %cst_281 = arith.constant dense<0.000000e+00> : vector<32x32xf32>
    %478 = tpu.matmul %475, %477, %cst_281 {dimension_numbers = #tpu.dot_dimension_numbers<[1], [0], [0], [1], [0, 0, 1, 1], [], []>} : vector<32x32xbf16>, vector<32x32xbf16>, vector<32x32xf32> -> vector<32x32xf32>
    %479 = arith.addf %473, %478 : vector<32x32xf32>
    %480 = vector.extract_strided_slice %466 {offsets = [64, 0], sizes = [32, 32], strides = [1, 1]} : vector<288x32xf32> to vector<32x32xf32>
    %481 = arith.truncf %480 : vector<32x32xf32> to vector<32x32xbf16>
    %c2_282 = arith.constant 2 : index
    %c0_283 = arith.constant 0 : index
    %c0_284 = arith.constant 0 : index
    %482 = vector.load %arg12[%c2_282, %c0_283, %c0_284] : memref<9x32x32xbf16, #tpu.memory_space<vmem>>, vector<1x32x32xbf16>
    %483 = vector.shape_cast %482 : vector<1x32x32xbf16> to vector<32x32xbf16>
    %cst_285 = arith.constant dense<0.000000e+00> : vector<32x32xf32>
    %484 = tpu.matmul %481, %483, %cst_285 {dimension_numbers = #tpu.dot_dimension_numbers<[1], [0], [0], [1], [0, 0, 1, 1], [], []>} : vector<32x32xbf16>, vector<32x32xbf16>, vector<32x32xf32> -> vector<32x32xf32>
    %485 = arith.addf %479, %484 : vector<32x32xf32>
    %486 = vector.extract_strided_slice %466 {offsets = [96, 0], sizes = [32, 32], strides = [1, 1]} : vector<288x32xf32> to vector<32x32xf32>
    %487 = arith.truncf %486 : vector<32x32xf32> to vector<32x32xbf16>
    %c3_286 = arith.constant 3 : index
    %c0_287 = arith.constant 0 : index
    %c0_288 = arith.constant 0 : index
    %488 = vector.load %arg12[%c3_286, %c0_287, %c0_288] : memref<9x32x32xbf16, #tpu.memory_space<vmem>>, vector<1x32x32xbf16>
    %489 = vector.shape_cast %488 : vector<1x32x32xbf16> to vector<32x32xbf16>
    %cst_289 = arith.constant dense<0.000000e+00> : vector<32x32xf32>
    %490 = tpu.matmul %487, %489, %cst_289 {dimension_numbers = #tpu.dot_dimension_numbers<[1], [0], [0], [1], [0, 0, 1, 1], [], []>} : vector<32x32xbf16>, vector<32x32xbf16>, vector<32x32xf32> -> vector<32x32xf32>
    %491 = arith.addf %485, %490 : vector<32x32xf32>
    %492 = vector.extract_strided_slice %466 {offsets = [128, 0], sizes = [32, 32], strides = [1, 1]} : vector<288x32xf32> to vector<32x32xf32>
    %493 = arith.truncf %492 : vector<32x32xf32> to vector<32x32xbf16>
    %c4_290 = arith.constant 4 : index
    %c0_291 = arith.constant 0 : index
    %c0_292 = arith.constant 0 : index
    %494 = vector.load %arg12[%c4_290, %c0_291, %c0_292] : memref<9x32x32xbf16, #tpu.memory_space<vmem>>, vector<1x32x32xbf16>
    %495 = vector.shape_cast %494 : vector<1x32x32xbf16> to vector<32x32xbf16>
    %cst_293 = arith.constant dense<0.000000e+00> : vector<32x32xf32>
    %496 = tpu.matmul %493, %495, %cst_293 {dimension_numbers = #tpu.dot_dimension_numbers<[1], [0], [0], [1], [0, 0, 1, 1], [], []>} : vector<32x32xbf16>, vector<32x32xbf16>, vector<32x32xf32> -> vector<32x32xf32>
    %497 = arith.addf %491, %496 : vector<32x32xf32>
    %498 = vector.extract_strided_slice %466 {offsets = [160, 0], sizes = [32, 32], strides = [1, 1]} : vector<288x32xf32> to vector<32x32xf32>
    %499 = arith.truncf %498 : vector<32x32xf32> to vector<32x32xbf16>
    %c5_294 = arith.constant 5 : index
    %c0_295 = arith.constant 0 : index
    %c0_296 = arith.constant 0 : index
    %500 = vector.load %arg12[%c5_294, %c0_295, %c0_296] : memref<9x32x32xbf16, #tpu.memory_space<vmem>>, vector<1x32x32xbf16>
    %501 = vector.shape_cast %500 : vector<1x32x32xbf16> to vector<32x32xbf16>
    %cst_297 = arith.constant dense<0.000000e+00> : vector<32x32xf32>
    %502 = tpu.matmul %499, %501, %cst_297 {dimension_numbers = #tpu.dot_dimension_numbers<[1], [0], [0], [1], [0, 0, 1, 1], [], []>} : vector<32x32xbf16>, vector<32x32xbf16>, vector<32x32xf32> -> vector<32x32xf32>
    %503 = arith.addf %497, %502 : vector<32x32xf32>
    %504 = vector.extract_strided_slice %466 {offsets = [192, 0], sizes = [32, 32], strides = [1, 1]} : vector<288x32xf32> to vector<32x32xf32>
    %505 = arith.truncf %504 : vector<32x32xf32> to vector<32x32xbf16>
    %c6_298 = arith.constant 6 : index
    %c0_299 = arith.constant 0 : index
    %c0_300 = arith.constant 0 : index
    %506 = vector.load %arg12[%c6_298, %c0_299, %c0_300] : memref<9x32x32xbf16, #tpu.memory_space<vmem>>, vector<1x32x32xbf16>
    %507 = vector.shape_cast %506 : vector<1x32x32xbf16> to vector<32x32xbf16>
    %cst_301 = arith.constant dense<0.000000e+00> : vector<32x32xf32>
    %508 = tpu.matmul %505, %507, %cst_301 {dimension_numbers = #tpu.dot_dimension_numbers<[1], [0], [0], [1], [0, 0, 1, 1], [], []>} : vector<32x32xbf16>, vector<32x32xbf16>, vector<32x32xf32> -> vector<32x32xf32>
    %509 = arith.addf %503, %508 : vector<32x32xf32>
    %510 = vector.extract_strided_slice %466 {offsets = [224, 0], sizes = [32, 32], strides = [1, 1]} : vector<288x32xf32> to vector<32x32xf32>
    %511 = arith.truncf %510 : vector<32x32xf32> to vector<32x32xbf16>
    %c7_302 = arith.constant 7 : index
    %c0_303 = arith.constant 0 : index
    %c0_304 = arith.constant 0 : index
    %512 = vector.load %arg12[%c7_302, %c0_303, %c0_304] : memref<9x32x32xbf16, #tpu.memory_space<vmem>>, vector<1x32x32xbf16>
    %513 = vector.shape_cast %512 : vector<1x32x32xbf16> to vector<32x32xbf16>
    %cst_305 = arith.constant dense<0.000000e+00> : vector<32x32xf32>
    %514 = tpu.matmul %511, %513, %cst_305 {dimension_numbers = #tpu.dot_dimension_numbers<[1], [0], [0], [1], [0, 0, 1, 1], [], []>} : vector<32x32xbf16>, vector<32x32xbf16>, vector<32x32xf32> -> vector<32x32xf32>
    %515 = arith.addf %509, %514 : vector<32x32xf32>
    %516 = vector.extract_strided_slice %466 {offsets = [256, 0], sizes = [32, 32], strides = [1, 1]} : vector<288x32xf32> to vector<32x32xf32>
    %517 = arith.truncf %516 : vector<32x32xf32> to vector<32x32xbf16>
    %c8_306 = arith.constant 8 : index
    %c0_307 = arith.constant 0 : index
    %c0_308 = arith.constant 0 : index
    %518 = vector.load %arg12[%c8_306, %c0_307, %c0_308] : memref<9x32x32xbf16, #tpu.memory_space<vmem>>, vector<1x32x32xbf16>
    %519 = vector.shape_cast %518 : vector<1x32x32xbf16> to vector<32x32xbf16>
    %cst_309 = arith.constant dense<0.000000e+00> : vector<32x32xf32>
    %520 = tpu.matmul %517, %519, %cst_309 {dimension_numbers = #tpu.dot_dimension_numbers<[1], [0], [0], [1], [0, 0, 1, 1], [], []>} : vector<32x32xbf16>, vector<32x32xbf16>, vector<32x32xf32> -> vector<32x32xf32>
    %521 = arith.addf %515, %520 : vector<32x32xf32>
    %c3_310 = arith.constant 3 : index
    %c0_311 = arith.constant 0 : index
    %c0_312 = arith.constant 0 : index
    %522 = vector.load %arg14[%c3_310, %c0_311, %c0_312] : memref<6x32x1xf32, #tpu.memory_space<vmem>>, vector<1x32x1xf32>
    %523 = vector.shape_cast %522 : vector<1x32x1xf32> to vector<32x1xf32>
    %c3_313 = arith.constant 3 : index
    %c0_314 = arith.constant 0 : index
    %c0_315 = arith.constant 0 : index
    %524 = vector.load %arg15[%c3_313, %c0_314, %c0_315] : memref<6x32x1xf32, #tpu.memory_space<vmem>>, vector<1x32x1xf32>
    %525 = vector.shape_cast %524 : vector<1x32x1xf32> to vector<32x1xf32>
    %cst_316 = arith.constant dense<0.000000e+00> : vector<32xf32>
    %526 = vector.multi_reduction <add>, %521, %cst_316 [1] : vector<32x32xf32> to vector<32xf32>
    %527 = vector.shape_cast %526 : vector<32xf32> to vector<32x1xf32>
    %cst_317 = arith.constant 3.200000e+01 : f32
    %528 = vector.broadcast %cst_317 : f32 to vector<32x1xf32>
    %529 = arith.divf %527, %528 : vector<32x1xf32>
    %530 = arith.mulf %521, %521 : vector<32x32xf32>
    %cst_318 = arith.constant dense<0.000000e+00> : vector<32xf32>
    %531 = vector.multi_reduction <add>, %530, %cst_318 [1] : vector<32x32xf32> to vector<32xf32>
    %532 = vector.shape_cast %531 : vector<32xf32> to vector<32x1xf32>
    %cst_319 = arith.constant 3.200000e+01 : f32
    %533 = vector.broadcast %cst_319 : f32 to vector<32x1xf32>
    %534 = arith.divf %532, %533 : vector<32x1xf32>
    %535 = arith.mulf %529, %529 : vector<32x1xf32>
    %536 = arith.subf %534, %535 : vector<32x1xf32>
    %cst_320 = arith.constant 0.000000e+00 : f32
    %537 = vector.broadcast %cst_320 : f32 to vector<32x1xf32>
    %538 = arith.maximumf %536, %537 : vector<32x1xf32>
    %539 = vector.broadcast %529 : vector<32x1xf32> to vector<32x32xf32>
    %540 = arith.subf %521, %539 : vector<32x32xf32>
    %cst_321 = arith.constant 9.99999974E-6 : f32
    %541 = vector.broadcast %cst_321 : f32 to vector<32x1xf32>
    %542 = arith.addf %538, %541 : vector<32x1xf32>
    %543 = math.rsqrt %542 : vector<32x1xf32>
    %544 = arith.mulf %523, %543 : vector<32x1xf32>
    %545 = vector.broadcast %544 : vector<32x1xf32> to vector<32x32xf32>
    %546 = arith.mulf %540, %545 : vector<32x32xf32>
    %547 = vector.broadcast %525 : vector<32x1xf32> to vector<32x32xf32>
    %548 = arith.addf %546, %547 : vector<32x32xf32>
    %549 = arith.addf %374, %548 : vector<32x32xf32>
    %550 = arith.truncf %549 : vector<32x32xf32> to vector<32x32xbf16>
    %c4_322 = arith.constant 4 : index
    %c0_323 = arith.constant 0 : index
    %c0_324 = arith.constant 0 : index
    %551 = vector.load %arg13[%c4_322, %c0_323, %c0_324] : memref<6x288x32xbf16, #tpu.memory_space<vmem>>, vector<1x288x32xbf16>
    %552 = vector.shape_cast %551 : vector<1x288x32xbf16> to vector<288x32xbf16>
    %cst_325 = arith.constant dense<0.000000e+00> : vector<288x32xf32>
    %553 = tpu.matmul %552, %550, %cst_325 {dimension_numbers = #tpu.dot_dimension_numbers<[1], [0], [0], [1], [0, 0, 1, 1], [], []>} : vector<288x32xbf16>, vector<32x32xbf16>, vector<288x32xf32> -> vector<288x32xf32>
    %cst_326 = arith.constant 0.000000e+00 : f32
    %554 = vector.broadcast %cst_326 : f32 to vector<32x32xf32>
    %555 = vector.extract_strided_slice %553 {offsets = [0, 0], sizes = [32, 32], strides = [1, 1]} : vector<288x32xf32> to vector<32x32xf32>
    %556 = arith.truncf %555 : vector<32x32xf32> to vector<32x32xbf16>
    %c0_327 = arith.constant 0 : index
    %c0_328 = arith.constant 0 : index
    %c0_329 = arith.constant 0 : index
    %557 = vector.load %arg12[%c0_327, %c0_328, %c0_329] : memref<9x32x32xbf16, #tpu.memory_space<vmem>>, vector<1x32x32xbf16>
    %558 = vector.shape_cast %557 : vector<1x32x32xbf16> to vector<32x32xbf16>
    %cst_330 = arith.constant dense<0.000000e+00> : vector<32x32xf32>
    %559 = tpu.matmul %556, %558, %cst_330 {dimension_numbers = #tpu.dot_dimension_numbers<[1], [0], [0], [1], [0, 0, 1, 1], [], []>} : vector<32x32xbf16>, vector<32x32xbf16>, vector<32x32xf32> -> vector<32x32xf32>
    %560 = arith.addf %554, %559 : vector<32x32xf32>
    %561 = vector.extract_strided_slice %553 {offsets = [32, 0], sizes = [32, 32], strides = [1, 1]} : vector<288x32xf32> to vector<32x32xf32>
    %562 = arith.truncf %561 : vector<32x32xf32> to vector<32x32xbf16>
    %c1_331 = arith.constant 1 : index
    %c0_332 = arith.constant 0 : index
    %c0_333 = arith.constant 0 : index
    %563 = vector.load %arg12[%c1_331, %c0_332, %c0_333] : memref<9x32x32xbf16, #tpu.memory_space<vmem>>, vector<1x32x32xbf16>
    %564 = vector.shape_cast %563 : vector<1x32x32xbf16> to vector<32x32xbf16>
    %cst_334 = arith.constant dense<0.000000e+00> : vector<32x32xf32>
    %565 = tpu.matmul %562, %564, %cst_334 {dimension_numbers = #tpu.dot_dimension_numbers<[1], [0], [0], [1], [0, 0, 1, 1], [], []>} : vector<32x32xbf16>, vector<32x32xbf16>, vector<32x32xf32> -> vector<32x32xf32>
    %566 = arith.addf %560, %565 : vector<32x32xf32>
    %567 = vector.extract_strided_slice %553 {offsets = [64, 0], sizes = [32, 32], strides = [1, 1]} : vector<288x32xf32> to vector<32x32xf32>
    %568 = arith.truncf %567 : vector<32x32xf32> to vector<32x32xbf16>
    %c2_335 = arith.constant 2 : index
    %c0_336 = arith.constant 0 : index
    %c0_337 = arith.constant 0 : index
    %569 = vector.load %arg12[%c2_335, %c0_336, %c0_337] : memref<9x32x32xbf16, #tpu.memory_space<vmem>>, vector<1x32x32xbf16>
    %570 = vector.shape_cast %569 : vector<1x32x32xbf16> to vector<32x32xbf16>
    %cst_338 = arith.constant dense<0.000000e+00> : vector<32x32xf32>
    %571 = tpu.matmul %568, %570, %cst_338 {dimension_numbers = #tpu.dot_dimension_numbers<[1], [0], [0], [1], [0, 0, 1, 1], [], []>} : vector<32x32xbf16>, vector<32x32xbf16>, vector<32x32xf32> -> vector<32x32xf32>
    %572 = arith.addf %566, %571 : vector<32x32xf32>
    %573 = vector.extract_strided_slice %553 {offsets = [96, 0], sizes = [32, 32], strides = [1, 1]} : vector<288x32xf32> to vector<32x32xf32>
    %574 = arith.truncf %573 : vector<32x32xf32> to vector<32x32xbf16>
    %c3_339 = arith.constant 3 : index
    %c0_340 = arith.constant 0 : index
    %c0_341 = arith.constant 0 : index
    %575 = vector.load %arg12[%c3_339, %c0_340, %c0_341] : memref<9x32x32xbf16, #tpu.memory_space<vmem>>, vector<1x32x32xbf16>
    %576 = vector.shape_cast %575 : vector<1x32x32xbf16> to vector<32x32xbf16>
    %cst_342 = arith.constant dense<0.000000e+00> : vector<32x32xf32>
    %577 = tpu.matmul %574, %576, %cst_342 {dimension_numbers = #tpu.dot_dimension_numbers<[1], [0], [0], [1], [0, 0, 1, 1], [], []>} : vector<32x32xbf16>, vector<32x32xbf16>, vector<32x32xf32> -> vector<32x32xf32>
    %578 = arith.addf %572, %577 : vector<32x32xf32>
    %579 = vector.extract_strided_slice %553 {offsets = [128, 0], sizes = [32, 32], strides = [1, 1]} : vector<288x32xf32> to vector<32x32xf32>
    %580 = arith.truncf %579 : vector<32x32xf32> to vector<32x32xbf16>
    %c4_343 = arith.constant 4 : index
    %c0_344 = arith.constant 0 : index
    %c0_345 = arith.constant 0 : index
    %581 = vector.load %arg12[%c4_343, %c0_344, %c0_345] : memref<9x32x32xbf16, #tpu.memory_space<vmem>>, vector<1x32x32xbf16>
    %582 = vector.shape_cast %581 : vector<1x32x32xbf16> to vector<32x32xbf16>
    %cst_346 = arith.constant dense<0.000000e+00> : vector<32x32xf32>
    %583 = tpu.matmul %580, %582, %cst_346 {dimension_numbers = #tpu.dot_dimension_numbers<[1], [0], [0], [1], [0, 0, 1, 1], [], []>} : vector<32x32xbf16>, vector<32x32xbf16>, vector<32x32xf32> -> vector<32x32xf32>
    %584 = arith.addf %578, %583 : vector<32x32xf32>
    %585 = vector.extract_strided_slice %553 {offsets = [160, 0], sizes = [32, 32], strides = [1, 1]} : vector<288x32xf32> to vector<32x32xf32>
    %586 = arith.truncf %585 : vector<32x32xf32> to vector<32x32xbf16>
    %c5_347 = arith.constant 5 : index
    %c0_348 = arith.constant 0 : index
    %c0_349 = arith.constant 0 : index
    %587 = vector.load %arg12[%c5_347, %c0_348, %c0_349] : memref<9x32x32xbf16, #tpu.memory_space<vmem>>, vector<1x32x32xbf16>
    %588 = vector.shape_cast %587 : vector<1x32x32xbf16> to vector<32x32xbf16>
    %cst_350 = arith.constant dense<0.000000e+00> : vector<32x32xf32>
    %589 = tpu.matmul %586, %588, %cst_350 {dimension_numbers = #tpu.dot_dimension_numbers<[1], [0], [0], [1], [0, 0, 1, 1], [], []>} : vector<32x32xbf16>, vector<32x32xbf16>, vector<32x32xf32> -> vector<32x32xf32>
    %590 = arith.addf %584, %589 : vector<32x32xf32>
    %591 = vector.extract_strided_slice %553 {offsets = [192, 0], sizes = [32, 32], strides = [1, 1]} : vector<288x32xf32> to vector<32x32xf32>
    %592 = arith.truncf %591 : vector<32x32xf32> to vector<32x32xbf16>
    %c6_351 = arith.constant 6 : index
    %c0_352 = arith.constant 0 : index
    %c0_353 = arith.constant 0 : index
    %593 = vector.load %arg12[%c6_351, %c0_352, %c0_353] : memref<9x32x32xbf16, #tpu.memory_space<vmem>>, vector<1x32x32xbf16>
    %594 = vector.shape_cast %593 : vector<1x32x32xbf16> to vector<32x32xbf16>
    %cst_354 = arith.constant dense<0.000000e+00> : vector<32x32xf32>
    %595 = tpu.matmul %592, %594, %cst_354 {dimension_numbers = #tpu.dot_dimension_numbers<[1], [0], [0], [1], [0, 0, 1, 1], [], []>} : vector<32x32xbf16>, vector<32x32xbf16>, vector<32x32xf32> -> vector<32x32xf32>
    %596 = arith.addf %590, %595 : vector<32x32xf32>
    %597 = vector.extract_strided_slice %553 {offsets = [224, 0], sizes = [32, 32], strides = [1, 1]} : vector<288x32xf32> to vector<32x32xf32>
    %598 = arith.truncf %597 : vector<32x32xf32> to vector<32x32xbf16>
    %c7_355 = arith.constant 7 : index
    %c0_356 = arith.constant 0 : index
    %c0_357 = arith.constant 0 : index
    %599 = vector.load %arg12[%c7_355, %c0_356, %c0_357] : memref<9x32x32xbf16, #tpu.memory_space<vmem>>, vector<1x32x32xbf16>
    %600 = vector.shape_cast %599 : vector<1x32x32xbf16> to vector<32x32xbf16>
    %cst_358 = arith.constant dense<0.000000e+00> : vector<32x32xf32>
    %601 = tpu.matmul %598, %600, %cst_358 {dimension_numbers = #tpu.dot_dimension_numbers<[1], [0], [0], [1], [0, 0, 1, 1], [], []>} : vector<32x32xbf16>, vector<32x32xbf16>, vector<32x32xf32> -> vector<32x32xf32>
    %602 = arith.addf %596, %601 : vector<32x32xf32>
    %603 = vector.extract_strided_slice %553 {offsets = [256, 0], sizes = [32, 32], strides = [1, 1]} : vector<288x32xf32> to vector<32x32xf32>
    %604 = arith.truncf %603 : vector<32x32xf32> to vector<32x32xbf16>
    %c8_359 = arith.constant 8 : index
    %c0_360 = arith.constant 0 : index
    %c0_361 = arith.constant 0 : index
    %605 = vector.load %arg12[%c8_359, %c0_360, %c0_361] : memref<9x32x32xbf16, #tpu.memory_space<vmem>>, vector<1x32x32xbf16>
    %606 = vector.shape_cast %605 : vector<1x32x32xbf16> to vector<32x32xbf16>
    %cst_362 = arith.constant dense<0.000000e+00> : vector<32x32xf32>
    %607 = tpu.matmul %604, %606, %cst_362 {dimension_numbers = #tpu.dot_dimension_numbers<[1], [0], [0], [1], [0, 0, 1, 1], [], []>} : vector<32x32xbf16>, vector<32x32xbf16>, vector<32x32xf32> -> vector<32x32xf32>
    %608 = arith.addf %602, %607 : vector<32x32xf32>
    %c4_363 = arith.constant 4 : index
    %c0_364 = arith.constant 0 : index
    %c0_365 = arith.constant 0 : index
    %609 = vector.load %arg14[%c4_363, %c0_364, %c0_365] : memref<6x32x1xf32, #tpu.memory_space<vmem>>, vector<1x32x1xf32>
    %610 = vector.shape_cast %609 : vector<1x32x1xf32> to vector<32x1xf32>
    %c4_366 = arith.constant 4 : index
    %c0_367 = arith.constant 0 : index
    %c0_368 = arith.constant 0 : index
    %611 = vector.load %arg15[%c4_366, %c0_367, %c0_368] : memref<6x32x1xf32, #tpu.memory_space<vmem>>, vector<1x32x1xf32>
    %612 = vector.shape_cast %611 : vector<1x32x1xf32> to vector<32x1xf32>
    %cst_369 = arith.constant dense<0.000000e+00> : vector<32xf32>
    %613 = vector.multi_reduction <add>, %608, %cst_369 [1] : vector<32x32xf32> to vector<32xf32>
    %614 = vector.shape_cast %613 : vector<32xf32> to vector<32x1xf32>
    %cst_370 = arith.constant 3.200000e+01 : f32
    %615 = vector.broadcast %cst_370 : f32 to vector<32x1xf32>
    %616 = arith.divf %614, %615 : vector<32x1xf32>
    %617 = arith.mulf %608, %608 : vector<32x32xf32>
    %cst_371 = arith.constant dense<0.000000e+00> : vector<32xf32>
    %618 = vector.multi_reduction <add>, %617, %cst_371 [1] : vector<32x32xf32> to vector<32xf32>
    %619 = vector.shape_cast %618 : vector<32xf32> to vector<32x1xf32>
    %cst_372 = arith.constant 3.200000e+01 : f32
    %620 = vector.broadcast %cst_372 : f32 to vector<32x1xf32>
    %621 = arith.divf %619, %620 : vector<32x1xf32>
    %622 = arith.mulf %616, %616 : vector<32x1xf32>
    %623 = arith.subf %621, %622 : vector<32x1xf32>
    %cst_373 = arith.constant 0.000000e+00 : f32
    %624 = vector.broadcast %cst_373 : f32 to vector<32x1xf32>
    %625 = arith.maximumf %623, %624 : vector<32x1xf32>
    %626 = vector.broadcast %616 : vector<32x1xf32> to vector<32x32xf32>
    %627 = arith.subf %608, %626 : vector<32x32xf32>
    %cst_374 = arith.constant 9.99999974E-6 : f32
    %628 = vector.broadcast %cst_374 : f32 to vector<32x1xf32>
    %629 = arith.addf %625, %628 : vector<32x1xf32>
    %630 = math.rsqrt %629 : vector<32x1xf32>
    %631 = arith.mulf %610, %630 : vector<32x1xf32>
    %632 = vector.broadcast %631 : vector<32x1xf32> to vector<32x32xf32>
    %633 = arith.mulf %627, %632 : vector<32x32xf32>
    %634 = vector.broadcast %612 : vector<32x1xf32> to vector<32x32xf32>
    %635 = arith.addf %633, %634 : vector<32x32xf32>
    %cst_375 = arith.constant 0.000000e+00 : f32
    %636 = vector.broadcast %cst_375 : f32 to vector<32x32xf32>
    %637 = arith.maximumf %635, %636 : vector<32x32xf32>
    %638 = arith.truncf %637 : vector<32x32xf32> to vector<32x32xbf16>
    %c5_376 = arith.constant 5 : index
    %c0_377 = arith.constant 0 : index
    %c0_378 = arith.constant 0 : index
    %639 = vector.load %arg13[%c5_376, %c0_377, %c0_378] : memref<6x288x32xbf16, #tpu.memory_space<vmem>>, vector<1x288x32xbf16>
    %640 = vector.shape_cast %639 : vector<1x288x32xbf16> to vector<288x32xbf16>
    %cst_379 = arith.constant dense<0.000000e+00> : vector<288x32xf32>
    %641 = tpu.matmul %640, %638, %cst_379 {dimension_numbers = #tpu.dot_dimension_numbers<[1], [0], [0], [1], [0, 0, 1, 1], [], []>} : vector<288x32xbf16>, vector<32x32xbf16>, vector<288x32xf32> -> vector<288x32xf32>
    %cst_380 = arith.constant 0.000000e+00 : f32
    %642 = vector.broadcast %cst_380 : f32 to vector<32x32xf32>
    %643 = vector.extract_strided_slice %641 {offsets = [0, 0], sizes = [32, 32], strides = [1, 1]} : vector<288x32xf32> to vector<32x32xf32>
    %644 = arith.truncf %643 : vector<32x32xf32> to vector<32x32xbf16>
    %c0_381 = arith.constant 0 : index
    %c0_382 = arith.constant 0 : index
    %c0_383 = arith.constant 0 : index
    %645 = vector.load %arg12[%c0_381, %c0_382, %c0_383] : memref<9x32x32xbf16, #tpu.memory_space<vmem>>, vector<1x32x32xbf16>
    %646 = vector.shape_cast %645 : vector<1x32x32xbf16> to vector<32x32xbf16>
    %cst_384 = arith.constant dense<0.000000e+00> : vector<32x32xf32>
    %647 = tpu.matmul %644, %646, %cst_384 {dimension_numbers = #tpu.dot_dimension_numbers<[1], [0], [0], [1], [0, 0, 1, 1], [], []>} : vector<32x32xbf16>, vector<32x32xbf16>, vector<32x32xf32> -> vector<32x32xf32>
    %648 = arith.addf %642, %647 : vector<32x32xf32>
    %649 = vector.extract_strided_slice %641 {offsets = [32, 0], sizes = [32, 32], strides = [1, 1]} : vector<288x32xf32> to vector<32x32xf32>
    %650 = arith.truncf %649 : vector<32x32xf32> to vector<32x32xbf16>
    %c1_385 = arith.constant 1 : index
    %c0_386 = arith.constant 0 : index
    %c0_387 = arith.constant 0 : index
    %651 = vector.load %arg12[%c1_385, %c0_386, %c0_387] : memref<9x32x32xbf16, #tpu.memory_space<vmem>>, vector<1x32x32xbf16>
    %652 = vector.shape_cast %651 : vector<1x32x32xbf16> to vector<32x32xbf16>
    %cst_388 = arith.constant dense<0.000000e+00> : vector<32x32xf32>
    %653 = tpu.matmul %650, %652, %cst_388 {dimension_numbers = #tpu.dot_dimension_numbers<[1], [0], [0], [1], [0, 0, 1, 1], [], []>} : vector<32x32xbf16>, vector<32x32xbf16>, vector<32x32xf32> -> vector<32x32xf32>
    %654 = arith.addf %648, %653 : vector<32x32xf32>
    %655 = vector.extract_strided_slice %641 {offsets = [64, 0], sizes = [32, 32], strides = [1, 1]} : vector<288x32xf32> to vector<32x32xf32>
    %656 = arith.truncf %655 : vector<32x32xf32> to vector<32x32xbf16>
    %c2_389 = arith.constant 2 : index
    %c0_390 = arith.constant 0 : index
    %c0_391 = arith.constant 0 : index
    %657 = vector.load %arg12[%c2_389, %c0_390, %c0_391] : memref<9x32x32xbf16, #tpu.memory_space<vmem>>, vector<1x32x32xbf16>
    %658 = vector.shape_cast %657 : vector<1x32x32xbf16> to vector<32x32xbf16>
    %cst_392 = arith.constant dense<0.000000e+00> : vector<32x32xf32>
    %659 = tpu.matmul %656, %658, %cst_392 {dimension_numbers = #tpu.dot_dimension_numbers<[1], [0], [0], [1], [0, 0, 1, 1], [], []>} : vector<32x32xbf16>, vector<32x32xbf16>, vector<32x32xf32> -> vector<32x32xf32>
    %660 = arith.addf %654, %659 : vector<32x32xf32>
    %661 = vector.extract_strided_slice %641 {offsets = [96, 0], sizes = [32, 32], strides = [1, 1]} : vector<288x32xf32> to vector<32x32xf32>
    %662 = arith.truncf %661 : vector<32x32xf32> to vector<32x32xbf16>
    %c3_393 = arith.constant 3 : index
    %c0_394 = arith.constant 0 : index
    %c0_395 = arith.constant 0 : index
    %663 = vector.load %arg12[%c3_393, %c0_394, %c0_395] : memref<9x32x32xbf16, #tpu.memory_space<vmem>>, vector<1x32x32xbf16>
    %664 = vector.shape_cast %663 : vector<1x32x32xbf16> to vector<32x32xbf16>
    %cst_396 = arith.constant dense<0.000000e+00> : vector<32x32xf32>
    %665 = tpu.matmul %662, %664, %cst_396 {dimension_numbers = #tpu.dot_dimension_numbers<[1], [0], [0], [1], [0, 0, 1, 1], [], []>} : vector<32x32xbf16>, vector<32x32xbf16>, vector<32x32xf32> -> vector<32x32xf32>
    %666 = arith.addf %660, %665 : vector<32x32xf32>
    %667 = vector.extract_strided_slice %641 {offsets = [128, 0], sizes = [32, 32], strides = [1, 1]} : vector<288x32xf32> to vector<32x32xf32>
    %668 = arith.truncf %667 : vector<32x32xf32> to vector<32x32xbf16>
    %c4_397 = arith.constant 4 : index
    %c0_398 = arith.constant 0 : index
    %c0_399 = arith.constant 0 : index
    %669 = vector.load %arg12[%c4_397, %c0_398, %c0_399] : memref<9x32x32xbf16, #tpu.memory_space<vmem>>, vector<1x32x32xbf16>
    %670 = vector.shape_cast %669 : vector<1x32x32xbf16> to vector<32x32xbf16>
    %cst_400 = arith.constant dense<0.000000e+00> : vector<32x32xf32>
    %671 = tpu.matmul %668, %670, %cst_400 {dimension_numbers = #tpu.dot_dimension_numbers<[1], [0], [0], [1], [0, 0, 1, 1], [], []>} : vector<32x32xbf16>, vector<32x32xbf16>, vector<32x32xf32> -> vector<32x32xf32>
    %672 = arith.addf %666, %671 : vector<32x32xf32>
    %673 = vector.extract_strided_slice %641 {offsets = [160, 0], sizes = [32, 32], strides = [1, 1]} : vector<288x32xf32> to vector<32x32xf32>
    %674 = arith.truncf %673 : vector<32x32xf32> to vector<32x32xbf16>
    %c5_401 = arith.constant 5 : index
    %c0_402 = arith.constant 0 : index
    %c0_403 = arith.constant 0 : index
    %675 = vector.load %arg12[%c5_401, %c0_402, %c0_403] : memref<9x32x32xbf16, #tpu.memory_space<vmem>>, vector<1x32x32xbf16>
    %676 = vector.shape_cast %675 : vector<1x32x32xbf16> to vector<32x32xbf16>
    %cst_404 = arith.constant dense<0.000000e+00> : vector<32x32xf32>
    %677 = tpu.matmul %674, %676, %cst_404 {dimension_numbers = #tpu.dot_dimension_numbers<[1], [0], [0], [1], [0, 0, 1, 1], [], []>} : vector<32x32xbf16>, vector<32x32xbf16>, vector<32x32xf32> -> vector<32x32xf32>
    %678 = arith.addf %672, %677 : vector<32x32xf32>
    %679 = vector.extract_strided_slice %641 {offsets = [192, 0], sizes = [32, 32], strides = [1, 1]} : vector<288x32xf32> to vector<32x32xf32>
    %680 = arith.truncf %679 : vector<32x32xf32> to vector<32x32xbf16>
    %c6_405 = arith.constant 6 : index
    %c0_406 = arith.constant 0 : index
    %c0_407 = arith.constant 0 : index
    %681 = vector.load %arg12[%c6_405, %c0_406, %c0_407] : memref<9x32x32xbf16, #tpu.memory_space<vmem>>, vector<1x32x32xbf16>
    %682 = vector.shape_cast %681 : vector<1x32x32xbf16> to vector<32x32xbf16>
    %cst_408 = arith.constant dense<0.000000e+00> : vector<32x32xf32>
    %683 = tpu.matmul %680, %682, %cst_408 {dimension_numbers = #tpu.dot_dimension_numbers<[1], [0], [0], [1], [0, 0, 1, 1], [], []>} : vector<32x32xbf16>, vector<32x32xbf16>, vector<32x32xf32> -> vector<32x32xf32>
    %684 = arith.addf %678, %683 : vector<32x32xf32>
    %685 = vector.extract_strided_slice %641 {offsets = [224, 0], sizes = [32, 32], strides = [1, 1]} : vector<288x32xf32> to vector<32x32xf32>
    %686 = arith.truncf %685 : vector<32x32xf32> to vector<32x32xbf16>
    %c7_409 = arith.constant 7 : index
    %c0_410 = arith.constant 0 : index
    %c0_411 = arith.constant 0 : index
    %687 = vector.load %arg12[%c7_409, %c0_410, %c0_411] : memref<9x32x32xbf16, #tpu.memory_space<vmem>>, vector<1x32x32xbf16>
    %688 = vector.shape_cast %687 : vector<1x32x32xbf16> to vector<32x32xbf16>
    %cst_412 = arith.constant dense<0.000000e+00> : vector<32x32xf32>
    %689 = tpu.matmul %686, %688, %cst_412 {dimension_numbers = #tpu.dot_dimension_numbers<[1], [0], [0], [1], [0, 0, 1, 1], [], []>} : vector<32x32xbf16>, vector<32x32xbf16>, vector<32x32xf32> -> vector<32x32xf32>
    %690 = arith.addf %684, %689 : vector<32x32xf32>
    %691 = vector.extract_strided_slice %641 {offsets = [256, 0], sizes = [32, 32], strides = [1, 1]} : vector<288x32xf32> to vector<32x32xf32>
    %692 = arith.truncf %691 : vector<32x32xf32> to vector<32x32xbf16>
    %c8_413 = arith.constant 8 : index
    %c0_414 = arith.constant 0 : index
    %c0_415 = arith.constant 0 : index
    %693 = vector.load %arg12[%c8_413, %c0_414, %c0_415] : memref<9x32x32xbf16, #tpu.memory_space<vmem>>, vector<1x32x32xbf16>
    %694 = vector.shape_cast %693 : vector<1x32x32xbf16> to vector<32x32xbf16>
    %cst_416 = arith.constant dense<0.000000e+00> : vector<32x32xf32>
    %695 = tpu.matmul %692, %694, %cst_416 {dimension_numbers = #tpu.dot_dimension_numbers<[1], [0], [0], [1], [0, 0, 1, 1], [], []>} : vector<32x32xbf16>, vector<32x32xbf16>, vector<32x32xf32> -> vector<32x32xf32>
    %696 = arith.addf %690, %695 : vector<32x32xf32>
    %c5_417 = arith.constant 5 : index
    %c0_418 = arith.constant 0 : index
    %c0_419 = arith.constant 0 : index
    %697 = vector.load %arg14[%c5_417, %c0_418, %c0_419] : memref<6x32x1xf32, #tpu.memory_space<vmem>>, vector<1x32x1xf32>
    %698 = vector.shape_cast %697 : vector<1x32x1xf32> to vector<32x1xf32>
    %c5_420 = arith.constant 5 : index
    %c0_421 = arith.constant 0 : index
    %c0_422 = arith.constant 0 : index
    %699 = vector.load %arg15[%c5_420, %c0_421, %c0_422] : memref<6x32x1xf32, #tpu.memory_space<vmem>>, vector<1x32x1xf32>
    %700 = vector.shape_cast %699 : vector<1x32x1xf32> to vector<32x1xf32>
    %cst_423 = arith.constant dense<0.000000e+00> : vector<32xf32>
    %701 = vector.multi_reduction <add>, %696, %cst_423 [1] : vector<32x32xf32> to vector<32xf32>
    %702 = vector.shape_cast %701 : vector<32xf32> to vector<32x1xf32>
    %cst_424 = arith.constant 3.200000e+01 : f32
    %703 = vector.broadcast %cst_424 : f32 to vector<32x1xf32>
    %704 = arith.divf %702, %703 : vector<32x1xf32>
    %705 = arith.mulf %696, %696 : vector<32x32xf32>
    %cst_425 = arith.constant dense<0.000000e+00> : vector<32xf32>
    %706 = vector.multi_reduction <add>, %705, %cst_425 [1] : vector<32x32xf32> to vector<32xf32>
    %707 = vector.shape_cast %706 : vector<32xf32> to vector<32x1xf32>
    %cst_426 = arith.constant 3.200000e+01 : f32
    %708 = vector.broadcast %cst_426 : f32 to vector<32x1xf32>
    %709 = arith.divf %707, %708 : vector<32x1xf32>
    %710 = arith.mulf %704, %704 : vector<32x1xf32>
    %711 = arith.subf %709, %710 : vector<32x1xf32>
    %cst_427 = arith.constant 0.000000e+00 : f32
    %712 = vector.broadcast %cst_427 : f32 to vector<32x1xf32>
    %713 = arith.maximumf %711, %712 : vector<32x1xf32>
    %714 = vector.broadcast %704 : vector<32x1xf32> to vector<32x32xf32>
    %715 = arith.subf %696, %714 : vector<32x32xf32>
    %cst_428 = arith.constant 9.99999974E-6 : f32
    %716 = vector.broadcast %cst_428 : f32 to vector<32x1xf32>
    %717 = arith.addf %713, %716 : vector<32x1xf32>
    %718 = math.rsqrt %717 : vector<32x1xf32>
    %719 = arith.mulf %698, %718 : vector<32x1xf32>
    %720 = vector.broadcast %719 : vector<32x1xf32> to vector<32x32xf32>
    %721 = arith.mulf %715, %720 : vector<32x32xf32>
    %722 = vector.broadcast %700 : vector<32x1xf32> to vector<32x32xf32>
    %723 = arith.addf %721, %722 : vector<32x32xf32>
    %724 = arith.addf %549, %723 : vector<32x32xf32>
    %725 = arith.truncf %724 : vector<32x32xf32> to vector<32x32xbf16>
    %c0_429 = arith.constant 0 : index
    %c0_430 = arith.constant 0 : index
    %726 = vector.load %arg16[%c0_429, %c0_430] : memref<144x32xbf16, #tpu.memory_space<vmem>>, vector<144x32xbf16>
    %cst_431 = arith.constant dense<0.000000e+00> : vector<144x32xf32>
    %727 = tpu.matmul %726, %725, %cst_431 {dimension_numbers = #tpu.dot_dimension_numbers<[1], [0], [0], [1], [0, 0, 1, 1], [], []>} : vector<144x32xbf16>, vector<32x32xbf16>, vector<144x32xf32> -> vector<144x32xf32>
    %cst_432 = arith.constant 0.000000e+00 : f32
    %728 = vector.broadcast %cst_432 : f32 to vector<16x128xf32>
    %729 = vector.extract_strided_slice %727 {offsets = [0, 0], sizes = [16, 32], strides = [1, 1]} : vector<144x32xf32> to vector<16x32xf32>
    %730 = arith.truncf %729 : vector<16x32xf32> to vector<16x32xbf16>
    %c0_433 = arith.constant 0 : index
    %c0_434 = arith.constant 0 : index
    %c0_435 = arith.constant 0 : index
    %731 = vector.load %arg19[%c0_433, %c0_434, %c0_435] : memref<9x32x128xbf16, #tpu.memory_space<vmem>>, vector<1x32x128xbf16>
    %732 = vector.shape_cast %731 : vector<1x32x128xbf16> to vector<32x128xbf16>
    %cst_436 = arith.constant dense<0.000000e+00> : vector<16x128xf32>
    %733 = tpu.matmul %730, %732, %cst_436 {dimension_numbers = #tpu.dot_dimension_numbers<[1], [0], [0], [1], [0, 0, 1, 1], [], []>} : vector<16x32xbf16>, vector<32x128xbf16>, vector<16x128xf32> -> vector<16x128xf32>
    %734 = arith.addf %728, %733 : vector<16x128xf32>
    %735 = vector.extract_strided_slice %727 {offsets = [16, 0], sizes = [16, 32], strides = [1, 1]} : vector<144x32xf32> to vector<16x32xf32>
    %736 = arith.truncf %735 : vector<16x32xf32> to vector<16x32xbf16>
    %c1_437 = arith.constant 1 : index
    %c0_438 = arith.constant 0 : index
    %c0_439 = arith.constant 0 : index
    %737 = vector.load %arg19[%c1_437, %c0_438, %c0_439] : memref<9x32x128xbf16, #tpu.memory_space<vmem>>, vector<1x32x128xbf16>
    %738 = vector.shape_cast %737 : vector<1x32x128xbf16> to vector<32x128xbf16>
    %cst_440 = arith.constant dense<0.000000e+00> : vector<16x128xf32>
    %739 = tpu.matmul %736, %738, %cst_440 {dimension_numbers = #tpu.dot_dimension_numbers<[1], [0], [0], [1], [0, 0, 1, 1], [], []>} : vector<16x32xbf16>, vector<32x128xbf16>, vector<16x128xf32> -> vector<16x128xf32>
    %740 = arith.addf %734, %739 : vector<16x128xf32>
    %741 = vector.extract_strided_slice %727 {offsets = [32, 0], sizes = [16, 32], strides = [1, 1]} : vector<144x32xf32> to vector<16x32xf32>
    %742 = arith.truncf %741 : vector<16x32xf32> to vector<16x32xbf16>
    %c2_441 = arith.constant 2 : index
    %c0_442 = arith.constant 0 : index
    %c0_443 = arith.constant 0 : index
    %743 = vector.load %arg19[%c2_441, %c0_442, %c0_443] : memref<9x32x128xbf16, #tpu.memory_space<vmem>>, vector<1x32x128xbf16>
    %744 = vector.shape_cast %743 : vector<1x32x128xbf16> to vector<32x128xbf16>
    %cst_444 = arith.constant dense<0.000000e+00> : vector<16x128xf32>
    %745 = tpu.matmul %742, %744, %cst_444 {dimension_numbers = #tpu.dot_dimension_numbers<[1], [0], [0], [1], [0, 0, 1, 1], [], []>} : vector<16x32xbf16>, vector<32x128xbf16>, vector<16x128xf32> -> vector<16x128xf32>
    %746 = arith.addf %740, %745 : vector<16x128xf32>
    %747 = vector.extract_strided_slice %727 {offsets = [48, 0], sizes = [16, 32], strides = [1, 1]} : vector<144x32xf32> to vector<16x32xf32>
    %748 = arith.truncf %747 : vector<16x32xf32> to vector<16x32xbf16>
    %c3_445 = arith.constant 3 : index
    %c0_446 = arith.constant 0 : index
    %c0_447 = arith.constant 0 : index
    %749 = vector.load %arg19[%c3_445, %c0_446, %c0_447] : memref<9x32x128xbf16, #tpu.memory_space<vmem>>, vector<1x32x128xbf16>
    %750 = vector.shape_cast %749 : vector<1x32x128xbf16> to vector<32x128xbf16>
    %cst_448 = arith.constant dense<0.000000e+00> : vector<16x128xf32>
    %751 = tpu.matmul %748, %750, %cst_448 {dimension_numbers = #tpu.dot_dimension_numbers<[1], [0], [0], [1], [0, 0, 1, 1], [], []>} : vector<16x32xbf16>, vector<32x128xbf16>, vector<16x128xf32> -> vector<16x128xf32>
    %752 = arith.addf %746, %751 : vector<16x128xf32>
    %753 = vector.extract_strided_slice %727 {offsets = [64, 0], sizes = [16, 32], strides = [1, 1]} : vector<144x32xf32> to vector<16x32xf32>
    %754 = arith.truncf %753 : vector<16x32xf32> to vector<16x32xbf16>
    %c4_449 = arith.constant 4 : index
    %c0_450 = arith.constant 0 : index
    %c0_451 = arith.constant 0 : index
    %755 = vector.load %arg19[%c4_449, %c0_450, %c0_451] : memref<9x32x128xbf16, #tpu.memory_space<vmem>>, vector<1x32x128xbf16>
    %756 = vector.shape_cast %755 : vector<1x32x128xbf16> to vector<32x128xbf16>
    %cst_452 = arith.constant dense<0.000000e+00> : vector<16x128xf32>
    %757 = tpu.matmul %754, %756, %cst_452 {dimension_numbers = #tpu.dot_dimension_numbers<[1], [0], [0], [1], [0, 0, 1, 1], [], []>} : vector<16x32xbf16>, vector<32x128xbf16>, vector<16x128xf32> -> vector<16x128xf32>
    %758 = arith.addf %752, %757 : vector<16x128xf32>
    %759 = vector.extract_strided_slice %727 {offsets = [80, 0], sizes = [16, 32], strides = [1, 1]} : vector<144x32xf32> to vector<16x32xf32>
    %760 = arith.truncf %759 : vector<16x32xf32> to vector<16x32xbf16>
    %c5_453 = arith.constant 5 : index
    %c0_454 = arith.constant 0 : index
    %c0_455 = arith.constant 0 : index
    %761 = vector.load %arg19[%c5_453, %c0_454, %c0_455] : memref<9x32x128xbf16, #tpu.memory_space<vmem>>, vector<1x32x128xbf16>
    %762 = vector.shape_cast %761 : vector<1x32x128xbf16> to vector<32x128xbf16>
    %cst_456 = arith.constant dense<0.000000e+00> : vector<16x128xf32>
    %763 = tpu.matmul %760, %762, %cst_456 {dimension_numbers = #tpu.dot_dimension_numbers<[1], [0], [0], [1], [0, 0, 1, 1], [], []>} : vector<16x32xbf16>, vector<32x128xbf16>, vector<16x128xf32> -> vector<16x128xf32>
    %764 = arith.addf %758, %763 : vector<16x128xf32>
    %765 = vector.extract_strided_slice %727 {offsets = [96, 0], sizes = [16, 32], strides = [1, 1]} : vector<144x32xf32> to vector<16x32xf32>
    %766 = arith.truncf %765 : vector<16x32xf32> to vector<16x32xbf16>
    %c6_457 = arith.constant 6 : index
    %c0_458 = arith.constant 0 : index
    %c0_459 = arith.constant 0 : index
    %767 = vector.load %arg19[%c6_457, %c0_458, %c0_459] : memref<9x32x128xbf16, #tpu.memory_space<vmem>>, vector<1x32x128xbf16>
    %768 = vector.shape_cast %767 : vector<1x32x128xbf16> to vector<32x128xbf16>
    %cst_460 = arith.constant dense<0.000000e+00> : vector<16x128xf32>
    %769 = tpu.matmul %766, %768, %cst_460 {dimension_numbers = #tpu.dot_dimension_numbers<[1], [0], [0], [1], [0, 0, 1, 1], [], []>} : vector<16x32xbf16>, vector<32x128xbf16>, vector<16x128xf32> -> vector<16x128xf32>
    %770 = arith.addf %764, %769 : vector<16x128xf32>
    %771 = vector.extract_strided_slice %727 {offsets = [112, 0], sizes = [16, 32], strides = [1, 1]} : vector<144x32xf32> to vector<16x32xf32>
    %772 = arith.truncf %771 : vector<16x32xf32> to vector<16x32xbf16>
    %c7_461 = arith.constant 7 : index
    %c0_462 = arith.constant 0 : index
    %c0_463 = arith.constant 0 : index
    %773 = vector.load %arg19[%c7_461, %c0_462, %c0_463] : memref<9x32x128xbf16, #tpu.memory_space<vmem>>, vector<1x32x128xbf16>
    %774 = vector.shape_cast %773 : vector<1x32x128xbf16> to vector<32x128xbf16>
    %cst_464 = arith.constant dense<0.000000e+00> : vector<16x128xf32>
    %775 = tpu.matmul %772, %774, %cst_464 {dimension_numbers = #tpu.dot_dimension_numbers<[1], [0], [0], [1], [0, 0, 1, 1], [], []>} : vector<16x32xbf16>, vector<32x128xbf16>, vector<16x128xf32> -> vector<16x128xf32>
    %776 = arith.addf %770, %775 : vector<16x128xf32>
    %777 = vector.extract_strided_slice %727 {offsets = [128, 0], sizes = [16, 32], strides = [1, 1]} : vector<144x32xf32> to vector<16x32xf32>
    %778 = arith.truncf %777 : vector<16x32xf32> to vector<16x32xbf16>
    %c8_465 = arith.constant 8 : index
    %c0_466 = arith.constant 0 : index
    %c0_467 = arith.constant 0 : index
    %779 = vector.load %arg19[%c8_465, %c0_466, %c0_467] : memref<9x32x128xbf16, #tpu.memory_space<vmem>>, vector<1x32x128xbf16>
    %780 = vector.shape_cast %779 : vector<1x32x128xbf16> to vector<32x128xbf16>
    %cst_468 = arith.constant dense<0.000000e+00> : vector<16x128xf32>
    %781 = tpu.matmul %778, %780, %cst_468 {dimension_numbers = #tpu.dot_dimension_numbers<[1], [0], [0], [1], [0, 0, 1, 1], [], []>} : vector<16x32xbf16>, vector<32x128xbf16>, vector<16x128xf32> -> vector<16x128xf32>
    %782 = arith.addf %776, %781 : vector<16x128xf32>
    %c0_469 = arith.constant 0 : index
    %c0_470 = arith.constant 0 : index
    %783 = vector.load %arg17[%c0_469, %c0_470] : memref<16x1xf32, #tpu.memory_space<vmem>>, vector<16x1xf32>
    %c0_471 = arith.constant 0 : index
    %c0_472 = arith.constant 0 : index
    %784 = vector.load %arg18[%c0_471, %c0_472] : memref<16x1xf32, #tpu.memory_space<vmem>>, vector<16x1xf32>
    %cst_473 = arith.constant dense<0.000000e+00> : vector<16xf32>
    %785 = vector.multi_reduction <add>, %782, %cst_473 [1] : vector<16x128xf32> to vector<16xf32>
    %786 = vector.shape_cast %785 : vector<16xf32> to vector<16x1xf32>
    %cst_474 = arith.constant 1.280000e+02 : f32
    %787 = vector.broadcast %cst_474 : f32 to vector<16x1xf32>
    %788 = arith.divf %786, %787 : vector<16x1xf32>
    %789 = arith.mulf %782, %782 : vector<16x128xf32>
    %cst_475 = arith.constant dense<0.000000e+00> : vector<16xf32>
    %790 = vector.multi_reduction <add>, %789, %cst_475 [1] : vector<16x128xf32> to vector<16xf32>
    %791 = vector.shape_cast %790 : vector<16xf32> to vector<16x1xf32>
    %cst_476 = arith.constant 1.280000e+02 : f32
    %792 = vector.broadcast %cst_476 : f32 to vector<16x1xf32>
    %793 = arith.divf %791, %792 : vector<16x1xf32>
    %794 = arith.mulf %788, %788 : vector<16x1xf32>
    %795 = arith.subf %793, %794 : vector<16x1xf32>
    %cst_477 = arith.constant 0.000000e+00 : f32
    %796 = vector.broadcast %cst_477 : f32 to vector<16x1xf32>
    %797 = arith.maximumf %795, %796 : vector<16x1xf32>
    %798 = vector.broadcast %788 : vector<16x1xf32> to vector<16x128xf32>
    %799 = arith.subf %782, %798 : vector<16x128xf32>
    %cst_478 = arith.constant 9.99999974E-6 : f32
    %800 = vector.broadcast %cst_478 : f32 to vector<16x1xf32>
    %801 = arith.addf %797, %800 : vector<16x1xf32>
    %802 = math.rsqrt %801 : vector<16x1xf32>
    %803 = arith.mulf %783, %802 : vector<16x1xf32>
    %804 = vector.broadcast %803 : vector<16x1xf32> to vector<16x128xf32>
    %805 = arith.mulf %799, %804 : vector<16x128xf32>
    %806 = vector.broadcast %784 : vector<16x1xf32> to vector<16x128xf32>
    %807 = arith.addf %805, %806 : vector<16x128xf32>
    %cst_479 = arith.constant 0.000000e+00 : f32
    %808 = vector.broadcast %cst_479 : f32 to vector<16x128xf32>
    %809 = arith.maximumf %807, %808 : vector<16x128xf32>
    %810 = arith.truncf %809 : vector<16x128xf32> to vector<16x128xbf16>
    %c0_480 = arith.constant 0 : index
    %c0_481 = arith.constant 0 : index
    %811 = vector.load %arg20[%c0_480, %c0_481] : memref<72x16xbf16, #tpu.memory_space<vmem>>, vector<72x16xbf16>
    %cst_482 = arith.constant dense<0.000000e+00> : vector<72x128xf32>
    %812 = tpu.matmul %811, %810, %cst_482 {dimension_numbers = #tpu.dot_dimension_numbers<[1], [0], [0], [1], [0, 0, 1, 1], [], []>} : vector<72x16xbf16>, vector<16x128xbf16>, vector<72x128xf32> -> vector<72x128xf32>
    %cst_483 = arith.constant 0.000000e+00 : f32
    %813 = vector.broadcast %cst_483 : f32 to vector<8x512xf32>
    %814 = vector.extract_strided_slice %812 {offsets = [0, 0], sizes = [8, 128], strides = [1, 1]} : vector<72x128xf32> to vector<8x128xf32>
    %815 = arith.truncf %814 : vector<8x128xf32> to vector<8x128xbf16>
    %c0_484 = arith.constant 0 : index
    %c0_485 = arith.constant 0 : index
    %c0_486 = arith.constant 0 : index
    %816 = vector.load %arg23[%c0_484, %c0_485, %c0_486] : memref<9x128x512xbf16, #tpu.memory_space<vmem>>, vector<1x128x512xbf16>
    %817 = vector.shape_cast %816 : vector<1x128x512xbf16> to vector<128x512xbf16>
    %cst_487 = arith.constant dense<0.000000e+00> : vector<8x512xf32>
    %818 = tpu.matmul %815, %817, %cst_487 {dimension_numbers = #tpu.dot_dimension_numbers<[1], [0], [0], [1], [0, 0, 1, 1], [], []>} : vector<8x128xbf16>, vector<128x512xbf16>, vector<8x512xf32> -> vector<8x512xf32>
    %819 = arith.addf %813, %818 : vector<8x512xf32>
    %820 = vector.extract_strided_slice %812 {offsets = [8, 0], sizes = [8, 128], strides = [1, 1]} : vector<72x128xf32> to vector<8x128xf32>
    %821 = arith.truncf %820 : vector<8x128xf32> to vector<8x128xbf16>
    %c1_488 = arith.constant 1 : index
    %c0_489 = arith.constant 0 : index
    %c0_490 = arith.constant 0 : index
    %822 = vector.load %arg23[%c1_488, %c0_489, %c0_490] : memref<9x128x512xbf16, #tpu.memory_space<vmem>>, vector<1x128x512xbf16>
    %823 = vector.shape_cast %822 : vector<1x128x512xbf16> to vector<128x512xbf16>
    %cst_491 = arith.constant dense<0.000000e+00> : vector<8x512xf32>
    %824 = tpu.matmul %821, %823, %cst_491 {dimension_numbers = #tpu.dot_dimension_numbers<[1], [0], [0], [1], [0, 0, 1, 1], [], []>} : vector<8x128xbf16>, vector<128x512xbf16>, vector<8x512xf32> -> vector<8x512xf32>
    %825 = arith.addf %819, %824 : vector<8x512xf32>
    %826 = vector.extract_strided_slice %812 {offsets = [16, 0], sizes = [8, 128], strides = [1, 1]} : vector<72x128xf32> to vector<8x128xf32>
    %827 = arith.truncf %826 : vector<8x128xf32> to vector<8x128xbf16>
    %c2_492 = arith.constant 2 : index
    %c0_493 = arith.constant 0 : index
    %c0_494 = arith.constant 0 : index
    %828 = vector.load %arg23[%c2_492, %c0_493, %c0_494] : memref<9x128x512xbf16, #tpu.memory_space<vmem>>, vector<1x128x512xbf16>
    %829 = vector.shape_cast %828 : vector<1x128x512xbf16> to vector<128x512xbf16>
    %cst_495 = arith.constant dense<0.000000e+00> : vector<8x512xf32>
    %830 = tpu.matmul %827, %829, %cst_495 {dimension_numbers = #tpu.dot_dimension_numbers<[1], [0], [0], [1], [0, 0, 1, 1], [], []>} : vector<8x128xbf16>, vector<128x512xbf16>, vector<8x512xf32> -> vector<8x512xf32>
    %831 = arith.addf %825, %830 : vector<8x512xf32>
    %832 = vector.extract_strided_slice %812 {offsets = [24, 0], sizes = [8, 128], strides = [1, 1]} : vector<72x128xf32> to vector<8x128xf32>
    %833 = arith.truncf %832 : vector<8x128xf32> to vector<8x128xbf16>
    %c3_496 = arith.constant 3 : index
    %c0_497 = arith.constant 0 : index
    %c0_498 = arith.constant 0 : index
    %834 = vector.load %arg23[%c3_496, %c0_497, %c0_498] : memref<9x128x512xbf16, #tpu.memory_space<vmem>>, vector<1x128x512xbf16>
    %835 = vector.shape_cast %834 : vector<1x128x512xbf16> to vector<128x512xbf16>
    %cst_499 = arith.constant dense<0.000000e+00> : vector<8x512xf32>
    %836 = tpu.matmul %833, %835, %cst_499 {dimension_numbers = #tpu.dot_dimension_numbers<[1], [0], [0], [1], [0, 0, 1, 1], [], []>} : vector<8x128xbf16>, vector<128x512xbf16>, vector<8x512xf32> -> vector<8x512xf32>
    %837 = arith.addf %831, %836 : vector<8x512xf32>
    %838 = vector.extract_strided_slice %812 {offsets = [32, 0], sizes = [8, 128], strides = [1, 1]} : vector<72x128xf32> to vector<8x128xf32>
    %839 = arith.truncf %838 : vector<8x128xf32> to vector<8x128xbf16>
    %c4_500 = arith.constant 4 : index
    %c0_501 = arith.constant 0 : index
    %c0_502 = arith.constant 0 : index
    %840 = vector.load %arg23[%c4_500, %c0_501, %c0_502] : memref<9x128x512xbf16, #tpu.memory_space<vmem>>, vector<1x128x512xbf16>
    %841 = vector.shape_cast %840 : vector<1x128x512xbf16> to vector<128x512xbf16>
    %cst_503 = arith.constant dense<0.000000e+00> : vector<8x512xf32>
    %842 = tpu.matmul %839, %841, %cst_503 {dimension_numbers = #tpu.dot_dimension_numbers<[1], [0], [0], [1], [0, 0, 1, 1], [], []>} : vector<8x128xbf16>, vector<128x512xbf16>, vector<8x512xf32> -> vector<8x512xf32>
    %843 = arith.addf %837, %842 : vector<8x512xf32>
    %844 = vector.extract_strided_slice %812 {offsets = [40, 0], sizes = [8, 128], strides = [1, 1]} : vector<72x128xf32> to vector<8x128xf32>
    %845 = arith.truncf %844 : vector<8x128xf32> to vector<8x128xbf16>
    %c5_504 = arith.constant 5 : index
    %c0_505 = arith.constant 0 : index
    %c0_506 = arith.constant 0 : index
    %846 = vector.load %arg23[%c5_504, %c0_505, %c0_506] : memref<9x128x512xbf16, #tpu.memory_space<vmem>>, vector<1x128x512xbf16>
    %847 = vector.shape_cast %846 : vector<1x128x512xbf16> to vector<128x512xbf16>
    %cst_507 = arith.constant dense<0.000000e+00> : vector<8x512xf32>
    %848 = tpu.matmul %845, %847, %cst_507 {dimension_numbers = #tpu.dot_dimension_numbers<[1], [0], [0], [1], [0, 0, 1, 1], [], []>} : vector<8x128xbf16>, vector<128x512xbf16>, vector<8x512xf32> -> vector<8x512xf32>
    %849 = arith.addf %843, %848 : vector<8x512xf32>
    %850 = vector.extract_strided_slice %812 {offsets = [48, 0], sizes = [8, 128], strides = [1, 1]} : vector<72x128xf32> to vector<8x128xf32>
    %851 = arith.truncf %850 : vector<8x128xf32> to vector<8x128xbf16>
    %c6_508 = arith.constant 6 : index
    %c0_509 = arith.constant 0 : index
    %c0_510 = arith.constant 0 : index
    %852 = vector.load %arg23[%c6_508, %c0_509, %c0_510] : memref<9x128x512xbf16, #tpu.memory_space<vmem>>, vector<1x128x512xbf16>
    %853 = vector.shape_cast %852 : vector<1x128x512xbf16> to vector<128x512xbf16>
    %cst_511 = arith.constant dense<0.000000e+00> : vector<8x512xf32>
    %854 = tpu.matmul %851, %853, %cst_511 {dimension_numbers = #tpu.dot_dimension_numbers<[1], [0], [0], [1], [0, 0, 1, 1], [], []>} : vector<8x128xbf16>, vector<128x512xbf16>, vector<8x512xf32> -> vector<8x512xf32>
    %855 = arith.addf %849, %854 : vector<8x512xf32>
    %856 = vector.extract_strided_slice %812 {offsets = [56, 0], sizes = [8, 128], strides = [1, 1]} : vector<72x128xf32> to vector<8x128xf32>
    %857 = arith.truncf %856 : vector<8x128xf32> to vector<8x128xbf16>
    %c7_512 = arith.constant 7 : index
    %c0_513 = arith.constant 0 : index
    %c0_514 = arith.constant 0 : index
    %858 = vector.load %arg23[%c7_512, %c0_513, %c0_514] : memref<9x128x512xbf16, #tpu.memory_space<vmem>>, vector<1x128x512xbf16>
    %859 = vector.shape_cast %858 : vector<1x128x512xbf16> to vector<128x512xbf16>
    %cst_515 = arith.constant dense<0.000000e+00> : vector<8x512xf32>
    %860 = tpu.matmul %857, %859, %cst_515 {dimension_numbers = #tpu.dot_dimension_numbers<[1], [0], [0], [1], [0, 0, 1, 1], [], []>} : vector<8x128xbf16>, vector<128x512xbf16>, vector<8x512xf32> -> vector<8x512xf32>
    %861 = arith.addf %855, %860 : vector<8x512xf32>
    %862 = vector.extract_strided_slice %812 {offsets = [64, 0], sizes = [8, 128], strides = [1, 1]} : vector<72x128xf32> to vector<8x128xf32>
    %863 = arith.truncf %862 : vector<8x128xf32> to vector<8x128xbf16>
    %c8_516 = arith.constant 8 : index
    %c0_517 = arith.constant 0 : index
    %c0_518 = arith.constant 0 : index
    %864 = vector.load %arg23[%c8_516, %c0_517, %c0_518] : memref<9x128x512xbf16, #tpu.memory_space<vmem>>, vector<1x128x512xbf16>
    %865 = vector.shape_cast %864 : vector<1x128x512xbf16> to vector<128x512xbf16>
    %cst_519 = arith.constant dense<0.000000e+00> : vector<8x512xf32>
    %866 = tpu.matmul %863, %865, %cst_519 {dimension_numbers = #tpu.dot_dimension_numbers<[1], [0], [0], [1], [0, 0, 1, 1], [], []>} : vector<8x128xbf16>, vector<128x512xbf16>, vector<8x512xf32> -> vector<8x512xf32>
    %867 = arith.addf %861, %866 : vector<8x512xf32>
    %c0_520 = arith.constant 0 : index
    %c0_521 = arith.constant 0 : index
    %868 = vector.load %arg21[%c0_520, %c0_521] : memref<8x1xf32, #tpu.memory_space<vmem>>, vector<8x1xf32>
    %c0_522 = arith.constant 0 : index
    %c0_523 = arith.constant 0 : index
    %869 = vector.load %arg22[%c0_522, %c0_523] : memref<8x1xf32, #tpu.memory_space<vmem>>, vector<8x1xf32>
    %cst_524 = arith.constant dense<0.000000e+00> : vector<8xf32>
    %870 = vector.multi_reduction <add>, %867, %cst_524 [1] : vector<8x512xf32> to vector<8xf32>
    %871 = vector.shape_cast %870 : vector<8xf32> to vector<8x1xf32>
    %cst_525 = arith.constant 5.120000e+02 : f32
    %872 = vector.broadcast %cst_525 : f32 to vector<8x1xf32>
    %873 = arith.divf %871, %872 : vector<8x1xf32>
    %874 = arith.mulf %867, %867 : vector<8x512xf32>
    %cst_526 = arith.constant dense<0.000000e+00> : vector<8xf32>
    %875 = vector.multi_reduction <add>, %874, %cst_526 [1] : vector<8x512xf32> to vector<8xf32>
    %876 = vector.shape_cast %875 : vector<8xf32> to vector<8x1xf32>
    %cst_527 = arith.constant 5.120000e+02 : f32
    %877 = vector.broadcast %cst_527 : f32 to vector<8x1xf32>
    %878 = arith.divf %876, %877 : vector<8x1xf32>
    %879 = arith.mulf %873, %873 : vector<8x1xf32>
    %880 = arith.subf %878, %879 : vector<8x1xf32>
    %cst_528 = arith.constant 0.000000e+00 : f32
    %881 = vector.broadcast %cst_528 : f32 to vector<8x1xf32>
    %882 = arith.maximumf %880, %881 : vector<8x1xf32>
    %883 = vector.broadcast %873 : vector<8x1xf32> to vector<8x512xf32>
    %884 = arith.subf %867, %883 : vector<8x512xf32>
    %cst_529 = arith.constant 9.99999974E-6 : f32
    %885 = vector.broadcast %cst_529 : f32 to vector<8x1xf32>
    %886 = arith.addf %882, %885 : vector<8x1xf32>
    %887 = math.rsqrt %886 : vector<8x1xf32>
    %888 = arith.mulf %868, %887 : vector<8x1xf32>
    %889 = vector.broadcast %888 : vector<8x1xf32> to vector<8x512xf32>
    %890 = arith.mulf %884, %889 : vector<8x512xf32>
    %891 = vector.broadcast %869 : vector<8x1xf32> to vector<8x512xf32>
    %892 = arith.addf %890, %891 : vector<8x512xf32>
    %cst_530 = arith.constant 0.000000e+00 : f32
    %893 = vector.broadcast %cst_530 : f32 to vector<8x512xf32>
    %894 = arith.maximumf %892, %893 : vector<8x512xf32>
    %c0_531 = arith.constant 0 : index
    %c0_532 = arith.constant 0 : index
    %895 = vector.load %arg24[%c0_531, %c0_532] : memref<8x512xf32, #tpu.memory_space<vmem>>, vector<8x512xf32>
    tpu.vector_store %arg24[%c0_531, %c0_532], %894 {strides = array<i32>} : memref<8x512xf32, #tpu.memory_space<vmem>>, vector<8x512xf32>,
    return
  }
}

module attributes {stable_mosaic.version = 11 : i64} {
  func.func @_final_kernel(%arg0: memref<2x392xf32, #tpu.memory_space<vmem>>, %arg1: memref<392x512xf32, #tpu.memory_space<vmem>>, %arg2: memref<2x1xf32, #tpu.memory_space<vmem>>, %arg3: memref<2x512xf32, #tpu.memory_space<vmem>>) attributes {dimension_semantics = [], scalar_prefetch = 0 : i64, scratch_operands = 0 : i64, tpu.core_type = #tpu.core_type<tc>} {
    %c0 = arith.constant 0 : index
    %c0_0 = arith.constant 0 : index
    %0 = vector.load %arg0[%c0, %c0_0] : memref<2x392xf32, #tpu.memory_space<vmem>>, vector<2x392xf32>
    %c0_1 = arith.constant 0 : index
    %c0_2 = arith.constant 0 : index
    %1 = vector.load %arg1[%c0_1, %c0_2] : memref<392x512xf32, #tpu.memory_space<vmem>>, vector<392x512xf32>
    %cst = arith.constant dense<0.000000e+00> : vector<2x512xf32>
    %2 = tpu.matmul %0, %1, %cst {dimension_numbers = #tpu.dot_dimension_numbers<[1], [0], [0], [1], [0, 0, 1, 1], [], []>} : vector<2x392xf32>, vector<392x512xf32>, vector<2x512xf32> -> vector<2x512xf32>
    %c0_3 = arith.constant 0 : index
    %c0_4 = arith.constant 0 : index
    %3 = vector.load %arg2[%c0_3, %c0_4] : memref<2x1xf32, #tpu.memory_space<vmem>>, vector<2x1xf32>
    %4 = vector.broadcast %3 : vector<2x1xf32> to vector<2x512xf32>
    %5 = arith.addf %2, %4 : vector<2x512xf32>
    %cst_5 = arith.constant 0.000000e+00 : f32
    %cst_6 = arith.constant 1.000000e-01 : f32
    %6 = vector.broadcast %cst_5 : f32 to vector<2x512xf32>
    %7 = arith.maximumf %6, %5 : vector<2x512xf32>
    %8 = vector.broadcast %cst_6 : f32 to vector<2x512xf32>
    %9 = arith.minimumf %8, %7 : vector<2x512xf32>
    %c0_7 = arith.constant 0 : index
    %c0_8 = arith.constant 0 : index
    %10 = vector.load %arg3[%c0_7, %c0_8] : memref<2x512xf32, #tpu.memory_space<vmem>>, vector<2x512xf32>
    tpu.vector_store %arg3[%c0_7, %c0_8], %9 {strides = array<i32>} : memref<2x512xf32, #tpu.memory_space<vmem>>, vector<2x512xf32>,
    return
  }
}

</mosaic_0001>

<bundles_post_ra>
// kernel: deformation_net_forward.3
= control target key start
LH: loop header
LB: loop body
LE: loop exit
PB: predicated region body
PF: predicated region fallthrough
CT: control target
= control target key end

     0   :  { %v766_v3 = vmov 0   ;;  %vm238_vm0 = vcmask 64512   ;;  %s1410_s1 = inlined_call_operand.vmem [shape: f32[392,512], index: 1, kind: input, shape index: {}]   ;;  %s1411_s0 = inlined_call_operand.vmem [shape: f32[2,392], index: 0, kind: input, shape index: {}]   ;;  %s1412_s2 = inlined_call_operand.vmem [shape: f32[2,1], index: 2, kind: input, shape index: {}]   ;;  %s1413_s3 = inlined_call_operand.vmem [shape: f32[2,512], index: 3, kind: output, shape index: {}]  }
   0x1   :  { %v16_v0 = vld [vmem:[%s1410_s1 + $0x8] sm:$0xff]  ;;  %v18_v2 = vld [vmem:[%s1410_s1 + $0x18] sm:$0xff]  ;;  %764 = vset.pattern.permute.xlu0 %v766_v3  ;;  %v15_v6 = vld [vmem:[%s1410_s1] sm:$0xff] }
   0x2   :  { %v20_v1 = vld [vmem:[%s1410_s1 + $0x28] sm:$0xff]  ;;  %v22_v5 = vld [vmem:[%s1410_s1 + $0x38] sm:$0xff]  ;;  %v19_v7 = vld [vmem:[%s1410_s1 + $0x20] sm:$0xff] }
   0x3   :  { %v562_v4 = vpack.c.bf16 %v20_v1, %v16_v0  ;;  %v658_v8 = vpack.c.bf16 %v22_v5, %v18_v2  ;;  %v564_v9 = vpack.c.bf16 %v19_v7, %v15_v6  ;;  %v17_v10 = vld [vmem:[%s1410_s1 + $0x10] sm:$0xff]  ;;  %v24_v12 = vld [vmem:[%s1410_s1 + $0x48] sm:$0xff]  ;;  %v26_v15 = vld [vmem:[%s1410_s1 + $0x58] sm:$0xff] }
   0x4   :  { %v21_v11 = vld [vmem:[%s1410_s1 + $0x30] sm:$0xff]  ;;  %v28_v14 = vld [vmem:[%s1410_s1 + $0x68] sm:$0xff]  ;;  %v30_v16 = vld [vmem:[%s1410_s1 + $0x78] sm:$0xff] }
   0x5   :  { %563 = vmatprep.subr.bf16.mxu0 %v562_v4  ;;  %v660_v13 = vpack.c.bf16 %v21_v11, %v17_v10  ;;  %659 = vmatprep.subr.bf16.mxu1 %v658_v8  ;;  %v566_v17 = vpack.c.bf16 %v28_v14, %v24_v12  ;;  %v662_v18 = vpack.c.bf16 %v30_v16, %v26_v15  ;;  %v23_v19 = vld [vmem:[%s1410_s1 + $0x40] sm:$0xff]  ;;  %v25_v21 = vld [vmem:[%s1410_s1 + $0x50] sm:$0xff]  ;;  %v32_v24 = vld [vmem:[%s1410_s1 + $0x88] sm:$0xff] }
   0x6   :  { %565 = vmatpush1.bf16.msra.mxu0 %v564_v9  ;;  %v27_v20 = vld [vmem:[%s1410_s1 + $0x60] sm:$0xff]  ;;  %v29_v23 = vld [vmem:[%s1410_s1 + $0x70] sm:$0xff]  ;;  %v36_v25 = vld [vmem:[%s1410_s1 + $0xa8] sm:$0xff] }
   0x7   :  { %661 = vmatpush1.bf16.msra.mxu1 %v660_v13  ;;  %v568_v22 = vpack.c.bf16 %v27_v20, %v23_v19  ;;  %567 = vmatprep.subr.bf16.mxu0 %v566_v17  ;;  %v664_v26 = vpack.c.bf16 %v29_v23, %v25_v21  ;;  %v570_v27 = vpack.c.bf16 %v36_v25, %v32_v24  ;;  %v34_v28 = vld [vmem:[%s1410_s1 + $0x98] sm:$0xff]  ;;  %v31_v30 = vld [vmem:[%s1410_s1 + $0x80] sm:$0xff]  ;;  %v33_v33 = vld [vmem:[%s1410_s1 + $0x90] sm:$0xff] }
   0x8   :  { %663 = vmatprep.subr.bf16.mxu1 %v662_v18  ;;  %v38_v29 = vld [vmem:[%s1410_s1 + $0xb8] sm:$0xff]  ;;  %v35_v32 = vld [vmem:[%s1410_s1 + $0xa0] sm:$0xff]  ;;  %v37_v34 = vld [vmem:[%s1410_s1 + $0xb0] sm:$0xff] }
   0x9   :  { %v666_v31 = vpack.c.bf16 %v38_v29, %v34_v28  ;;  %v572_v35 = vpack.c.bf16 %v35_v32, %v31_v30  ;;  %v40_v36 = vld [vmem:[%s1410_s1 + $0xc8] sm:$0xff]  ;;  %v42_v38 = vld [vmem:[%s1410_s1 + $0xd8] sm:$0xff]  ;;  %v668_v39 = vpack.c.bf16 %v37_v34, %v33_v33  ;;  %v39_v42 = vld [vmem:[%s1410_s1 + $0xc0] sm:$0xff] }
   0xa   :  { %569 = vmatpush1.bf16.msra.mxu0 %v568_v22  ;;  %v44_v37 = vld [vmem:[%s1410_s1 + $0xe8] sm:$0xff]  ;;  %v46_v41 = vld [vmem:[%s1410_s1 + $0xf8] sm:$0xff]  ;;  %v43_v43 = vld [vmem:[%s1410_s1 + $0xe0] sm:$0xff] }
   0xb   :  { %665 = vmatpush1.bf16.msra.mxu1 %v664_v26  ;;  %571 = vmatprep.subr.bf16.mxu0 %v570_v27  ;;  %v574_v40 = vpack.c.bf16 %v44_v37, %v40_v36  ;;  %v670_v44 = vpack.c.bf16 %v46_v41, %v42_v38  ;;  %v41_v45 = vld [vmem:[%s1410_s1 + $0xd0] sm:$0xff]  ;;  %v48_v47 = vld [vmem:[%s1410_s1 + $0x108] sm:$0xff]  ;;  %v50_v49 = vld [vmem:[%s1410_s1 + $0x118] sm:$0xff]  ;;  %v576_v51 = vpack.c.bf16 %v43_v43, %v39_v42 }
   0xc   :  { %667 = vmatprep.subr.bf16.mxu1 %v666_v31  ;;  %v45_v46 = vld [vmem:[%s1410_s1 + $0xf0] sm:$0xff]  ;;  %v52_v48 = vld [vmem:[%s1410_s1 + $0x128] sm:$0xff]  ;;  %v54_v50 = vld [vmem:[%s1410_s1 + $0x138] sm:$0xff] }
   0xd   :  { %v672_v52 = vpack.c.bf16 %v45_v46, %v41_v45  ;;  %v578_v53 = vpack.c.bf16 %v52_v48, %v48_v47  ;;  %v47_v54 = vld [vmem:[%s1410_s1 + $0x100] sm:$0xff]  ;;  %v49_v56 = vld [vmem:[%s1410_s1 + $0x110] sm:$0xff]  ;;  %v674_v57 = vpack.c.bf16 %v54_v50, %v50_v49  ;;  %v56_v59 = vld [vmem:[%s1410_s1 + $0x148] sm:$0xff]  ;;  %v767_v47 = vmov 1983009808  }
   0xe   :  { %573 = vmatpush1.bf16.msra.mxu0 %v572_v35  ;;  %v51_v55 = vld [vmem:[%s1410_s1 + $0x120] sm:$0xff]  ;;  %v53_v58 = vld [vmem:[%s1410_s1 + $0x130] sm:$0xff]  ;;  %v60_v60 = vld [vmem:[%s1410_s1 + $0x168] sm:$0xff]  ;;  %v220_v48 = vunpack.c.l.s4 %v767_v47  ;;  %v222_v49 = vlaneseq }
   0xf   :  { %669 = vmatpush1.bf16.msra.mxu1 %v668_v39  ;;  %575 = vmatprep.subr.bf16.mxu0 %v574_v40  ;;  %v58_v61 = vld [vmem:[%s1410_s1 + $0x158] sm:$0xff]  ;;  %v580_v63 = vpack.c.bf16 %v51_v55, %v47_v54  ;;  %v676_v0 = vpack.c.bf16 %v53_v58, %v49_v56  ;;  %v582_v1 = vpack.c.bf16 %v60_v60, %v56_v59  ;;  %v55_v2 = vld [vmem:[%s1410_s1 + $0x140] sm:$0xff]  ;;  %v57_v4 = vld [vmem:[%s1410_s1 + $0x150] sm:$0xff] }
  0x10   :  { %671 = vmatprep.subr.bf16.mxu1 %v670_v44  ;;  %v62_v62 = vld [vmem:[%s1410_s1 + $0x178] sm:$0xff]  ;;  %v59_v3 = vld [vmem:[%s1410_s1 + $0x160] sm:$0xff]  ;;  %v61_v6 = vld [vmem:[%s1410_s1 + $0x170] sm:$0xff] }
  0x11   :  { %v678_v5 = vpack.c.bf16 %v62_v62, %v58_v61  ;;  %v64_v7 = vld [vmem:[%s1410_s1 + $0x188] sm:$0xff]  ;;  %v66_v9 = vld [vmem:[%s1410_s1 + $0x198] sm:$0xff]  ;;  %v584_v11 = vpack.c.bf16 %v59_v3, %v55_v2  ;;  %v680_v12 = vpack.c.bf16 %v61_v6, %v57_v4  ;;  %v63_v14 = vld [vmem:[%s1410_s1 + $0x180] sm:$0xff]  ;;  %v221_v62 = vunpack.c.0.s8 %v220_v48 }
  0x12   :  { %577 = vmatpush1.bf16.msra.mxu0 %v576_v51  ;;  %v68_v8 = vld [vmem:[%s1410_s1 + $0x1a8] sm:$0xff]  ;;  %v70_v10 = vld [vmem:[%s1410_s1 + $0x1b8] sm:$0xff]  ;;  %v67_v15 = vld [vmem:[%s1410_s1 + $0x1a0] sm:$0xff] }
  0x13   :  { %673 = vmatpush1.bf16.msra.mxu1 %v672_v52  ;;  %579 = vmatprep.subr.bf16.mxu0 %v578_v53  ;;  %v586_v13 = vpack.c.bf16 %v68_v8, %v64_v7  ;;  %v65_v16 = vld [vmem:[%s1410_s1 + $0x190] sm:$0xff]  ;;  %v682_v17 = vpack.c.bf16 %v70_v10, %v66_v9  ;;  %v72_v19 = vld [vmem:[%s1410_s1 + $0x1c8] sm:$0xff]  ;;  %v74_v21 = vld [vmem:[%s1410_s1 + $0x1d8] sm:$0xff]  ;;  %v588_v23 = vpack.c.bf16 %v67_v15, %v63_v14 }
  0x14   :  { %675 = vmatprep.subr.bf16.mxu1 %v674_v57  ;;  %v69_v18 = vld [vmem:[%s1410_s1 + $0x1b0] sm:$0xff]  ;;  %v76_v20 = vld [vmem:[%s1410_s1 + $0x1e8] sm:$0xff]  ;;  %v78_v22 = vld [vmem:[%s1410_s1 + $0x1f8] sm:$0xff] }
  0x15   :  { %v684_v24 = vpack.c.bf16 %v69_v18, %v65_v16  ;;  %v590_v25 = vpack.c.bf16 %v76_v20, %v72_v19  ;;  %v71_v26 = vld [vmem:[%s1410_s1 + $0x1c0] sm:$0xff]  ;;  %v73_v28 = vld [vmem:[%s1410_s1 + $0x1d0] sm:$0xff]  ;;  %v686_v29 = vpack.c.bf16 %v78_v22, %v74_v21  ;;  %v80_v31 = vld [vmem:[%s1410_s1 + $0x208] sm:$0xff] }
  0x16   :  { %581 = vmatpush1.bf16.msra.mxu0 %v580_v63  ;;  %v75_v27 = vld [vmem:[%s1410_s1 + $0x1e0] sm:$0xff]  ;;  %v77_v30 = vld [vmem:[%s1410_s1 + $0x1f0] sm:$0xff]  ;;  %v84_v32 = vld [vmem:[%s1410_s1 + $0x228] sm:$0xff]  ;;  %v223_v63 = vshrl.u32 %v222_v49, 7 }
  0x17   :  { %677 = vmatpush1.bf16.msra.mxu1 %v676_v0  ;;  %583 = vmatprep.subr.bf16.mxu0 %v582_v1  ;;  %v82_v33 = vld [vmem:[%s1410_s1 + $0x218] sm:$0xff]  ;;  %v592_v35 = vpack.c.bf16 %v75_v27, %v71_v26  ;;  %v688_v36 = vpack.c.bf16 %v77_v30, %v73_v28  ;;  %v594_v37 = vpack.c.bf16 %v84_v32, %v80_v31  ;;  %v79_v38 = vld [vmem:[%s1410_s1 + $0x200] sm:$0xff]  ;;  %v81_v40 = vld [vmem:[%s1410_s1 + $0x210] sm:$0xff] }
  0x18   :  { %679 = vmatprep.subr.bf16.mxu1 %v678_v5  ;;  %v86_v34 = vld [vmem:[%s1410_s1 + $0x238] sm:$0xff]  ;;  %v83_v39 = vld [vmem:[%s1410_s1 + $0x220] sm:$0xff]  ;;  %v85_v42 = vld [vmem:[%s1410_s1 + $0x230] sm:$0xff] }
  0x19   :  { %v690_v41 = vpack.c.bf16 %v86_v34, %v82_v33  ;;  %v88_v43 = vld [vmem:[%s1410_s1 + $0x248] sm:$0xff]  ;;  %v90_v45 = vld [vmem:[%s1410_s1 + $0x258] sm:$0xff]  ;;  %v596_v50 = vpack.c.bf16 %v83_v39, %v79_v38  ;;  %v692_v51 = vpack.c.bf16 %v85_v42, %v81_v40  ;;  %v87_v53 = vld [vmem:[%s1410_s1 + $0x240] sm:$0xff] }
  0x1a   :  { %585 = vmatpush1.bf16.msra.mxu0 %v584_v11  ;;  %v92_v44 = vld [vmem:[%s1410_s1 + $0x268] sm:$0xff]  ;;  %v94_v46 = vld [vmem:[%s1410_s1 + $0x278] sm:$0xff]  ;;  %v91_v54 = vld [vmem:[%s1410_s1 + $0x260] sm:$0xff] }
  0x1b   :  { %681 = vmatpush1.bf16.msra.mxu1 %v680_v12  ;;  %587 = vmatprep.subr.bf16.mxu0 %v586_v13  ;;  %v598_v52 = vpack.c.bf16 %v92_v44, %v88_v43  ;;  %v89_v55 = vld [vmem:[%s1410_s1 + $0x250] sm:$0xff]  ;;  %v694_v56 = vpack.c.bf16 %v94_v46, %v90_v45  ;;  %v96_v58 = vld [vmem:[%s1410_s1 + $0x288] sm:$0xff]  ;;  %v98_v60 = vld [vmem:[%s1410_s1 + $0x298] sm:$0xff]  ;;  %v600_v0 = vpack.c.bf16 %v91_v54, %v87_v53 }
  0x1c   :  { %683 = vmatprep.subr.bf16.mxu1 %v682_v17  ;;  %v93_v57 = vld [vmem:[%s1410_s1 + $0x270] sm:$0xff]  ;;  %v100_v59 = vld [vmem:[%s1410_s1 + $0x2a8] sm:$0xff]  ;;  %v102_v61 = vld [vmem:[%s1410_s1 + $0x2b8] sm:$0xff]  ;;  %v1064_v12 = vsub.s32 %v221_v62, %v223_v63 }
  0x1d   :  { %v696_v1 = vpack.c.bf16 %v93_v57, %v89_v55  ;;  %v602_v2 = vpack.c.bf16 %v100_v59, %v96_v58  ;;  %v95_v3 = vld [vmem:[%s1410_s1 + $0x280] sm:$0xff]  ;;  %v97_v5 = vld [vmem:[%s1410_s1 + $0x290] sm:$0xff]  ;;  %v698_v6 = vpack.c.bf16 %v102_v61, %v98_v60  ;;  %v104_v8 = vld [vmem:[%s1410_s1 + $0x2c8] sm:$0xff] }
  0x1e   :  { %589 = vmatpush1.bf16.msra.mxu0 %v588_v23  ;;  %v99_v4 = vld [vmem:[%s1410_s1 + $0x2a0] sm:$0xff]  ;;  %v101_v7 = vld [vmem:[%s1410_s1 + $0x2b0] sm:$0xff]  ;;  %v108_v9 = vld [vmem:[%s1410_s1 + $0x2e8] sm:$0xff] }
  0x1f   :  { %685 = vmatpush1.bf16.msra.mxu1 %v684_v24  ;;  %591 = vmatprep.subr.bf16.mxu0 %v590_v25  ;;  %v106_v10 = vld [vmem:[%s1410_s1 + $0x2d8] sm:$0xff]  ;;  %v604_v13 = vpack.c.bf16 %v99_v4, %v95_v3  ;;  %v103_v14 = vld [vmem:[%s1410_s1 + $0x2c0] sm:$0xff]  ;;  %v700_v15 = vpack.c.bf16 %v101_v7, %v97_v5  ;;  %v606_v16 = vpack.c.bf16 %v108_v9, %v104_v8  ;;  %v105_v18 = vld [vmem:[%s1410_s1 + $0x2d0] sm:$0xff] }
  0x20   :  { %687 = vmatprep.subr.bf16.mxu1 %v686_v29  ;;  %v110_v11 = vld [vmem:[%s1410_s1 + $0x2f8] sm:$0xff]  ;;  %v107_v17 = vld [vmem:[%s1410_s1 + $0x2e0] sm:$0xff]  ;;  %v109_v19 = vld [vmem:[%s1410_s1 + $0x2f0] sm:$0xff] }
  0x21   :  { %v702_v20 = vpack.c.bf16 %v110_v11, %v106_v10  ;;  %v112_v21 = vld [vmem:[%s1410_s1 + $0x308] sm:$0xff]  ;;  %v1087_v23 = vld [vmem:[%s1411_s0] sm:$0xff]  ;;  %v114_v24 = vld [vmem:[%s1410_s1 + $0x318] sm:$0xff]  ;;  %v608_v27 = vpack.c.bf16 %v107_v17, %v103_v14  ;;  %v704_v28 = vpack.c.bf16 %v109_v19, %v105_v18 }
  0x22   :  { %593 = vmatpush1.bf16.msra.mxu0 %v592_v35  ;;  %v116_v22 = vld [vmem:[%s1410_s1 + $0x328] sm:$0xff]  ;;  %v118_v25 = vld [vmem:[%s1410_s1 + $0x338] sm:$0xff]  ;;  %v1097_v26 = vrot.slane %v1087_v23, %v1064_v12  ;;  %v111_v30 = vld [vmem:[%s1410_s1 + $0x300] sm:$0xff]  ;;  %v218_v8 = vcombine.high %v1087_v23, %v1087_v23 }
  0x23   :  { %689 = vmatpush1.bf16.msra.mxu1 %v688_v36  ;;  %595 = vmatprep.subr.bf16.mxu0 %v594_v37  ;;  %v610_v29 = vpack.c.bf16 %v116_v22, %v112_v21  ;;  %v115_v31 = vld [vmem:[%s1410_s1 + $0x320] sm:$0xff]  ;;  %v113_v32 = vld [vmem:[%s1410_s1 + $0x310] sm:$0xff]  ;;  %v706_v34 = vpack.c.bf16 %v118_v25, %v114_v24  ;;  %v120_v36 = vld [vmem:[%s1410_s1 + $0x348] sm:$0xff] }
  0x24   :  { %691 = vmatprep.subr.bf16.mxu1 %v690_v41  ;;  %v233_v33 = vcombine.high %v1097_v26, %v1097_v26  ;;  %v117_v35 = vld [vmem:[%s1410_s1 + $0x330] sm:$0xff]  ;;  %v124_v37 = vld [vmem:[%s1410_s1 + $0x368] sm:$0xff]  ;;  %v122_v38 = vld [vmem:[%s1410_s1 + $0x358] sm:$0xff]  ;;  %v612_v40 = vpack.c.bf16 %v115_v31, %v111_v30 }
  0x25   :  { %v126_v39 = vld [vmem:[%s1410_s1 + $0x378] sm:$0xff]  ;;  %v708_v41 = vpack.c.bf16 %v117_v35, %v113_v32  ;;  %v614_v42 = vpack.c.bf16 %v124_v37, %v120_v36  ;;  %v119_v43 = vld [vmem:[%s1410_s1 + $0x340] sm:$0xff]  ;;  %v121_v45 = vld [vmem:[%s1410_s1 + $0x350] sm:$0xff] }
  0x26   :  { %597 = vmatpush1.bf16.msra.mxu0 %v596_v50  ;;  %305 = vmatprep.mubr.f32.mxu0 %v233_v33  ;;  %v123_v44 = vld [vmem:[%s1410_s1 + $0x360] sm:$0xff]  ;;  %v710_v46 = vpack.c.bf16 %v126_v39, %v122_v38  ;;  %v125_v47 = vld [vmem:[%s1410_s1 + $0x370] sm:$0xff]  ;;  %v128_v48 = vld [vmem:[%s1410_s1 + $0x388] sm:$0xff] }
  0x27   :  { %693 = vmatpush1.bf16.msra.mxu1 %v692_v51  ;;  %599 = vmatprep.subr.bf16.mxu0 %v598_v52  ;;  %v132_v49 = vld [vmem:[%s1410_s1 + $0x3a8] sm:$0xff]  ;;  %v130_v50 = vld [vmem:[%s1410_s1 + $0x398] sm:$0xff]  ;;  %v616_v52 = vpack.c.bf16 %v123_v44, %v119_v43  ;;  %v712_v53 = vpack.c.bf16 %v125_v47, %v121_v45  ;;  %v127_v55 = vld [vmem:[%s1410_s1 + $0x380] sm:$0xff] }
  0x28   :  { %695 = vmatprep.subr.bf16.mxu1 %v694_v56  ;;  %447 = vmatprep.mubr.f32.mxu1 %v233_v33  ;;  %v134_v51 = vld [vmem:[%s1410_s1 + $0x3b8] sm:$0xff]  ;;  %v618_v54 = vpack.c.bf16 %v132_v49, %v128_v48  ;;  %v131_v56 = vld [vmem:[%s1410_s1 + $0x3a0] sm:$0xff]  ;;  %v129_v57 = vld [vmem:[%s1410_s1 + $0x390] sm:$0xff] }
  0x29   :  { %v714_v58 = vpack.c.bf16 %v134_v51, %v130_v50  ;;  %v133_v59 = vld [vmem:[%s1410_s1 + $0x3b0] sm:$0xff]  ;;  %v136_v60 = vld [vmem:[%s1410_s1 + $0x3c8] sm:$0xff]  ;;  %v138_v62 = vld [vmem:[%s1410_s1 + $0x3d8] sm:$0xff] }
  0x2a   :  { %601 = vmatpush1.bf16.msra.mxu0 %v600_v0  ;;  %v140_v61 = vld [vmem:[%s1410_s1 + $0x3e8] sm:$0xff]  ;;  %v142_v63 = vld [vmem:[%s1410_s1 + $0x3f8] sm:$0xff]  ;;  %v620_v0 = vpack.c.bf16 %v131_v56, %v127_v55  ;;  %v135_v3 = vld [vmem:[%s1410_s1 + $0x3c0] sm:$0xff] }
  0x2b   :  { %697 = vmatpush1.bf16.msra.mxu1 %v696_v1  ;;  %603 = vmatprep.subr.bf16.mxu0 %v602_v2  ;;  %v716_v1 = vpack.c.bf16 %v133_v59, %v129_v57  ;;  %v622_v2 = vpack.c.bf16 %v140_v61, %v136_v60  ;;  %v139_v4 = vld [vmem:[%s1410_s1 + $0x3e0] sm:$0xff]  ;;  %v137_v5 = vld [vmem:[%s1410_s1 + $0x3d0] sm:$0xff]  ;;  %v144_v9 = vld [vmem:[%s1410_s1 + $0x408] sm:$0xff] }
  0x2c   :  { %699 = vmatprep.subr.bf16.mxu1 %v698_v6  ;;  %v718_v6 = vpack.c.bf16 %v142_v63, %v138_v62  ;;  %v141_v7 = vld [vmem:[%s1410_s1 + $0x3f0] sm:$0xff]  ;;  %v148_v10 = vld [vmem:[%s1410_s1 + $0x428] sm:$0xff]  ;;  %v146_v11 = vld [vmem:[%s1410_s1 + $0x418] sm:$0xff]  ;;  %v624_v14 = vpack.c.bf16 %v139_v4, %v135_v3 }
  0x2d   :  { %v143_v17 = vld [vmem:[%s1410_s1 + $0x400] sm:$0xff]  ;;  %v145_v19 = vld [vmem:[%s1410_s1 + $0x410] sm:$0xff]  ;;  %v152_v23 = vld [vmem:[%s1410_s1 + $0x448] sm:$0xff] }
  0x2e   :  { %605 = vmatpush1.bf16.msra.mxu0 %v604_v13  ;;  %v150_v13 = vld [vmem:[%s1410_s1 + $0x438] sm:$0xff]  ;;  %v147_v18 = vld [vmem:[%s1410_s1 + $0x420] sm:$0xff]  ;;  %v149_v22 = vld [vmem:[%s1410_s1 + $0x430] sm:$0xff] }
  0x2f   :  { %701 = vmatpush1.bf16.msra.mxu1 %v700_v15  ;;  %607 = vmatprep.subr.bf16.mxu0 %v606_v16  ;;  %v720_v15 = vpack.c.bf16 %v141_v7, %v137_v5  ;;  %v626_v16 = vpack.c.bf16 %v148_v10, %v144_v9  ;;  %v722_v21 = vpack.c.bf16 %v150_v13, %v146_v11  ;;  %v156_v24 = vld [vmem:[%s1410_s1 + $0x468] sm:$0xff]  ;;  %v154_v25 = vld [vmem:[%s1410_s1 + $0x458] sm:$0xff]  ;;  %v155_v32 = vld [vmem:[%s1410_s1 + $0x460] sm:$0xff] }
  0x30   :  { %703 = vmatprep.subr.bf16.mxu1 %v702_v20  ;;  %v1209_v20 = vrot.slane %v218_v8, %v1064_v12  ;;  %v724_v30 = vpack.c.bf16 %v149_v22, %v145_v19  ;;  %v630_v31 = vpack.c.bf16 %v156_v24, %v152_v23  ;;  %v153_v33 = vld [vmem:[%s1410_s1 + $0x450] sm:$0xff]  ;;  %v160_v37 = vld [vmem:[%s1410_s1 + $0x488] sm:$0xff]  ;;  %v159_v45 = vld [vmem:[%s1410_s1 + $0x480] sm:$0xff] }
  0x31   :  { %v157_v36 = vld [vmem:[%s1410_s1 + $0x470] sm:$0xff]  ;;  %v164_v38 = vld [vmem:[%s1410_s1 + $0x4a8] sm:$0xff]  ;;  %v170_v51 = vld [vmem:[%s1410_s1 + $0x4d8] sm:$0xff] }
  0x32   :  { %609 = vmatpush1.bf16.msra.mxu0 %v608_v27  ;;  %v158_v27 = vld [vmem:[%s1410_s1 + $0x478] sm:$0xff]  ;;  %v234_v39 = vcombine.high %v1209_v20, %v1209_v20  ;;  %v728_v43 = vpack.c.bf16 %v157_v36, %v153_v33  ;;  %v634_v44 = vpack.c.bf16 %v164_v38, %v160_v37  ;;  %v161_v47 = vld [vmem:[%s1410_s1 + $0x490] sm:$0xff]  ;;  %v168_v49 = vld [vmem:[%s1410_s1 + $0x4c8] sm:$0xff] }
  0x33   :  { %705 = vmatpush1.bf16.msra.mxu1 %v704_v28  ;;  %611 = vmatprep.subr.bf16.mxu0 %v610_v29  ;;  %v628_v28 = vpack.c.bf16 %v147_v18, %v143_v17  ;;  %v151_v29 = vld [vmem:[%s1410_s1 + $0x440] sm:$0xff]  ;;  %v726_v35 = vpack.c.bf16 %v158_v27, %v154_v25  ;;  %v172_v50 = vld [vmem:[%s1410_s1 + $0x4e8] sm:$0xff]  ;;  %v173_v60 = vld [vmem:[%s1410_s1 + $0x4f0] sm:$0xff] }
  0x34   :  { %707 = vmatprep.subr.bf16.mxu1 %v706_v34  ;;  %v211_v34 = vld [vmem:[%s1412_s2] sm:$0x3]  ;;  %v638_v55 = vpack.c.bf16 %v172_v50, %v168_v49  ;;  %v176_v61 = vld [vmem:[%s1410_s1 + $0x508] sm:$0xff]  ;;  %v178_v63 = vld [vmem:[%s1410_s1 + $0x518] sm:$0xff] }
  0x35   :  { %214 = vperm.xlu0 %764, %v211_v34   ;;  %v167_v56 = vld [vmem:[%s1410_s1 + $0x4c0] sm:$0xff]  ;;  %v180_v62 = vld [vmem:[%s1410_s1 + $0x528] sm:$0xff]  ;;  %v181_v8 = vld [vmem:[%s1410_s1 + $0x530] sm:$0xff] }
  0x36   :  { %613 = vmatpush1.bf16.msra.mxu0 %v612_v40  ;;  %v162_v40 = vld [vmem:[%s1410_s1 + $0x498] sm:$0xff]  ;;  %v171_v57 = vld [vmem:[%s1410_s1 + $0x4e0] sm:$0xff]  ;;  %v642_v3 = vpack.c.bf16 %v180_v62, %v176_v61  ;;  %v184_v9 = vld [vmem:[%s1410_s1 + $0x548] sm:$0xff] }
  0x37   :  { %709 = vmatpush1.bf16.msra.mxu1 %v708_v41  ;;  %615 = vmatprep.subr.bf16.mxu0 %v614_v42  ;;  %v166_v41 = vld [vmem:[%s1410_s1 + $0x4b8] sm:$0xff]  ;;  %v632_v42 = vpack.c.bf16 %v155_v32, %v151_v29  ;;  %v175_v4 = vld [vmem:[%s1410_s1 + $0x500] sm:$0xff]  ;;  %v188_v10 = vld [vmem:[%s1410_s1 + $0x568] sm:$0xff] }
  0x38   :  { %711 = vmatprep.subr.bf16.mxu1 %v710_v46  ;;  %v163_v46 = vld [vmem:[%s1410_s1 + $0x4a0] sm:$0xff]  ;;  %v730_v48 = vpack.c.bf16 %v166_v41, %v162_v40  ;;  %v186_v11 = vld [vmem:[%s1410_s1 + $0x558] sm:$0xff]  ;;  %v185_v19 = vld [vmem:[%s1410_s1 + $0x550] sm:$0xff] }
  0x39   :  { %v179_v5 = vld [vmem:[%s1410_s1 + $0x520] sm:$0xff]  ;;  %v190_v13 = vld [vmem:[%s1410_s1 + $0x578] sm:$0xff]  ;;  %v189_v22 = vld [vmem:[%s1410_s1 + $0x570] sm:$0xff] }
  0x3a   :  { %617 = vmatpush1.bf16.msra.mxu0 %v616_v52  ;;  %v174_v52 = vld [vmem:[%s1410_s1 + $0x4f8] sm:$0xff]  ;;  %v183_v17 = vld [vmem:[%s1410_s1 + $0x540] sm:$0xff]  ;;  %v192_v23 = vld [vmem:[%s1410_s1 + $0x588] sm:$0xff]  ;;  %v744_v29 = vpack.c.bf16 %v189_v22, %v185_v19 }
  0x3b   :  { %713 = vmatpush1.bf16.msra.mxu1 %v712_v53  ;;  %619 = vmatprep.subr.bf16.mxu0 %v618_v54  ;;  %v636_v53 = vpack.c.bf16 %v163_v46, %v159_v45  ;;  %v734_v59 = vpack.c.bf16 %v174_v52, %v170_v51  ;;  %v187_v18 = vld [vmem:[%s1410_s1 + $0x560] sm:$0xff]  ;;  %v196_v24 = vld [vmem:[%s1410_s1 + $0x5a8] sm:$0xff]  ;;  %v194_v25 = vld [vmem:[%s1410_s1 + $0x598] sm:$0xff] }
  0x3c   :  { %715 = vmatprep.subr.bf16.mxu1 %v714_v58  ;;  %v169_v58 = vld [vmem:[%s1410_s1 + $0x4d0] sm:$0xff]  ;;  %v198_v27 = vld [vmem:[%s1410_s1 + $0x5b8] sm:$0xff]  ;;  %v195_v32 = vld [vmem:[%s1410_s1 + $0x5a0] sm:$0xff] }
  0x3d   :  { %v193_v33 = vld [vmem:[%s1410_s1 + $0x590] sm:$0xff]  ;;  %v746_v34 = vpack.c.bf16 %v198_v27, %v194_v25  ;;  %v200_v36 = vld [vmem:[%s1410_s1 + $0x5c8] sm:$0xff]  ;;  %v202_v38 = vld [vmem:[%s1410_s1 + $0x5d8] sm:$0xff] }
  0x3e   :  { %621 = vmatpush1.bf16.msra.mxu0 %v620_v0  ;;  %v182_v0 = vld [vmem:[%s1410_s1 + $0x538] sm:$0xff]  ;;  %v204_v37 = vld [vmem:[%s1410_s1 + $0x5e8] sm:$0xff]  ;;  %v201_v46 = vld [vmem:[%s1410_s1 + $0x5d0] sm:$0xff] }
  0x3f   :  { %717 = vmatpush1.bf16.msra.mxu1 %v716_v1  ;;  %623 = vmatprep.subr.bf16.mxu0 %v622_v2  ;;  %v640_v1 = vpack.c.bf16 %v171_v57, %v167_v56  ;;  %v736_v2 = vpack.c.bf16 %v173_v60, %v169_v58  ;;  %v738_v7 = vpack.c.bf16 %v182_v0, %v178_v63  ;;  %v208_v49 = vld [vmem:[%s1410_s1 + $0x608] sm:$0xff]  ;;  %v210_v50 = vld [vmem:[%s1410_s1 + $0x618] sm:$0xff]  ;;  %v207_v51 = vld [vmem:[%s1410_s1 + $0x600] sm:$0xff] }
  0x40   :  { %719 = vmatprep.subr.bf16.mxu1 %v718_v6  ;;  %v177_v6 = vld [vmem:[%s1410_s1 + $0x510] sm:$0xff] }
  0x41   :  { %v209_v52 = vld [vmem:[%s1410_s1 + $0x610] sm:$0xff] }
  0x42   :  { %625 = vmatpush1.bf16.msra.mxu0 %v624_v14  ;;  %v644_v14 = vpack.c.bf16 %v179_v5, %v175_v4 }
  0x43   :  { %721 = vmatpush1.bf16.msra.mxu1 %v720_v15  ;;  %627 = vmatprep.subr.bf16.mxu0 %v626_v16  ;;  %v740_v15 = vpack.c.bf16 %v181_v8, %v177_v6  ;;  %v646_v16 = vpack.c.bf16 %v188_v10, %v184_v9 }
  0x44   :  { %723 = vmatprep.subr.bf16.mxu1 %v722_v21  ;;  %v742_v21 = vpack.c.bf16 %v190_v13, %v186_v11 }
  0x45   :  { %306 = vmatmul.mubr.f32.vlgmr.msra.gmra.mrb[0].mxu0 %v1097_v26 }
  0x46   :  { %629 = vmatpush1.bf16.msra.mxu0 %v628_v28  ;;  %448 = vmatmul.mubr.f32.vlgmr.msra.gmra.mrb[0].mxu1 %v1097_v26  ;;  %v165_v26 = vld [vmem:[%s1410_s1 + $0x4b0] sm:$0xff]  ;;  %v648_v28 = vpack.c.bf16 %v187_v18, %v183_v17 }
  0x47   :  { %725 = vmatpush1.bf16.msra.mxu1 %v724_v30  ;;  %631 = vmatprep.subr.bf16.mxu0 %v630_v31  ;;  %v732_v54 = vpack.c.bf16 %v165_v26, %v161_v47  ;;  %v650_v30 = vpack.c.bf16 %v196_v24, %v192_v23  ;;  %v191_v31 = vld [vmem:[%s1410_s1 + $0x580] sm:$0xff]  ;;  %v205_v47 = vld [vmem:[%s1410_s1 + $0x5f0] sm:$0xff] }
  0x48   :  { %727 = vmatprep.subr.bf16.mxu1 %v726_v35  ;;  %560 = vmatprep.mubr.msk.f32.mxu0 %vm238_vm0, %v234_v39  ;;  %v197_v35 = vld [vmem:[%s1410_s1 + $0x5b0] sm:$0xff]  ;;  %v652_v40 = vpack.c.bf16 %v195_v32, %v191_v31  ;;  %v752_v26 = vpack.c.bf16 %v205_v47, %v201_v46 }
  0x49   :  { %561 = vmatprep.mubr.msk.f32.mxu1 %vm238_vm0, %v234_v39  ;;  %v206_v39 = vld [vmem:[%s1410_s1 + $0x5f8] sm:$0xff]  ;;  %v748_v41 = vpack.c.bf16 %v197_v35, %v193_v33 }
  0x4a   :  { %633 = vmatpush1.bf16.msra.mxu0 %v632_v42  ;;  %v654_v42 = vpack.c.bf16 %v204_v37, %v200_v36  ;;  %v750_v45 = vpack.c.bf16 %v206_v39, %v202_v38 }
  0x4b   :  { %729 = vmatpush1.bf16.msra.mxu1 %v728_v43  ;;  %635 = vmatprep.subr.bf16.mxu0 %v634_v44  ;;  %v199_v43 = vld [vmem:[%s1410_s1 + $0x5c0] sm:$0xff] }
  0x4c   :  { %731 = vmatprep.subr.bf16.mxu1 %v730_v48  ;;  %v203_v44 = vld [vmem:[%s1410_s1 + $0x5e0] sm:$0xff] }
  0x4d   :  { %v656_v48 = vpack.c.bf16 %v203_v44, %v199_v43 }
  0x4e   :  { %637 = vmatpush1.bf16.msra.mxu0 %v636_v53 }
  0x4f   :  { %733 = vmatpush1.bf16.msra.mxu1 %v732_v54  ;;  %639 = vmatprep.subr.bf16.mxu0 %v638_v55 }
  0x50   :  { %735 = vmatprep.subr.bf16.mxu1 %v734_v59 }
  0x52   :  { %641 = vmatpush1.bf16.msra.mxu0 %v640_v1 }
  0x53   :  { %737 = vmatpush1.bf16.msra.mxu1 %v736_v2  ;;  %643 = vmatprep.subr.bf16.mxu0 %v642_v3 }
  0x54   :  { %739 = vmatprep.subr.bf16.mxu1 %v738_v7 }
  0x56   :  { %645 = vmatpush1.bf16.msra.mxu0 %v644_v14 }
  0x57   :  { %741 = vmatpush1.bf16.msra.mxu1 %v740_v15  ;;  %647 = vmatprep.subr.bf16.mxu0 %v646_v16 }
  0x58   :  { %743 = vmatprep.subr.bf16.mxu1 %v742_v21 }
  0x5a   :  { %649 = vmatpush1.bf16.msra.mxu0 %v648_v28 }
  0x5b   :  { %745 = vmatpush1.bf16.msra.mxu1 %v744_v29  ;;  %651 = vmatprep.subr.bf16.mxu0 %v650_v30 }
  0x5c   :  { %747 = vmatprep.subr.bf16.mxu1 %v746_v34 }
  0x5e   :  { %653 = vmatpush1.bf16.msra.mxu0 %v652_v40 }
  0x5f   :  { %749 = vmatpush1.bf16.msra.mxu1 %v748_v41  ;;  %655 = vmatprep.subr.bf16.mxu0 %v654_v42 }
  0x60   :  { %751 = vmatprep.subr.bf16.mxu1 %v750_v45 }
  0x62   :  { %657 = vmatpush1.bf16.msra.mxu0 %v656_v48 }
  0x63   :  { %753 = vmatpush1.bf16.msra.mxu1 %v752_v26  ;;  %344 = vmatprep.subr.mxu0 %v208_v49 }
  0x64   :  { %486 = vmatprep.subr.mxu1 %v210_v50 }
  0x66   :  { %345 = vmatpush1.msra.mxu0 %v207_v51 }
  0x67   :  { %487 = vmatpush1.msra.mxu1 %v209_v52  ;;  %377 = vmatmul.mubr.f32.vlgmr.msra.gmra.mrb[0].mxu0 %v1209_v20 }
  0x68   :  { %519 = vmatmul.mubr.f32.vlgmr.msra.gmra.mrb[0].mxu1 %v1209_v20 }
  0xb4   :  { %v215_v53 = vpop.permute.xlu0 %214 }
 0x13a   :  { %v378_v54 = vpop.f32.mrb[0].mxu0 }
 0x13b   :  { %v754_v55 = vadd.f32 %v378_v54, %v215_v53  ;;  %v520_v56 = vpop.f32.mrb[0].mxu1  ;;  %v380_v57 = vpop.f32.mrb[1].mxu0 }
 0x13c   :  { %v756_v58 = vadd.f32 %v520_v56, %v215_v53  ;;  %v755_v59 = vadd.f32 %v380_v57, %v215_v53  ;;  %v522_v60 = vpop.f32.mrb[1].mxu1 }
 0x13d   :  { %v525_v61 = vmax.f32 %v754_v55, 0.0  ;;  %v757_v62 = vadd.f32 %v522_v60, %v215_v53 }
 0x13e   :  { %v527_v63 = vmax.f32 %v756_v58, 0.0  ;;  %v526_v0 = vmax.f32 %v755_v59, 0.0 }
 0x13f   :  { %v529_v1 = vmin.f32 %v525_v61, 0.1  ;;  %v528_v2 = vmax.f32 %v757_v62, 0.0 }
 0x140   :  { %v531_v3 = vmin.f32 %v527_v63, 0.1  ;;  %v530_v4 = vmin.f32 %v526_v0, 0.1 }
 0x141   :  { %v532_v5 = vmin.f32 %v528_v2, 0.1 }
 0x142   :  { %v537_v6 = vcombine.low %v529_v1, %v530_v4 }
 0x143   :  { %v538_v7 = vcombine.low %v531_v3, %v532_v5 }
 0x144   :  { %v545_v20 = vrot.slane %v537_v6, %v1064_v12 }
 0x145   :  { %v552_v8 = vrot.slane %v538_v7, %v1064_v12 }
 0x147   :  { %v553_v9 = vcombine.low %v545_v20, %v552_v8 }
 0x149   :  { %555 = vst [vmem:[%s1413_s3] sm:$0xff] %v553_v9 }

// kernel: deformation_net_forward.2
= control target key start
LH: loop header
LB: loop body
LE: loop exit
PB: predicated region body
PF: predicated region fallthrough
CT: control target
= control target key end

     0   :  { %s23203_s0 = inlined_call_operand.vmem [shape: bf16[147,512], index: 0, kind: input, shape index: {}]   ;;  %s23204_s1 = inlined_call_operand.hbm [shape: bf16[8,147], index: 1, kind: input, shape index: {}]   ;;  %s23205_s2 = inlined_call_operand.vmem [shape: f32[8,1], index: 2, kind: input, shape index: {}]   ;;  %s23206_s3 = inlined_call_operand.vmem [shape: f32[8,1], index: 3, kind: input, shape index: {}]   ;;  %s23207_s4 = inlined_call_operand.vmem [shape: bf16[144,8], index: 4, kind: input, shape index: {}]   ;;  %s23208_s5 = inlined_call_operand.vmem [shape: f32[16,1], index: 5, kind: input, shape index: {}]   ;;  %s23209_s6 = inlined_call_operand.vmem [shape: f32[16,1], index: 6, kind: input, shape index: {}]   ;;  %s23210_s7 = inlined_call_operand.hbm [shape: bf16[9,512,128], index: 7, kind: input, shape index: {}]   ;;  %s23211_s8 = inlined_call_operand.vmem [shape: bf16[288,16], index: 8, kind: input, shape index: {}]   ;;  %s23212_s9 = inlined_call_operand.vmem [shape: f32[32,1], index: 9, kind: input, shape index: {}]   ;;  %s23213_s10 = inlined_call_operand.vmem [shape: f32[32,1], index: 10, kind: input, shape index: {}]   ;;  %s23214_s11 = inlined_call_operand.vmem [shape: bf16[9,128,32], index: 11, kind: input, shape index: {}]   ;;  %s23215_s12 = inlined_call_operand.hbm [shape: bf16[9,32,32], index: 12, kind: input, shape index: {}]   ;;  %s23216_s13 = inlined_call_operand.vmem [shape: bf16[6,288,32], index: 13, kind: input, shape index: {}]   ;;  %s23217_s14 = inlined_call_operand.vmem [shape: f32[6,32,1], index: 14, kind: input, shape index: {}]   ;;  %s23218_s15 = inlined_call_operand.vmem [shape: f32[6,32,1], index: 15, kind: input, shape index: {}]   ;;  %s23219_s16 = inlined_call_operand.vmem [shape: bf16[144,32], index: 16, kind: input, shape index: {}]   ;;  %s23220_s17 = inlined_call_operand.vmem [shape: f32[16,1], index: 17, kind: input, shape index: {}]   ;;  %s23221_s18 = inlined_call_operand.vmem [shape: f32[16,1], index: 18, kind: input, shape index: {}]   ;;  %s23222_s19 = inlined_call_operand.hbm [shape: bf16[9,32,128], index: 19, kind: input, shape index: {}]   ;;  %s23223_s20 = inlined_call_operand.vmem [shape: bf16[72,16], index: 20, kind: input, shape index: {}]   ;;  %s23224_s21 = inlined_call_operand.vmem [shape: f32[8,1], index: 21, kind: input, shape index: {}]   ;;  %s23225_s22 = inlined_call_operand.vmem [shape: f32[8,1], index: 22, kind: input, shape index: {}]   ;;  %s23226_s23 = inlined_call_operand.hbm [shape: bf16[9,128,512], index: 23, kind: input, shape index: {}]   ;;  %s23227_s24 = inlined_call_operand.vmem [shape: f32[8,512], index: 24, kind: output, shape index: {}]  }
   0x1   :  { %23238 = sst [smem:[#allocation13_spill]] %s23203_s0 }
   0x2   :  { %23239 = sst [smem:[#allocation14_spill]] %s23204_s1 }
   0x3   :  { %23240 = sst [smem:[#allocation15_spill]] %s23205_s2 }
   0x4   :  { %23241 = sst [smem:[#allocation16_spill]] %s23206_s3 }
   0x5   :  { %23242 = sst [smem:[#allocation17_spill]] %s23207_s4 }
   0x6   :  { %23243 = sst [smem:[#allocation18_spill]] %s23208_s5 }
   0x7   :  { %23244 = sst [smem:[#allocation19_spill]] %s23209_s6 }
   0x8   :  { %23245 = sst [smem:[#allocation20_spill]] %s23210_s7 }
   0x9   :  { %23246 = sst [smem:[#allocation21_spill]] %s23211_s8 }
   0xa   :  { %23247 = sst [smem:[#allocation22_spill]] %s23224_s21 }
   0xb   :  { %23248 = sst [smem:[#allocation23_spill]] %s23227_s24 }
   0xc   :  { %29 = vsyncpa [#allocation3], 0 }
   0xd   :  { %30 = vsyncpa [#allocation5], 0 }
   0xe   :  { %31 = vsyncpa [#allocation8], 0  ;;  %s20431_s5 = smov [#allocation4]   ;;  %s23249_s6 = sld [smem:[#allocation20_spill]] }
   0xf   :  { %s59_s26 = sshll.u32 %s20431_s5, 4  ;;  %s60_s26 = int_to_ptr.vmem [resolvable:$true] %s59_s26 }
  0x14   :  { %s20315_s2 = scalar_lea.hbm %s23249_s6, 36864 }
  0x15   :  { %p20316_p0 = scmp.ne.s32.totalorder %s23249_s6, %s20315_s2  ;;  %p20319_p1 = scmp.lt.u32.totalorder %s20315_s2, %s23249_s6 }
  0x17   :  { %p20321_p2 = pnand %p20319_p1, %p20316_p0 }
  0x19   :  { %20324 = shalt.err (!%p20321_p2)
}
  0x1a   :  { %s20325_s3 = scalar_lea.vmem %s60_s26, 36864  ;;  %p20330_p4 = scmp.lt.s32.totalorder %s60_s26, %s60_s26 }
  0x1b   :  { %p20326_p3 = scmp.ne.s32.totalorder %s60_s26, %s20325_s3  ;;  %p20331_p5 = scmp.lt.s32.totalorder %s20325_s3, %s20325_s3 }
  0x1d   :  { %p20332_p6 = por %p20331_p5, %p20330_p4 }
  0x1f   :  { %p20333_p7 = pnand %p20332_p6, %p20326_p3 }
  0x21   :  { %20336 = shalt.err (!%p20333_p7)
}
  0x22   :  { %s20432_s25 = smov 64   ;;  %s20433_s8 = smov 4  }
  0x23   :  { %65 = dma.hbm_to_vmem [thread:$0]  %s23249_s6, 36864, %s60_s26, [#allocation5], %s20432_s25, %s20432_s25, %s20433_s8  }
  0x24   :  { %s20434_s5 = smov [#allocation7]   ;;  %s20435_s28 = smov [#allocation2]  }
  0x25   :  { %s103_s27 = sshll.u32 %s20434_s5, 4  ;;  %s40_s2 = sshll.u32 %s20435_s28, 4  ;;  %s104_s27 = int_to_ptr.vmem [resolvable:$true] %s103_s27  ;;  %s41_s2 = int_to_ptr.vmem [resolvable:$true] %s40_s2 }
  0x26   :  { %s20337_s7 = scalar_lea.hbm %s23222_s19, 2304 }
  0x27   :  { %p20338_p8 = scmp.ne.s32.totalorder %s23222_s19, %s20337_s7  ;;  %p20341_p9 = scmp.lt.u32.totalorder %s20337_s7, %s23222_s19 }
  0x29   :  { %p20343_p10 = pnand %p20341_p9, %p20338_p8 }
  0x2b   :  { %20346 = shalt.err (!%p20343_p10)
}
  0x2c   :  { %s20347_s26 = scalar_lea.vmem %s104_s27, 2304  ;;  %p20352_p12 = scmp.lt.s32.totalorder %s104_s27, %s104_s27 }
  0x2d   :  { %p20348_p11 = scmp.ne.s32.totalorder %s104_s27, %s20347_s26  ;;  %p20353_p13 = scmp.lt.s32.totalorder %s20347_s26, %s20347_s26 }
  0x2f   :  { %p20354_p0 = por %p20353_p13, %p20352_p12 }
  0x31   :  { %p20355_p1 = pnand %p20354_p0, %p20348_p11 }
  0x33   :  { %20358 = shalt.err (!%p20355_p1)
}
  0x34   :  { %109 = dma.hbm_to_vmem [thread:$0]  %s23222_s19, 2304, %s104_s27, [#allocation8], %s20432_s25, %s20432_s25, %s20433_s8  }
  0x35   :  { %s23250_s24 = sld [smem:[#allocation14_spill]] }
  0x3b   :  { %s20359_s5 = scalar_lea.hbm %s23250_s24, 128 }
  0x3c   :  { %p20360_p2 = scmp.ne.s32.totalorder %s23250_s24, %s20359_s5  ;;  %p20363_p3 = scmp.lt.u32.totalorder %s20359_s5, %s23250_s24 }
  0x3e   :  { %p20365_p4 = pnand %p20363_p3, %p20360_p2 }
  0x40   :  { %20368 = shalt.err (!%p20365_p4)
}
  0x41   :  { %s20369_s30 = scalar_lea.vmem %s41_s2, 128  ;;  %p20374_p6 = scmp.lt.s32.totalorder %s41_s2, %s41_s2 }
  0x42   :  { %p20370_p5 = scmp.ne.s32.totalorder %s41_s2, %s20369_s30  ;;  %p20375_p7 = scmp.lt.s32.totalorder %s20369_s30, %s20369_s30 }
  0x44   :  { %p20376_p8 = por %p20375_p7, %p20374_p6 }
  0x46   :  { %p20377_p9 = pnand %p20376_p8, %p20370_p5 }
  0x48   :  { %20380 = shalt.err (!%p20377_p9)
}
  0x49   :  { %43 = dma.hbm_to_vmem [thread:$0]  %s23250_s24, 128, %s41_s2, [#allocation3]  }
  0x4a   :  { %s20436_s3 = smov [#allocation6]   ;;  %s20437_s6 = smov [#allocation9]  }
  0x4b   :  { %s79_s26 = sshll.u32 %s20436_s3, 4  ;;  %s121_s4 = sshll.u32 %s20437_s6, 4  ;;  %s80_s26 = int_to_ptr.vmem [resolvable:$true] %s79_s26  ;;  %s122_s4 = int_to_ptr.vmem [resolvable:$true] %s121_s4 }
  0x4c   :  { %s20381_s5 = scalar_lea.hbm %s23215_s12, 2304 }
  0x4d   :  { %p20382_p10 = scmp.ne.s32.totalorder %s23215_s12, %s20381_s5  ;;  %p20385_p11 = scmp.lt.u32.totalorder %s20381_s5, %s23215_s12 }
  0x4f   :  { %p20387_p12 = pnand %p20385_p11, %p20382_p10 }
  0x51   :  { %20390 = shalt.err (!%p20387_p12)
}
  0x52   :  { %s20391_s2 = scalar_lea.vmem %s80_s26, 2304  ;;  %p20396_p0 = scmp.lt.s32.totalorder %s80_s26, %s80_s26 }
  0x53   :  { %p20392_p13 = scmp.ne.s32.totalorder %s80_s26, %s20391_s2  ;;  %p20397_p1 = scmp.lt.s32.totalorder %s20391_s2, %s20391_s2 }
  0x55   :  { %p20398_p2 = por %p20397_p1, %p20396_p0 }
  0x57   :  { %p20399_p3 = pnand %p20398_p2, %p20392_p13 }
  0x59   :  { %20402 = shalt.err (!%p20399_p3)
}
  0x5a   :  { %85 = dma.hbm_to_vmem [thread:$0]  %s23215_s12, 2304, %s80_s26, [#allocation5], %s20432_s25, %s20432_s25, %s20433_s8  }
  0x5b   :  { %s20403_s3 = scalar_lea.hbm %s23226_s23, 36864 }
  0x5c   :  { %p20404_p4 = scmp.ne.s32.totalorder %s23226_s23, %s20403_s3  ;;  %p20407_p5 = scmp.lt.u32.totalorder %s20403_s3, %s23226_s23 }
  0x5e   :  { %p20409_p6 = pnand %p20407_p5, %p20404_p4 }
  0x60   :  { %20412 = shalt.err (!%p20409_p6)
}
  0x61   :  { %s20413_s28 = scalar_lea.vmem %s122_s4, 36864  ;;  %p20418_p8 = scmp.lt.s32.totalorder %s122_s4, %s122_s4 }
  0x62   :  { %p20414_p7 = scmp.ne.s32.totalorder %s122_s4, %s20413_s28  ;;  %p20419_p9 = scmp.lt.s32.totalorder %s20413_s28, %s20413_s28 }
  0x64   :  { %p20420_p10 = por %p20419_p9, %p20418_p8 }
  0x66   :  { %p20421_p11 = pnand %p20420_p10, %p20414_p7 }
  0x68   :  { %20424 = shalt.err (!%p20421_p11)
}
  0x69   :  { %s20438_s12 = smov 256   ;;  %s20439_s25 = smov 16  }
  0x6a   :  { %127 = dma.hbm_to_vmem [thread:$0]  %s23226_s23, 36864, %s122_s4, [#allocation8], %s20438_s12, %s20438_s12, %s20439_s25  }
  0x6b   :  { %20425 = dma.done.wait [#allocation3], 128  }
  0x6c   :  { %20426 = vsyncadd [#allocation3], 4294967168 }
  0x6d   :  { %20427 = dma.done.wait [#allocation5], 39168  }
  0x6e   :  { %20428 = vsyncadd [#allocation5], 4294928128 }
  0x6f   :  { %20429 = dma.done.wait [#allocation8], 39168  }
  0x70   :  { %20430 = vsyncadd [#allocation8], 4294928128  ;;  %s23251_s7 = sld [smem:[#allocation13_spill]]  ;;  %v144_v9 = vld [vmem:[#allocation2] sm:$0xff]  ;;  %vm379_vm0 = vcmask 154624   ;;  %vm383_vm1 = vcmask 1040384  }
  0x71   :  { %v15431_v10 = vcombine.high %v144_v9, %v144_v9  ;;  %vm384_vm2 = vcmask 1041408   ;;  %v20440_v15 = vmov 65535   ;;  %v15430_v30 = vcombine.low %v144_v9, %v144_v9  ;;  %s23252_s0 = sld [smem:[#allocation15_spill]]  ;;  %s23253_s30 = sld [smem:[#allocation16_spill]] }
  0x72   :  { %v385_v16 = vsel %vm383_vm1, 4294967295, %v20440_v15  ;;  %vm627_vm3 = vcmask 1043456   ;;  %s23254_s4 = sld [smem:[#allocation17_spill]]  ;;  %vm599_vm4 = vcmask 64512   ;;  %s23271_s23 = sld [smem:[#allocation18_spill]]  ;;  %vm4172_vm5 = vcmask 130048  }
  0x73   :  { %15472 = vmatprep.mubr.msk.bf16.mxu0 %vm379_vm0, %v15431_v10  ;;  %v386_v20 = vsel %vm384_vm2, %v385_v16, 0  ;;  %s23272_s1 = sld [smem:[#allocation19_spill]]  ;;  %s23273_s25 = sld [smem:[#allocation21_spill]]  ;;  %vm5483_vm6 = vcmask 261120   ;;  %vm20443_vm7 = vmmov 0  }
  0x74   :  { %s23276_s6 = sld [smem:[#allocation23_spill]] }
  0x76   :  { %v19176_v0 = vld [vmem:[%s23251_s7 + $0x4] ss:$16 sps:$4 sm:$0xff]   ;;  %v19178_v1 = vld [vmem:[%s23251_s7] ss:$16 sps:$4 sm:$0xff]   ;;  %v19209_v27 = vld [vmem:[%s23251_s7 + $0xc] ss:$16 sps:$4 sm:$0xff]  }
  0x77   :  { %399 = vmatprep.subr.bf16.mxu0 %v19176_v0  ;;  %v19179_v2 = vld [vmem:[%s23251_s7 + $0x24] ss:$16 sps:$4 sm:$0xff]   ;;  %v19181_v3 = vld [vmem:[%s23251_s7 + $0x20] ss:$16 sps:$4 sm:$0xff]   ;;  %v19207_v29 = vld [vmem:[%s23251_s7 + $0x8] ss:$16 sps:$4 sm:$0xff]  }
  0x78   :  { %400 = vmatpush1.bf16.msra.mxu0 %v19178_v1  ;;  %v19182_v4 = vld [vmem:[%s23251_s7 + $0x44] ss:$16 sps:$4 sm:$0xff]   ;;  %v19184_v5 = vld [vmem:[%s23251_s7 + $0x40] ss:$16 sps:$4 sm:$0xff]   ;;  %v19212_v31 = vld [vmem:[%s23251_s7 + $0x2c] ss:$16 sps:$4 sm:$0xff]  }
  0x79   :  { %401 = vmatprep.subr.bf16.mxu0 %v19179_v2  ;;  %v19185_v6 = vld [vmem:[%s23251_s7 + $0x64] ss:$16 sps:$4 sm:$0xff]   ;;  %v19187_v7 = vld [vmem:[%s23251_s7 + $0x60] ss:$16 sps:$4 sm:$0xff]   ;;  %v19210_v32 = vld [vmem:[%s23251_s7 + $0x28] ss:$16 sps:$4 sm:$0xff]  }
  0x7a   :  { %v19188_v8 = vld [vmem:[%s23251_s7 + $0x84] ss:$16 sps:$4 sm:$0xff]   ;;  %v19190_v11 = vld [vmem:[%s23251_s7 + $0x80] ss:$16 sps:$4 sm:$0xff]   ;;  %v19215_v33 = vld [vmem:[%s23251_s7 + $0x4c] ss:$16 sps:$4 sm:$0xff]  }
  0x7b   :  { %v19191_v12 = vld [vmem:[%s23251_s7 + $0xa4] ss:$16 sps:$4 sm:$0xff]   ;;  %v19193_v13 = vld [vmem:[%s23251_s7 + $0xa0] ss:$16 sps:$4 sm:$0xff]   ;;  %v19213_v34 = vld [vmem:[%s23251_s7 + $0x48] ss:$16 sps:$4 sm:$0xff]  }
  0x7c   :  { %402 = vmatpush1.bf16.msra.mxu0 %v19181_v3  ;;  %v19194_v14 = vld [vmem:[%s23251_s7 + $0xc4] ss:$16 sps:$4 sm:$0xff]   ;;  %v19196_v17 = vld [vmem:[%s23251_s7 + $0xc0] ss:$16 sps:$4 sm:$0xff]   ;;  %v19218_v35 = vld [vmem:[%s23251_s7 + $0x6c] ss:$16 sps:$4 sm:$0xff]  }
  0x7d   :  { %403 = vmatprep.subr.bf16.mxu0 %v19182_v4  ;;  %v19197_v18 = vld [vmem:[%s23251_s7 + $0xe4] ss:$16 sps:$4 sm:$0xff]   ;;  %v19199_v21 = vld [vmem:[%s23251_s7 + $0xe0] ss:$16 sps:$4 sm:$0xff]   ;;  %v19216_v36 = vld [vmem:[%s23251_s7 + $0x68] ss:$16 sps:$4 sm:$0xff]  }
  0x7e   :  { %v181_v19 = vld [vmem:[%s23251_s7 + $0x120] sm:$0x33]  ;;  %v19221_v37 = vld [vmem:[%s23251_s7 + $0x8c] ss:$16 sps:$4 sm:$0xff]   ;;  %v19219_v38 = vld [vmem:[%s23251_s7 + $0x88] ss:$16 sps:$4 sm:$0xff]  }
  0x7f   :  { %v19200_v22 = vld [vmem:[%s23251_s7 + $0x104] ss:$16 sps:$4 sm:$0xff]   ;;  %v15469_v23 = vcombine.high %v181_v19, %v181_v19  ;;  %v19202_v24 = vld [vmem:[%s23251_s7 + $0x100] ss:$16 sps:$4 sm:$0xff]   ;;  %v15468_v25 = vcombine.low %v181_v19, %v181_v19  ;;  %v19224_v39 = vld [vmem:[%s23251_s7 + $0xac] ss:$16 sps:$4 sm:$0xff]  }
  0x80   :  { %404 = vmatpush1.bf16.msra.mxu0 %v19184_v5  ;;  %v19222_v40 = vld [vmem:[%s23251_s7 + $0xa8] ss:$16 sps:$4 sm:$0xff]   ;;  %v19227_v41 = vld [vmem:[%s23251_s7 + $0xcc] ss:$16 sps:$4 sm:$0xff]   ;;  %v481_v19 = vld [vmem:[%s23252_s0] sm:$0xff] }
  0x81   :  { %405 = vmatprep.subr.bf16.mxu0 %v19185_v6  ;;  %v391_v26 = vand.u32 %v15469_v23, %v386_v20  ;;  %v388_v28 = vand.u32 %v15468_v25, %v386_v20  ;;  %v19225_v42 = vld [vmem:[%s23251_s7 + $0xc8] ss:$16 sps:$4 sm:$0xff]   ;;  %v19230_v43 = vld [vmem:[%s23251_s7 + $0xec] ss:$16 sps:$4 sm:$0xff]   ;;  %v23236_v6 = vmov 0  }
  0x82   :  { %v182_v44 = vld [vmem:[%s23251_s7 + $0x128] sm:$0x33]  ;;  %19174 = vset.pattern.permute.xlu1 %v23236_v6  ;;  %795 = vmatprep.mubr.bf16.mxu1 %v23236_v6 }
  0x83   :  { %v19228_v45 = vld [vmem:[%s23251_s7 + $0xe8] ss:$16 sps:$4 sm:$0xff]   ;;  %v19233_v46 = vld [vmem:[%s23251_s7 + $0x10c] ss:$16 sps:$4 sm:$0xff]   ;;  %v15471_v47 = vcombine.high %v182_v44, %v182_v44  ;;  %v15470_v49 = vcombine.low %v182_v44, %v182_v44  ;;  %19175 = vset.pattern.permute.xlu0 %v23236_v6 }
  0x84   :  { %406 = vmatpush1.bf16.msra.mxu0 %v19187_v7  ;;  %v19231_v48 = vld [vmem:[%s23251_s7 + $0x108] ss:$16 sps:$4 sm:$0xff]  }
  0x85   :  { %407 = vmatprep.subr.bf16.mxu0 %v19188_v8  ;;  %v397_v50 = vand.u32 %v15471_v47, %v386_v20  ;;  %v394_v51 = vand.u32 %v15470_v49, %v386_v20  ;;  %v19245_v47 = vld [vmem:[#allocation4 + $0x180] sm:$0xff]   ;;  %v19248_v49 = vld [vmem:[#allocation4 + $0x1c8] sm:$0xff]  }
  0x88   :  { %408 = vmatpush1.bf16.msra.mxu0 %v19190_v11 }
  0x89   :  { %409 = vmatprep.subr.bf16.mxu0 %v19191_v12 }
  0x8c   :  { %410 = vmatpush1.bf16.msra.mxu0 %v19193_v13 }
  0x8d   :  { %411 = vmatprep.subr.bf16.mxu0 %v19194_v14 }
  0x90   :  { %412 = vmatpush1.bf16.msra.mxu0 %v19196_v17 }
  0x91   :  { %413 = vmatprep.subr.bf16.mxu0 %v19197_v18 }
  0x94   :  { %414 = vmatpush1.bf16.msra.mxu0 %v19199_v21 }
  0x95   :  { %415 = vmatprep.subr.bf16.mxu0 %v19200_v22  ;;  %v482_v22 = vld [vmem:[%s23253_s30] sm:$0xff] }
  0x98   :  { %416 = vmatpush1.bf16.msra.mxu0 %v19202_v24 }
  0x99   :  { %417 = vmatprep.subr.bf16.mxu0 %v391_v26 }
  0x9c   :  { %418 = vmatpush1.bf16.msra.mxu0 %v388_v28 }
  0x9d   :  { %440 = vmatprep.subr.bf16.mxu0 %v19209_v27 }
  0x9f   :  { %432 = vmatmul.mubr.bf16.vlgmr.msra.gmra.mrb[0].mxu0 %v15430_v30 }
  0xa0   :  { %441 = vmatpush1.bf16.msra.mxu0 %v19207_v29  ;;  %15473 = vmatprep.mubr.msk.bf16.mxu0 %vm379_vm0, %v15431_v10 }
  0xa1   :  { %442 = vmatprep.subr.bf16.mxu0 %v19212_v31 }
  0xa4   :  { %443 = vmatpush1.bf16.msra.mxu0 %v19210_v32 }
  0xa5   :  { %444 = vmatprep.subr.bf16.mxu0 %v19215_v33 }
  0xa8   :  { %445 = vmatpush1.bf16.msra.mxu0 %v19213_v34 }
  0xa9   :  { %446 = vmatprep.subr.bf16.mxu0 %v19218_v35 }
  0xac   :  { %447 = vmatpush1.bf16.msra.mxu0 %v19216_v36 }
  0xad   :  { %448 = vmatprep.subr.bf16.mxu0 %v19221_v37 }
  0xb0   :  { %449 = vmatpush1.bf16.msra.mxu0 %v19219_v38 }
  0xb1   :  { %450 = vmatprep.subr.bf16.mxu0 %v19224_v39 }
  0xb4   :  { %451 = vmatpush1.bf16.msra.mxu0 %v19222_v40 }
  0xb5   :  { %452 = vmatprep.subr.bf16.mxu0 %v19227_v41  ;;  %v19242_v41 = vld [vmem:[#allocation4 + $0x140] sm:$0xff]  }
  0xb8   :  { %453 = vmatpush1.bf16.msra.mxu0 %v19225_v42  ;;  %v19243_v42 = vld [vmem:[#allocation4 + $0x1c0] sm:$0xff]  }
  0xb9   :  { %454 = vmatprep.subr.bf16.mxu0 %v19230_v43 }
  0xbc   :  { %455 = vmatpush1.bf16.msra.mxu0 %v19228_v45  ;;  %v19236_v45 = vld [vmem:[%s23254_s4] sm:$0xff]  }
  0xbd   :  { %456 = vmatprep.subr.bf16.mxu0 %v19233_v46  ;;  %v19244_v46 = vld [vmem:[#allocation4 + $0x100] sm:$0xff]  }
  0xc0   :  { %457 = vmatpush1.bf16.msra.mxu0 %v19231_v48  ;;  %v19247_v48 = vld [vmem:[#allocation4 + $0x148] sm:$0xff]  }
  0xc1   :  { %458 = vmatprep.subr.bf16.mxu0 %v397_v50  ;;  %v19249_v50 = vld [vmem:[#allocation4 + $0x108] sm:$0xff]  }
  0xc4   :  { %459 = vmatpush1.bf16.msra.mxu0 %v394_v51  ;;  %v19250_v51 = vld [vmem:[#allocation4 + $0x188] sm:$0xff]  }
  0xc7   :  { %473 = vmatmul.mubr.bf16.vlgmr.msra.gmra.mrb[4].mxu0 %v15430_v30 }
  0xc8   :  { %672 = vmatprep.mubr.bf16.mxu0 %v23236_v6 }
 0x172   :  { %v433_v52 = vpop.f32.mrb[0].mxu0 }
 0x173   :  { %v435_v53 = vpop.f32.mrb[1].mxu0  ;;  %v490_v54 = vmul.f32 %v433_v52, %v433_v52 }
 0x174   :  { %v437_v55 = vpop.f32.mrb[2].mxu0  ;;  %v483_v56 = vadd.f32 %v435_v53, %v433_v52  ;;  %v491_v57 = vmul.f32 %v435_v53, %v435_v53 }
 0x175   :  { %v438_v58 = vpop.f32.mrb[3].mxu0  ;;  %v19253_v55 = vld [vmem:[#allocation4 + $0x110] sm:$0xff]  }
 0x176   :  { %v494_v59 = vadd.f32 %v491_v57, %v490_v54  ;;  %v19237_v54 = vld [vmem:[%s23254_s4 + $0x8] sm:$0xff]   ;;  %v19255_v57 = vld [vmem:[#allocation4 + $0x158] sm:$0xff]  }
 0x177   :  { %v19256_v58 = vld [vmem:[#allocation4 + $0x1d8] sm:$0xff]  }
 0x19a   :  { %v474_v60 = vpop.f32.mrb[4].mxu0 }
 0x19b   :  { %v476_v61 = vpop.f32.mrb[5].mxu0  ;;  %v484_v62 = vadd.f32 %v483_v56, %v474_v60  ;;  %v492_v63 = vmul.f32 %v474_v60, %v474_v60  ;;  %v19254_v56 = vld [vmem:[#allocation4 + $0x190] sm:$0xff]  }
 0x19c   :  { %v478_v0 = vpop.f32.mrb[6].mxu0  ;;  %v493_v1 = vmul.f32 %v476_v61, %v476_v61 }
 0x19d   :  { %v479_v2 = vpop.f32.mrb[7].mxu0  ;;  %v485_v3 = vadd.f32 %v484_v62, %v476_v61  ;;  %v495_v4 = vadd.f32 %v494_v59, %v492_v63  ;;  %v19257_v59 = vld [vmem:[#allocation4 + $0x118] sm:$0xff]   ;;  %v19261_v62 = vld [vmem:[#allocation4 + $0x1e0] sm:$0xff]   ;;  %v19238_v63 = vld [vmem:[%s23254_s4 + $0x10] sm:$0xff]  }
 0x19e   :  { %v19262_v0 = vld [vmem:[#allocation4 + $0x120] sm:$0xff]   ;;  %v19239_v2 = vld [vmem:[%s23254_s4 + $0x18] sm:$0xff]  }
 0x19f   :  { %486 = vadd.xlane.f32.xlu0 %v485_v3  ;;  %v496_v5 = vadd.f32 %v495_v4, %v493_v1  ;;  %v19263_v1 = vld [vmem:[#allocation4 + $0x1a0] sm:$0xff]   ;;  %v19240_v3 = vld [vmem:[%s23254_s4 + $0x20] sm:$0xff]  }
 0x1a0   :  { %v19241_v4 = vld [vmem:[%s23254_s4 + $0x28] sm:$0xff]  }
 0x1a3   :  { %497 = vadd.xlane.f32.xlu0 %v496_v5  ;;  %v19246_v5 = vld [vmem:[%s23254_s4 + $0x30] sm:$0xff]  }
 0x22c   :  { %v487_v7 = vpop.xlane.xlu0 %486 }
 0x22d   :  { %v489_v8 = vmul.f32 0.001953125, %v487_v7  ;;  %v19259_v7 = vld [vmem:[%s23254_s4 + $0x38] sm:$0xff]  }
 0x22f   :  { %v504_v9 = vsub.f32 %v435_v53, %v489_v8  ;;  %v506_v10 = vsub.f32 %v476_v61, %v489_v8  ;;  %v503_v11 = vsub.f32 %v433_v52, %v489_v8  ;;  %v505_v13 = vsub.f32 %v474_v60, %v489_v8  ;;  %v19251_v52 = vld [vmem:[#allocation4 + $0x150] sm:$0xff]   ;;  %v19258_v60 = vld [vmem:[#allocation4 + $0x198] sm:$0xff]   ;;  %v19260_v61 = vld [vmem:[#allocation4 + $0x160] sm:$0xff]  }
 0x230   :  { %v498_v12 = vpop.xlane.xlu0 %497  ;;  %v500_v14 = vmul.f32 %v489_v8, %v489_v8  ;;  %v19252_v53 = vld [vmem:[#allocation4 + $0x1d0] sm:$0xff]   ;;  %v19264_v8 = vld [vmem:[#allocation4 + $0x168] sm:$0xff]  }
 0x231   :  { %v499_v15 = vmul.f32 0.001953125, %v498_v12  ;;  %v19268_v12 = vld [vmem:[%s23254_s4 + $0x40] sm:$0xff]  }
 0x233   :  { %v501_v16 = vsub.f32 %v499_v15, %v500_v14  ;;  %v19270_v14 = vld [vmem:[#allocation4 + $0x1f0] sm:$0xff]  }
 0x234   :  { %v19271_v15 = vld [vmem:[#allocation4 + $0x130] sm:$0xff]  }
 0x235   :  { %v502_v17 = vmax.f32 %v501_v16, 0.0  ;;  %v19272_v16 = vld [vmem:[#allocation4 + $0x1b0] sm:$0xff]  }
 0x237   :  { %v507_v18 = vadd.f32 1e-05, %v502_v17  ;;  %v19273_v17 = vld [vmem:[#allocation4 + $0x178] sm:$0xff]  }
 0x239   :  { %20213 = vrsqrt.f32 %v507_v18  ;;  %v19274_v18 = vld [vmem:[#allocation4 + $0x1f8] sm:$0xff]  }
 0x243   :  { %v20214_v20 = vpop.eup %20213 }
 0x244   :  { %v509_v21 = vmul.f32 %v20214_v20, %v481_v19  ;;  %v19275_v19 = vld [vmem:[#allocation4 + $0x138] sm:$0xff]  }
 0x245   :  { %v19276_v20 = vld [vmem:[#allocation4 + $0x1b8] sm:$0xff]  }
 0x246   :  { %512 = vperm.xlu1 %19174, %v509_v21   ;;  %v19277_v21 = vld [vmem:[#allocation4 + $0x40] sm:$0xff]  }
 0x24a   :  { %521 = vperm.xlu1 %19174, %v482_v22   ;;  %v19278_v22 = vld [vmem:[#allocation4 + $0xc0] sm:$0xff]  }
 0x2c5   :  { %v513_v23 = vpop.permute.xlu1 %512 }
 0x2c6   :  { %v516_v24 = vmul.f32 %v513_v23, %v504_v9  ;;  %v518_v25 = vmul.f32 %v513_v23, %v506_v10  ;;  %v515_v26 = vmul.f32 %v513_v23, %v503_v11  ;;  %v517_v27 = vmul.f32 %v513_v23, %v505_v13  ;;  %v19265_v9 = vld [vmem:[#allocation4 + $0x1e8] sm:$0xff]   ;;  %v19269_v13 = vld [vmem:[#allocation4 + $0x170] sm:$0xff]  }
 0x2c7   :  { %v19266_v10 = vld [vmem:[#allocation4 + $0x128] sm:$0xff]  }
 0x2c8   :  { %v19267_v11 = vld [vmem:[#allocation4 + $0x1a8] sm:$0xff]  }
 0x2c9   :  { %v522_v28 = vpop.permute.xlu1 %521 }
 0x2ca   :  { %v525_v29 = vadd.f32 %v522_v28, %v516_v24  ;;  %v527_v30 = vadd.f32 %v522_v28, %v518_v25  ;;  %v524_v31 = vadd.f32 %v522_v28, %v515_v26  ;;  %v526_v32 = vadd.f32 %v522_v28, %v517_v27 }
 0x2cc   :  { %v529_v33 = vmax.f32 %v525_v29, 0.0  ;;  %v531_v34 = vmax.f32 %v527_v30, 0.0  ;;  %v528_v35 = vmax.f32 %v524_v31, 0.0  ;;  %v530_v36 = vmax.f32 %v526_v32, 0.0 }
 0x2ce   :  { %v533_v37 = vpack.c.bf16 %v529_v33, %v529_v33  ;;  %v535_v38 = vpack.c.bf16 %v531_v34, %v531_v34  ;;  %v532_v39 = vpack.c.bf16 %v528_v35, %v528_v35  ;;  %v534_v40 = vpack.c.bf16 %v530_v36, %v530_v36 }
 0x2d0   :  { %15483 = vmatprep.subr.msk.bf16.mxu0 %vm627_vm3, %v533_v37  ;;  %15493 = vmatprep.subr.msk.bf16.mxu1 %vm627_vm3, %v535_v38  ;;  %v629_v43 = vsel %vm627_vm3, %v532_v39, 0  ;;  %v635_v44 = vsel %vm627_vm3, %v534_v40, 0 }
 0x2d1   :  { %641 = vmatpush1.bf16.msra.mxu0 %v629_v43  ;;  %764 = vmatpush1.bf16.msra.mxu1 %v635_v44 }
 0x2d2   :  { %16932 = vmatprep.subr.bf16.mxu0 %v19242_v41  ;;  %16954 = vmatprep.subr.bf16.mxu1 %v19243_v42 }
 0x2d4   :  { %15484 = vmatmul.mubr.msk.bf16.vlgmr.msra.gmra.mrb[8].mxu0 %vm599_vm4, %v19236_v45  ;;  %15494 = vmatmul.mubr.msk.bf16.vlgmr.msra.gmra.mrb[0].mxu1 %vm599_vm4, %v19236_v45 }
 0x2d5   :  { %682 = vmatprep.mubr.bf16.mxu0 %v23236_v6  ;;  %805 = vmatprep.mubr.bf16.mxu1 %v23236_v6 }
 0x2d6   :  { %16933 = vmatpush3.bf16.msra.mxu0 %v19244_v46  ;;  %16955 = vmatpush3.bf16.msra.mxu1 %v19245_v47  ;;  %v19279_v47 = vld [vmem:[#allocation4] sm:$0xff]  }
 0x2d7   :  { %16934 = vmatprep.subr.bf16.mxu0 %v19247_v48  ;;  %16956 = vmatprep.subr.bf16.mxu1 %v19248_v49  ;;  %v19280_v48 = vld [vmem:[#allocation4 + $0x80] sm:$0xff]   ;;  %v19281_v49 = vld [vmem:[#allocation4 + $0x48] sm:$0xff]  }
 0x2da   :  { %16935 = vmatpush3.bf16.msra.mxu0 %v19249_v50  ;;  %16957 = vmatpush3.bf16.msra.mxu1 %v19250_v51  ;;  %v19282_v50 = vld [vmem:[#allocation4 + $0xc8] sm:$0xff]  }
 0x2db   :  { %16936 = vmatprep.subr.bf16.mxu0 %v19251_v52  ;;  %16958 = vmatprep.subr.bf16.mxu1 %v19252_v53  ;;  %v19283_v51 = vld [vmem:[#allocation4 + $0x8] sm:$0xff]  }
 0x2dc   :  { %15485 = vmatmul.mubr.msk.bf16.gmra.mrb[12].mxu0 %vm599_vm4, %v19237_v54  ;;  %15495 = vmatmul.mubr.msk.bf16.gmra.mrb[4].mxu1 %vm599_vm4, %v19237_v54  ;;  %v19284_v52 = vld [vmem:[#allocation4 + $0x88] sm:$0xff]  }
 0x2dd   :  { %692 = vmatprep.mubr.bf16.mxu0 %v23236_v6  ;;  %815 = vmatprep.mubr.bf16.mxu1 %v23236_v6 }
 0x2de   :  { %16937 = vmatpush3.bf16.msra.mxu0 %v19253_v55  ;;  %16959 = vmatpush3.bf16.msra.mxu1 %v19254_v56  ;;  %v19285_v55 = vld [vmem:[#allocation4 + $0x50] sm:$0xff]  }
 0x2df   :  { %16938 = vmatprep.subr.bf16.mxu0 %v19255_v57  ;;  %16960 = vmatprep.subr.bf16.mxu1 %v19256_v58  ;;  %v19286_v56 = vld [vmem:[#allocation4 + $0xd0] sm:$0xff]  }
 0x2e2   :  { %16939 = vmatpush3.bf16.msra.mxu0 %v19257_v59  ;;  %16961 = vmatpush3.bf16.msra.mxu1 %v19258_v60 }
 0x2e3   :  { %16940 = vmatprep.subr.bf16.mxu0 %v19260_v61  ;;  %16962 = vmatprep.subr.bf16.mxu1 %v19261_v62 }
 0x2e4   :  { %15486 = vmatmul.mubr.msk.bf16.gmra.mrb[16].mxu0 %vm599_vm4, %v19238_v63  ;;  %15496 = vmatmul.mubr.msk.bf16.gmra.mrb[8].mxu1 %vm599_vm4, %v19238_v63 }
 0x2e5   :  { %702 = vmatprep.mubr.bf16.mxu0 %v23236_v6  ;;  %825 = vmatprep.mubr.bf16.mxu1 %v23236_v6 }
 0x2e6   :  { %16941 = vmatpush3.bf16.msra.mxu0 %v19262_v0  ;;  %16963 = vmatpush3.bf16.msra.mxu1 %v19263_v1  ;;  %v19287_v1 = vld [vmem:[#allocation4 + $0x10] sm:$0xff]  }
 0x2e7   :  { %16942 = vmatprep.subr.bf16.mxu0 %v19264_v8  ;;  %16964 = vmatprep.subr.bf16.mxu1 %v19265_v9  ;;  %v19291_v8 = vld [vmem:[#allocation4 + $0x18] sm:$0xff]  }
 0x2e8   :  { %v19292_v9 = vld [vmem:[#allocation4 + $0x98] sm:$0xff]  }
 0x2ea   :  { %16943 = vmatpush3.bf16.msra.mxu0 %v19266_v10  ;;  %16965 = vmatpush3.bf16.msra.mxu1 %v19267_v11 }
 0x2eb   :  { %16944 = vmatprep.subr.bf16.mxu0 %v19269_v13  ;;  %16966 = vmatprep.subr.bf16.mxu1 %v19270_v14  ;;  %v19294_v13 = vld [vmem:[#allocation4 + $0xe0] sm:$0xff]  }
 0x2ec   :  { %15487 = vmatmul.mubr.msk.bf16.gmra.mrb[20].mxu0 %vm599_vm4, %v19239_v2  ;;  %15497 = vmatmul.mubr.msk.bf16.gmra.mrb[12].mxu1 %vm599_vm4, %v19239_v2  ;;  %v19288_v2 = vld [vmem:[#allocation4 + $0x90] sm:$0xff]  }
 0x2ed   :  { %712 = vmatprep.mubr.bf16.mxu0 %v23236_v6  ;;  %835 = vmatprep.mubr.bf16.mxu1 %v23236_v6 }
 0x2ee   :  { %16945 = vmatpush3.bf16.msra.mxu0 %v19271_v15  ;;  %16967 = vmatpush3.bf16.msra.mxu1 %v19272_v16 }
 0x2ef   :  { %16946 = vmatprep.subr.bf16.mxu0 %v19273_v17  ;;  %16968 = vmatprep.subr.bf16.mxu1 %v19274_v18 }
 0x2f2   :  { %16947 = vmatpush3.bf16.msra.mxu0 %v19275_v19  ;;  %16969 = vmatpush3.bf16.msra.mxu1 %v19276_v20 }
 0x2f3   :  { %16976 = vmatprep.subr.bf16.mxu0 %v19277_v21  ;;  %16998 = vmatprep.subr.bf16.mxu1 %v19278_v22  ;;  %v19295_v22 = vld [vmem:[#allocation4 + $0x20] sm:$0xff]  }
 0x2f4   :  { %15488 = vmatmul.mubr.msk.bf16.gmra.mrb[24].mxu0 %vm599_vm4, %v19240_v3  ;;  %15498 = vmatmul.mubr.msk.bf16.gmra.mrb[16].mxu1 %vm599_vm4, %v19240_v3 }
 0x2f5   :  { %722 = vmatprep.mubr.bf16.mxu0 %v23236_v6  ;;  %845 = vmatprep.mubr.bf16.mxu1 %v23236_v6 }
 0x2fc   :  { %15489 = vmatmul.mubr.msk.bf16.gmra.mrb[28].mxu0 %vm599_vm4, %v19241_v4  ;;  %15499 = vmatmul.mubr.msk.bf16.gmra.mrb[20].mxu1 %vm599_vm4, %v19241_v4 }
 0x2fd   :  { %732 = vmatprep.mubr.bf16.mxu0 %v23236_v6  ;;  %855 = vmatprep.mubr.bf16.mxu1 %v23236_v6 }
 0x304   :  { %15490 = vmatmul.mubr.msk.bf16.gmra.mrb[32].mxu0 %vm599_vm4, %v19246_v5  ;;  %15500 = vmatmul.mubr.msk.bf16.gmra.mrb[24].mxu1 %vm599_vm4, %v19246_v5  ;;  %v19289_v5 = vld [vmem:[#allocation4 + $0x58] sm:$0xff]  }
 0x305   :  { %742 = vmatprep.mubr.bf16.mxu0 %v23236_v6  ;;  %865 = vmatprep.mubr.bf16.mxu1 %v23236_v6 }
 0x30c   :  { %15491 = vmatmul.mubr.msk.bf16.gmra.mrb[36].mxu0 %vm599_vm4, %v19259_v7  ;;  %15501 = vmatmul.mubr.msk.bf16.gmra.mrb[28].mxu1 %vm599_vm4, %v19259_v7  ;;  %v19290_v7 = vld [vmem:[#allocation4 + $0xd8] sm:$0xff]  }
 0x30d   :  { %752 = vmatprep.mubr.bf16.mxu0 %v23236_v6  ;;  %875 = vmatprep.mubr.bf16.mxu1 %v23236_v6  ;;  %v19318_v6 = vld [vmem:[#allocation4 + $0x2d0] sm:$0xff]  }
 0x314   :  { %15492 = vmatmul.mubr.msk.bf16.gmra.mrb[40].mxu0 %vm599_vm4, %v19268_v12  ;;  %15502 = vmatmul.mubr.msk.bf16.gmra.mrb[32].mxu1 %vm599_vm4, %v19268_v12  ;;  %v19293_v12 = vld [vmem:[#allocation4 + $0x60] sm:$0xff]  }
 0x3a7   :  { %v20825_v23 = vpop.f32.mrb[8].mxu0  ;;  %v20827_v24 = vpop.f32.mrb[0].mxu1 }
 0x3a8   :  { %v676_v25 = vpop.f32.mrb[9].mxu0  ;;  %v799_v26 = vpop.f32.mrb[1].mxu1 }
 0x3a9   :  { %v20829_v27 = vpop.f32.mrb[10].mxu0  ;;  %v20831_v28 = vpop.f32.mrb[2].mxu1 }
 0x3aa   :  { %v886_v29 = vpack.c.bf16 %v20829_v27, %v20825_v23  ;;  %v888_v30 = vpack.c.bf16 %v20831_v28, %v20827_v24  ;;  %v680_v31 = vpop.f32.mrb[11].mxu0  ;;  %v803_v32 = vpop.f32.mrb[3].mxu1  ;;  %v19319_v23 = vld [vmem:[#allocation4 + $0x210] sm:$0xff]   ;;  %v19321_v27 = vld [vmem:[#allocation4 + $0x258] sm:$0xff]  }
 0x3ab   :  { %v887_v33 = vpack.c.bf16 %v680_v31, %v676_v25  ;;  %v889_v34 = vpack.c.bf16 %v803_v32, %v799_v26  ;;  %v19296_v25 = vld [vmem:[#allocation4 + $0xa0] sm:$0xff]   ;;  %v19297_v32 = vld [vmem:[#allocation4 + $0x68] sm:$0xff]   ;;  %v19320_v24 = vld [vmem:[#allocation4 + $0x290] sm:$0xff]  }
 0x3ac   :  { %v19322_v28 = vld [vmem:[#allocation4 + $0x2d8] sm:$0xff]  }
 0x3af   :  { %v684_v35 = vpop.f32.mrb[12].mxu0  ;;  %v807_v36 = vpop.f32.mrb[4].mxu1 }
 0x3b0   :  { %v686_v37 = vpop.f32.mrb[13].mxu0  ;;  %v809_v38 = vpop.f32.mrb[5].mxu1 }
 0x3b1   :  { %v688_v39 = vpop.f32.mrb[14].mxu0  ;;  %v811_v40 = vpop.f32.mrb[6].mxu1 }
 0x3b2   :  { %v954_v41 = vpack.c.bf16 %v688_v39, %v684_v35  ;;  %v956_v42 = vpack.c.bf16 %v811_v40, %v807_v36  ;;  %v690_v43 = vpop.f32.mrb[15].mxu0  ;;  %v813_v44 = vpop.f32.mrb[7].mxu1  ;;  %v19300_v35 = vld [vmem:[#allocation4 + $0xa8] sm:$0xff]   ;;  %v19302_v39 = vld [vmem:[#allocation4 + $0xf0] sm:$0xff]  }
 0x3b3   :  { %v955_v45 = vpack.c.bf16 %v690_v43, %v686_v37  ;;  %v957_v46 = vpack.c.bf16 %v813_v44, %v809_v38  ;;  %v19301_v38 = vld [vmem:[#allocation4 + $0x70] sm:$0xff]  }
 0x3b5   :  { %1247 = vmatprep.mubr.bf16.mxu0 %v955_v45  ;;  %1288 = vmatprep.mubr.bf16.mxu1 %v957_v46 }
 0x3b6   :  { %1248 = vmatmul.mubr.bf16.vlgmr.msra.gmra.mrb[44].mxu0 %v954_v41  ;;  %1289 = vmatmul.mubr.bf16.vlgmr.msra.gmra.mrb[36].mxu1 %v956_v42 }
 0x3b7   :  { %16977 = vmatpush3.bf16.msra.mxu0 %v19279_v47  ;;  %16999 = vmatpush3.bf16.msra.mxu1 %v19280_v48  ;;  %v20837_v53 = vpop.f32.mrb[16].mxu0  ;;  %v20839_v54 = vpop.f32.mrb[8].mxu1  ;;  %v19303_v48 = vld [vmem:[#allocation4 + $0x30] sm:$0xff]  }
 0x3b8   :  { %1521 = vmatprep.mubr.bf16.mxu0 %v887_v33  ;;  %1562 = vmatprep.mubr.bf16.mxu1 %v889_v34  ;;  %v20841_v57 = vpop.f32.mrb[17].mxu0  ;;  %v20843_v58 = vpop.f32.mrb[9].mxu1  ;;  %v19298_v33 = vld [vmem:[#allocation4 + $0xe8] sm:$0xff]  }
 0x3b9   :  { %16978 = vmatprep.subr.bf16.mxu0 %v19281_v49  ;;  %17000 = vmatprep.subr.bf16.mxu1 %v19282_v50  ;;  %v20845_v59 = vpop.f32.mrb[18].mxu0  ;;  %v20847_v60 = vpop.f32.mrb[10].mxu1  ;;  %v19299_v34 = vld [vmem:[#allocation4 + $0x28] sm:$0xff]   ;;  %v19304_v49 = vld [vmem:[#allocation4 + $0xb0] sm:$0xff]  }
 0x3ba   :  { %v1573_v61 = vpack.c.bf16 %v20847_v60, %v20839_v54  ;;  %v20851_v62 = vpop.f32.mrb[19].mxu0  ;;  %v20853_v63 = vpop.f32.mrb[11].mxu1  ;;  %v1571_v0 = vpack.c.bf16 %v20845_v59, %v20837_v53  ;;  %v19349_v53 = vld [vmem:[#allocation4 + $0x350] sm:$0xff]  }
 0x3bb   :  { %16979 = vmatpush3.bf16.msra.mxu0 %v19283_v51  ;;  %17001 = vmatpush3.bf16.msra.mxu1 %v19284_v52  ;;  %v1574_v3 = vpack.c.bf16 %v20853_v63, %v20843_v58  ;;  %v1572_v4 = vpack.c.bf16 %v20851_v62, %v20841_v57  ;;  %v19305_v52 = vld [vmem:[#allocation4 + $0x78] sm:$0xff]   ;;  %v19325_v57 = vld [vmem:[#allocation4 + $0x260] sm:$0xff]   ;;  %v19350_v59 = vld [vmem:[#allocation4 + $0x3d0] sm:$0xff]  }
 0x3bc   :  { %16980 = vmatprep.subr.bf16.mxu0 %v19285_v55  ;;  %17002 = vmatprep.subr.bf16.mxu1 %v19286_v56  ;;  %v19306_v55 = vld [vmem:[#allocation4 + $0xf8] sm:$0xff]   ;;  %v19326_v62 = vld [vmem:[#allocation4 + $0x2e0] sm:$0xff]  }
 0x3bd   :  { %v19307_v56 = vld [vmem:[#allocation4 + $0x38] sm:$0xff]   ;;  %v19327_v58 = vld [vmem:[#allocation4 + $0x220] sm:$0xff]  }
 0x3be   :  { %v19328_v63 = vld [vmem:[#allocation4 + $0x2a0] sm:$0xff]  }
 0x3bf   :  { %16981 = vmatpush3.bf16.msra.mxu0 %v19287_v1  ;;  %17003 = vmatpush3.bf16.msra.mxu1 %v19288_v2  ;;  %v20861_v10 = vpop.f32.mrb[20].mxu0  ;;  %v20863_v11 = vpop.f32.mrb[12].mxu1  ;;  %v19308_v1 = vld [vmem:[#allocation4 + $0xb8] sm:$0xff]  }
 0x3c0   :  { %16982 = vmatprep.subr.bf16.mxu0 %v19289_v5  ;;  %17004 = vmatprep.subr.bf16.mxu1 %v19290_v7  ;;  %v20865_v14 = vpop.f32.mrb[21].mxu0  ;;  %v20867_v15 = vpop.f32.mrb[13].mxu1  ;;  %v19309_v7 = vld [vmem:[#allocation4 + $0x240] sm:$0xff]  }
 0x3c1   :  { %v20869_v16 = vpop.f32.mrb[22].mxu0  ;;  %v20871_v17 = vpop.f32.mrb[14].mxu1 }
 0x3c2   :  { %v1916_v18 = vpack.c.bf16 %v20869_v16, %v20861_v10  ;;  %v1918_v19 = vpack.c.bf16 %v20871_v17, %v20863_v11  ;;  %v20877_v20 = vpop.f32.mrb[23].mxu0  ;;  %v20879_v21 = vpop.f32.mrb[15].mxu1  ;;  %v19383_v10 = vld [vmem:[#allocation4 + $0x410] sm:$0xff]   ;;  %v19385_v16 = vld [vmem:[#allocation4 + $0x458] sm:$0xff]  }
 0x3c3   :  { %16983 = vmatpush3.bf16.msra.mxu0 %v19291_v8  ;;  %17005 = vmatpush3.bf16.msra.mxu1 %v19292_v9  ;;  %v1917_v26 = vpack.c.bf16 %v20877_v20, %v20865_v14  ;;  %v1919_v31 = vpack.c.bf16 %v20879_v21, %v20867_v15  ;;  %v19310_v8 = vld [vmem:[#allocation4 + $0x2c0] sm:$0xff]   ;;  %v19351_v15 = vld [vmem:[#allocation4 + $0x310] sm:$0xff]   ;;  %v19353_v21 = vld [vmem:[#allocation4 + $0x358] sm:$0xff]  }
 0x3c4   :  { %16984 = vmatprep.subr.bf16.mxu0 %v19293_v12  ;;  %17006 = vmatprep.subr.bf16.mxu1 %v19294_v13  ;;  %v19352_v20 = vld [vmem:[#allocation4 + $0x390] sm:$0xff]   ;;  %v19358_v14 = vld [vmem:[#allocation4 + $0x3e0] sm:$0xff]   ;;  %v19386_v17 = vld [vmem:[#allocation4 + $0x4d8] sm:$0xff]  }
 0x3c5   :  { %v19384_v11 = vld [vmem:[#allocation4 + $0x490] sm:$0xff]  }
 0x3c7   :  { %16985 = vmatpush3.bf16.msra.mxu0 %v19295_v22  ;;  %17007 = vmatpush3.bf16.msra.mxu1 %v19296_v25  ;;  %v20885_v36 = vpop.f32.mrb[24].mxu0  ;;  %v20887_v37 = vpop.f32.mrb[16].mxu1  ;;  %v19364_v25 = vld [vmem:[#allocation4 + $0x3a8] sm:$0xff]  }
 0x3c8   :  { %16986 = vmatprep.subr.bf16.mxu0 %v19297_v32  ;;  %17008 = vmatprep.subr.bf16.mxu1 %v19298_v33  ;;  %v20889_v40 = vpop.f32.mrb[25].mxu0  ;;  %v20891_v41 = vpop.f32.mrb[17].mxu1  ;;  %v19362_v32 = vld [vmem:[#allocation4 + $0x3e8] sm:$0xff]  }
 0x3c9   :  { %v20893_v42 = vpop.f32.mrb[26].mxu0  ;;  %v20895_v43 = vpop.f32.mrb[18].mxu1 }
 0x3ca   :  { %v2261_v44 = vpack.c.bf16 %v20893_v42, %v20885_v36  ;;  %v2263_v45 = vpack.c.bf16 %v20895_v43, %v20887_v37  ;;  %v20901_v46 = vpop.f32.mrb[27].mxu0  ;;  %v20903_v47 = vpop.f32.mrb[19].mxu1  ;;  %v19415_v37 = vld [vmem:[#allocation4 + $0x510] sm:$0xff]   ;;  %v19417_v43 = vld [vmem:[#allocation4 + $0x558] sm:$0xff]  }
 0x3cb   :  { %16987 = vmatpush3.bf16.msra.mxu0 %v19299_v34  ;;  %17009 = vmatpush3.bf16.msra.mxu1 %v19300_v35  ;;  %v2262_v50 = vpack.c.bf16 %v20901_v46, %v20889_v40  ;;  %v2264_v51 = vpack.c.bf16 %v20903_v47, %v20891_v41  ;;  %v19311_v35 = vld [vmem:[#allocation4 + $0x200] sm:$0xff]   ;;  %v19416_v42 = vld [vmem:[#allocation4 + $0x590] sm:$0xff]  }
 0x3cc   :  { %16988 = vmatprep.subr.bf16.mxu0 %v19301_v38  ;;  %17010 = vmatprep.subr.bf16.mxu1 %v19302_v39  ;;  %v19312_v38 = vld [vmem:[#allocation4 + $0x280] sm:$0xff]   ;;  %v19368_v39 = vld [vmem:[#allocation4 + $0x3b0] sm:$0xff]  }
 0x3cd   :  { %v19389_v40 = vld [vmem:[#allocation4 + $0x460] sm:$0xff]  }
 0x3ce   :  { %v19390_v46 = vld [vmem:[#allocation4 + $0x4e0] sm:$0xff]  }
 0x3cf   :  { %16989 = vmatpush3.bf16.msra.mxu0 %v19303_v48  ;;  %17011 = vmatpush3.bf16.msra.mxu1 %v19304_v49  ;;  %v20909_v2 = vpop.f32.mrb[28].mxu0  ;;  %v20911_v5 = vpop.f32.mrb[20].mxu1  ;;  %v19313_v49 = vld [vmem:[#allocation4 + $0x248] sm:$0xff]   ;;  %v19367_v48 = vld [vmem:[#allocation4 + $0x330] sm:$0xff]   ;;  %v19391_v41 = vld [vmem:[#allocation4 + $0x420] sm:$0xff]  }
 0x3d0   :  { %16990 = vmatprep.subr.bf16.mxu0 %v19305_v52  ;;  %17012 = vmatprep.subr.bf16.mxu1 %v19306_v55  ;;  %v20913_v9 = vpop.f32.mrb[29].mxu0  ;;  %v20915_v12 = vpop.f32.mrb[21].mxu1  ;;  %v19314_v52 = vld [vmem:[#allocation4 + $0x2c8] sm:$0xff]   ;;  %v19392_v47 = vld [vmem:[#allocation4 + $0x4a0] sm:$0xff]  }
 0x3d1   :  { %v20917_v13 = vpop.f32.mrb[30].mxu0  ;;  %v20919_v22 = vpop.f32.mrb[22].mxu1  ;;  %v19315_v55 = vld [vmem:[#allocation4 + $0x208] sm:$0xff]  }
 0x3d2   :  { %v20925_v33 = vpop.f32.mrb[31].mxu0  ;;  %v20927_v34 = vpop.f32.mrb[23].mxu1 }
 0x3d3   :  { %16991 = vmatpush3.bf16.msra.mxu0 %v19307_v56  ;;  %17013 = vmatpush3.bf16.msra.mxu1 %v19308_v1  ;;  %v19316_v56 = vld [vmem:[#allocation4 + $0x288] sm:$0xff]   ;;  %v19317_v1 = vld [vmem:[#allocation4 + $0x250] sm:$0xff]   ;;  %v23256_v36 = vpack.c.bf16 %v20927_v34, %v20915_v12  ;;  %v19423_v12 = vld [vmem:[#allocation4 + $0x520] sm:$0xff]  }
 0x3d4   :  { %17020 = vmatprep.subr.bf16.mxu0 %v19309_v7  ;;  %17042 = vmatprep.subr.bf16.mxu1 %v19310_v8  ;;  %v19332_v7 = vld [vmem:[#allocation4 + $0x2a8] sm:$0xff]   ;;  %v19333_v8 = vld [vmem:[#allocation4 + $0x270] sm:$0xff]   ;;  %v19424_v34 = vld [vmem:[#allocation4 + $0x5a0] sm:$0xff]  }
 0x3d6   :  { %1522 = vmatmul.mubr.bf16.vlgmr.msra.gmra.mrb[48].mxu0 %v886_v29  ;;  %1563 = vmatmul.mubr.bf16.vlgmr.msra.gmra.mrb[40].mxu1 %v888_v30  ;;  %v19323_v29 = vld [vmem:[#allocation4 + $0x218] sm:$0xff]  }
 0x3d7   :  { %17021 = vmatpush3.bf16.msra.mxu0 %v19311_v35  ;;  %17043 = vmatpush3.bf16.msra.mxu1 %v19312_v38  ;;  %v19324_v30 = vld [vmem:[#allocation4 + $0x298] sm:$0xff]   ;;  %v19334_v35 = vld [vmem:[#allocation4 + $0x2f0] sm:$0xff]  }
 0x3d8   :  { %17022 = vmatprep.subr.bf16.mxu0 %v19313_v49  ;;  %17044 = vmatprep.subr.bf16.mxu1 %v19314_v52  ;;  %v19335_v38 = vld [vmem:[#allocation4 + $0x230] sm:$0xff]   ;;  %v20945_v52 = vpop.f32.mrb[32].mxu0 }
 0x3d9   :  { %1864 = vmatprep.mubr.bf16.mxu0 %v1572_v4  ;;  %1905 = vmatprep.mubr.bf16.mxu1 %v1574_v3  ;;  %v19329_v3 = vld [vmem:[#allocation4 + $0x268] sm:$0xff]   ;;  %v19336_v49 = vld [vmem:[#allocation4 + $0x2b0] sm:$0xff]  }
 0x3da   :  { %v19330_v4 = vld [vmem:[#allocation4 + $0x2e8] sm:$0xff]  }
 0x3db   :  { %17023 = vmatpush3.bf16.msra.mxu0 %v19315_v55  ;;  %17045 = vmatpush3.bf16.msra.mxu1 %v19316_v56  ;;  %v20947_v55 = vpop.f32.mrb[24].mxu1  ;;  %v19337_v56 = vld [vmem:[#allocation4 + $0x278] sm:$0xff]  }
 0x3dc   :  { %17024 = vmatprep.subr.bf16.mxu0 %v19317_v1  ;;  %17046 = vmatprep.subr.bf16.mxu1 %v19318_v6  ;;  %v19331_v6 = vld [vmem:[#allocation4 + $0x228] sm:$0xff]   ;;  %v19338_v1 = vld [vmem:[#allocation4 + $0x2f8] sm:$0xff]  }
 0x3df   :  { %17025 = vmatpush3.bf16.msra.mxu0 %v19319_v23  ;;  %17047 = vmatpush3.bf16.msra.mxu1 %v19320_v24  ;;  %v20949_v23 = vpop.f32.mrb[33].mxu0  ;;  %v20951_v24 = vpop.f32.mrb[25].mxu1 }
 0x3e0   :  { %17026 = vmatprep.subr.bf16.mxu0 %v19321_v27  ;;  %17048 = vmatprep.subr.bf16.mxu1 %v19322_v28  ;;  %v20953_v27 = vpop.f32.mrb[34].mxu0  ;;  %v20955_v28 = vpop.f32.mrb[26].mxu1 }
 0x3e3   :  { %17027 = vmatpush3.bf16.msra.mxu0 %v19323_v29  ;;  %17049 = vmatpush3.bf16.msra.mxu1 %v19324_v30  ;;  %v19360_v29 = vld [vmem:[#allocation4 + $0x3a0] sm:$0xff]  }
 0x3e4   :  { %17028 = vmatprep.subr.bf16.mxu0 %v19325_v57  ;;  %17050 = vmatprep.subr.bf16.mxu1 %v19326_v62  ;;  %v19339_v57 = vld [vmem:[#allocation4 + $0x238] sm:$0xff]  }
 0x3e5   :  { %v19340_v62 = vld [vmem:[#allocation4 + $0x2b8] sm:$0xff]  }
 0x3e7   :  { %17029 = vmatpush3.bf16.msra.mxu0 %v19327_v58  ;;  %17051 = vmatpush3.bf16.msra.mxu1 %v19328_v63  ;;  %v20961_v58 = vpop.f32.mrb[35].mxu0  ;;  %v20963_v63 = vpop.f32.mrb[27].mxu1 }
 0x3e8   :  { %17030 = vmatprep.subr.bf16.mxu0 %v19329_v3  ;;  %17052 = vmatprep.subr.bf16.mxu1 %v19330_v4  ;;  %v19341_v3 = vld [vmem:[#allocation4 + $0x340] sm:$0xff]  }
 0x3e9   :  { %v19342_v4 = vld [vmem:[#allocation4 + $0x3c0] sm:$0xff]  }
 0x3eb   :  { %17031 = vmatpush3.bf16.msra.mxu0 %v19331_v6  ;;  %17053 = vmatpush3.bf16.msra.mxu1 %v19332_v7  ;;  %v19369_v7 = vld [vmem:[#allocation4 + $0x378] sm:$0xff]  }
 0x3ec   :  { %17032 = vmatprep.subr.bf16.mxu0 %v19333_v8  ;;  %17054 = vmatprep.subr.bf16.mxu1 %v19334_v35  ;;  %v19343_v8 = vld [vmem:[#allocation4 + $0x300] sm:$0xff]   ;;  %v19370_v6 = vld [vmem:[#allocation4 + $0x3f8] sm:$0xff]  }
 0x3ed   :  { %v19344_v35 = vld [vmem:[#allocation4 + $0x380] sm:$0xff]  }
 0x3ef   :  { %17033 = vmatpush3.bf16.msra.mxu0 %v19335_v38  ;;  %17055 = vmatpush3.bf16.msra.mxu1 %v19336_v49  ;;  %v19345_v38 = vld [vmem:[#allocation4 + $0x348] sm:$0xff]  }
 0x3f0   :  { %17034 = vmatprep.subr.bf16.mxu0 %v19337_v56  ;;  %17056 = vmatprep.subr.bf16.mxu1 %v19338_v1  ;;  %v19346_v49 = vld [vmem:[#allocation4 + $0x3c8] sm:$0xff]   ;;  %v20975_v56 = vpop.f32.mrb[36].mxu0  ;;  %v20977_v1 = vpop.f32.mrb[28].mxu1 }
 0x3f3   :  { %17035 = vmatpush3.bf16.msra.mxu0 %v19339_v57  ;;  %17057 = vmatpush3.bf16.msra.mxu1 %v19340_v62  ;;  %v19347_v57 = vld [vmem:[#allocation4 + $0x308] sm:$0xff]  }
 0x3f4   :  { %17064 = vmatprep.subr.bf16.mxu0 %v19341_v3  ;;  %17086 = vmatprep.subr.bf16.mxu1 %v19342_v4  ;;  %v19348_v62 = vld [vmem:[#allocation4 + $0x388] sm:$0xff]   ;;  %v20979_v3 = vpop.f32.mrb[37].mxu0  ;;  %v20981_v4 = vpop.f32.mrb[29].mxu1 }
 0x3f5   :  { %v20985_v54 = vpop.f32.mrb[30].mxu1 }
 0x3f6   :  { %1865 = vmatmul.mubr.bf16.vlgmr.msra.gmra.mrb[52].mxu0 %v1571_v0  ;;  %1906 = vmatmul.mubr.bf16.vlgmr.msra.gmra.mrb[44].mxu1 %v1573_v61  ;;  %v20983_v0 = vpop.f32.mrb[38].mxu0 }
 0x3f7   :  { %17065 = vmatpush3.bf16.msra.mxu0 %v19343_v8  ;;  %17087 = vmatpush3.bf16.msra.mxu1 %v19344_v35  ;;  %v20997_v8 = vpop.f32.mrb[39].mxu0  ;;  %v20999_v35 = vpop.f32.mrb[31].mxu1 }
 0x3f8   :  { %17066 = vmatprep.subr.bf16.mxu0 %v19345_v38  ;;  %17088 = vmatprep.subr.bf16.mxu1 %v19346_v49  ;;  %v19356_v49 = vld [vmem:[#allocation4 + $0x398] sm:$0xff]   ;;  %v21005_v61 = vpop.f32.mrb[40].mxu0  ;;  %v21007_v60 = vpop.f32.mrb[32].mxu1  ;;  %v19357_v38 = vld [vmem:[#allocation4 + $0x360] sm:$0xff]  }
 0x3f9   :  { %2209 = vmatprep.mubr.bf16.mxu0 %v1917_v26  ;;  %2250 = vmatprep.mubr.bf16.mxu1 %v1919_v31  ;;  %v19354_v26 = vld [vmem:[#allocation4 + $0x3d8] sm:$0xff]  }
 0x3fa   :  { %v19355_v31 = vld [vmem:[#allocation4 + $0x318] sm:$0xff]  }
 0x3fb   :  { %17067 = vmatpush3.bf16.msra.mxu0 %v19347_v57  ;;  %17089 = vmatpush3.bf16.msra.mxu1 %v19348_v62  ;;  %v21009_v57 = vpop.f32.mrb[41].mxu0  ;;  %v21011_v62 = vpop.f32.mrb[33].mxu1 }
 0x3fc   :  { %17068 = vmatprep.subr.bf16.mxu0 %v19349_v53  ;;  %17090 = vmatprep.subr.bf16.mxu1 %v19350_v59  ;;  %v21013_v53 = vpop.f32.mrb[42].mxu0  ;;  %v21015_v59 = vpop.f32.mrb[34].mxu1 }
 0x3fd   :  { %v21021_v30 = vpop.f32.mrb[43].mxu0 }
 0x3ff   :  { %17069 = vmatpush3.bf16.msra.mxu0 %v19351_v15  ;;  %17091 = vmatpush3.bf16.msra.mxu1 %v19352_v20  ;;  %v19361_v15 = vld [vmem:[#allocation4 + $0x368] sm:$0xff]  }
 0x400   :  { %17070 = vmatprep.subr.bf16.mxu0 %v19353_v21  ;;  %17092 = vmatprep.subr.bf16.mxu1 %v19354_v26  ;;  %v21023_v21 = vpop.f32.mrb[35].mxu1  ;;  %v19359_v26 = vld [vmem:[#allocation4 + $0x320] sm:$0xff]   ;;  %v19363_v20 = vld [vmem:[#allocation4 + $0x328] sm:$0xff]  }
 0x403   :  { %17071 = vmatpush3.bf16.msra.mxu0 %v19355_v31  ;;  %17093 = vmatpush3.bf16.msra.mxu1 %v19356_v49  ;;  %v19365_v31 = vld [vmem:[#allocation4 + $0x370] sm:$0xff]  }
 0x404   :  { %17072 = vmatprep.subr.bf16.mxu0 %v19357_v38  ;;  %17094 = vmatprep.subr.bf16.mxu1 %v19358_v14  ;;  %v19366_v49 = vld [vmem:[#allocation4 + $0x3f0] sm:$0xff]   ;;  %v19371_v38 = vld [vmem:[#allocation4 + $0x338] sm:$0xff]  }
 0x405   :  { %v19372_v14 = vld [vmem:[#allocation4 + $0x3b8] sm:$0xff]  }
 0x407   :  { %17073 = vmatpush3.bf16.msra.mxu0 %v19359_v26  ;;  %17095 = vmatpush3.bf16.msra.mxu1 %v19360_v29  ;;  %v19373_v29 = vld [vmem:[#allocation4 + $0x440] sm:$0xff]  }
 0x408   :  { %17074 = vmatprep.subr.bf16.mxu0 %v19361_v15  ;;  %17096 = vmatprep.subr.bf16.mxu1 %v19362_v32  ;;  %v19374_v26 = vld [vmem:[#allocation4 + $0x4c0] sm:$0xff]  }
 0x409   :  { %v19375_v32 = vld [vmem:[#allocation4 + $0x400] sm:$0xff]  }
 0x40a   :  { %v19376_v15 = vld [vmem:[#allocation4 + $0x480] sm:$0xff]  }
 0x40b   :  { %17075 = vmatpush3.bf16.msra.mxu0 %v19363_v20  ;;  %17097 = vmatpush3.bf16.msra.mxu1 %v19364_v25  ;;  %v19377_v25 = vld [vmem:[#allocation4 + $0x448] sm:$0xff]  }
 0x40c   :  { %17076 = vmatprep.subr.bf16.mxu0 %v19365_v31  ;;  %17098 = vmatprep.subr.bf16.mxu1 %v19366_v49  ;;  %v19378_v20 = vld [vmem:[#allocation4 + $0x4c8] sm:$0xff]  }
 0x40d   :  { %v19395_v31 = vld [vmem:[#allocation4 + $0x428] sm:$0xff]  }
 0x40e   :  { %v19396_v49 = vld [vmem:[#allocation4 + $0x4a8] sm:$0xff]  }
 0x40f   :  { %17077 = vmatpush3.bf16.msra.mxu0 %v19367_v48  ;;  %17099 = vmatpush3.bf16.msra.mxu1 %v19368_v39  ;;  %v19379_v39 = vld [vmem:[#allocation4 + $0x408] sm:$0xff]  }
 0x410   :  { %17078 = vmatprep.subr.bf16.mxu0 %v19369_v7  ;;  %17100 = vmatprep.subr.bf16.mxu1 %v19370_v6  ;;  %v19380_v48 = vld [vmem:[#allocation4 + $0x488] sm:$0xff]   ;;  %v19381_v6 = vld [vmem:[#allocation4 + $0x450] sm:$0xff]  }
 0x411   :  { %v19382_v7 = vld [vmem:[#allocation4 + $0x4d0] sm:$0xff]  }
 0x413   :  { %17079 = vmatpush3.bf16.msra.mxu0 %v19371_v38  ;;  %17101 = vmatpush3.bf16.msra.mxu1 %v19372_v14  ;;  %v19397_v38 = vld [vmem:[#allocation4 + $0x470] sm:$0xff]  }
 0x414   :  { %17108 = vmatprep.subr.bf16.mxu0 %v19373_v29  ;;  %17130 = vmatprep.subr.bf16.mxu1 %v19374_v26  ;;  %v19398_v14 = vld [vmem:[#allocation4 + $0x4f0] sm:$0xff]  }
 0x415   :  { %v19399_v29 = vld [vmem:[#allocation4 + $0x430] sm:$0xff]  }
 0x416   :  { %2210 = vmatmul.mubr.bf16.vlgmr.msra.gmra.mrb[56].mxu0 %v1916_v18  ;;  %2251 = vmatmul.mubr.bf16.vlgmr.msra.gmra.mrb[48].mxu1 %v1918_v19  ;;  %v19387_v18 = vld [vmem:[#allocation4 + $0x418] sm:$0xff]   ;;  %v19400_v26 = vld [vmem:[#allocation4 + $0x4b0] sm:$0xff]  }
 0x417   :  { %17109 = vmatpush3.bf16.msra.mxu0 %v19375_v32  ;;  %17131 = vmatpush3.bf16.msra.mxu1 %v19376_v15  ;;  %v19388_v19 = vld [vmem:[#allocation4 + $0x498] sm:$0xff]  }
 0x418   :  { %17110 = vmatprep.subr.bf16.mxu0 %v19377_v25  ;;  %17132 = vmatprep.subr.bf16.mxu1 %v19378_v20  ;;  %v19401_v32 = vld [vmem:[#allocation4 + $0x478] sm:$0xff]  }
 0x419   :  { %2554 = vmatprep.mubr.bf16.mxu0 %v2262_v50  ;;  %2595 = vmatprep.mubr.bf16.mxu1 %v2264_v51  ;;  %v19393_v50 = vld [vmem:[#allocation4 + $0x468] sm:$0xff]   ;;  %v19402_v15 = vld [vmem:[#allocation4 + $0x4f8] sm:$0xff]  }
 0x41a   :  { %v19394_v51 = vld [vmem:[#allocation4 + $0x4e8] sm:$0xff]   ;;  %v19403_v25 = vld [vmem:[#allocation4 + $0x438] sm:$0xff]  }
 0x41b   :  { %17111 = vmatpush3.bf16.msra.mxu0 %v19379_v39  ;;  %17133 = vmatpush3.bf16.msra.mxu1 %v19380_v48  ;;  %v19404_v20 = vld [vmem:[#allocation4 + $0x4b8] sm:$0xff]   ;;  %v19405_v39 = vld [vmem:[#allocation4 + $0x540] sm:$0xff]  }
 0x41c   :  { %17112 = vmatprep.subr.bf16.mxu0 %v19381_v6  ;;  %17134 = vmatprep.subr.bf16.mxu1 %v19382_v7  ;;  %v19406_v48 = vld [vmem:[#allocation4 + $0x5c0] sm:$0xff]  }
 0x41d   :  { %v19407_v6 = vld [vmem:[#allocation4 + $0x500] sm:$0xff]  }
 0x41e   :  { %v19408_v7 = vld [vmem:[#allocation4 + $0x580] sm:$0xff]  }
 0x41f   :  { %17113 = vmatpush3.bf16.msra.mxu0 %v19383_v10  ;;  %17135 = vmatpush3.bf16.msra.mxu1 %v19384_v11  ;;  %v19409_v10 = vld [vmem:[#allocation4 + $0x548] sm:$0xff]  }
 0x420   :  { %17114 = vmatprep.subr.bf16.mxu0 %v19385_v16  ;;  %17136 = vmatprep.subr.bf16.mxu1 %v19386_v17  ;;  %v19410_v11 = vld [vmem:[#allocation4 + $0x5c8] sm:$0xff]  }
 0x421   :  { %v19411_v16 = vld [vmem:[#allocation4 + $0x508] sm:$0xff]  }
 0x422   :  { %v19412_v17 = vld [vmem:[#allocation4 + $0x588] sm:$0xff]  }
 0x423   :  { %17115 = vmatpush3.bf16.msra.mxu0 %v19387_v18  ;;  %17137 = vmatpush3.bf16.msra.mxu1 %v19388_v19  ;;  %v19413_v18 = vld [vmem:[#allocation4 + $0x550] sm:$0xff]  }
 0x424   :  { %17116 = vmatprep.subr.bf16.mxu0 %v19389_v40  ;;  %17138 = vmatprep.subr.bf16.mxu1 %v19390_v46  ;;  %v19414_v19 = vld [vmem:[#allocation4 + $0x5d0] sm:$0xff]   ;;  %v23255_v40 = vpack.c.bf16 %v20925_v33, %v20913_v9  ;;  %v19420_v46 = vld [vmem:[#allocation4 + $0x598] sm:$0xff]   ;;  %v19421_v9 = vld [vmem:[#allocation4 + $0x560] sm:$0xff]  }
 0x425   :  { %v19422_v33 = vld [vmem:[#allocation4 + $0x5e0] sm:$0xff]  }
 0x427   :  { %17117 = vmatpush3.bf16.msra.mxu0 %v19391_v41  ;;  %17139 = vmatpush3.bf16.msra.mxu1 %v19392_v47  ;;  %v19425_v41 = vld [vmem:[#allocation4 + $0x568] sm:$0xff]  }
 0x428   :  { %17118 = vmatprep.subr.bf16.mxu0 %v19393_v50  ;;  %17140 = vmatprep.subr.bf16.mxu1 %v19394_v51  ;;  %v19426_v47 = vld [vmem:[#allocation4 + $0x5e8] sm:$0xff]  }
 0x429   :  { %v19427_v50 = vld [vmem:[#allocation4 + $0x528] sm:$0xff]  }
 0x42a   :  { %v19428_v51 = vld [vmem:[#allocation4 + $0x5a8] sm:$0xff]  }
 0x42b   :  { %17119 = vmatpush3.bf16.msra.mxu0 %v19395_v31  ;;  %17141 = vmatpush3.bf16.msra.mxu1 %v19396_v49  ;;  %v19429_v31 = vld [vmem:[#allocation4 + $0x570] sm:$0xff]  }
 0x42c   :  { %17120 = vmatprep.subr.bf16.mxu0 %v19397_v38  ;;  %17142 = vmatprep.subr.bf16.mxu1 %v19398_v14  ;;  %v19430_v49 = vld [vmem:[#allocation4 + $0x5f0] sm:$0xff]  }
 0x42d   :  { %v19431_v38 = vld [vmem:[#allocation4 + $0x530] sm:$0xff]  }
 0x42e   :  { %v19432_v14 = vld [vmem:[#allocation4 + $0x5b0] sm:$0xff]  }
 0x42f   :  { %17121 = vmatpush3.bf16.msra.mxu0 %v19399_v29  ;;  %17143 = vmatpush3.bf16.msra.mxu1 %v19400_v26  ;;  %v19433_v29 = vld [vmem:[#allocation4 + $0x578] sm:$0xff]  }
 0x430   :  { %17122 = vmatprep.subr.bf16.mxu0 %v19401_v32  ;;  %17144 = vmatprep.subr.bf16.mxu1 %v19402_v15  ;;  %v19434_v26 = vld [vmem:[#allocation4 + $0x5f8] sm:$0xff]  }
 0x431   :  { %v19435_v32 = vld [vmem:[#allocation4 + $0x538] sm:$0xff]  }
 0x432   :  { %v19436_v15 = vld [vmem:[#allocation4 + $0x5b8] sm:$0xff]  }
 0x433   :  { %17123 = vmatpush3.bf16.msra.mxu0 %v19403_v25  ;;  %17145 = vmatpush3.bf16.msra.mxu1 %v19404_v20  ;;  %v19437_v25 = vld [vmem:[#allocation4 + $0x640] sm:$0xff]  }
 0x434   :  { %17152 = vmatprep.subr.bf16.mxu0 %v19405_v39  ;;  %17174 = vmatprep.subr.bf16.mxu1 %v19406_v48  ;;  %v19438_v20 = vld [vmem:[#allocation4 + $0x6c0] sm:$0xff]  }
 0x435   :  { %v19439_v39 = vld [vmem:[#allocation4 + $0x600] sm:$0xff]  }
 0x436   :  { %2555 = vmatmul.mubr.bf16.vlgmr.msra.gmra.mrb[60].mxu0 %v2261_v44  ;;  %2596 = vmatmul.mubr.bf16.vlgmr.msra.gmra.mrb[52].mxu1 %v2263_v45  ;;  %v19418_v44 = vld [vmem:[#allocation4 + $0x5d8] sm:$0xff]   ;;  %v19440_v48 = vld [vmem:[#allocation4 + $0x680] sm:$0xff]  }
 0x437   :  { %17153 = vmatpush3.bf16.msra.mxu0 %v19407_v6  ;;  %17175 = vmatpush3.bf16.msra.mxu1 %v19408_v7  ;;  %v19419_v45 = vld [vmem:[#allocation4 + $0x518] sm:$0xff]   ;;  %v19441_v6 = vld [vmem:[#allocation4 + $0x648] sm:$0xff]  }
 0x438   :  { %17154 = vmatprep.subr.bf16.mxu0 %v19409_v10  ;;  %17176 = vmatprep.subr.bf16.mxu1 %v19410_v11  ;;  %v19442_v7 = vld [vmem:[#allocation4 + $0x6c8] sm:$0xff]   ;;  %v23257_v10 = vpack.c.bf16 %v20917_v13, %v20909_v2  ;;  %v23258_v11 = vpack.c.bf16 %v20919_v22, %v20911_v5  ;;  %v23260_v2 = vpack.c.bf16 %v20963_v63, %v20951_v24  ;;  %v19447_v5 = vld [vmem:[#allocation4 + $0x610] sm:$0xff]   ;;  %v19449_v22 = vld [vmem:[#allocation4 + $0x658] sm:$0xff]  }
 0x439   :  { %2899 = vmatprep.mubr.bf16.mxu0 %v23255_v40  ;;  %2940 = vmatprep.mubr.bf16.mxu1 %v23256_v36  ;;  %v23259_v40 = vpack.c.bf16 %v20961_v58, %v20949_v23  ;;  %v19448_v13 = vld [vmem:[#allocation4 + $0x690] sm:$0xff]   ;;  %v19450_v36 = vld [vmem:[#allocation4 + $0x6d8] sm:$0xff]   ;;  %v19453_v23 = vld [vmem:[#allocation4 + $0x660] sm:$0xff]  }
 0x43a   :  { %v19454_v58 = vld [vmem:[#allocation4 + $0x6e0] sm:$0xff]  }
 0x43b   :  { %17155 = vmatpush3.bf16.msra.mxu0 %v19411_v16  ;;  %17177 = vmatpush3.bf16.msra.mxu1 %v19412_v17  ;;  %v19443_v16 = vld [vmem:[#allocation4 + $0x608] sm:$0xff]   ;;  %v19455_v24 = vld [vmem:[#allocation4 + $0x620] sm:$0xff]  }
 0x43c   :  { %17156 = vmatprep.subr.bf16.mxu0 %v19413_v18  ;;  %17178 = vmatprep.subr.bf16.mxu1 %v19414_v19  ;;  %v19444_v17 = vld [vmem:[#allocation4 + $0x688] sm:$0xff]   ;;  %v19445_v18 = vld [vmem:[#allocation4 + $0x650] sm:$0xff]   ;;  %v19456_v63 = vld [vmem:[#allocation4 + $0x6a0] sm:$0xff]  }
 0x43d   :  { %v19446_v19 = vld [vmem:[#allocation4 + $0x6d0] sm:$0xff]  }
 0x43f   :  { %17157 = vmatpush3.bf16.msra.mxu0 %v19415_v37  ;;  %17179 = vmatpush3.bf16.msra.mxu1 %v19416_v42  ;;  %v19451_v37 = vld [vmem:[#allocation4 + $0x618] sm:$0xff]  }
 0x440   :  { %17158 = vmatprep.subr.bf16.mxu0 %v19417_v43  ;;  %17180 = vmatprep.subr.bf16.mxu1 %v19418_v44  ;;  %v19452_v42 = vld [vmem:[#allocation4 + $0x698] sm:$0xff]   ;;  %v19457_v43 = vld [vmem:[#allocation4 + $0x668] sm:$0xff]  }
 0x441   :  { %v19458_v44 = vld [vmem:[#allocation4 + $0x6e8] sm:$0xff]  }
 0x443   :  { %17159 = vmatpush3.bf16.msra.mxu0 %v19419_v45  ;;  %17181 = vmatpush3.bf16.msra.mxu1 %v19420_v46  ;;  %v19459_v45 = vld [vmem:[#allocation4 + $0x628] sm:$0xff]  }
 0x444   :  { %17160 = vmatprep.subr.bf16.mxu0 %v19421_v9  ;;  %17182 = vmatprep.subr.bf16.mxu1 %v19422_v33  ;;  %v19460_v46 = vld [vmem:[#allocation4 + $0x6a8] sm:$0xff]   ;;  %v19461_v9 = vld [vmem:[#allocation4 + $0x670] sm:$0xff]  }
 0x445   :  { %v19462_v33 = vld [vmem:[#allocation4 + $0x6f0] sm:$0xff]  }
 0x447   :  { %17161 = vmatpush3.bf16.msra.mxu0 %v19423_v12  ;;  %17183 = vmatpush3.bf16.msra.mxu1 %v19424_v34  ;;  %v19463_v12 = vld [vmem:[#allocation4 + $0x630] sm:$0xff]  }
 0x448   :  { %17162 = vmatprep.subr.bf16.mxu0 %v19425_v41  ;;  %17184 = vmatprep.subr.bf16.mxu1 %v19426_v47  ;;  %v19464_v34 = vld [vmem:[#allocation4 + $0x6b0] sm:$0xff]   ;;  %v19465_v41 = vld [vmem:[#allocation4 + $0x678] sm:$0xff]  }
 0x449   :  { %v19466_v47 = vld [vmem:[#allocation4 + $0x6f8] sm:$0xff]  }
 0x44b   :  { %17163 = vmatpush3.bf16.msra.mxu0 %v19427_v50  ;;  %17185 = vmatpush3.bf16.msra.mxu1 %v19428_v51  ;;  %v19467_v50 = vld [vmem:[#allocation4 + $0x638] sm:$0xff]  }
 0x44c   :  { %17164 = vmatprep.subr.bf16.mxu0 %v19429_v31  ;;  %17186 = vmatprep.subr.bf16.mxu1 %v19430_v49  ;;  %v19468_v51 = vld [vmem:[#allocation4 + $0x6b8] sm:$0xff]   ;;  %v19469_v31 = vld [vmem:[#allocation4 + $0x740] sm:$0xff]  }
 0x44d   :  { %v19470_v49 = vld [vmem:[#allocation4 + $0x7c0] sm:$0xff]  }
 0x44f   :  { %17165 = vmatpush3.bf16.msra.mxu0 %v19431_v38  ;;  %17187 = vmatpush3.bf16.msra.mxu1 %v19432_v14  ;;  %v19471_v38 = vld [vmem:[#allocation4 + $0x700] sm:$0xff]  }
 0x450   :  { %17166 = vmatprep.subr.bf16.mxu0 %v19433_v29  ;;  %17188 = vmatprep.subr.bf16.mxu1 %v19434_v26  ;;  %v19472_v14 = vld [vmem:[#allocation4 + $0x780] sm:$0xff]   ;;  %v19473_v29 = vld [vmem:[#allocation4 + $0x748] sm:$0xff]  }
 0x451   :  { %v19474_v26 = vld [vmem:[#allocation4 + $0x7c8] sm:$0xff]  }
 0x453   :  { %17167 = vmatpush3.bf16.msra.mxu0 %v19435_v32  ;;  %17189 = vmatpush3.bf16.msra.mxu1 %v19436_v15  ;;  %v23261_v32 = vpack.c.bf16 %v20953_v27, %v20945_v52  ;;  %v23262_v15 = vpack.c.bf16 %v20955_v28, %v20947_v55  ;;  %v23264_v52 = vpack.c.bf16 %v20999_v35, %v20981_v4  ;;  %v19479_v55 = vld [vmem:[#allocation4 + $0x710] sm:$0xff]   ;;  %v19481_v28 = vld [vmem:[#allocation4 + $0x758] sm:$0xff]   ;;  %v19487_v4 = vld [vmem:[#allocation4 + $0x720] sm:$0xff]  }
 0x454   :  { %17196 = vmatprep.subr.bf16.mxu0 %v19437_v25  ;;  %17218 = vmatprep.subr.bf16.mxu1 %v19438_v20  ;;  %v19475_v25 = vld [vmem:[#allocation4 + $0x708] sm:$0xff]   ;;  %v19480_v27 = vld [vmem:[#allocation4 + $0x790] sm:$0xff]   ;;  %v19488_v35 = vld [vmem:[#allocation4 + $0x7a0] sm:$0xff]  }
 0x455   :  { %v19476_v20 = vld [vmem:[#allocation4 + $0x788] sm:$0xff]  }
 0x456   :  { %2900 = vmatmul.mubr.bf16.vlgmr.msra.gmra.mrb[64].mxu0 %v23257_v10  ;;  %2941 = vmatmul.mubr.bf16.vlgmr.msra.gmra.mrb[56].mxu1 %v23258_v11  ;;  %v19483_v10 = vld [vmem:[#allocation4 + $0x718] sm:$0xff]  }
 0x457   :  { %17197 = vmatpush3.bf16.msra.mxu0 %v19439_v39  ;;  %17219 = vmatpush3.bf16.msra.mxu1 %v19440_v48  ;;  %v19477_v39 = vld [vmem:[#allocation4 + $0x750] sm:$0xff]   ;;  %v19484_v11 = vld [vmem:[#allocation4 + $0x798] sm:$0xff]  }
 0x458   :  { %17198 = vmatprep.subr.bf16.mxu0 %v19441_v6  ;;  %17220 = vmatprep.subr.bf16.mxu1 %v19442_v7  ;;  %v19478_v48 = vld [vmem:[#allocation4 + $0x7d0] sm:$0xff]   ;;  %v23263_v6 = vpack.c.bf16 %v20997_v8, %v20979_v3  ;;  %v19482_v7 = vld [vmem:[#allocation4 + $0x7d8] sm:$0xff]   ;;  %v19485_v3 = vld [vmem:[#allocation4 + $0x760] sm:$0xff]  }
 0x459   :  { %3244 = vmatprep.mubr.bf16.mxu0 %v23259_v40  ;;  %3285 = vmatprep.mubr.bf16.mxu1 %v23260_v2  ;;  %v19486_v8 = vld [vmem:[#allocation4 + $0x7e0] sm:$0xff]   ;;  %v19493_v40 = vld [vmem:[#allocation4 + $0x770] sm:$0xff]  }
 0x45a   :  { %v19494_v2 = vld [vmem:[#allocation4 + $0x7f0] sm:$0xff]  }
 0x45b   :  { %17199 = vmatpush3.bf16.msra.mxu0 %v19443_v16  ;;  %17221 = vmatpush3.bf16.msra.mxu1 %v19444_v17  ;;  %v19489_v16 = vld [vmem:[#allocation4 + $0x768] sm:$0xff]  }
 0x45c   :  { %17200 = vmatprep.subr.bf16.mxu0 %v19445_v18  ;;  %17222 = vmatprep.subr.bf16.mxu1 %v19446_v19  ;;  %v19490_v17 = vld [vmem:[#allocation4 + $0x7e8] sm:$0xff]  }
 0x45d   :  { %v19491_v18 = vld [vmem:[#allocation4 + $0x728] sm:$0xff]  }
 0x45e   :  { %v19492_v19 = vld [vmem:[#allocation4 + $0x7a8] sm:$0xff]  }
 0x45f   :  { %17201 = vmatpush3.bf16.msra.mxu0 %v19447_v5  ;;  %17223 = vmatpush3.bf16.msra.mxu1 %v19448_v13 }
 0x460   :  { %17202 = vmatprep.subr.bf16.mxu0 %v19449_v22  ;;  %17224 = vmatprep.subr.bf16.mxu1 %v19450_v36 }
 0x463   :  { %17203 = vmatpush3.bf16.msra.mxu0 %v19451_v37  ;;  %17225 = vmatpush3.bf16.msra.mxu1 %v19452_v42 }
 0x464   :  { %17204 = vmatprep.subr.bf16.mxu0 %v19453_v23  ;;  %17226 = vmatprep.subr.bf16.mxu1 %v19454_v58 }
 0x467   :  { %17205 = vmatpush3.bf16.msra.mxu0 %v19455_v24  ;;  %17227 = vmatpush3.bf16.msra.mxu1 %v19456_v63  ;;  %v19495_v24 = vld [vmem:[#allocation4 + $0x730] sm:$0xff]  }
 0x468   :  { %17206 = vmatprep.subr.bf16.mxu0 %v19457_v43  ;;  %17228 = vmatprep.subr.bf16.mxu1 %v19458_v44  ;;  %v19496_v63 = vld [vmem:[#allocation4 + $0x7b0] sm:$0xff]  }
 0x46b   :  { %17207 = vmatpush3.bf16.msra.mxu0 %v19459_v45  ;;  %17229 = vmatpush3.bf16.msra.mxu1 %v19460_v46  ;;  %v19497_v45 = vld [vmem:[#allocation4 + $0x778] sm:$0xff]  }
 0x46c   :  { %17208 = vmatprep.subr.bf16.mxu0 %v19461_v9  ;;  %17230 = vmatprep.subr.bf16.mxu1 %v19462_v33  ;;  %v19498_v46 = vld [vmem:[#allocation4 + $0x7f8] sm:$0xff]  }
 0x46f   :  { %17209 = vmatpush3.bf16.msra.mxu0 %v19463_v12  ;;  %17231 = vmatpush3.bf16.msra.mxu1 %v19464_v34 }
 0x470   :  { %17210 = vmatprep.subr.bf16.mxu0 %v19465_v41  ;;  %17232 = vmatprep.subr.bf16.mxu1 %v19466_v47  ;;  %v19499_v41 = vld [vmem:[#allocation4 + $0x738] sm:$0xff]  }
 0x471   :  { %v19500_v47 = vld [vmem:[#allocation4 + $0x7b8] sm:$0xff]  }
 0x473   :  { %17211 = vmatpush3.bf16.msra.mxu0 %v19467_v50  ;;  %17233 = vmatpush3.bf16.msra.mxu1 %v19468_v51  ;;  %v19501_v50 = vld [vmem:[#allocation4 + $0x840] sm:$0xff]  }
 0x474   :  { %17240 = vmatprep.subr.bf16.mxu0 %v19469_v31  ;;  %17262 = vmatprep.subr.bf16.mxu1 %v19470_v49  ;;  %v19502_v51 = vld [vmem:[#allocation4 + $0x8c0] sm:$0xff]  }
 0x475   :  { %v19503_v31 = vld [vmem:[#allocation4 + $0x800] sm:$0xff]  }
 0x476   :  { %3245 = vmatmul.mubr.bf16.vlgmr.msra.gmra.mrb[68].mxu0 %v23261_v32  ;;  %3286 = vmatmul.mubr.bf16.vlgmr.msra.gmra.mrb[60].mxu1 %v23262_v15  ;;  %v19504_v49 = vld [vmem:[#allocation4 + $0x880] sm:$0xff]   ;;  %v23267_v32 = vpack.c.bf16 %v21021_v30, %v21009_v57  ;;  %v19507_v15 = vld [vmem:[#allocation4 + $0x808] sm:$0xff]   ;;  %v19514_v30 = vld [vmem:[#allocation4 + $0x8d8] sm:$0xff]  }
 0x477   :  { %17241 = vmatpush3.bf16.msra.mxu0 %v19471_v38  ;;  %17263 = vmatpush3.bf16.msra.mxu1 %v19472_v14  ;;  %v19505_v38 = vld [vmem:[#allocation4 + $0x848] sm:$0xff]   ;;  %v19515_v57 = vld [vmem:[#allocation4 + $0x818] sm:$0xff]  }
 0x478   :  { %17242 = vmatprep.subr.bf16.mxu0 %v19473_v29  ;;  %17264 = vmatprep.subr.bf16.mxu1 %v19474_v26  ;;  %v19506_v14 = vld [vmem:[#allocation4 + $0x8c8] sm:$0xff]   ;;  %v23265_v29 = vpack.c.bf16 %v20983_v0, %v20975_v56  ;;  %v23266_v26 = vpack.c.bf16 %v20985_v54, %v20977_v1  ;;  %v19510_v56 = vld [vmem:[#allocation4 + $0x8d0] sm:$0xff]   ;;  %v19513_v54 = vld [vmem:[#allocation4 + $0x858] sm:$0xff]  }
 0x479   :  { %3589 = vmatprep.mubr.bf16.mxu0 %v23263_v6  ;;  %3630 = vmatprep.mubr.bf16.mxu1 %v23264_v52  ;;  %v19511_v0 = vld [vmem:[#allocation4 + $0x810] sm:$0xff]   ;;  %v19519_v6 = vld [vmem:[#allocation4 + $0x820] sm:$0xff]  }
 0x47a   :  { %v19512_v1 = vld [vmem:[#allocation4 + $0x890] sm:$0xff]   ;;  %v19520_v52 = vld [vmem:[#allocation4 + $0x8a0] sm:$0xff]  }
 0x47b   :  { %17243 = vmatpush3.bf16.msra.mxu0 %v19475_v25  ;;  %17265 = vmatpush3.bf16.msra.mxu1 %v19476_v20  ;;  %v23268_v25 = vpack.c.bf16 %v21023_v21, %v21011_v62  ;;  %v19508_v20 = vld [vmem:[#allocation4 + $0x888] sm:$0xff]   ;;  %v19517_v62 = vld [vmem:[#allocation4 + $0x860] sm:$0xff]  }
 0x47c   :  { %17244 = vmatprep.subr.bf16.mxu0 %v19477_v39  ;;  %17266 = vmatprep.subr.bf16.mxu1 %v19478_v48  ;;  %v19509_v39 = vld [vmem:[#allocation4 + $0x850] sm:$0xff]   ;;  %v19516_v48 = vld [vmem:[#allocation4 + $0x898] sm:$0xff]   ;;  %v19518_v21 = vld [vmem:[#allocation4 + $0x8e0] sm:$0xff]  }
 0x47f   :  { %17245 = vmatpush3.bf16.msra.mxu0 %v19479_v55  ;;  %17267 = vmatpush3.bf16.msra.mxu1 %v19480_v27  ;;  %v19521_v55 = vld [vmem:[#allocation4 + $0x868] sm:$0xff]  }
 0x480   :  { %17246 = vmatprep.subr.bf16.mxu0 %v19481_v28  ;;  %17268 = vmatprep.subr.bf16.mxu1 %v19482_v7  ;;  %v19522_v27 = vld [vmem:[#allocation4 + $0x8e8] sm:$0xff]  }
 0x481   :  { %v19523_v28 = vld [vmem:[#allocation4 + $0x828] sm:$0xff]  }
 0x482   :  { %v19524_v7 = vld [vmem:[#allocation4 + $0x8a8] sm:$0xff]  }
 0x483   :  { %17247 = vmatpush3.bf16.msra.mxu0 %v19483_v10  ;;  %17269 = vmatpush3.bf16.msra.mxu1 %v19484_v11  ;;  %v19525_v10 = vld [vmem:[#allocation4 + $0x870] sm:$0xff]  }
 0x484   :  { %17248 = vmatprep.subr.bf16.mxu0 %v19485_v3  ;;  %17270 = vmatprep.subr.bf16.mxu1 %v19486_v8  ;;  %v19526_v8 = vld [vmem:[#allocation4 + $0x8f0] sm:$0xff]  }
 0x487   :  { %17249 = vmatpush3.bf16.msra.mxu0 %v19487_v4  ;;  %17271 = vmatpush3.bf16.msra.mxu1 %v19488_v35 }
 0x488   :  { %17250 = vmatprep.subr.bf16.mxu0 %v19489_v16  ;;  %17272 = vmatprep.subr.bf16.mxu1 %v19490_v17 }
 0x489   :  { %v16948_v5 = vpop.f32.mrb[44].mxu0  ;;  %v16970_v13 = vpop.f32.mrb[36].mxu1 }
 0x48a   :  { %v16949_v22 = vpop.f32.mrb[45].mxu0  ;;  %v16971_v36 = vpop.f32.mrb[37].mxu1 }
 0x48b   :  { %v16950_v37 = vadd.f32 %v16949_v22, %v16948_v5  ;;  %v16972_v42 = vadd.f32 %v16971_v36, %v16970_v13  ;;  %17251 = vmatpush3.bf16.msra.mxu0 %v19491_v18  ;;  %17273 = vmatpush3.bf16.msra.mxu1 %v19492_v19  ;;  %v16951_v23 = vpop.f32.mrb[46].mxu0  ;;  %v16973_v58 = vpop.f32.mrb[38].mxu1  ;;  %v19528_v13 = vld [vmem:[#allocation4 + $0x8b0] sm:$0xff]   ;;  %v19529_v22 = vld [vmem:[#allocation4 + $0x878] sm:$0xff]  }
 0x48c   :  { %v16952_v43 = vpop.f32.mrb[47].mxu0  ;;  %v16974_v44 = vpop.f32.mrb[39].mxu1  ;;  %17252 = vmatprep.subr.bf16.mxu0 %v19493_v40  ;;  %17274 = vmatprep.subr.bf16.mxu1 %v19494_v2  ;;  %v19527_v40 = vld [vmem:[#allocation4 + $0x830] sm:$0xff]  }
 0x48d   :  { %v21077_v9 = vadd.f32 %v16972_v42, %v16950_v37  ;;  %v16953_v33 = vadd.f32 %v16952_v43, %v16951_v23  ;;  %v16975_v12 = vadd.f32 %v16974_v44, %v16973_v58  ;;  %v19530_v23 = vld [vmem:[#allocation4 + $0x8f8] sm:$0xff]  }
 0x48e   :  { %v19532_v43 = vld [vmem:[#allocation4 + $0x8b8] sm:$0xff]  }
 0x48f   :  { %v21079_v34 = vadd.f32 %v16975_v12, %v16953_v33  ;;  %17253 = vmatpush3.bf16.msra.mxu0 %v19495_v24  ;;  %17275 = vmatpush3.bf16.msra.mxu1 %v19496_v63  ;;  %v19531_v63 = vld [vmem:[#allocation4 + $0x838] sm:$0xff]  }
 0x490   :  { %17254 = vmatprep.subr.bf16.mxu0 %v19497_v45  ;;  %17276 = vmatprep.subr.bf16.mxu1 %v19498_v46  ;;  %v23269_v45 = vpack.c.bf16 %v21013_v53, %v21005_v61  ;;  %v23270_v46 = vpack.c.bf16 %v21015_v59, %v21007_v60 }
 0x493   :  { %17255 = vmatpush3.bf16.msra.mxu0 %v19499_v41  ;;  %17277 = vmatpush3.bf16.msra.mxu1 %v19500_v47 }
 0x494   :  { %17284 = vmatprep.subr.bf16.mxu0 %v19501_v50  ;;  %17306 = vmatprep.subr.bf16.mxu1 %v19502_v51 }
 0x496   :  { %3590 = vmatmul.mubr.bf16.vlgmr.msra.gmra.mrb[72].mxu0 %v23265_v29  ;;  %3631 = vmatmul.mubr.bf16.vlgmr.msra.gmra.mrb[64].mxu1 %v23266_v26 }
 0x497   :  { %17285 = vmatpush3.bf16.msra.mxu0 %v19503_v31  ;;  %3934 = vmatprep.mubr.bf16.mxu0 %v23267_v32 }
 0x498   :  { %17307 = vmatpush3.bf16.msra.mxu1 %v19504_v49  ;;  %3975 = vmatprep.mubr.bf16.mxu1 %v23268_v25 }
 0x499   :  { %17286 = vmatprep.subr.bf16.mxu0 %v19505_v38  ;;  %17308 = vmatprep.subr.bf16.mxu1 %v19506_v14 }
 0x49b   :  { %17287 = vmatpush3.bf16.msra.mxu0 %v19507_v15 }
 0x49c   :  { %17309 = vmatpush3.bf16.msra.mxu1 %v19508_v20  ;;  %17288 = vmatprep.subr.bf16.mxu0 %v19509_v39 }
 0x49d   :  { %17310 = vmatprep.subr.bf16.mxu1 %v19510_v56 }
 0x49f   :  { %17289 = vmatpush3.bf16.msra.mxu0 %v19511_v0 }
 0x4a0   :  { %17311 = vmatpush3.bf16.msra.mxu1 %v19512_v1  ;;  %17290 = vmatprep.subr.bf16.mxu0 %v19513_v54 }
 0x4a1   :  { %17312 = vmatprep.subr.bf16.mxu1 %v19514_v30 }
 0x4a3   :  { %17291 = vmatpush3.bf16.msra.mxu0 %v19515_v57 }
 0x4a4   :  { %17313 = vmatpush3.bf16.msra.mxu1 %v19516_v48  ;;  %17292 = vmatprep.subr.bf16.mxu0 %v19517_v62 }
 0x4a5   :  { %17314 = vmatprep.subr.bf16.mxu1 %v19518_v21 }
 0x4a7   :  { %17293 = vmatpush3.bf16.msra.mxu0 %v19519_v6 }
 0x4a8   :  { %17315 = vmatpush3.bf16.msra.mxu1 %v19520_v52  ;;  %17294 = vmatprep.subr.bf16.mxu0 %v19521_v55 }
 0x4a9   :  { %v16992_v11 = vpop.f32.mrb[48].mxu0  ;;  %v17014_v3 = vpop.f32.mrb[40].mxu1  ;;  %17316 = vmatprep.subr.bf16.mxu1 %v19522_v27 }
 0x4aa   :  { %v16993_v4 = vpop.f32.mrb[49].mxu0  ;;  %v17015_v35 = vpop.f32.mrb[41].mxu1 }
 0x4ab   :  { %v16994_v16 = vadd.f32 %v16993_v4, %v16992_v11  ;;  %v17016_v17 = vadd.f32 %v17015_v35, %v17014_v3  ;;  %v16995_v18 = vpop.f32.mrb[50].mxu0  ;;  %v17017_v19 = vpop.f32.mrb[42].mxu1  ;;  %17295 = vmatpush3.bf16.msra.mxu0 %v19523_v28 }
 0x4ac   :  { %17317 = vmatpush3.bf16.msra.mxu1 %v19524_v7  ;;  %v16996_v2 = vpop.f32.mrb[51].mxu0  ;;  %v17018_v5 = vpop.f32.mrb[43].mxu1  ;;  %17296 = vmatprep.subr.bf16.mxu0 %v19525_v10 }
 0x4ad   :  { %v1524_v36 = vadd.f32 %v16994_v16, %v21077_v9  ;;  %v16997_v37 = vadd.f32 %v16996_v2, %v16995_v18  ;;  %v17019_v42 = vadd.f32 %v17018_v5, %v17017_v19  ;;  %17318 = vmatprep.subr.bf16.mxu1 %v19526_v8 }
 0x4af   :  { %v1565_v58 = vadd.f32 %v17016_v17, %v1524_v36  ;;  %v1527_v24 = vadd.f32 %v16997_v37, %v21079_v34  ;;  %17297 = vmatpush3.bf16.msra.mxu0 %v19527_v40 }
 0x4b0   :  { %17319 = vmatpush3.bf16.msra.mxu1 %v19528_v13  ;;  %17298 = vmatprep.subr.bf16.mxu0 %v19529_v22 }
 0x4b1   :  { %v1568_v44 = vadd.f32 %v17019_v42, %v1527_v24  ;;  %17320 = vmatprep.subr.bf16.mxu1 %v19530_v23 }
 0x4b3   :  { %17299 = vmatpush3.bf16.msra.mxu0 %v19531_v63 }
 0x4b4   :  { %17321 = vmatpush3.bf16.msra.mxu1 %v19532_v43 }
 0x4b6   :  { %3935 = vmatmul.mubr.bf16.vlgmr.msra.gmra.mrb[76].mxu0 %v23269_v45 }
 0x4b7   :  { %3976 = vmatmul.mubr.bf16.vlgmr.msra.gmra.mrb[68].mxu1 %v23270_v46 }
 0x4c9   :  { %v17036_v9 = vpop.f32.mrb[52].mxu0  ;;  %v17058_v33 = vpop.f32.mrb[44].mxu1 }
 0x4ca   :  { %v17037_v12 = vpop.f32.mrb[53].mxu0  ;;  %v17059_v34 = vpop.f32.mrb[45].mxu1 }
 0x4cb   :  { %v17038_v41 = vadd.f32 %v17037_v12, %v17036_v9  ;;  %v17060_v47 = vadd.f32 %v17059_v34, %v17058_v33  ;;  %v17039_v50 = vpop.f32.mrb[54].mxu0  ;;  %v17061_v51 = vpop.f32.mrb[46].mxu1 }
 0x4cc   :  { %v17040_v31 = vpop.f32.mrb[55].mxu0  ;;  %v17062_v49 = vpop.f32.mrb[47].mxu1 }
 0x4cd   :  { %v1908_v38 = vadd.f32 %v17060_v47, %v17038_v41  ;;  %v17041_v14 = vadd.f32 %v17040_v31, %v17039_v50  ;;  %v17063_v29 = vadd.f32 %v17062_v49, %v17061_v51 }
 0x4cf   :  { %v1914_v26 = vadd.f32 %v1908_v38, %v1565_v58  ;;  %v1911_v61 = vadd.f32 %v17063_v29, %v17041_v14 }
 0x4d1   :  { %v1915_v53 = vadd.f32 %v1911_v61, %v1568_v44 }
 0x4e9   :  { %v17080_v32 = vpop.f32.mrb[56].mxu0  ;;  %v17102_v15 = vpop.f32.mrb[48].mxu1 }
 0x4ea   :  { %v17081_v60 = vpop.f32.mrb[57].mxu0  ;;  %v17103_v59 = vpop.f32.mrb[49].mxu1 }
 0x4eb   :  { %v17082_v25 = vadd.f32 %v17081_v60, %v17080_v32  ;;  %v17104_v20 = vadd.f32 %v17103_v59, %v17102_v15  ;;  %v17083_v39 = vpop.f32.mrb[58].mxu0  ;;  %v17105_v56 = vpop.f32.mrb[50].mxu1 }
 0x4ec   :  { %v17084_v0 = vpop.f32.mrb[59].mxu0  ;;  %v17106_v1 = vpop.f32.mrb[51].mxu1 }
 0x4ed   :  { %v2253_v54 = vadd.f32 %v17104_v20, %v17082_v25  ;;  %v17085_v30 = vadd.f32 %v17084_v0, %v17083_v39  ;;  %v17107_v57 = vadd.f32 %v17106_v1, %v17105_v56 }
 0x4ef   :  { %v2259_v48 = vadd.f32 %v2253_v54, %v1914_v26  ;;  %v2256_v62 = vadd.f32 %v17107_v57, %v17085_v30 }
 0x4f1   :  { %v2260_v21 = vadd.f32 %v2256_v62, %v1915_v53 }
 0x509   :  { %v17124_v6 = vpop.f32.mrb[60].mxu0  ;;  %v17146_v52 = vpop.f32.mrb[52].mxu1 }
 0x50a   :  { %v17125_v55 = vpop.f32.mrb[61].mxu0  ;;  %v17147_v27 = vpop.f32.mrb[53].mxu1 }
 0x50b   :  { %v17126_v28 = vadd.f32 %v17125_v55, %v17124_v6  ;;  %v17148_v7 = vadd.f32 %v17147_v27, %v17146_v52  ;;  %v17127_v10 = vpop.f32.mrb[62].mxu0  ;;  %v17149_v11 = vpop.f32.mrb[54].mxu1 }
 0x50c   :  { %v17128_v3 = vpop.f32.mrb[63].mxu0  ;;  %v17150_v8 = vpop.f32.mrb[55].mxu1 }
 0x50d   :  { %v2598_v4 = vadd.f32 %v17148_v7, %v17126_v28  ;;  %v17129_v35 = vadd.f32 %v17128_v3, %v17127_v10  ;;  %v17151_v16 = vadd.f32 %v17150_v8, %v17149_v11 }
 0x50f   :  { %v2604_v17 = vadd.f32 %v2598_v4, %v2259_v48  ;;  %v2601_v18 = vadd.f32 %v17151_v16, %v17129_v35 }
 0x511   :  { %v2605_v19 = vadd.f32 %v2601_v18, %v2260_v21 }
 0x529   :  { %v17168_v40 = vpop.f32.mrb[64].mxu0  ;;  %v17190_v2 = vpop.f32.mrb[56].mxu1 }
 0x52a   :  { %v17169_v5 = vpop.f32.mrb[65].mxu0  ;;  %v17191_v13 = vpop.f32.mrb[57].mxu1 }
 0x52b   :  { %v17170_v22 = vadd.f32 %v17169_v5, %v17168_v40  ;;  %v17192_v36 = vadd.f32 %v17191_v13, %v17190_v2  ;;  %v17171_v37 = vpop.f32.mrb[66].mxu0  ;;  %v17193_v42 = vpop.f32.mrb[58].mxu1 }
 0x52c   :  { %v17172_v23 = vpop.f32.mrb[67].mxu0  ;;  %v17194_v58 = vpop.f32.mrb[59].mxu1 }
 0x52d   :  { %v2943_v24 = vadd.f32 %v17192_v36, %v17170_v22  ;;  %v17173_v63 = vadd.f32 %v17172_v23, %v17171_v37  ;;  %v17195_v43 = vadd.f32 %v17194_v58, %v17193_v42 }
 0x52f   :  { %v2949_v44 = vadd.f32 %v2943_v24, %v2604_v17  ;;  %v2946_v45 = vadd.f32 %v17195_v43, %v17173_v63 }
 0x531   :  { %v2950_v46 = vadd.f32 %v2946_v45, %v2605_v19 }
 0x549   :  { %v17212_v9 = vpop.f32.mrb[68].mxu0  ;;  %v17234_v33 = vpop.f32.mrb[60].mxu1 }
 0x54a   :  { %v17213_v12 = vpop.f32.mrb[69].mxu0  ;;  %v17235_v34 = vpop.f32.mrb[61].mxu1 }
 0x54b   :  { %v17214_v41 = vadd.f32 %v17213_v12, %v17212_v9  ;;  %v17236_v47 = vadd.f32 %v17235_v34, %v17234_v33  ;;  %v17215_v50 = vpop.f32.mrb[70].mxu0  ;;  %v17237_v51 = vpop.f32.mrb[62].mxu1  ;;  %v3986_v12 = vld [vmem:[%s23271_s23] sm:$0xff] }
 0x54c   :  { %v17216_v31 = vpop.f32.mrb[71].mxu0  ;;  %v17238_v49 = vpop.f32.mrb[63].mxu1 }
 0x54d   :  { %v3288_v38 = vadd.f32 %v17236_v47, %v17214_v41  ;;  %v17217_v14 = vadd.f32 %v17216_v31, %v17215_v50  ;;  %v17239_v29 = vadd.f32 %v17238_v49, %v17237_v51  ;;  %v3987_v47 = vld [vmem:[%s23271_s23 + $0x8] sm:$0xff]  ;;  %v3988_v49 = vld [vmem:[%s23272_s1] sm:$0xff] }
 0x54e   :  { %v3989_v51 = vld [vmem:[%s23272_s1 + $0x8] sm:$0xff] }
 0x54f   :  { %v3294_v26 = vadd.f32 %v3288_v38, %v2949_v44  ;;  %v3291_v61 = vadd.f32 %v17239_v29, %v17217_v14  ;;  %v19533_v38 = vld [vmem:[%s23273_s25] sm:$0xff]   ;;  %v19548_v29 = vld [vmem:[%s23214_s11 + $0x48] sm:$0xff]  }
 0x550   :  { %17819 = vmatprep.mubr.msk.bf16.mxu0 %vm4172_vm5, %v19533_v38  ;;  %v19545_v14 = vld [vmem:[%s23214_s11 + $0x40] sm:$0xff]  }
 0x551   :  { %v3295_v53 = vadd.f32 %v3291_v61, %v2950_v46  ;;  %17855 = vmatprep.subr.bf16.mxu1 %v19545_v14  ;;  %v19550_v61 = vld [vmem:[%s23214_s11 + $0x58] sm:$0xff]  }
 0x552   :  { %17856 = vmatpush3.bf16.msra.mxu1 %v19545_v14 }
 0x553   :  { %17857 = vmatprep.subr.bf16.mxu1 %v19548_v29 }
 0x556   :  { %17858 = vmatpush3.bf16.msra.mxu1 %v19548_v29 }
 0x569   :  { %v17256_v32 = vpop.f32.mrb[72].mxu0  ;;  %v17278_v15 = vpop.f32.mrb[64].mxu1 }
 0x56a   :  { %v17257_v60 = vpop.f32.mrb[73].mxu0  ;;  %v17279_v59 = vpop.f32.mrb[65].mxu1 }
 0x56b   :  { %v17258_v25 = vadd.f32 %v17257_v60, %v17256_v32  ;;  %v17280_v20 = vadd.f32 %v17279_v59, %v17278_v15  ;;  %v17259_v39 = vpop.f32.mrb[74].mxu0  ;;  %v17281_v56 = vpop.f32.mrb[66].mxu1 }
 0x56c   :  { %v17260_v0 = vpop.f32.mrb[75].mxu0  ;;  %v17282_v1 = vpop.f32.mrb[67].mxu1 }
 0x56d   :  { %v3633_v54 = vadd.f32 %v17280_v20, %v17258_v25  ;;  %v17261_v30 = vadd.f32 %v17260_v0, %v17259_v39  ;;  %v17283_v57 = vadd.f32 %v17282_v1, %v17281_v56 }
 0x56f   :  { %v3639_v48 = vadd.f32 %v3633_v54, %v3294_v26  ;;  %v3636_v62 = vadd.f32 %v17283_v57, %v17261_v30  ;;  %v19549_v26 = vld [vmem:[%s23214_s11 + $0x50] sm:$0xff]  }
 0x570   :  { %17859 = vmatprep.subr.bf16.mxu1 %v19549_v26 }
 0x571   :  { %v3640_v21 = vadd.f32 %v3636_v62, %v3295_v53  ;;  %17860 = vmatpush3.bf16.msra.mxu1 %v19549_v26  ;;  %v19551_v53 = vld [vmem:[%s23214_s11 + $0x60] sm:$0xff]   ;;  %v19535_v62 = vld [vmem:[%s23273_s25 + $0x10] sm:$0xff]  }
 0x572   :  { %17861 = vmatprep.subr.bf16.mxu1 %v19550_v61 }
 0x575   :  { %17862 = vmatpush3.bf16.msra.mxu1 %v19550_v61  ;;  %v19562_v61 = vld [vmem:[%s23214_s11 + $0x28] sm:$0xff]  }
 0x576   :  { %17863 = vmatprep.subr.bf16.mxu1 %v19551_v53 }
 0x579   :  { %17864 = vmatpush3.bf16.msra.mxu1 %v19551_v53 }
 0x589   :  { %v17300_v6 = vpop.f32.mrb[76].mxu0 }
 0x58a   :  { %v17322_v52 = vpop.f32.mrb[68].mxu1  ;;  %v17301_v55 = vpop.f32.mrb[77].mxu0 }
 0x58b   :  { %v17302_v27 = vadd.f32 %v17301_v55, %v17300_v6  ;;  %v17323_v28 = vpop.f32.mrb[69].mxu1  ;;  %v17303_v7 = vpop.f32.mrb[78].mxu0  ;;  %v19537_v6 = vld [vmem:[%s23273_s25 + $0x20] sm:$0xff]   ;;  %v19539_v55 = vld [vmem:[%s23273_s25 + $0x30] sm:$0xff]  }
 0x58c   :  { %v17324_v10 = vadd.f32 %v17323_v28, %v17322_v52  ;;  %v17325_v11 = vpop.f32.mrb[70].mxu1  ;;  %v17304_v3 = vpop.f32.mrb[79].mxu0  ;;  %v19538_v52 = vld [vmem:[%s23273_s25 + $0x28] sm:$0xff]   ;;  %v19541_v28 = vld [vmem:[%s23273_s25 + $0x40] sm:$0xff]  }
 0x58d   :  { %v17305_v8 = vadd.f32 %v17304_v3, %v17303_v7  ;;  %v17326_v4 = vpop.f32.mrb[71].mxu1  ;;  %v19542_v7 = vld [vmem:[%s23273_s25 + $0x48] sm:$0xff]   ;;  %v19546_v3 = vld [vmem:[%s23273_s25 + $0x60] sm:$0xff]  }
 0x58e   :  { %v3978_v35 = vadd.f32 %v17324_v10, %v17302_v27  ;;  %v17327_v16 = vadd.f32 %v17326_v4, %v17325_v11  ;;  %v19540_v27 = vld [vmem:[%s23273_s25 + $0x38] sm:$0xff]   ;;  %v19543_v10 = vld [vmem:[%s23273_s25 + $0x50] sm:$0xff]   ;;  %v19552_v4 = vld [vmem:[%s23214_s11 + $0x68] sm:$0xff]  }
 0x58f   :  { %v19544_v11 = vld [vmem:[%s23273_s25 + $0x58] sm:$0xff]   ;;  %17865 = vmatprep.subr.bf16.mxu1 %v19552_v4 }
 0x590   :  { %v3981_v17 = vadd.f32 %v17327_v16, %v17305_v8  ;;  %v21101_v18 = vadd.f32 %v3978_v35, %v3639_v48  ;;  %v19534_v48 = vld [vmem:[%s23273_s25 + $0x8] sm:$0xff]   ;;  %17866 = vmatpush3.bf16.msra.mxu1 %v19552_v4  ;;  %v19553_v35 = vld [vmem:[%s23214_s11 + $0x70] sm:$0xff]   ;;  %v19554_v16 = vld [vmem:[%s23214_s11 + $0x78] sm:$0xff]  }
 0x591   :  { %v19547_v8 = vld [vmem:[%s23273_s25 + $0x68] sm:$0xff]   ;;  %17867 = vmatprep.subr.bf16.mxu1 %v19553_v35  ;;  %v19575_v4 = vld [vmem:[%s23214_s11 + $0xc0] sm:$0xff]  }
 0x592   :  { %3990 = vadd.xlane.f32.xlu0 %v21101_v18  ;;  %v3985_v19 = vadd.f32 %v3981_v17, %v3640_v21  ;;  %v3997_v40 = vmul.f32 %v21101_v18, %v21101_v18  ;;  %v19536_v21 = vld [vmem:[%s23273_s25 + $0x18] sm:$0xff]   ;;  %v19555_v17 = vld [vmem:[%s23214_s11] sm:$0xff]  }
 0x594   :  { %3992 = vadd.xlane.f32.xlu1 %v3985_v19  ;;  %v3998_v2 = vmul.f32 %v3985_v19, %v3985_v19  ;;  %17868 = vmatpush3.bf16.msra.mxu1 %v19553_v35 }
 0x595   :  { %17869 = vmatprep.subr.bf16.mxu1 %v19554_v16 }
 0x596   :  { %3999 = vadd.xlane.f32.xlu0 %v3997_v40  ;;  %v19566_v40 = vld [vmem:[%s23273_s25 + $0x80] sm:$0xff]  }
 0x598   :  { %17870 = vmatpush3.bf16.msra.mxu1 %v19554_v16  ;;  %v19576_v16 = vld [vmem:[%s23214_s11 + $0xc8] sm:$0xff]  }
 0x599   :  { %17875 = vmatprep.subr.bf16.mxu1 %v19555_v17 }
 0x59a   :  { %4001 = vadd.xlane.f32.xlu0 %v3998_v2  ;;  %v19567_v2 = vld [vmem:[%s23273_s25 + $0x88] sm:$0xff]  }
 0x61f   :  { %v3991_v5 = vpop.xlane.xlu0 %3990 }
 0x620   :  { %v3995_v13 = vmul.f32 0.0078125, %v3991_v5 }
 0x621   :  { %v3993_v22 = vpop.xlane.xlu1 %3992 }
 0x622   :  { %v4005_v37 = vmul.f32 %v3995_v13, %v3995_v13  ;;  %v3996_v42 = vmul.f32 0.0078125, %v3993_v22  ;;  %v4011_v59 = vsub.f32 %v21101_v18, %v3995_v13  ;;  %v19556_v18 = vld [vmem:[%s23273_s25 + $0x70] sm:$0xff]  }
 0x623   :  { %v4000_v36 = vpop.xlane.xlu0 %3999 }
 0x624   :  { %v4003_v23 = vmul.f32 0.0078125, %v4000_v36  ;;  %v4006_v63 = vmul.f32 %v3996_v42, %v3996_v42  ;;  %v4012_v15 = vsub.f32 %v3985_v19, %v3996_v42  ;;  %v19557_v19 = vld [vmem:[%s23273_s25 + $0x78] sm:$0xff]  }
 0x626   :  { %v4007_v58 = vsub.f32 %v4003_v23, %v4005_v37 }
 0x627   :  { %v4002_v24 = vpop.xlane.xlu0 %4001 }
 0x628   :  { %v4009_v43 = vmax.f32 %v4007_v58, 0.0  ;;  %v4004_v44 = vmul.f32 0.0078125, %v4002_v24 }
 0x62a   :  { %v4013_v45 = vadd.f32 1e-05, %v4009_v43  ;;  %v4008_v46 = vsub.f32 %v4004_v44, %v4006_v63 }
 0x62c   :  { %20215 = vrsqrt.f32 %v4013_v45  ;;  %v4010_v9 = vmax.f32 %v4008_v46, 0.0  ;;  %v19558_v45 = vld [vmem:[%s23214_s11 + $0x8] sm:$0xff]  }
 0x62e   :  { %v4014_v33 = vadd.f32 1e-05, %v4010_v9  ;;  %v19559_v9 = vld [vmem:[%s23214_s11 + $0x10] sm:$0xff]  }
 0x630   :  { %20217 = vrsqrt.f32 %v4014_v33 }
 0x636   :  { %v20216_v34 = vpop.eup %20215 }
 0x637   :  { %v4017_v41 = vmul.f32 %v20216_v34, %v3986_v12 }
 0x639   :  { %4021 = vperm.xlu0 %19175, %v4017_v41  }
 0x63a   :  { %v20218_v50 = vpop.eup %20217 }
 0x63b   :  { %v4018_v31 = vmul.f32 %v20218_v50, %v3987_v47  ;;  %v19560_v50 = vld [vmem:[%s23214_s11 + $0x18] sm:$0xff]  }
 0x63d   :  { %4038 = vperm.xlu0 %19175, %v3989_v51   ;;  %4026 = vperm.xlu1 %19174, %v4018_v31   ;;  %v19561_v31 = vld [vmem:[%s23214_s11 + $0x20] sm:$0xff]  }
 0x641   :  { %4033 = vperm.xlu1 %19174, %v3988_v49  }
 0x6b8   :  { %v4022_v32 = vpop.permute.xlu0 %4021 }
 0x6b9   :  { %v4029_v39 = vmul.f32 %v4022_v32, %v4011_v59  ;;  %v19563_v32 = vld [vmem:[%s23214_s11 + $0x30] sm:$0xff]  }
 0x6bc   :  { %v4027_v60 = vpop.permute.xlu1 %4026  ;;  %v4039_v20 = vpop.permute.xlu0 %4038 }
 0x6bd   :  { %v4030_v25 = vmul.f32 %v4027_v60, %v4012_v15 }
 0x6bf   :  { %v4042_v56 = vadd.f32 %v4039_v20, %v4030_v25 }
 0x6c0   :  { %v4034_v0 = vpop.permute.xlu1 %4033 }
 0x6c1   :  { %v4041_v1 = vadd.f32 %v4034_v0, %v4029_v39  ;;  %v4044_v54 = vmax.f32 %v4042_v56, 0.0  ;;  %v19564_v39 = vld [vmem:[%s23214_s11 + $0x38] sm:$0xff]   ;;  %v19565_v0 = vld [vmem:[%s23214_s11 + $0x80] sm:$0xff]  }
 0x6c3   :  { %v4043_v30 = vmax.f32 %v4041_v1, 0.0 }
 0x6c5   :  { %v4045_v57 = vpack.c.bf16 %v4044_v54, %v4043_v30 }
 0x6c7   :  { %17817 = vmatprep.subr.bf16.mxu0 %v4045_v57 }
 0x6c8   :  { %17818 = vmatpush3.bf16.msra.mxu0 %v4045_v57 }
 0x6cb   :  { %17820 = vmatmul.mubr.msk.bf16.vlgmr.msra.gmra.mrb[80].mxu0 %vm4172_vm5, %v19534_v48 }
 0x6cc   :  { %17823 = vmatprep.mubr.msk.bf16.mxu0 %vm4172_vm5, %v19535_v62  ;;  %v19568_v62 = vld [vmem:[%s23214_s11 + $0x88] sm:$0xff]  }
 0x6d3   :  { %17824 = vmatmul.mubr.msk.bf16.gmra.mrb[84].mxu0 %vm4172_vm5, %v19536_v21  ;;  %v19569_v21 = vld [vmem:[%s23214_s11 + $0x90] sm:$0xff]  }
 0x6d4   :  { %17827 = vmatprep.mubr.msk.bf16.mxu0 %vm4172_vm5, %v19537_v6  ;;  %v19570_v6 = vld [vmem:[%s23214_s11 + $0x98] sm:$0xff]  }
 0x6db   :  { %17828 = vmatmul.mubr.msk.bf16.gmra.mrb[88].mxu0 %vm4172_vm5, %v19538_v52  ;;  %v19571_v52 = vld [vmem:[%s23214_s11 + $0xa0] sm:$0xff]  }
 0x6dc   :  { %17831 = vmatprep.mubr.msk.bf16.mxu0 %vm4172_vm5, %v19539_v55  ;;  %v19572_v55 = vld [vmem:[%s23214_s11 + $0xa8] sm:$0xff]  }
 0x6e3   :  { %17832 = vmatmul.mubr.msk.bf16.gmra.mrb[92].mxu0 %vm4172_vm5, %v19540_v27  ;;  %v19573_v27 = vld [vmem:[%s23214_s11 + $0xb0] sm:$0xff]  }
 0x6e4   :  { %17835 = vmatprep.mubr.msk.bf16.mxu0 %vm4172_vm5, %v19541_v28 }
 0x6eb   :  { %17836 = vmatmul.mubr.msk.bf16.gmra.mrb[96].mxu0 %vm4172_vm5, %v19542_v7  ;;  %v19574_v7 = vld [vmem:[%s23214_s11 + $0xb8] sm:$0xff]  }
 0x6ec   :  { %17839 = vmatprep.mubr.msk.bf16.mxu0 %vm4172_vm5, %v19543_v10 }
 0x6f3   :  { %17840 = vmatmul.mubr.msk.bf16.gmra.mrb[100].mxu0 %vm4172_vm5, %v19544_v11 }
 0x6f4   :  { %17843 = vmatprep.mubr.msk.bf16.mxu0 %vm4172_vm5, %v19546_v3 }
 0x6fb   :  { %17844 = vmatmul.mubr.msk.bf16.gmra.mrb[104].mxu0 %vm4172_vm5, %v19547_v8 }
 0x6fc   :  { %17847 = vmatprep.mubr.msk.bf16.mxu0 %vm4172_vm5, %v19556_v18  ;;  %v19578_v18 = vld [vmem:[%s23214_s11 + $0xd8] sm:$0xff]  }
 0x703   :  { %17848 = vmatmul.mubr.msk.bf16.gmra.mrb[108].mxu0 %vm4172_vm5, %v19557_v19  ;;  %v19579_v19 = vld [vmem:[%s23214_s11 + $0xe0] sm:$0xff]  }
 0x704   :  { %17851 = vmatprep.mubr.msk.bf16.mxu0 %vm4172_vm5, %v19566_v40  ;;  %v19580_v40 = vld [vmem:[%s23214_s11 + $0xe8] sm:$0xff]  }
 0x70b   :  { %17852 = vmatmul.mubr.msk.bf16.gmra.mrb[112].mxu0 %vm4172_vm5, %v19567_v2  ;;  %v19581_v2 = vld [vmem:[%s23214_s11 + $0xf0] sm:$0xff]  }
 0x79e   :  { %v21218_v5 = vpop.f32.mrb[80].mxu0 }
 0x79f   :  { %v4261_v13 = vpop.f32.mrb[81].mxu0 }
 0x7a0   :  { %v17822_v22 = vpop.f32.mrb[82].mxu0 }
 0x7a1   :  { %v4405_v36 = vpack.c.bf16 %v17822_v22, %v21218_v5  ;;  %v4264_v37 = vpop.f32.mrb[83].mxu0  ;;  %v19582_v5 = vld [vmem:[%s23214_s11 + $0xf8] sm:$0xff]  }
 0x7a2   :  { %v4404_v42 = vpack.c.bf16 %v4264_v37, %v4261_v13  ;;  %v19583_v37 = vld [vmem:[%s23214_s11 + $0x100] sm:$0xff]  }
 0x7a6   :  { %v17825_v23 = vpop.f32.mrb[84].mxu0 }
 0x7a7   :  { %v4277_v58 = vpop.f32.mrb[85].mxu0 }
 0x7a8   :  { %v17826_v24 = vpop.f32.mrb[86].mxu0 }
 0x7a9   :  { %v4423_v63 = vpack.c.bf16 %v17826_v24, %v17825_v23  ;;  %v4280_v43 = vpop.f32.mrb[87].mxu0  ;;  %v19584_v24 = vld [vmem:[%s23214_s11 + $0x108] sm:$0xff]  }
 0x7aa   :  { %v4422_v44 = vpack.c.bf16 %v4280_v43, %v4277_v58  ;;  %v19586_v43 = vld [vmem:[%s23214_s11 + $0x118] sm:$0xff]  }
 0x7ac   :  { %17871 = vmatprep.mubr.bf16.mxu1 %v4422_v44  ;;  %v19587_v44 = vld [vmem:[%s23214_s11 + $0x120] sm:$0xff]  }
 0x7ad   :  { %17872 = vmatmul.mubr.bf16.vlgmr.msra.gmra.mrb[72].mxu1 %v4423_v63  ;;  %v19585_v63 = vld [vmem:[%s23214_s11 + $0x110] sm:$0xff]  }
 0x7ae   :  { %17876 = vmatpush3.bf16.msra.mxu1 %v19555_v17  ;;  %17891 = vmatprep.mubr.bf16.mxu1 %v4404_v42  ;;  %v21224_v46 = vpop.f32.mrb[88].mxu0  ;;  %v19577_v17 = vld [vmem:[%s23214_s11 + $0xd0] sm:$0xff]  }
 0x7af   :  { %17877 = vmatprep.subr.bf16.mxu1 %v19558_v45  ;;  %v4293_v33 = vpop.f32.mrb[89].mxu0 }
 0x7b0   :  { %v21229_v12 = vpop.f32.mrb[90].mxu0 }
 0x7b1   :  { %v4636_v34 = vpack.c.bf16 %v21229_v12, %v21224_v46  ;;  %v4296_v41 = vpop.f32.mrb[91].mxu0  ;;  %v19589_v46 = vld [vmem:[%s23214_s11 + $0x130] sm:$0xff]  }
 0x7b2   :  { %17878 = vmatpush3.bf16.msra.mxu1 %v19558_v45  ;;  %v4635_v47 = vpack.c.bf16 %v4296_v41, %v4293_v33  ;;  %v19588_v45 = vld [vmem:[%s23214_s11 + $0x128] sm:$0xff]  }
 0x7b3   :  { %17879 = vmatprep.subr.bf16.mxu1 %v19559_v9 }
 0x7b6   :  { %17880 = vmatpush3.bf16.msra.mxu1 %v19559_v9  ;;  %v21236_v51 = vpop.f32.mrb[92].mxu0  ;;  %v19590_v9 = vld [vmem:[%s23214_s11 + $0x138] sm:$0xff]  }
 0x7b7   :  { %17881 = vmatprep.subr.bf16.mxu1 %v19560_v50  ;;  %v21241_v49 = vpop.f32.mrb[93].mxu0 }
 0x7b8   :  { %v21243_v38 = vpop.f32.mrb[94].mxu0 }
 0x7b9   :  { %v4756_v14 = vpack.c.bf16 %v21243_v38, %v21236_v51  ;;  %v21247_v29 = vpop.f32.mrb[95].mxu0  ;;  %v19594_v38 = vld [vmem:[%s23214_s11 + $0x158] sm:$0xff]  }
 0x7ba   :  { %17882 = vmatpush3.bf16.msra.mxu1 %v19560_v50  ;;  %v4755_v26 = vpack.c.bf16 %v21247_v29, %v21241_v49  ;;  %v19591_v50 = vld [vmem:[%s23214_s11 + $0x140] sm:$0xff]   ;;  %v19593_v49 = vld [vmem:[%s23214_s11 + $0x150] sm:$0xff]   ;;  %v19596_v29 = vld [vmem:[%s23214_s11 + $0x168] sm:$0xff]  }
 0x7bb   :  { %17883 = vmatprep.subr.bf16.mxu1 %v19561_v31 }
 0x7be   :  { %17884 = vmatpush3.bf16.msra.mxu1 %v19561_v31  ;;  %v21254_v53 = vpop.f32.mrb[96].mxu0  ;;  %v19592_v31 = vld [vmem:[%s23214_s11 + $0x148] sm:$0xff]  }
 0x7bf   :  { %17885 = vmatprep.subr.bf16.mxu1 %v19562_v61  ;;  %v21259_v15 = vpop.f32.mrb[97].mxu0 }
 0x7c0   :  { %v21261_v60 = vpop.f32.mrb[98].mxu0 }
 0x7c1   :  { %v4876_v59 = vpack.c.bf16 %v21261_v60, %v21254_v53  ;;  %v21265_v25 = vpop.f32.mrb[99].mxu0  ;;  %v19599_v53 = vld [vmem:[%s23214_s11 + $0x180] sm:$0xff]   ;;  %v19602_v60 = vld [vmem:[%s23214_s11 + $0x198] sm:$0xff]  }
 0x7c2   :  { %17886 = vmatpush3.bf16.msra.mxu1 %v19562_v61  ;;  %v4875_v20 = vpack.c.bf16 %v21265_v25, %v21259_v15  ;;  %v19598_v61 = vld [vmem:[%s23214_s11 + $0x178] sm:$0xff]   ;;  %v19601_v15 = vld [vmem:[%s23214_s11 + $0x190] sm:$0xff]   ;;  %v19604_v25 = vld [vmem:[%s23214_s11 + $0x1a8] sm:$0xff]  }
 0x7c3   :  { %17887 = vmatprep.subr.bf16.mxu1 %v19563_v32 }
 0x7c6   :  { %17888 = vmatpush3.bf16.msra.mxu1 %v19563_v32  ;;  %v21272_v56 = vpop.f32.mrb[100].mxu0  ;;  %v19600_v32 = vld [vmem:[%s23214_s11 + $0x188] sm:$0xff]  }
 0x7c7   :  { %17889 = vmatprep.subr.bf16.mxu1 %v19564_v39  ;;  %v21277_v1 = vpop.f32.mrb[101].mxu0 }
 0x7c8   :  { %v21279_v54 = vpop.f32.mrb[102].mxu0 }
 0x7c9   :  { %v4996_v30 = vpack.c.bf16 %v21279_v54, %v21272_v56  ;;  %v21283_v57 = vpop.f32.mrb[103].mxu0  ;;  %v19607_v56 = vld [vmem:[%s23214_s11 + $0x1c0] sm:$0xff]   ;;  %v19610_v54 = vld [vmem:[%s23214_s11 + $0x1d8] sm:$0xff]  }
 0x7ca   :  { %17890 = vmatpush3.bf16.msra.mxu1 %v19564_v39  ;;  %v4995_v48 = vpack.c.bf16 %v21283_v57, %v21277_v1  ;;  %v19606_v39 = vld [vmem:[%s23214_s11 + $0x1b8] sm:$0xff]   ;;  %v19609_v1 = vld [vmem:[%s23214_s11 + $0x1d0] sm:$0xff]   ;;  %v19612_v57 = vld [vmem:[%s23214_s11 + $0x1e8] sm:$0xff]  }
 0x7cb   :  { %17895 = vmatprep.subr.bf16.mxu1 %v19565_v0 }
 0x7cd   :  { %17892 = vmatmul.mubr.bf16.vlgmr.msra.gmra.mrb[72].mxu1 %v4405_v36 }
 0x7ce   :  { %17896 = vmatpush3.bf16.msra.mxu1 %v19565_v0  ;;  %17911 = vmatprep.mubr.bf16.mxu1 %v4635_v47  ;;  %v21305_v28 = vpop.f32.mrb[104].mxu0  ;;  %v19608_v0 = vld [vmem:[%s23214_s11 + $0x1c8] sm:$0xff]  }
 0x7cf   :  { %17897 = vmatprep.subr.bf16.mxu1 %v19568_v62  ;;  %v21310_v10 = vpop.f32.mrb[105].mxu0 }
 0x7d0   :  { %v21312_v11 = vpop.f32.mrb[106].mxu0 }
 0x7d1   :  { %v5116_v3 = vpack.c.bf16 %v21312_v11, %v21305_v28  ;;  %v21316_v8 = vpop.f32.mrb[107].mxu0  ;;  %v19620_v28 = vld [vmem:[%s23214_s11 + $0x228] sm:$0xff]  }
 0x7d2   :  { %17898 = vmatpush3.bf16.msra.mxu1 %v19568_v62  ;;  %v5115_v35 = vpack.c.bf16 %v21316_v8, %v21310_v10  ;;  %v19614_v62 = vld [vmem:[%s23214_s11 + $0x1f8] sm:$0xff]  }
 0x7d3   :  { %17899 = vmatprep.subr.bf16.mxu1 %v19569_v21  ;;  %v19622_v10 = vld [vmem:[%s23214_s11 + $0x238] sm:$0xff]  }
 0x7d6   :  { %17900 = vmatpush3.bf16.msra.mxu1 %v19569_v21  ;;  %v21347_v13 = vpop.f32.mrb[108].mxu0  ;;  %v19615_v21 = vld [vmem:[%s23214_s11 + $0x200] sm:$0xff]  }
 0x7d7   :  { %17901 = vmatprep.subr.bf16.mxu1 %v19570_v6  ;;  %v21349_v22 = vpop.f32.mrb[109].mxu0 }
 0x7d8   :  { %v21351_v36 = vpop.f32.mrb[110].mxu0 }
 0x7d9   :  { %v5236_v42 = vpack.c.bf16 %v21351_v36, %v21347_v13  ;;  %v21358_v23 = vpop.f32.mrb[111].mxu0 }
 0x7da   :  { %17902 = vmatpush3.bf16.msra.mxu1 %v19570_v6  ;;  %v5235_v58 = vpack.c.bf16 %v21358_v23, %v21349_v22  ;;  %v19616_v6 = vld [vmem:[%s23214_s11 + $0x208] sm:$0xff]  }
 0x7db   :  { %17903 = vmatprep.subr.bf16.mxu1 %v19571_v52  ;;  %v5480_v23 = vld [vmem:[%s23213_s10 + $0x8] sm:$0xff] }
 0x7de   :  { %17904 = vmatpush3.bf16.msra.mxu1 %v19571_v52  ;;  %v21389_v33 = vpop.f32.mrb[112].mxu0  ;;  %v19617_v52 = vld [vmem:[%s23214_s11 + $0x210] sm:$0xff]  }
 0x7df   :  { %17905 = vmatprep.subr.bf16.mxu1 %v19572_v55  ;;  %v21391_v12 = vpop.f32.mrb[113].mxu0 }
 0x7e2   :  { %17906 = vmatpush3.bf16.msra.mxu1 %v19572_v55  ;;  %v19618_v55 = vld [vmem:[%s23214_s11 + $0x218] sm:$0xff]  }
 0x7e3   :  { %17907 = vmatprep.subr.bf16.mxu1 %v19573_v27 }
 0x7e6   :  { %17908 = vmatpush3.bf16.msra.mxu1 %v19573_v27  ;;  %v19619_v27 = vld [vmem:[%s23214_s11 + $0x220] sm:$0xff]  }
 0x7e7   :  { %17909 = vmatprep.subr.bf16.mxu1 %v19574_v7 }
 0x7ea   :  { %17910 = vmatpush3.bf16.msra.mxu1 %v19574_v7  ;;  %v19621_v7 = vld [vmem:[%s23214_s11 + $0x230] sm:$0xff]  }
 0x7eb   :  { %17915 = vmatprep.subr.bf16.mxu1 %v19575_v4 }
 0x7ed   :  { %17912 = vmatmul.mubr.bf16.vlgmr.msra.gmra.mrb[72].mxu1 %v4636_v34  ;;  %v21393_v34 = vpop.f32.mrb[114].mxu0 }
 0x7ee   :  { %17916 = vmatpush3.bf16.msra.mxu1 %v19575_v4  ;;  %17931 = vmatprep.mubr.bf16.mxu1 %v4755_v26  ;;  %v5356_v41 = vpack.c.bf16 %v21393_v34, %v21389_v33  ;;  %v21397_v47 = vpop.f32.mrb[115].mxu0  ;;  %v19597_v26 = vld [vmem:[%s23214_s11 + $0x170] sm:$0xff]  }
 0x7ef   :  { %17917 = vmatprep.subr.bf16.mxu1 %v19576_v16  ;;  %v5355_v51 = vpack.c.bf16 %v21397_v47, %v21391_v12 }
 0x7f2   :  { %17918 = vmatpush3.bf16.msra.mxu1 %v19576_v16 }
 0x7f3   :  { %17919 = vmatprep.subr.bf16.mxu1 %v19577_v17 }
 0x7f6   :  { %17920 = vmatpush3.bf16.msra.mxu1 %v19577_v17 }
 0x7f7   :  { %17921 = vmatprep.subr.bf16.mxu1 %v19578_v18 }
 0x7fa   :  { %17922 = vmatpush3.bf16.msra.mxu1 %v19578_v18 }
 0x7fb   :  { %17923 = vmatprep.subr.bf16.mxu1 %v19579_v19 }
 0x7fe   :  { %17924 = vmatpush3.bf16.msra.mxu1 %v19579_v19 }
 0x7ff   :  { %17925 = vmatprep.subr.bf16.mxu1 %v19580_v40 }
 0x802   :  { %17926 = vmatpush3.bf16.msra.mxu1 %v19580_v40 }
 0x803   :  { %17927 = vmatprep.subr.bf16.mxu1 %v19581_v2 }
 0x806   :  { %17928 = vmatpush3.bf16.msra.mxu1 %v19581_v2 }
 0x807   :  { %17929 = vmatprep.subr.bf16.mxu1 %v19582_v5 }
 0x80a   :  { %17930 = vmatpush3.bf16.msra.mxu1 %v19582_v5 }
 0x80b   :  { %17935 = vmatprep.subr.bf16.mxu1 %v19583_v37 }
 0x80d   :  { %17932 = vmatmul.mubr.bf16.vlgmr.msra.gmra.mrb[72].mxu1 %v4756_v14  ;;  %v19595_v14 = vld [vmem:[%s23214_s11 + $0x160] sm:$0xff]  }
 0x80e   :  { %17936 = vmatpush3.bf16.msra.mxu1 %v19583_v37  ;;  %17951 = vmatprep.mubr.bf16.mxu1 %v4875_v20  ;;  %v19605_v20 = vld [vmem:[%s23214_s11 + $0x1b0] sm:$0xff]  }
 0x80f   :  { %17937 = vmatprep.subr.bf16.mxu1 %v19584_v24 }
 0x812   :  { %17938 = vmatpush3.bf16.msra.mxu1 %v19584_v24 }
 0x813   :  { %17939 = vmatprep.subr.bf16.mxu1 %v19585_v63 }
 0x816   :  { %17940 = vmatpush3.bf16.msra.mxu1 %v19585_v63 }
 0x817   :  { %17941 = vmatprep.subr.bf16.mxu1 %v19586_v43 }
 0x81a   :  { %17942 = vmatpush3.bf16.msra.mxu1 %v19586_v43 }
 0x81b   :  { %17943 = vmatprep.subr.bf16.mxu1 %v19587_v44 }
 0x81e   :  { %17944 = vmatpush3.bf16.msra.mxu1 %v19587_v44 }
 0x81f   :  { %17945 = vmatprep.subr.bf16.mxu1 %v19588_v45 }
 0x822   :  { %17946 = vmatpush3.bf16.msra.mxu1 %v19588_v45 }
 0x823   :  { %17947 = vmatprep.subr.bf16.mxu1 %v19589_v46 }
 0x826   :  { %17948 = vmatpush3.bf16.msra.mxu1 %v19589_v46 }
 0x827   :  { %17949 = vmatprep.subr.bf16.mxu1 %v19590_v9 }
 0x82a   :  { %17950 = vmatpush3.bf16.msra.mxu1 %v19590_v9 }
 0x82b   :  { %17955 = vmatprep.subr.bf16.mxu1 %v19591_v50 }
 0x82d   :  { %17952 = vmatmul.mubr.bf16.vlgmr.msra.gmra.mrb[72].mxu1 %v4876_v59  ;;  %v19603_v59 = vld [vmem:[%s23214_s11 + $0x1a0] sm:$0xff]  }
 0x82e   :  { %17956 = vmatpush3.bf16.msra.mxu1 %v19591_v50  ;;  %17971 = vmatprep.mubr.bf16.mxu1 %v4995_v48  ;;  %v19613_v48 = vld [vmem:[%s23214_s11 + $0x1f0] sm:$0xff]  }
 0x82f   :  { %17957 = vmatprep.subr.bf16.mxu1 %v19592_v31 }
 0x832   :  { %17958 = vmatpush3.bf16.msra.mxu1 %v19592_v31 }
 0x833   :  { %17959 = vmatprep.subr.bf16.mxu1 %v19593_v49 }
 0x836   :  { %17960 = vmatpush3.bf16.msra.mxu1 %v19593_v49 }
 0x837   :  { %17961 = vmatprep.subr.bf16.mxu1 %v19594_v38 }
 0x83a   :  { %17962 = vmatpush3.bf16.msra.mxu1 %v19594_v38 }
 0x83b   :  { %17963 = vmatprep.subr.bf16.mxu1 %v19595_v14 }
 0x83e   :  { %17964 = vmatpush3.bf16.msra.mxu1 %v19595_v14 }
 0x83f   :  { %17965 = vmatprep.subr.bf16.mxu1 %v19596_v29 }
 0x842   :  { %17966 = vmatpush3.bf16.msra.mxu1 %v19596_v29 }
 0x843   :  { %17967 = vmatprep.subr.bf16.mxu1 %v19597_v26 }
 0x846   :  { %17968 = vmatpush3.bf16.msra.mxu1 %v19597_v26 }
 0x847   :  { %17969 = vmatprep.subr.bf16.mxu1 %v19598_v61 }
 0x84a   :  { %17970 = vmatpush3.bf16.msra.mxu1 %v19598_v61 }
 0x84b   :  { %17975 = vmatprep.subr.bf16.mxu1 %v19599_v53 }
 0x84d   :  { %17972 = vmatmul.mubr.bf16.vlgmr.msra.gmra.mrb[72].mxu1 %v4996_v30  ;;  %v19611_v30 = vld [vmem:[%s23214_s11 + $0x1e0] sm:$0xff]  }
 0x84e   :  { %17976 = vmatpush3.bf16.msra.mxu1 %v19599_v53  ;;  %17991 = vmatprep.mubr.bf16.mxu1 %v5115_v35 }
 0x84f   :  { %17977 = vmatprep.subr.bf16.mxu1 %v19600_v32 }
 0x852   :  { %17978 = vmatpush3.bf16.msra.mxu1 %v19600_v32 }
 0x853   :  { %17979 = vmatprep.subr.bf16.mxu1 %v19601_v15 }
 0x856   :  { %17980 = vmatpush3.bf16.msra.mxu1 %v19601_v15 }
 0x857   :  { %17981 = vmatprep.subr.bf16.mxu1 %v19602_v60 }
 0x85a   :  { %17982 = vmatpush3.bf16.msra.mxu1 %v19602_v60 }
 0x85b   :  { %17983 = vmatprep.subr.bf16.mxu1 %v19603_v59 }
 0x85e   :  { %17984 = vmatpush3.bf16.msra.mxu1 %v19603_v59 }
 0x85f   :  { %17985 = vmatprep.subr.bf16.mxu1 %v19604_v25 }
 0x862   :  { %17986 = vmatpush3.bf16.msra.mxu1 %v19604_v25 }
 0x863   :  { %17987 = vmatprep.subr.bf16.mxu1 %v19605_v20 }
 0x866   :  { %17988 = vmatpush3.bf16.msra.mxu1 %v19605_v20 }
 0x867   :  { %17989 = vmatprep.subr.bf16.mxu1 %v19606_v39 }
 0x86a   :  { %17990 = vmatpush3.bf16.msra.mxu1 %v19606_v39 }
 0x86b   :  { %17995 = vmatprep.subr.bf16.mxu1 %v19607_v56 }
 0x86d   :  { %17992 = vmatmul.mubr.bf16.vlgmr.msra.gmra.mrb[72].mxu1 %v5116_v3 }
 0x86e   :  { %17996 = vmatpush3.bf16.msra.mxu1 %v19607_v56  ;;  %18011 = vmatprep.mubr.bf16.mxu1 %v5235_v58 }
 0x86f   :  { %17997 = vmatprep.subr.bf16.mxu1 %v19608_v0 }
 0x872   :  { %17998 = vmatpush3.bf16.msra.mxu1 %v19608_v0 }
 0x873   :  { %17999 = vmatprep.subr.bf16.mxu1 %v19609_v1 }
 0x876   :  { %18000 = vmatpush3.bf16.msra.mxu1 %v19609_v1 }
 0x877   :  { %18001 = vmatprep.subr.bf16.mxu1 %v19610_v54 }
 0x87a   :  { %18002 = vmatpush3.bf16.msra.mxu1 %v19610_v54 }
 0x87b   :  { %18003 = vmatprep.subr.bf16.mxu1 %v19611_v30 }
 0x87e   :  { %18004 = vmatpush3.bf16.msra.mxu1 %v19611_v30 }
 0x87f   :  { %18005 = vmatprep.subr.bf16.mxu1 %v19612_v57 }
 0x882   :  { %18006 = vmatpush3.bf16.msra.mxu1 %v19612_v57 }
 0x883   :  { %18007 = vmatprep.subr.bf16.mxu1 %v19613_v48 }
 0x886   :  { %18008 = vmatpush3.bf16.msra.mxu1 %v19613_v48  ;;  %v5475_v48 = vld [vmem:[%s23212_s9] sm:$0xff] }
 0x887   :  { %18009 = vmatprep.subr.bf16.mxu1 %v19614_v62 }
 0x88a   :  { %18010 = vmatpush3.bf16.msra.mxu1 %v19614_v62  ;;  %v5476_v62 = vld [vmem:[%s23212_s9 + $0x8] sm:$0xff] }
 0x88b   :  { %18015 = vmatprep.subr.bf16.mxu1 %v19615_v21 }
 0x88d   :  { %18012 = vmatmul.mubr.bf16.vlgmr.msra.gmra.mrb[72].mxu1 %v5236_v42  ;;  %v5479_v42 = vld [vmem:[%s23213_s10] sm:$0xff] }
 0x88e   :  { %18016 = vmatpush3.bf16.msra.mxu1 %v19615_v21  ;;  %18031 = vmatprep.mubr.bf16.mxu1 %v5355_v51 }
 0x88f   :  { %18017 = vmatprep.subr.bf16.mxu1 %v19616_v6 }
 0x892   :  { %18018 = vmatpush3.bf16.msra.mxu1 %v19616_v6 }
 0x893   :  { %18019 = vmatprep.subr.bf16.mxu1 %v19617_v52 }
 0x896   :  { %18020 = vmatpush3.bf16.msra.mxu1 %v19617_v52 }
 0x897   :  { %18021 = vmatprep.subr.bf16.mxu1 %v19618_v55 }
 0x89a   :  { %18022 = vmatpush3.bf16.msra.mxu1 %v19618_v55 }
 0x89b   :  { %18023 = vmatprep.subr.bf16.mxu1 %v19619_v27 }
 0x89e   :  { %18024 = vmatpush3.bf16.msra.mxu1 %v19619_v27  ;;  %v5477_v27 = vld [vmem:[%s23212_s9 + $0x10] sm:$0xff] }
 0x89f   :  { %18025 = vmatprep.subr.bf16.mxu1 %v19620_v28 }
 0x8a2   :  { %18026 = vmatpush3.bf16.msra.mxu1 %v19620_v28  ;;  %v5478_v28 = vld [vmem:[%s23212_s9 + $0x18] sm:$0xff] }
 0x8a3   :  { %18027 = vmatprep.subr.bf16.mxu1 %v19621_v7 }
 0x8a6   :  { %18028 = vmatpush3.bf16.msra.mxu1 %v19621_v7 }
 0x8a7   :  { %18029 = vmatprep.subr.bf16.mxu1 %v19622_v10 }
 0x8aa   :  { %18030 = vmatpush3.bf16.msra.mxu1 %v19622_v10 }
 0x8ad   :  { %18032 = vmatmul.mubr.bf16.vlgmr.msra.gmra.mrb[72].mxu1 %v5356_v41 }
 0x980   :  { %v21524_v11 = vpop.f32.mrb[72].mxu1 }
 0x981   :  { %v21526_v3 = vpop.f32.mrb[73].mxu1  ;;  %v5490_v8 = vsel %vm5483_vm6, %v21524_v11, 0.0  ;;  %v5503_v5 = vmul.f32 %v21524_v11, %v21524_v11 }
 0x982   :  { %5491 = vadd.xlane.f32.xlu0 %v5490_v8  ;;  %v21530_v4 = vpop.f32.mrb[74].mxu1  ;;  %v5484_v35 = vsel %vm5483_vm6, %v21526_v3, 0.0  ;;  %v5501_v18 = vmul.f32 %v21526_v3, %v21526_v3 }
 0x983   :  { %5485 = vadd.xlane.f32.xlu1 %v5484_v35  ;;  %v21534_v16 = vpop.f32.mrb[75].mxu1  ;;  %v5493_v19 = vsel %vm5483_vm6, %v21530_v4, 0.0  ;;  %v5504_v22 = vmul.f32 %v21530_v4, %v21530_v4  ;;  %v5511_v36 = vsel %vm5483_vm6, %v5503_v5, 0.0  ;;  %v5482_v35 = vld [vmem:[%s23213_s10 + $0x18] sm:$0xff] }
 0x984   :  { %v5487_v17 = vsel %vm5483_vm6, %v21534_v16, 0.0  ;;  %v5502_v40 = vmul.f32 %v21534_v16, %v21534_v16  ;;  %v5505_v2 = vsel %vm5483_vm6, %v5501_v18, 0.0 }
 0x985   :  { %v5514_v37 = vsel %vm5483_vm6, %v5504_v22, 0.0 }
 0x986   :  { %5488 = vadd.xlane.f32.xlu0 %v5487_v17  ;;  %v5508_v13 = vsel %vm5483_vm6, %v5502_v40, 0.0  ;;  %v19623_v17 = vld [vmem:[%s23216_s13] sm:$0xff]  }
 0x987   :  { %5494 = vadd.xlane.f32.xlu1 %v5493_v19  ;;  %18039 = vmatprep.mubr.msk.bf16.mxu0 %vm5483_vm6, %v19623_v17  ;;  %v21715_v17 = vld [vmem:[#allocation6 + $0x28] sm:$0xff]  }
 0x98a   :  { %5506 = vadd.xlane.f32.xlu0 %v5505_v2 }
 0x98b   :  { %5509 = vadd.xlane.f32.xlu1 %v5508_v13 }
 0x98e   :  { %5512 = vadd.xlane.f32.xlu0 %v5511_v36 }
 0x98f   :  { %5515 = vadd.xlane.f32.xlu1 %v5514_v37 }
 0x9a0   :  { %5575 = vperm.xlu1 %19174, %v5479_v42  }
 0x9a4   :  { %5580 = vperm.xlu0 %19175, %v5480_v23  }
 0xa0f   :  { %v5492_v58 = vpop.xlane.xlu0 %5491 }
 0xa10   :  { %v21558_v24 = vmul.f32 0.03125, %v5492_v58  ;;  %v5486_v63 = vpop.xlane.xlu1 %5485 }
 0xa11   :  { %v21560_v43 = vmul.f32 0.03125, %v5486_v63 }
 0xa12   :  { %v5535_v44 = vsub.f32 %v21524_v11, %v21558_v24  ;;  %v5523_v61 = vmul.f32 %v21558_v24, %v21558_v24 }
 0xa13   :  { %v5489_v45 = vpop.xlane.xlu0 %5488  ;;  %v5533_v46 = vsub.f32 %v21526_v3, %v21560_v43  ;;  %v5521_v50 = vmul.f32 %v21560_v43, %v21560_v43 }
 0xa14   :  { %v5498_v9 = vmul.f32 0.03125, %v5489_v45  ;;  %v5495_v33 = vpop.xlane.xlu1 %5494 }
 0xa15   :  { %v21566_v12 = vmul.f32 0.03125, %v5495_v33 }
 0xa16   :  { %v5534_v34 = vsub.f32 %v21534_v16, %v5498_v9  ;;  %v5522_v49 = vmul.f32 %v5498_v9, %v5498_v9  ;;  %v5481_v16 = vld [vmem:[%s23213_s10 + $0x10] sm:$0xff] }
 0xa17   :  { %v5507_v41 = vpop.xlane.xlu0 %5506  ;;  %v5536_v47 = vsub.f32 %v21530_v4, %v21566_v12  ;;  %v5524_v60 = vmul.f32 %v21566_v12, %v21566_v12  ;;  %v19625_v12 = vld [vmem:[%s23216_s13 + $0x10] sm:$0xff]  }
 0xa18   :  { %v5517_v51 = vmul.f32 0.03125, %v5507_v41  ;;  %v5510_v31 = vpop.xlane.xlu1 %5509  ;;  %v19626_v41 = vld [vmem:[%s23216_s13 + $0x18] sm:$0xff]  }
 0xa19   :  { %v5518_v38 = vmul.f32 0.03125, %v5510_v31  ;;  %v19630_v31 = vld [vmem:[%s23216_s13 + $0x38] sm:$0xff]  }
 0xa1a   :  { %v5525_v14 = vsub.f32 %v5517_v51, %v5521_v50  ;;  %v19628_v50 = vld [vmem:[%s23216_s13 + $0x28] sm:$0xff]   ;;  %v19629_v51 = vld [vmem:[%s23216_s13 + $0x30] sm:$0xff]  }
 0xa1b   :  { %v5526_v29 = vsub.f32 %v5518_v38, %v5522_v49  ;;  %v5513_v26 = vpop.xlane.xlu0 %5512  ;;  %v19631_v49 = vld [vmem:[%s23216_s13 + $0x40] sm:$0xff]   ;;  %v19632_v38 = vld [vmem:[%s23216_s13 + $0x48] sm:$0xff]  }
 0xa1c   :  { %v5529_v53 = vmax.f32 %v5525_v14, 0.0  ;;  %v5519_v32 = vmul.f32 0.03125, %v5513_v26  ;;  %v5516_v15 = vpop.xlane.xlu1 %5515  ;;  %v19633_v14 = vld [vmem:[%s23216_s13 + $0x50] sm:$0xff]   ;;  %v19635_v26 = vld [vmem:[%s23216_s13 + $0x60] sm:$0xff]  }
 0xa1d   :  { %v5530_v59 = vmax.f32 %v5526_v29, 0.0  ;;  %v5520_v25 = vmul.f32 0.03125, %v5516_v15  ;;  %v19634_v29 = vld [vmem:[%s23216_s13 + $0x58] sm:$0xff]   ;;  %v19639_v15 = vld [vmem:[%s23216_s13 + $0x80] sm:$0xff]  }
 0xa1e   :  { %v5537_v20 = vadd.f32 1e-05, %v5529_v53  ;;  %v5527_v39 = vsub.f32 %v5519_v32, %v5523_v61  ;;  %v19636_v61 = vld [vmem:[%s23216_s13 + $0x68] sm:$0xff]   ;;  %v19637_v53 = vld [vmem:[%s23216_s13 + $0x70] sm:$0xff]   ;;  %v19638_v32 = vld [vmem:[%s23216_s13 + $0x78] sm:$0xff]  }
 0xa1f   :  { %v5538_v56 = vadd.f32 1e-05, %v5530_v59  ;;  %v5528_v0 = vsub.f32 %v5520_v25, %v5524_v60  ;;  %v19640_v60 = vld [vmem:[%s23216_s13 + $0x88] sm:$0xff]   ;;  %v21693_v59 = vld [vmem:[#allocation6 + $0x10] sm:$0xff]   ;;  %v21697_v25 = vld [vmem:[#allocation6 + $0x18] sm:$0xff]  }
 0xa20   :  { %20219 = vrsqrt.f32 %v5537_v20  ;;  %v5531_v1 = vmax.f32 %v5527_v39, 0.0  ;;  %v5576_v19 = vpop.permute.xlu1 %5575  ;;  %v21701_v20 = vld [vmem:[#allocation6] sm:$0xff]  }
 0xa21   :  { %20221 = vrsqrt.f32 %v5538_v56  ;;  %v5532_v54 = vmax.f32 %v5528_v0, 0.0 }
 0xa22   :  { %v5539_v30 = vadd.f32 1e-05, %v5531_v1 }
 0xa23   :  { %v5540_v57 = vadd.f32 1e-05, %v5532_v54  ;;  %v5581_v18 = vpop.permute.xlu0 %5580 }
 0xa24   :  { %20223 = vrsqrt.f32 %v5539_v30 }
 0xa25   :  { %20225 = vrsqrt.f32 %v5540_v57 }
 0xa2a   :  { %v20220_v21 = vpop.eup %20219 }
 0xa2b   :  { %v20222_v6 = vpop.eup %20221  ;;  %v5545_v52 = vmul.f32 %v20220_v21, %v5475_v48 }
 0xa2c   :  { %v5546_v55 = vmul.f32 %v20222_v6, %v5476_v62 }
 0xa2d   :  { %5551 = vperm.xlu0 %19175, %v5545_v52  }
 0xa2e   :  { %v20224_v7 = vpop.eup %20223  ;;  %5556 = vperm.xlu1 %19174, %v5546_v55   ;;  %v21704_v55 = vld [vmem:[#allocation6 + $0x8] sm:$0xff]  }
 0xa2f   :  { %v20226_v10 = vpop.eup %20225  ;;  %v5547_v3 = vmul.f32 %v20224_v7, %v5477_v27  ;;  %v21711_v7 = vld [vmem:[#allocation6 + $0x20] sm:$0xff]  }
 0xa30   :  { %v5548_v8 = vmul.f32 %v20226_v10, %v5478_v28 }
 0xa32   :  { %5566 = vperm.xlu0 %19175, %v5548_v8   ;;  %5561 = vperm.xlu1 %19174, %v5547_v3  }
 0xa36   :  { %5590 = vperm.xlu0 %19175, %v5482_v35   ;;  %5585 = vperm.xlu1 %19174, %v5481_v16  }
 0xaac   :  { %v5552_v40 = vpop.permute.xlu0 %5551 }
 0xaad   :  { %v5569_v2 = vmul.f32 %v5552_v40, %v5533_v46  ;;  %v5557_v5 = vpop.permute.xlu1 %5556 }
 0xaae   :  { %v5570_v13 = vmul.f32 %v5557_v5, %v5534_v34 }
 0xaaf   :  { %v21599_v22 = vadd.f32 %v5576_v19, %v5569_v2 }
 0xab0   :  { %v21601_v36 = vadd.f32 %v5581_v18, %v5570_v13  ;;  %v21721_v13 = vld [vmem:[#allocation6 + $0x30] sm:$0xff]  }
 0xab1   :  { %v5597_v37 = vmax.f32 %v21599_v22, 0.0  ;;  %v5562_v42 = vpop.permute.xlu1 %5561  ;;  %v5567_v23 = vpop.permute.xlu0 %5566 }
 0xab2   :  { %v5598_v58 = vmax.f32 %v21601_v36, 0.0  ;;  %v5571_v63 = vmul.f32 %v5562_v42, %v5535_v44  ;;  %v5572_v43 = vmul.f32 %v5567_v23, %v5536_v47  ;;  %v19624_v44 = vld [vmem:[%s23216_s13 + $0x8] sm:$0xff]   ;;  %v19627_v47 = vld [vmem:[%s23216_s13 + $0x20] sm:$0xff]  }
 0xab4   :  { %v5601_v45 = vpack.c.bf16 %v5598_v58, %v5597_v37 }
 0xab5   :  { %v5586_v46 = vpop.permute.xlu1 %5585  ;;  %v5591_v9 = vpop.permute.xlu0 %5590 }
 0xab6   :  { %v21615_v33 = vadd.f32 %v5586_v46, %v5571_v63  ;;  %v21617_v34 = vadd.f32 %v5591_v9, %v5572_v43  ;;  %18035 = vmatprep.subr.bf16.mxu0 %v5601_v45  ;;  %v21725_v9 = vld [vmem:[#allocation6 + $0x38] sm:$0xff]  }
 0xab7   :  { %18036 = vmatpush3.bf16.msra.mxu0 %v5601_v45 }
 0xab8   :  { %v5599_v11 = vmax.f32 %v21615_v33, 0.0  ;;  %v5600_v24 = vmax.f32 %v21617_v34, 0.0  ;;  %v19680_v33 = vld [vmem:[%s23216_s13 + $0x138] sm:$0xff]   ;;  %v19681_v34 = vld [vmem:[%s23216_s13 + $0x140] sm:$0xff]  }
 0xaba   :  { %v5602_v4 = vpack.c.bf16 %v5600_v24, %v5599_v11 }
 0xabc   :  { %18037 = vmatprep.subr.bf16.mxu0 %v5602_v4 }
 0xabd   :  { %18038 = vmatpush3.bf16.msra.mxu0 %v5602_v4 }
 0xabe   :  { %18075 = vmatprep.subr.bf16.mxu0 %v21693_v59 }
 0xac0   :  { %18040 = vmatmul.mubr.msk.bf16.vlgmr.msra.gmra.mrb[116].mxu0 %vm5483_vm6, %v19624_v44  ;;  %v21731_v44 = vld [vmem:[#allocation6 + $0x40] sm:$0xff]  }
 0xac1   :  { %18043 = vmatprep.mubr.msk.bf16.mxu0 %vm5483_vm6, %v19625_v12  ;;  %18076 = vmatpush3.bf16.msra.mxu0 %v21693_v59 }
 0xac2   :  { %18077 = vmatprep.subr.bf16.mxu0 %v21697_v25 }
 0xac5   :  { %18078 = vmatpush3.bf16.msra.mxu0 %v21697_v25 }
 0xac6   :  { %18083 = vmatprep.subr.bf16.mxu0 %v21701_v20 }
 0xac8   :  { %18044 = vmatmul.mubr.msk.bf16.gmra.mrb[120].mxu0 %vm5483_vm6, %v19626_v41 }
 0xac9   :  { %18047 = vmatprep.mubr.msk.bf16.mxu0 %vm5483_vm6, %v19627_v47 }
 0xad0   :  { %18048 = vmatmul.mubr.msk.bf16.gmra.mrb[124].mxu0 %vm5483_vm6, %v19628_v50 }
 0xad1   :  { %18051 = vmatprep.mubr.msk.bf16.mxu0 %vm5483_vm6, %v19629_v51 }
 0xad8   :  { %18052 = vmatmul.mubr.msk.bf16.gmra.mrb[128].mxu0 %vm5483_vm6, %v19630_v31 }
 0xad9   :  { %18055 = vmatprep.mubr.msk.bf16.mxu0 %vm5483_vm6, %v19631_v49  ;;  %v21735_v49 = vld [vmem:[#allocation6 + $0x48] sm:$0xff]  }
 0xae0   :  { %18056 = vmatmul.mubr.msk.bf16.gmra.mrb[132].mxu0 %vm5483_vm6, %v19632_v38 }
 0xae1   :  { %18059 = vmatprep.mubr.msk.bf16.mxu0 %vm5483_vm6, %v19633_v14 }
 0xae8   :  { %18060 = vmatmul.mubr.msk.bf16.gmra.mrb[136].mxu0 %vm5483_vm6, %v19634_v29 }
 0xae9   :  { %18063 = vmatprep.mubr.msk.bf16.mxu0 %vm5483_vm6, %v19635_v26 }
 0xaf0   :  { %18064 = vmatmul.mubr.msk.bf16.gmra.mrb[140].mxu0 %vm5483_vm6, %v19636_v61 }
 0xaf1   :  { %18067 = vmatprep.mubr.msk.bf16.mxu0 %vm5483_vm6, %v19637_v53  ;;  %v21741_v53 = vld [vmem:[#allocation6 + $0x50] sm:$0xff]  }
 0xaf8   :  { %18068 = vmatmul.mubr.msk.bf16.gmra.mrb[144].mxu0 %vm5483_vm6, %v19638_v32 }
 0xaf9   :  { %18071 = vmatprep.mubr.msk.bf16.mxu0 %vm5483_vm6, %v19639_v15 }
 0xb00   :  { %18072 = vmatmul.mubr.msk.bf16.gmra.mrb[148].mxu0 %vm5483_vm6, %v19640_v60 }
 0xb93   :  { %v18041_v39 = vpop.f32.mrb[116].mxu0 }
 0xb94   :  { %v5817_v56 = vpop.f32.mrb[117].mxu0 }
 0xb95   :  { %v18042_v0 = vpop.f32.mrb[118].mxu0 }
 0xb96   :  { %v5961_v1 = vpack.c.bf16 %v18042_v0, %v18041_v39  ;;  %v5820_v54 = vpop.f32.mrb[119].mxu0 }
 0xb97   :  { %v5960_v30 = vpack.c.bf16 %v5820_v54, %v5817_v56 }
 0xb9b   :  { %v18045_v57 = vpop.f32.mrb[120].mxu0 }
 0xb9c   :  { %v5833_v48 = vpop.f32.mrb[121].mxu0 }
 0xb9d   :  { %v18046_v62 = vpop.f32.mrb[122].mxu0 }
 0xb9e   :  { %v5967_v21 = vpack.c.bf16 %v18046_v62, %v18045_v57  ;;  %v5836_v6 = vpop.f32.mrb[123].mxu0 }
 0xb9f   :  { %v5966_v52 = vpack.c.bf16 %v5836_v6, %v5833_v48 }
 0xba1   :  { %18079 = vmatprep.mubr.msk.bf16.mxu0 %vm5483_vm6, %v5966_v52  ;;  %v21755_v52 = vld [vmem:[#allocation6 + $0x68] sm:$0xff]  }
 0xba2   :  { %18080 = vmatmul.mubr.msk.bf16.vlgmr.msra.gmra.mrb[152].mxu0 %vm5483_vm6, %v5967_v21 }
 0xba3   :  { %18087 = vmatprep.mubr.msk.bf16.mxu0 %vm5483_vm6, %v5960_v30  ;;  %18084 = vmatpush3.bf16.msra.mxu0 %v21701_v20  ;;  %v18049_v27 = vpop.f32.mrb[124].mxu0  ;;  %v21751_v30 = vld [vmem:[#allocation6 + $0x60] sm:$0xff]  }
 0xba4   :  { %18085 = vmatprep.subr.bf16.mxu0 %v21704_v55  ;;  %v5849_v28 = vpop.f32.mrb[125].mxu0 }
 0xba5   :  { %v18050_v10 = vpop.f32.mrb[126].mxu0 }
 0xba6   :  { %v6108_v3 = vpack.c.bf16 %v18050_v10, %v18049_v27  ;;  %v5852_v8 = vpop.f32.mrb[127].mxu0  ;;  %v21761_v27 = vld [vmem:[#allocation6 + $0x70] sm:$0xff]   ;;  %v21771_v10 = vld [vmem:[#allocation6 + $0x80] sm:$0xff]  }
 0xba7   :  { %18086 = vmatpush3.bf16.msra.mxu0 %v21704_v55  ;;  %v6107_v35 = vpack.c.bf16 %v5852_v8, %v5849_v28  ;;  %v21765_v28 = vld [vmem:[#allocation6 + $0x78] sm:$0xff]  }
 0xba8   :  { %18091 = vmatprep.subr.bf16.mxu0 %v21711_v7 }
 0xbab   :  { %v18053_v16 = vpop.f32.mrb[128].mxu0 }
 0xbac   :  { %v5865_v18 = vpop.f32.mrb[129].mxu0 }
 0xbad   :  { %v18054_v19 = vpop.f32.mrb[130].mxu0 }
 0xbae   :  { %18088 = vmatmul.mubr.msk.bf16.vlgmr.msra.gmra.mrb[152].mxu0 %vm5483_vm6, %v5961_v1  ;;  %v6186_v40 = vpack.c.bf16 %v18054_v19, %v18053_v16  ;;  %v5868_v2 = vpop.f32.mrb[131].mxu0  ;;  %v21745_v1 = vld [vmem:[#allocation6 + $0x58] sm:$0xff]  }
 0xbaf   :  { %18092 = vmatpush3.bf16.msra.mxu0 %v21711_v7  ;;  %18095 = vmatprep.mubr.msk.bf16.mxu0 %vm5483_vm6, %v6107_v35  ;;  %v6185_v5 = vpack.c.bf16 %v5868_v2, %v5865_v18 }
 0xbb0   :  { %18093 = vmatprep.subr.bf16.mxu0 %v21715_v17 }
 0xbb3   :  { %18094 = vmatpush3.bf16.msra.mxu0 %v21715_v17  ;;  %v18057_v42 = vpop.f32.mrb[132].mxu0 }
 0xbb4   :  { %18099 = vmatprep.subr.bf16.mxu0 %v21721_v13  ;;  %v5881_v23 = vpop.f32.mrb[133].mxu0 }
 0xbb5   :  { %v18058_v63 = vpop.f32.mrb[134].mxu0 }
 0xbb6   :  { %v6264_v43 = vpack.c.bf16 %v18058_v63, %v18057_v42  ;;  %v5884_v45 = vpop.f32.mrb[135].mxu0 }
 0xbb7   :  { %v6263_v46 = vpack.c.bf16 %v5884_v45, %v5881_v23 }
 0xbba   :  { %18096 = vmatmul.mubr.msk.bf16.vlgmr.msra.gmra.mrb[152].mxu0 %vm5483_vm6, %v6108_v3  ;;  %v21775_v3 = vld [vmem:[#allocation6 + $0x88] sm:$0xff]  }
 0xbbb   :  { %18100 = vmatpush3.bf16.msra.mxu0 %v21721_v13  ;;  %18103 = vmatprep.mubr.msk.bf16.mxu0 %vm5483_vm6, %v6185_v5  ;;  %v18061_v4 = vpop.f32.mrb[136].mxu0 }
 0xbbc   :  { %18101 = vmatprep.subr.bf16.mxu0 %v21725_v9  ;;  %v5897_v12 = vpop.f32.mrb[137].mxu0 }
 0xbbd   :  { %v18062_v41 = vpop.f32.mrb[138].mxu0 }
 0xbbe   :  { %v6342_v47 = vpack.c.bf16 %v18062_v41, %v18061_v4  ;;  %v5900_v50 = vpop.f32.mrb[139].mxu0  ;;  %v6657_v41 = vld [vmem:[%s23218_s15] sm:$0xff] }
 0xbbf   :  { %18102 = vmatpush3.bf16.msra.mxu0 %v21725_v9  ;;  %v6341_v51 = vpack.c.bf16 %v5900_v50, %v5897_v12 }
 0xbc0   :  { %18107 = vmatprep.subr.bf16.mxu0 %v21731_v44 }
 0xbc3   :  { %v18065_v31 = vpop.f32.mrb[140].mxu0 }
 0xbc4   :  { %v5913_v38 = vpop.f32.mrb[141].mxu0 }
 0xbc5   :  { %v18066_v14 = vpop.f32.mrb[142].mxu0 }
 0xbc6   :  { %18104 = vmatmul.mubr.msk.bf16.vlgmr.msra.gmra.mrb[152].mxu0 %vm5483_vm6, %v6186_v40  ;;  %v6420_v29 = vpack.c.bf16 %v18066_v14, %v18065_v31  ;;  %v5916_v26 = vpop.f32.mrb[143].mxu0 }
 0xbc7   :  { %18108 = vmatpush3.bf16.msra.mxu0 %v21731_v44  ;;  %18111 = vmatprep.mubr.msk.bf16.mxu0 %vm5483_vm6, %v6263_v46  ;;  %v6419_v61 = vpack.c.bf16 %v5916_v26, %v5913_v38 }
 0xbc8   :  { %18109 = vmatprep.subr.bf16.mxu0 %v21735_v49 }
 0xbcb   :  { %18110 = vmatpush3.bf16.msra.mxu0 %v21735_v49  ;;  %v18069_v32 = vpop.f32.mrb[144].mxu0 }
 0xbcc   :  { %18115 = vmatprep.subr.bf16.mxu0 %v21741_v53  ;;  %v5929_v15 = vpop.f32.mrb[145].mxu0 }
 0xbcd   :  { %v18070_v60 = vpop.f32.mrb[146].mxu0 }
 0xbce   :  { %v6498_v39 = vpack.c.bf16 %v18070_v60, %v18069_v32  ;;  %v5932_v56 = vpop.f32.mrb[147].mxu0 }
 0xbcf   :  { %v6497_v0 = vpack.c.bf16 %v5932_v56, %v5929_v15 }
 0xbd2   :  { %18112 = vmatmul.mubr.msk.bf16.vlgmr.msra.gmra.mrb[152].mxu0 %vm5483_vm6, %v6264_v43 }
 0xbd3   :  { %18116 = vmatpush3.bf16.msra.mxu0 %v21741_v53  ;;  %18119 = vmatprep.mubr.msk.bf16.mxu0 %vm5483_vm6, %v6341_v51  ;;  %v18073_v54 = vpop.f32.mrb[148].mxu0 }
 0xbd4   :  { %18117 = vmatprep.subr.bf16.mxu0 %v21745_v1  ;;  %v5945_v57 = vpop.f32.mrb[149].mxu0 }
 0xbd5   :  { %v18074_v48 = vpop.f32.mrb[150].mxu0 }
 0xbd6   :  { %v6576_v62 = vpack.c.bf16 %v18074_v48, %v18073_v54  ;;  %v5948_v21 = vpop.f32.mrb[151].mxu0 }
 0xbd7   :  { %18118 = vmatpush3.bf16.msra.mxu0 %v21745_v1  ;;  %v6575_v6 = vpack.c.bf16 %v5948_v21, %v5945_v57 }
 0xbd8   :  { %18123 = vmatprep.subr.bf16.mxu0 %v21751_v30 }
 0xbde   :  { %18120 = vmatmul.mubr.msk.bf16.vlgmr.msra.gmra.mrb[152].mxu0 %vm5483_vm6, %v6342_v47  ;;  %v6658_v47 = vld [vmem:[%s23218_s15 + $0x8] sm:$0xff] }
 0xbdf   :  { %18124 = vmatpush3.bf16.msra.mxu0 %v21751_v30  ;;  %18127 = vmatprep.mubr.msk.bf16.mxu0 %vm5483_vm6, %v6419_v61 }
 0xbe0   :  { %18125 = vmatprep.subr.bf16.mxu0 %v21755_v52 }
 0xbe3   :  { %18126 = vmatpush3.bf16.msra.mxu0 %v21755_v52 }
 0xbe4   :  { %18131 = vmatprep.subr.bf16.mxu0 %v21761_v27 }
 0xbea   :  { %18128 = vmatmul.mubr.msk.bf16.vlgmr.msra.gmra.mrb[152].mxu0 %vm5483_vm6, %v6420_v29 }
 0xbeb   :  { %18132 = vmatpush3.bf16.msra.mxu0 %v21761_v27  ;;  %18135 = vmatprep.mubr.msk.bf16.mxu0 %vm5483_vm6, %v6497_v0 }
 0xbec   :  { %18133 = vmatprep.subr.bf16.mxu0 %v21765_v28 }
 0xbef   :  { %18134 = vmatpush3.bf16.msra.mxu0 %v21765_v28 }
 0xbf0   :  { %18139 = vmatprep.subr.bf16.mxu0 %v21771_v10 }
 0xbf6   :  { %18136 = vmatmul.mubr.msk.bf16.vlgmr.msra.gmra.mrb[152].mxu0 %vm5483_vm6, %v6498_v39 }
 0xbf7   :  { %18140 = vmatpush3.bf16.msra.mxu0 %v21771_v10  ;;  %18143 = vmatprep.mubr.msk.bf16.mxu0 %vm5483_vm6, %v6575_v6 }
 0xbf8   :  { %18141 = vmatprep.subr.bf16.mxu0 %v21775_v3 }
 0xbfb   :  { %18142 = vmatpush3.bf16.msra.mxu0 %v21775_v3 }
 0xc02   :  { %18144 = vmatmul.mubr.msk.bf16.vlgmr.msra.gmra.mrb[152].mxu0 %vm5483_vm6, %v6576_v62 }
 0xcd5   :  { %v21783_v8 = vpop.f32.mrb[152].mxu0 }
 0xcd6   :  { %v21785_v35 = vpop.f32.mrb[153].mxu0  ;;  %v6667_v16 = vsel %vm5483_vm6, %v21783_v8, 0.0  ;;  %v6679_v43 = vmul.f32 %v21783_v8, %v21783_v8 }
 0xcd7   :  { %6668 = vadd.xlane.f32.xlu0 %v6667_v16  ;;  %v21789_v18 = vpop.f32.mrb[154].mxu0  ;;  %v6661_v19 = vsel %vm5483_vm6, %v21785_v35, 0.0  ;;  %v6677_v5 = vmul.f32 %v21785_v35, %v21785_v35 }
 0xcd8   :  { %6662 = vadd.xlane.f32.xlu1 %v6661_v19  ;;  %v21793_v40 = vpop.f32.mrb[155].mxu0  ;;  %v6670_v42 = vsel %vm5483_vm6, %v21789_v18, 0.0  ;;  %v6680_v46 = vmul.f32 %v21789_v18, %v21789_v18  ;;  %v6687_v4 = vsel %vm5483_vm6, %v6679_v43, 0.0 }
 0xcd9   :  { %v6664_v2 = vsel %vm5483_vm6, %v21793_v40, 0.0  ;;  %v6678_v23 = vmul.f32 %v21793_v40, %v21793_v40  ;;  %v6681_v63 = vsel %vm5483_vm6, %v6677_v5, 0.0 }
 0xcda   :  { %v6690_v12 = vsel %vm5483_vm6, %v6680_v46, 0.0 }
 0xcdb   :  { %6665 = vadd.xlane.f32.xlu0 %v6664_v2  ;;  %v6684_v45 = vsel %vm5483_vm6, %v6678_v23, 0.0 }
 0xcdc   :  { %6671 = vadd.xlane.f32.xlu1 %v6670_v42 }
 0xcdf   :  { %6682 = vadd.xlane.f32.xlu0 %v6681_v63 }
 0xce0   :  { %6685 = vadd.xlane.f32.xlu1 %v6684_v45 }
 0xce3   :  { %6688 = vadd.xlane.f32.xlu0 %v6687_v4 }
 0xce4   :  { %6691 = vadd.xlane.f32.xlu1 %v6690_v12 }
 0xcf5   :  { %6751 = vperm.xlu1 %19174, %v6657_v41  }
 0xcf9   :  { %6756 = vperm.xlu0 %19175, %v6658_v47  }
 0xd64   :  { %v6669_v50 = vpop.xlane.xlu0 %6668 }
 0xd65   :  { %v21817_v51 = vmul.f32 0.03125, %v6669_v50  ;;  %v6663_v31 = vpop.xlane.xlu1 %6662  ;;  %v6653_v50 = vld [vmem:[%s23217_s14] sm:$0xff] }
 0xd66   :  { %v21819_v38 = vmul.f32 0.03125, %v6663_v31  ;;  %v6654_v31 = vld [vmem:[%s23217_s14 + $0x8] sm:$0xff] }
 0xd67   :  { %v6711_v14 = vsub.f32 %v21783_v8, %v21817_v51  ;;  %v6699_v16 = vmul.f32 %v21817_v51, %v21817_v51  ;;  %v19660_v8 = vld [vmem:[%s23216_s13 + $0x98] sm:$0xff]   ;;  %v19662_v51 = vld [vmem:[%s23216_s13 + $0xa8] sm:$0xff]  }
 0xd68   :  { %v6666_v29 = vpop.xlane.xlu0 %6665  ;;  %v6709_v26 = vsub.f32 %v21785_v35, %v21819_v38  ;;  %v6697_v0 = vmul.f32 %v21819_v38, %v21819_v38 }
 0xd69   :  { %v6674_v61 = vmul.f32 0.03125, %v6666_v29  ;;  %v6672_v32 = vpop.xlane.xlu1 %6671 }
 0xd6a   :  { %v21825_v15 = vmul.f32 0.03125, %v6672_v32 }
 0xd6b   :  { %v6710_v60 = vsub.f32 %v21793_v40, %v6674_v61  ;;  %v6698_v48 = vmul.f32 %v6674_v61, %v6674_v61 }
 0xd6c   :  { %v6683_v39 = vpop.xlane.xlu0 %6682  ;;  %v6712_v56 = vsub.f32 %v21789_v18, %v21825_v15  ;;  %v6700_v5 = vmul.f32 %v21825_v15, %v21825_v15  ;;  %v19661_v18 = vld [vmem:[%s23216_s13 + $0xa0] sm:$0xff]   ;;  %v19664_v15 = vld [vmem:[%s23216_s13 + $0xb8] sm:$0xff]  }
 0xd6d   :  { %v6693_v54 = vmul.f32 0.03125, %v6683_v39  ;;  %v6686_v57 = vpop.xlane.xlu1 %6685  ;;  %v6655_v39 = vld [vmem:[%s23217_s14 + $0x10] sm:$0xff] }
 0xd6e   :  { %v6694_v62 = vmul.f32 0.03125, %v6686_v57 }
 0xd6f   :  { %v6701_v21 = vsub.f32 %v6693_v54, %v6697_v0  ;;  %v6656_v0 = vld [vmem:[%s23217_s14 + $0x18] sm:$0xff] }
 0xd70   :  { %v6702_v6 = vsub.f32 %v6694_v62, %v6698_v48  ;;  %v6689_v35 = vpop.xlane.xlu0 %6688 }
 0xd71   :  { %v6705_v19 = vmax.f32 %v6701_v21, 0.0  ;;  %v6695_v2 = vmul.f32 0.03125, %v6689_v35  ;;  %v6692_v40 = vpop.xlane.xlu1 %6691  ;;  %v6660_v21 = vld [vmem:[%s23218_s15 + $0x18] sm:$0xff]  ;;  %v19659_v35 = vld [vmem:[%s23216_s13 + $0x90] sm:$0xff]  }
 0xd72   :  { %v6706_v42 = vmax.f32 %v6702_v6, 0.0  ;;  %v6696_v23 = vmul.f32 0.03125, %v6692_v40  ;;  %v6659_v6 = vld [vmem:[%s23218_s15 + $0x10] sm:$0xff]  ;;  %18151 = vmatprep.mubr.msk.bf16.mxu0 %vm5483_vm6, %v19659_v35 }
 0xd73   :  { %v6713_v63 = vadd.f32 1e-05, %v6705_v19  ;;  %v6703_v43 = vsub.f32 %v6695_v2, %v6699_v16  ;;  %v19675_v35 = vld [vmem:[%s23216_s13 + $0x110] sm:$0xff]  }
 0xd74   :  { %v6714_v45 = vadd.f32 1e-05, %v6706_v42  ;;  %v6704_v46 = vsub.f32 %v6696_v23, %v6700_v5 }
 0xd75   :  { %20227 = vrsqrt.f32 %v6713_v63  ;;  %v6707_v4 = vmax.f32 %v6703_v43, 0.0  ;;  %v6752_v19 = vpop.permute.xlu1 %6751 }
 0xd76   :  { %20229 = vrsqrt.f32 %v6714_v45  ;;  %v6708_v12 = vmax.f32 %v6704_v46, 0.0 }
 0xd77   :  { %v6715_v41 = vadd.f32 1e-05, %v6707_v4 }
 0xd78   :  { %v6716_v47 = vadd.f32 1e-05, %v6708_v12  ;;  %v6757_v16 = vpop.permute.xlu0 %6756 }
 0xd79   :  { %20231 = vrsqrt.f32 %v6715_v41 }
 0xd7a   :  { %20233 = vrsqrt.f32 %v6716_v47 }
 0xd7f   :  { %v20228_v38 = vpop.eup %20227 }
 0xd80   :  { %v20230_v29 = vpop.eup %20229  ;;  %v6721_v61 = vmul.f32 %v20228_v38, %v6653_v50 }
 0xd81   :  { %v6722_v32 = vmul.f32 %v20230_v29, %v6654_v31 }
 0xd82   :  { %6727 = vperm.xlu0 %19175, %v6721_v61  }
 0xd83   :  { %v20232_v54 = vpop.eup %20231  ;;  %6732 = vperm.xlu1 %19174, %v6722_v32   ;;  %v19666_v32 = vld [vmem:[%s23216_s13 + $0xc8] sm:$0xff]  }
 0xd84   :  { %v20234_v57 = vpop.eup %20233  ;;  %v6723_v48 = vmul.f32 %v20232_v54, %v6655_v39  ;;  %v19667_v39 = vld [vmem:[%s23216_s13 + $0xd0] sm:$0xff]   ;;  %v19669_v54 = vld [vmem:[%s23216_s13 + $0xe0] sm:$0xff]  }
 0xd85   :  { %v6724_v62 = vmul.f32 %v20234_v57, %v6656_v0  ;;  %v19668_v0 = vld [vmem:[%s23216_s13 + $0xd8] sm:$0xff]   ;;  %v19670_v57 = vld [vmem:[%s23216_s13 + $0xe8] sm:$0xff]  }
 0xd87   :  { %6742 = vperm.xlu0 %19175, %v6724_v62   ;;  %6737 = vperm.xlu1 %19174, %v6723_v48   ;;  %v19671_v48 = vld [vmem:[%s23216_s13 + $0xf0] sm:$0xff]   ;;  %v19672_v62 = vld [vmem:[%s23216_s13 + $0xf8] sm:$0xff]  }
 0xd8b   :  { %6766 = vperm.xlu0 %19175, %v6660_v21   ;;  %6761 = vperm.xlu1 %19174, %v6659_v6   ;;  %v19673_v21 = vld [vmem:[%s23216_s13 + $0x100] sm:$0xff]   ;;  %v19674_v6 = vld [vmem:[%s23216_s13 + $0x108] sm:$0xff]  }
 0xe01   :  { %v6728_v2 = vpop.permute.xlu0 %6727 }
 0xe02   :  { %v6745_v40 = vmul.f32 %v6728_v2, %v6709_v26  ;;  %v6733_v5 = vpop.permute.xlu1 %6732 }
 0xe03   :  { %v6746_v42 = vmul.f32 %v6733_v5, %v6710_v60 }
 0xe04   :  { %v6769_v23 = vadd.f32 %v6752_v19, %v6745_v40 }
 0xe05   :  { %v6770_v63 = vadd.f32 %v6757_v16, %v6746_v42  ;;  %v19676_v16 = vld [vmem:[%s23216_s13 + $0x118] sm:$0xff]  }
 0xe06   :  { %v6773_v43 = vmax.f32 %v6769_v23, 0.0  ;;  %v6738_v45 = vpop.permute.xlu1 %6737  ;;  %v6743_v46 = vpop.permute.xlu0 %6742 }
 0xe07   :  { %v6774_v4 = vmax.f32 %v6770_v63, 0.0  ;;  %v6747_v12 = vmul.f32 %v6738_v45, %v6711_v14  ;;  %v6748_v41 = vmul.f32 %v6743_v46, %v6712_v56  ;;  %v19663_v14 = vld [vmem:[%s23216_s13 + $0xb0] sm:$0xff]   ;;  %v19665_v56 = vld [vmem:[%s23216_s13 + $0xc0] sm:$0xff]  }
 0xe09   :  { %v6777_v47 = vpack.c.bf16 %v6774_v4, %v6773_v43 }
 0xe0a   :  { %v6762_v50 = vpop.permute.xlu1 %6761  ;;  %v6767_v31 = vpop.permute.xlu0 %6766 }
 0xe0b   :  { %v6771_v26 = vadd.f32 %v6762_v50, %v6747_v12  ;;  %v6772_v38 = vadd.f32 %v6767_v31, %v6748_v41  ;;  %18147 = vmatprep.subr.bf16.mxu0 %v6777_v47 }
 0xe0c   :  { %18148 = vmatpush3.bf16.msra.mxu0 %v6777_v47 }
 0xe0d   :  { %v6775_v60 = vmax.f32 %v6771_v26, 0.0  ;;  %v6776_v29 = vmax.f32 %v6772_v38, 0.0 }
 0xe0f   :  { %v6778_v61 = vpack.c.bf16 %v6776_v29, %v6775_v60 }
 0xe11   :  { %18149 = vmatprep.subr.bf16.mxu0 %v6778_v61 }
 0xe12   :  { %18150 = vmatpush3.bf16.msra.mxu0 %v6778_v61 }
 0xe13   :  { %18187 = vmatprep.subr.bf16.mxu0 %v21693_v59 }
 0xe15   :  { %18152 = vmatmul.mubr.msk.bf16.vlgmr.msra.gmra.mrb[156].mxu0 %vm5483_vm6, %v19660_v8 }
 0xe16   :  { %18155 = vmatprep.mubr.msk.bf16.mxu0 %vm5483_vm6, %v19661_v18  ;;  %18188 = vmatpush3.bf16.msra.mxu0 %v21693_v59 }
 0xe17   :  { %18189 = vmatprep.subr.bf16.mxu0 %v21697_v25 }
 0xe1a   :  { %18190 = vmatpush3.bf16.msra.mxu0 %v21697_v25 }
 0xe1b   :  { %18195 = vmatprep.subr.bf16.mxu0 %v21701_v20 }
 0xe1d   :  { %18156 = vmatmul.mubr.msk.bf16.gmra.mrb[160].mxu0 %vm5483_vm6, %v19662_v51 }
 0xe1e   :  { %18159 = vmatprep.mubr.msk.bf16.mxu0 %vm5483_vm6, %v19663_v14 }
 0xe25   :  { %18160 = vmatmul.mubr.msk.bf16.gmra.mrb[164].mxu0 %vm5483_vm6, %v19664_v15 }
 0xe26   :  { %18163 = vmatprep.mubr.msk.bf16.mxu0 %vm5483_vm6, %v19665_v56 }
 0xe2d   :  { %18164 = vmatmul.mubr.msk.bf16.gmra.mrb[168].mxu0 %vm5483_vm6, %v19666_v32 }
 0xe2e   :  { %18167 = vmatprep.mubr.msk.bf16.mxu0 %vm5483_vm6, %v19667_v39 }
 0xe35   :  { %18168 = vmatmul.mubr.msk.bf16.gmra.mrb[172].mxu0 %vm5483_vm6, %v19668_v0 }
 0xe36   :  { %18171 = vmatprep.mubr.msk.bf16.mxu0 %vm5483_vm6, %v19669_v54 }
 0xe3d   :  { %18172 = vmatmul.mubr.msk.bf16.gmra.mrb[176].mxu0 %vm5483_vm6, %v19670_v57 }
 0xe3e   :  { %18175 = vmatprep.mubr.msk.bf16.mxu0 %vm5483_vm6, %v19671_v48 }
 0xe45   :  { %18176 = vmatmul.mubr.msk.bf16.gmra.mrb[180].mxu0 %vm5483_vm6, %v19672_v62 }
 0xe46   :  { %18179 = vmatprep.mubr.msk.bf16.mxu0 %vm5483_vm6, %v19673_v21 }
 0xe4d   :  { %18180 = vmatmul.mubr.msk.bf16.gmra.mrb[184].mxu0 %vm5483_vm6, %v19674_v6 }
 0xe4e   :  { %18183 = vmatprep.mubr.msk.bf16.mxu0 %vm5483_vm6, %v19675_v35 }
 0xe55   :  { %18184 = vmatmul.mubr.msk.bf16.gmra.mrb[188].mxu0 %vm5483_vm6, %v19676_v16 }
 0xee8   :  { %v18153_v19 = vpop.f32.mrb[156].mxu0 }
 0xee9   :  { %v6994_v2 = vpop.f32.mrb[157].mxu0 }
 0xeea   :  { %v18154_v40 = vpop.f32.mrb[158].mxu0 }
 0xeeb   :  { %v7138_v5 = vpack.c.bf16 %v18154_v40, %v18153_v19  ;;  %v6997_v42 = vpop.f32.mrb[159].mxu0 }
 0xeec   :  { %v7137_v23 = vpack.c.bf16 %v6997_v42, %v6994_v2 }
 0xef0   :  { %v18157_v63 = vpop.f32.mrb[160].mxu0 }
 0xef1   :  { %v7010_v43 = vpop.f32.mrb[161].mxu0 }
 0xef2   :  { %v18158_v45 = vpop.f32.mrb[162].mxu0 }
 0xef3   :  { %v7140_v46 = vpack.c.bf16 %v18158_v45, %v18157_v63  ;;  %v7013_v4 = vpop.f32.mrb[163].mxu0 }
 0xef4   :  { %v7139_v12 = vpack.c.bf16 %v7013_v4, %v7010_v43 }
 0xef6   :  { %18191 = vmatprep.mubr.msk.bf16.mxu0 %vm5483_vm6, %v7139_v12 }
 0xef7   :  { %18192 = vmatmul.mubr.msk.bf16.vlgmr.msra.gmra.mrb[192].mxu0 %vm5483_vm6, %v7140_v46 }
 0xef8   :  { %18199 = vmatprep.mubr.msk.bf16.mxu0 %vm5483_vm6, %v7137_v23  ;;  %18196 = vmatpush3.bf16.msra.mxu0 %v21701_v20  ;;  %v18161_v41 = vpop.f32.mrb[164].mxu0 }
 0xef9   :  { %18197 = vmatprep.subr.bf16.mxu0 %v21704_v55  ;;  %v7026_v47 = vpop.f32.mrb[165].mxu0 }
 0xefa   :  { %v18162_v50 = vpop.f32.mrb[166].mxu0 }
 0xefb   :  { %v7252_v31 = vpack.c.bf16 %v18162_v50, %v18161_v41  ;;  %v7029_v26 = vpop.f32.mrb[167].mxu0 }
 0xefc   :  { %18198 = vmatpush3.bf16.msra.mxu0 %v21704_v55  ;;  %v7251_v38 = vpack.c.bf16 %v7029_v26, %v7026_v47 }
 0xefd   :  { %18203 = vmatprep.subr.bf16.mxu0 %v21711_v7 }
 0xf00   :  { %v18165_v60 = vpop.f32.mrb[168].mxu0 }
 0xf01   :  { %v7042_v29 = vpop.f32.mrb[169].mxu0 }
 0xf02   :  { %v18166_v61 = vpop.f32.mrb[170].mxu0 }
 0xf03   :  { %18200 = vmatmul.mubr.msk.bf16.vlgmr.msra.gmra.mrb[192].mxu0 %vm5483_vm6, %v7138_v5  ;;  %v7313_v8 = vpack.c.bf16 %v18166_v61, %v18165_v60  ;;  %v7045_v18 = vpop.f32.mrb[171].mxu0  ;;  %v16194_v60 = vld [vmem:[%s23218_s15 + $0x28] sm:$0xff] }
 0xf04   :  { %18204 = vmatpush3.bf16.msra.mxu0 %v21711_v7  ;;  %18207 = vmatprep.mubr.msk.bf16.mxu0 %vm5483_vm6, %v7251_v38  ;;  %v7312_v51 = vpack.c.bf16 %v7045_v18, %v7042_v29  ;;  %v16193_v38 = vld [vmem:[%s23218_s15 + $0x20] sm:$0xff] }
 0xf05   :  { %18205 = vmatprep.subr.bf16.mxu0 %v21715_v17 }
 0xf08   :  { %18206 = vmatpush3.bf16.msra.mxu0 %v21715_v17  ;;  %v18169_v55 = vpop.f32.mrb[172].mxu0 }
 0xf09   :  { %18211 = vmatprep.subr.bf16.mxu0 %v21721_v13  ;;  %v7058_v14 = vpop.f32.mrb[173].mxu0 }
 0xf0a   :  { %v18170_v15 = vpop.f32.mrb[174].mxu0 }
 0xf0b   :  { %v7374_v56 = vpack.c.bf16 %v18170_v15, %v18169_v55  ;;  %v7061_v32 = vpop.f32.mrb[175].mxu0 }
 0xf0c   :  { %v7373_v39 = vpack.c.bf16 %v7061_v32, %v7058_v14 }
 0xf0f   :  { %18208 = vmatmul.mubr.msk.bf16.vlgmr.msra.gmra.mrb[192].mxu0 %vm5483_vm6, %v7252_v31 }
 0xf10   :  { %18212 = vmatpush3.bf16.msra.mxu0 %v21721_v13  ;;  %18215 = vmatprep.mubr.msk.bf16.mxu0 %vm5483_vm6, %v7312_v51  ;;  %v18173_v7 = vpop.f32.mrb[176].mxu0 }
 0xf11   :  { %18213 = vmatprep.subr.bf16.mxu0 %v21725_v9  ;;  %v7074_v0 = vpop.f32.mrb[177].mxu0 }
 0xf12   :  { %v18174_v54 = vpop.f32.mrb[178].mxu0 }
 0xf13   :  { %v7435_v17 = vpack.c.bf16 %v18174_v54, %v18173_v7  ;;  %v7077_v57 = vpop.f32.mrb[179].mxu0 }
 0xf14   :  { %18214 = vmatpush3.bf16.msra.mxu0 %v21725_v9  ;;  %v7434_v48 = vpack.c.bf16 %v7077_v57, %v7074_v0 }
 0xf15   :  { %18219 = vmatprep.subr.bf16.mxu0 %v21731_v44 }
 0xf18   :  { %v18177_v62 = vpop.f32.mrb[180].mxu0 }
 0xf19   :  { %v7090_v21 = vpop.f32.mrb[181].mxu0 }
 0xf1a   :  { %v18178_v6 = vpop.f32.mrb[182].mxu0 }
 0xf1b   :  { %18216 = vmatmul.mubr.msk.bf16.vlgmr.msra.gmra.mrb[192].mxu0 %vm5483_vm6, %v7313_v8  ;;  %v7496_v13 = vpack.c.bf16 %v18178_v6, %v18177_v62  ;;  %v7093_v35 = vpop.f32.mrb[183].mxu0 }
 0xf1c   :  { %18220 = vmatpush3.bf16.msra.mxu0 %v21731_v44  ;;  %18223 = vmatprep.mubr.msk.bf16.mxu0 %vm5483_vm6, %v7373_v39  ;;  %v7495_v16 = vpack.c.bf16 %v7093_v35, %v7090_v21 }
 0xf1d   :  { %18221 = vmatprep.subr.bf16.mxu0 %v21735_v49 }
 0xf20   :  { %18222 = vmatpush3.bf16.msra.mxu0 %v21735_v49  ;;  %v18181_v9 = vpop.f32.mrb[184].mxu0 }
 0xf21   :  { %18227 = vmatprep.subr.bf16.mxu0 %v21741_v53  ;;  %v7106_v19 = vpop.f32.mrb[185].mxu0 }
 0xf22   :  { %v18182_v2 = vpop.f32.mrb[186].mxu0 }
 0xf23   :  { %v7557_v40 = vpack.c.bf16 %v18182_v2, %v18181_v9  ;;  %v7109_v5 = vpop.f32.mrb[187].mxu0 }
 0xf24   :  { %v7556_v42 = vpack.c.bf16 %v7109_v5, %v7106_v19 }
 0xf27   :  { %18224 = vmatmul.mubr.msk.bf16.vlgmr.msra.gmra.mrb[192].mxu0 %vm5483_vm6, %v7374_v56 }
 0xf28   :  { %18228 = vmatpush3.bf16.msra.mxu0 %v21741_v53  ;;  %18231 = vmatprep.mubr.msk.bf16.mxu0 %vm5483_vm6, %v7434_v48  ;;  %v18185_v44 = vpop.f32.mrb[188].mxu0 }
 0xf29   :  { %18229 = vmatprep.subr.bf16.mxu0 %v21745_v1  ;;  %v7122_v23 = vpop.f32.mrb[189].mxu0 }
 0xf2a   :  { %v18186_v63 = vpop.f32.mrb[190].mxu0 }
 0xf2b   :  { %v7618_v49 = vpack.c.bf16 %v18186_v63, %v18185_v44  ;;  %v7125_v43 = vpop.f32.mrb[191].mxu0 }
 0xf2c   :  { %18230 = vmatpush3.bf16.msra.mxu0 %v21745_v1  ;;  %v7617_v45 = vpack.c.bf16 %v7125_v43, %v7122_v23 }
 0xf2d   :  { %18235 = vmatprep.subr.bf16.mxu0 %v21751_v30 }
 0xf33   :  { %18232 = vmatmul.mubr.msk.bf16.vlgmr.msra.gmra.mrb[192].mxu0 %vm5483_vm6, %v7435_v17 }
 0xf34   :  { %18236 = vmatpush3.bf16.msra.mxu0 %v21751_v30  ;;  %18239 = vmatprep.mubr.msk.bf16.mxu0 %vm5483_vm6, %v7495_v16 }
 0xf35   :  { %18237 = vmatprep.subr.bf16.mxu0 %v21755_v52 }
 0xf38   :  { %18238 = vmatpush3.bf16.msra.mxu0 %v21755_v52 }
 0xf39   :  { %18243 = vmatprep.subr.bf16.mxu0 %v21761_v27 }
 0xf3f   :  { %18240 = vmatmul.mubr.msk.bf16.vlgmr.msra.gmra.mrb[192].mxu0 %vm5483_vm6, %v7496_v13 }
 0xf40   :  { %18244 = vmatpush3.bf16.msra.mxu0 %v21761_v27  ;;  %18247 = vmatprep.mubr.msk.bf16.mxu0 %vm5483_vm6, %v7556_v42 }
 0xf41   :  { %18245 = vmatprep.subr.bf16.mxu0 %v21765_v28 }
 0xf44   :  { %18246 = vmatpush3.bf16.msra.mxu0 %v21765_v28 }
 0xf45   :  { %18251 = vmatprep.subr.bf16.mxu0 %v21771_v10 }
 0xf4b   :  { %18248 = vmatmul.mubr.msk.bf16.vlgmr.msra.gmra.mrb[192].mxu0 %vm5483_vm6, %v7557_v40 }
 0xf4c   :  { %18252 = vmatpush3.bf16.msra.mxu0 %v21771_v10  ;;  %18255 = vmatprep.mubr.msk.bf16.mxu0 %vm5483_vm6, %v7617_v45 }
 0xf4d   :  { %18253 = vmatprep.subr.bf16.mxu0 %v21775_v3 }
 0xf50   :  { %18254 = vmatpush3.bf16.msra.mxu0 %v21775_v3 }
 0xf57   :  { %18256 = vmatmul.mubr.msk.bf16.vlgmr.msra.gmra.mrb[192].mxu0 %vm5483_vm6, %v7618_v49 }
0x102a   :  { %v21986_v53 = vpop.f32.mrb[192].mxu0 }
0x102b   :  { %v21988_v1 = vpop.f32.mrb[193].mxu0  ;;  %v7694_v30 = vsel %vm5483_vm6, %v21986_v53, 0.0  ;;  %v7706_v41 = vmul.f32 %v21986_v53, %v21986_v53 }
0x102c   :  { %7695 = vadd.xlane.f32.xlu0 %v7694_v30  ;;  %v21992_v52 = vpop.f32.mrb[194].mxu0  ;;  %v7688_v27 = vsel %vm5483_vm6, %v21988_v1, 0.0  ;;  %v7704_v3 = vmul.f32 %v21988_v1, %v21988_v1  ;;  %v16189_v30 = vld [vmem:[%s23217_s14 + $0x20] sm:$0xff] }
0x102d   :  { %7689 = vadd.xlane.f32.xlu1 %v7688_v27  ;;  %v21996_v28 = vpop.f32.mrb[195].mxu0  ;;  %v7697_v46 = vsel %vm5483_vm6, %v21992_v52, 0.0  ;;  %v7707_v50 = vmul.f32 %v21992_v52, %v21992_v52  ;;  %v7714_v31 = vsel %vm5483_vm6, %v7706_v41, 0.0  ;;  %v16190_v27 = vld [vmem:[%s23217_s14 + $0x28] sm:$0xff] }
0x102e   :  { %v7691_v10 = vsel %vm5483_vm6, %v21996_v28, 0.0  ;;  %v7705_v4 = vmul.f32 %v21996_v28, %v21996_v28  ;;  %v7708_v12 = vsel %vm5483_vm6, %v7704_v3, 0.0 }
0x102f   :  { %v7717_v26 = vsel %vm5483_vm6, %v7707_v50, 0.0 }
0x1030   :  { %7692 = vadd.xlane.f32.xlu0 %v7691_v10  ;;  %v7711_v47 = vsel %vm5483_vm6, %v7705_v4, 0.0  ;;  %v16191_v4 = vld [vmem:[%s23217_s14 + $0x30] sm:$0xff] }
0x1031   :  { %7698 = vadd.xlane.f32.xlu1 %v7697_v46 }
0x1034   :  { %7709 = vadd.xlane.f32.xlu0 %v7708_v12  ;;  %v16192_v12 = vld [vmem:[%s23217_s14 + $0x38] sm:$0xff] }
0x1035   :  { %7712 = vadd.xlane.f32.xlu1 %v7711_v47 }
0x1038   :  { %7715 = vadd.xlane.f32.xlu0 %v7714_v31 }
0x1039   :  { %7718 = vadd.xlane.f32.xlu1 %v7717_v26  ;;  %v16196_v26 = vld [vmem:[%s23218_s15 + $0x38] sm:$0xff] }
0x104a   :  { %7778 = vperm.xlu1 %19174, %v16193_v38   ;;  %v16195_v38 = vld [vmem:[%s23218_s15 + $0x30] sm:$0xff] }
0x104e   :  { %7783 = vperm.xlu0 %19175, %v16194_v60   ;;  %v19677_v60 = vld [vmem:[%s23216_s13 + $0x120] sm:$0xff]  }
0x104f   :  { %18263 = vmatprep.mubr.msk.bf16.mxu0 %vm5483_vm6, %v19677_v60 }
0x10b9   :  { %v7696_v29 = vpop.xlane.xlu0 %7695 }
0x10ba   :  { %v22020_v61 = vmul.f32 0.03125, %v7696_v29  ;;  %v7690_v8 = vpop.xlane.xlu1 %7689 }
0x10bb   :  { %v22022_v18 = vmul.f32 0.03125, %v7690_v8 }
0x10bc   :  { %v7738_v51 = vsub.f32 %v21986_v53, %v22020_v61  ;;  %v7726_v35 = vmul.f32 %v22020_v61, %v22020_v61  ;;  %v19679_v61 = vld [vmem:[%s23216_s13 + $0x130] sm:$0xff]  }
0x10bd   :  { %v7693_v55 = vpop.xlane.xlu0 %7692  ;;  %v7736_v14 = vsub.f32 %v21988_v1, %v22022_v18  ;;  %v7724_v54 = vmul.f32 %v22022_v18, %v22022_v18 }
0x10be   :  { %v7701_v15 = vmul.f32 0.03125, %v7693_v55  ;;  %v7699_v56 = vpop.xlane.xlu1 %7698 }
0x10bf   :  { %v22028_v32 = vmul.f32 0.03125, %v7699_v56 }
0x10c0   :  { %v7737_v39 = vsub.f32 %v21996_v28, %v7701_v15  ;;  %v7725_v48 = vmul.f32 %v7701_v15, %v7701_v15 }
0x10c1   :  { %v7710_v7 = vpop.xlane.xlu0 %7709  ;;  %v7739_v0 = vsub.f32 %v21992_v52, %v22028_v32  ;;  %v7727_v2 = vmul.f32 %v22028_v32, %v22028_v32  ;;  %v19678_v52 = vld [vmem:[%s23216_s13 + $0x128] sm:$0xff]   ;;  %v19688_v32 = vld [vmem:[%s23216_s13 + $0x178] sm:$0xff]  }
0x10c2   :  { %v7720_v17 = vmul.f32 0.03125, %v7710_v7  ;;  %v7713_v57 = vpop.xlane.xlu1 %7712 }
0x10c3   :  { %v7721_v62 = vmul.f32 0.03125, %v7713_v57 }
0x10c4   :  { %v7728_v21 = vsub.f32 %v7720_v17, %v7724_v54 }
0x10c5   :  { %v7729_v6 = vsub.f32 %v7721_v62, %v7725_v48  ;;  %v7716_v13 = vpop.xlane.xlu0 %7715 }
0x10c6   :  { %v7732_v16 = vmax.f32 %v7728_v21, 0.0  ;;  %v7722_v9 = vmul.f32 0.03125, %v7716_v13  ;;  %v7719_v19 = vpop.xlane.xlu1 %7718 }
0x10c7   :  { %v7733_v40 = vmax.f32 %v7729_v6, 0.0  ;;  %v7723_v5 = vmul.f32 0.03125, %v7719_v19  ;;  %v19693_v19 = vld [vmem:[%s23216_s13 + $0x1a0] sm:$0xff]  }
0x10c8   :  { %v7740_v42 = vadd.f32 1e-05, %v7732_v16  ;;  %v7730_v44 = vsub.f32 %v7722_v9, %v7726_v35  ;;  %v19690_v35 = vld [vmem:[%s23216_s13 + $0x188] sm:$0xff]   ;;  %v19691_v16 = vld [vmem:[%s23216_s13 + $0x190] sm:$0xff]   ;;  %v19692_v9 = vld [vmem:[%s23216_s13 + $0x198] sm:$0xff]  }
0x10c9   :  { %v7741_v23 = vadd.f32 1e-05, %v7733_v40  ;;  %v7731_v63 = vsub.f32 %v7723_v5, %v7727_v2  ;;  %v19694_v2 = vld [vmem:[%s23216_s13 + $0x1a8] sm:$0xff]  }
0x10ca   :  { %20235 = vrsqrt.f32 %v7740_v42  ;;  %v7734_v49 = vmax.f32 %v7730_v44, 0.0  ;;  %v7779_v8 = vpop.permute.xlu1 %7778 }
0x10cb   :  { %20237 = vrsqrt.f32 %v7741_v23  ;;  %v7735_v43 = vmax.f32 %v7731_v63, 0.0 }
0x10cc   :  { %v7742_v45 = vadd.f32 1e-05, %v7734_v49 }
0x10cd   :  { %v7743_v1 = vadd.f32 1e-05, %v7735_v43  ;;  %v7784_v29 = vpop.permute.xlu0 %7783 }
0x10ce   :  { %20239 = vrsqrt.f32 %v7742_v45 }
0x10cf   :  { %20241 = vrsqrt.f32 %v7743_v1 }
0x10d4   :  { %v20236_v28 = vpop.eup %20235 }
0x10d5   :  { %v20238_v10 = vpop.eup %20237  ;;  %v7748_v3 = vmul.f32 %v20236_v28, %v16189_v30  ;;  %v22163_v28 = vld [vmem:[#allocation6] sm:$0xff]  }
0x10d6   :  { %v7749_v46 = vmul.f32 %v20238_v10, %v16190_v27 }
0x10d7   :  { %7754 = vperm.xlu0 %19175, %v7748_v3   ;;  %v22166_v3 = vld [vmem:[#allocation6 + $0x8] sm:$0xff]  }
0x10d8   :  { %v20240_v41 = vpop.eup %20239  ;;  %7759 = vperm.xlu1 %19174, %v7749_v46  }
0x10d9   :  { %v20242_v47 = vpop.eup %20241  ;;  %v7750_v50 = vmul.f32 %v20240_v41, %v16191_v4 }
0x10da   :  { %v7751_v31 = vmul.f32 %v20242_v47, %v16192_v12 }
0x10dc   :  { %7769 = vperm.xlu0 %19175, %v7751_v31   ;;  %7764 = vperm.xlu1 %19174, %v7750_v50   ;;  %v22170_v50 = vld [vmem:[#allocation6 + $0x20] sm:$0xff]  }
0x10e0   :  { %7793 = vperm.xlu0 %19175, %v16196_v26   ;;  %7788 = vperm.xlu1 %19174, %v16195_v38  }
0x1156   :  { %v7755_v18 = vpop.permute.xlu0 %7754 }
0x1157   :  { %v7772_v55 = vmul.f32 %v7755_v18, %v7736_v14  ;;  %v7760_v15 = vpop.permute.xlu1 %7759  ;;  %v22176_v18 = vld [vmem:[#allocation6 + $0x28] sm:$0xff]  }
0x1158   :  { %v7773_v56 = vmul.f32 %v7760_v15, %v7737_v39  ;;  %v22180_v15 = vld [vmem:[#allocation6 + $0x30] sm:$0xff]  }
0x1159   :  { %v7796_v7 = vadd.f32 %v7779_v8, %v7772_v55 }
0x115a   :  { %v7797_v54 = vadd.f32 %v7784_v29, %v7773_v56 }
0x115b   :  { %v22063_v17 = vadd.f32 %v7796_v7, %v5597_v37  ;;  %v7765_v57 = vpop.permute.xlu1 %7764  ;;  %v7770_v48 = vpop.permute.xlu0 %7769 }
0x115c   :  { %v22067_v62 = vadd.f32 %v7797_v54, %v5598_v58  ;;  %v7774_v21 = vmul.f32 %v7765_v57, %v7738_v51  ;;  %v7775_v14 = vmul.f32 %v7770_v48, %v7739_v0  ;;  %v19687_v51 = vld [vmem:[%s23216_s13 + $0x170] sm:$0xff]   ;;  %v19689_v0 = vld [vmem:[%s23216_s13 + $0x180] sm:$0xff]  }
0x115e   :  { %v7804_v39 = vpack.c.bf16 %v22067_v62, %v22063_v17 }
0x115f   :  { %v7789_v22 = vpop.permute.xlu1 %7788  ;;  %v7794_v37 = vpop.permute.xlu0 %7793 }
0x1160   :  { %v7798_v6 = vadd.f32 %v7789_v22, %v7774_v21  ;;  %v7799_v13 = vadd.f32 %v7794_v37, %v7775_v14  ;;  %18259 = vmatprep.subr.bf16.mxu0 %v7804_v39  ;;  %v22186_v14 = vld [vmem:[#allocation6 + $0x38] sm:$0xff]  }
0x1161   :  { %18260 = vmatpush3.bf16.msra.mxu0 %v7804_v39 }
0x1162   :  { %v22079_v36 = vadd.f32 %v7798_v6, %v5599_v11  ;;  %v22083_v58 = vadd.f32 %v7799_v13, %v5600_v24  ;;  %v19682_v11 = vld [vmem:[%s23216_s13 + $0x148] sm:$0xff]   ;;  %v19683_v24 = vld [vmem:[%s23216_s13 + $0x150] sm:$0xff]  }
0x1164   :  { %v7805_v53 = vpack.c.bf16 %v22083_v58, %v22079_v36 }
0x1166   :  { %18261 = vmatprep.subr.bf16.mxu0 %v7805_v53 }
0x1167   :  { %18262 = vmatpush3.bf16.msra.mxu0 %v7805_v53  ;;  %v22190_v53 = vld [vmem:[#allocation6 + $0x40] sm:$0xff]  }
0x1168   :  { %18299 = vmatprep.subr.bf16.mxu0 %v21693_v59 }
0x116a   :  { %18264 = vmatmul.mubr.msk.bf16.vlgmr.msra.gmra.mrb[196].mxu0 %vm5483_vm6, %v19678_v52 }
0x116b   :  { %18267 = vmatprep.mubr.msk.bf16.mxu0 %vm5483_vm6, %v19679_v61  ;;  %18300 = vmatpush3.bf16.msra.mxu0 %v21693_v59  ;;  %v19684_v59 = vld [vmem:[%s23216_s13 + $0x158] sm:$0xff]  }
0x116c   :  { %18301 = vmatprep.subr.bf16.mxu0 %v21697_v25 }
0x116f   :  { %18302 = vmatpush3.bf16.msra.mxu0 %v21697_v25  ;;  %v19685_v25 = vld [vmem:[%s23216_s13 + $0x160] sm:$0xff]  }
0x1170   :  { %18307 = vmatprep.subr.bf16.mxu0 %v21701_v20  ;;  %v19686_v20 = vld [vmem:[%s23216_s13 + $0x168] sm:$0xff]  }
0x1172   :  { %18268 = vmatmul.mubr.msk.bf16.gmra.mrb[200].mxu0 %vm5483_vm6, %v19680_v33 }
0x1173   :  { %18271 = vmatprep.mubr.msk.bf16.mxu0 %vm5483_vm6, %v19681_v34 }
0x117a   :  { %18272 = vmatmul.mubr.msk.bf16.gmra.mrb[204].mxu0 %vm5483_vm6, %v19682_v11 }
0x117b   :  { %18275 = vmatprep.mubr.msk.bf16.mxu0 %vm5483_vm6, %v19683_v24 }
0x1182   :  { %18276 = vmatmul.mubr.msk.bf16.gmra.mrb[208].mxu0 %vm5483_vm6, %v19684_v59  ;;  %v22196_v59 = vld [vmem:[#allocation6 + $0x48] sm:$0xff]  }
0x1183   :  { %18279 = vmatprep.mubr.msk.bf16.mxu0 %vm5483_vm6, %v19685_v25 }
0x118a   :  { %18280 = vmatmul.mubr.msk.bf16.gmra.mrb[212].mxu0 %vm5483_vm6, %v19686_v20  ;;  %v22200_v20 = vld [vmem:[#allocation6 + $0x50] sm:$0xff]  }
0x118b   :  { %18283 = vmatprep.mubr.msk.bf16.mxu0 %vm5483_vm6, %v19687_v51 }
0x1192   :  { %18284 = vmatmul.mubr.msk.bf16.gmra.mrb[216].mxu0 %vm5483_vm6, %v19688_v32 }
0x1193   :  { %18287 = vmatprep.mubr.msk.bf16.mxu0 %vm5483_vm6, %v19689_v0 }
0x119a   :  { %18288 = vmatmul.mubr.msk.bf16.gmra.mrb[220].mxu0 %vm5483_vm6, %v19690_v35 }
0x119b   :  { %18291 = vmatprep.mubr.msk.bf16.mxu0 %vm5483_vm6, %v19691_v16 }
0x11a2   :  { %18292 = vmatmul.mubr.msk.bf16.gmra.mrb[224].mxu0 %vm5483_vm6, %v19692_v9 }
0x11a3   :  { %18295 = vmatprep.mubr.msk.bf16.mxu0 %vm5483_vm6, %v19693_v19  ;;  %v22206_v19 = vld [vmem:[#allocation6 + $0x58] sm:$0xff]  }
0x11aa   :  { %18296 = vmatmul.mubr.msk.bf16.gmra.mrb[228].mxu0 %vm5483_vm6, %v19694_v2 }
0x123d   :  { %v18265_v40 = vpop.f32.mrb[196].mxu0 }
0x123e   :  { %v8021_v5 = vpop.f32.mrb[197].mxu0 }
0x123f   :  { %v18266_v42 = vpop.f32.mrb[198].mxu0 }
0x1240   :  { %v8165_v44 = vpack.c.bf16 %v18266_v42, %v18265_v40  ;;  %v8024_v23 = vpop.f32.mrb[199].mxu0 }
0x1241   :  { %v8164_v63 = vpack.c.bf16 %v8024_v23, %v8021_v5  ;;  %v22210_v23 = vld [vmem:[#allocation6 + $0x60] sm:$0xff]  }
0x1245   :  { %v18269_v49 = vpop.f32.mrb[200].mxu0 }
0x1246   :  { %v8037_v43 = vpop.f32.mrb[201].mxu0 }
0x1247   :  { %v18270_v45 = vpop.f32.mrb[202].mxu0 }
0x1248   :  { %v8167_v1 = vpack.c.bf16 %v18270_v45, %v18269_v49  ;;  %v8040_v30 = vpop.f32.mrb[203].mxu0  ;;  %v22220_v49 = vld [vmem:[#allocation6 + $0x70] sm:$0xff]   ;;  %v22230_v45 = vld [vmem:[#allocation6 + $0x80] sm:$0xff]  }
0x1249   :  { %v8166_v27 = vpack.c.bf16 %v8040_v30, %v8037_v43  ;;  %v22226_v43 = vld [vmem:[#allocation6 + $0x78] sm:$0xff]  }
0x124b   :  { %18303 = vmatprep.mubr.msk.bf16.mxu0 %vm5483_vm6, %v8166_v27 }
0x124c   :  { %18304 = vmatmul.mubr.msk.bf16.vlgmr.msra.gmra.mrb[232].mxu0 %vm5483_vm6, %v8167_v1  ;;  %v22236_v1 = vld [vmem:[#allocation6 + $0x88] sm:$0xff]  }
0x124d   :  { %18311 = vmatprep.mubr.msk.bf16.mxu0 %vm5483_vm6, %v8164_v63  ;;  %18308 = vmatpush3.bf16.msra.mxu0 %v22163_v28  ;;  %v18273_v10 = vpop.f32.mrb[204].mxu0  ;;  %v22216_v63 = vld [vmem:[#allocation6 + $0x68] sm:$0xff]  }
0x124e   :  { %18309 = vmatprep.subr.bf16.mxu0 %v22166_v3  ;;  %v8053_v46 = vpop.f32.mrb[205].mxu0 }
0x124f   :  { %v18274_v4 = vpop.f32.mrb[206].mxu0 }
0x1250   :  { %v8279_v12 = vpack.c.bf16 %v18274_v4, %v18273_v10  ;;  %v8056_v41 = vpop.f32.mrb[207].mxu0 }
0x1251   :  { %18310 = vmatpush3.bf16.msra.mxu0 %v22166_v3  ;;  %v8278_v47 = vpack.c.bf16 %v8056_v41, %v8053_v46 }
0x1252   :  { %18315 = vmatprep.subr.bf16.mxu0 %v22170_v50 }
0x1255   :  { %v18277_v31 = vpop.f32.mrb[208].mxu0 }
0x1256   :  { %v8069_v26 = vpop.f32.mrb[209].mxu0 }
0x1257   :  { %v18278_v38 = vpop.f32.mrb[210].mxu0 }
0x1258   :  { %18312 = vmatmul.mubr.msk.bf16.vlgmr.msra.gmra.mrb[232].mxu0 %vm5483_vm6, %v8165_v44  ;;  %v8340_v60 = vpack.c.bf16 %v18278_v38, %v18277_v31  ;;  %v8072_v29 = vpop.f32.mrb[211].mxu0 }
0x1259   :  { %18316 = vmatpush3.bf16.msra.mxu0 %v22170_v50  ;;  %18319 = vmatprep.mubr.msk.bf16.mxu0 %vm5483_vm6, %v8278_v47  ;;  %v8339_v8 = vpack.c.bf16 %v8072_v29, %v8069_v26 }
0x125a   :  { %18317 = vmatprep.subr.bf16.mxu0 %v22176_v18 }
0x125d   :  { %18318 = vmatpush3.bf16.msra.mxu0 %v22176_v18  ;;  %v18281_v55 = vpop.f32.mrb[212].mxu0 }
0x125e   :  { %18323 = vmatprep.subr.bf16.mxu0 %v22180_v15  ;;  %v8085_v56 = vpop.f32.mrb[213].mxu0 }
0x125f   :  { %v18282_v7 = vpop.f32.mrb[214].mxu0 }
0x1260   :  { %v8401_v54 = vpack.c.bf16 %v18282_v7, %v18281_v55  ;;  %v8088_v57 = vpop.f32.mrb[215].mxu0  ;;  %v16291_v7 = vld [vmem:[%s23218_s15 + $0x40] sm:$0xff] }
0x1261   :  { %v8400_v48 = vpack.c.bf16 %v8088_v57, %v8085_v56 }
0x1264   :  { %18320 = vmatmul.mubr.msk.bf16.vlgmr.msra.gmra.mrb[232].mxu0 %vm5483_vm6, %v8279_v12 }
0x1265   :  { %18324 = vmatpush3.bf16.msra.mxu0 %v22180_v15  ;;  %18327 = vmatprep.mubr.msk.bf16.mxu0 %vm5483_vm6, %v8339_v8  ;;  %v18285_v21 = vpop.f32.mrb[216].mxu0 }
0x1266   :  { %18325 = vmatprep.subr.bf16.mxu0 %v22186_v14  ;;  %v8101_v39 = vpop.f32.mrb[217].mxu0 }
0x1267   :  { %v18286_v22 = vpop.f32.mrb[218].mxu0 }
0x1268   :  { %v8462_v37 = vpack.c.bf16 %v18286_v22, %v18285_v21  ;;  %v8104_v6 = vpop.f32.mrb[219].mxu0 }
0x1269   :  { %18326 = vmatpush3.bf16.msra.mxu0 %v22186_v14  ;;  %v8461_v13 = vpack.c.bf16 %v8104_v6, %v8101_v39 }
0x126a   :  { %18331 = vmatprep.subr.bf16.mxu0 %v22190_v53 }
0x126d   :  { %v18289_v52 = vpop.f32.mrb[220].mxu0 }
0x126e   :  { %v8117_v61 = vpop.f32.mrb[221].mxu0 }
0x126f   :  { %v18290_v33 = vpop.f32.mrb[222].mxu0 }
0x1270   :  { %18328 = vmatmul.mubr.msk.bf16.vlgmr.msra.gmra.mrb[232].mxu0 %vm5483_vm6, %v8340_v60  ;;  %v8523_v34 = vpack.c.bf16 %v18290_v33, %v18289_v52  ;;  %v8120_v11 = vpop.f32.mrb[223].mxu0 }
0x1271   :  { %18332 = vmatpush3.bf16.msra.mxu0 %v22190_v53  ;;  %18335 = vmatprep.mubr.msk.bf16.mxu0 %vm5483_vm6, %v8400_v48  ;;  %v8522_v24 = vpack.c.bf16 %v8120_v11, %v8117_v61 }
0x1272   :  { %18333 = vmatprep.subr.bf16.mxu0 %v22196_v59 }
0x1275   :  { %18334 = vmatpush3.bf16.msra.mxu0 %v22196_v59  ;;  %v18293_v25 = vpop.f32.mrb[224].mxu0 }
0x1276   :  { %18339 = vmatprep.subr.bf16.mxu0 %v22200_v20  ;;  %v8133_v51 = vpop.f32.mrb[225].mxu0 }
0x1277   :  { %v18294_v32 = vpop.f32.mrb[226].mxu0 }
0x1278   :  { %v8584_v0 = vpack.c.bf16 %v18294_v32, %v18293_v25  ;;  %v8136_v35 = vpop.f32.mrb[227].mxu0 }
0x1279   :  { %v8583_v16 = vpack.c.bf16 %v8136_v35, %v8133_v51 }
0x127c   :  { %18336 = vmatmul.mubr.msk.bf16.vlgmr.msra.gmra.mrb[232].mxu0 %vm5483_vm6, %v8401_v54  ;;  %v16292_v54 = vld [vmem:[%s23218_s15 + $0x48] sm:$0xff] }
0x127d   :  { %18340 = vmatpush3.bf16.msra.mxu0 %v22200_v20  ;;  %18343 = vmatprep.mubr.msk.bf16.mxu0 %vm5483_vm6, %v8461_v13  ;;  %v18297_v9 = vpop.f32.mrb[228].mxu0 }
0x127e   :  { %18341 = vmatprep.subr.bf16.mxu0 %v22206_v19  ;;  %v8149_v2 = vpop.f32.mrb[229].mxu0 }
0x127f   :  { %v18298_v40 = vpop.f32.mrb[230].mxu0 }
0x1280   :  { %v8645_v5 = vpack.c.bf16 %v18298_v40, %v18297_v9  ;;  %v8152_v42 = vpop.f32.mrb[231].mxu0 }
0x1281   :  { %18342 = vmatpush3.bf16.msra.mxu0 %v22206_v19  ;;  %v8644_v44 = vpack.c.bf16 %v8152_v42, %v8149_v2 }
0x1282   :  { %18347 = vmatprep.subr.bf16.mxu0 %v22210_v23 }
0x1288   :  { %18344 = vmatmul.mubr.msk.bf16.vlgmr.msra.gmra.mrb[232].mxu0 %vm5483_vm6, %v8462_v37 }
0x1289   :  { %18348 = vmatpush3.bf16.msra.mxu0 %v22210_v23  ;;  %18351 = vmatprep.mubr.msk.bf16.mxu0 %vm5483_vm6, %v8522_v24 }
0x128a   :  { %18349 = vmatprep.subr.bf16.mxu0 %v22216_v63 }
0x128d   :  { %18350 = vmatpush3.bf16.msra.mxu0 %v22216_v63 }
0x128e   :  { %18355 = vmatprep.subr.bf16.mxu0 %v22220_v49 }
0x1294   :  { %18352 = vmatmul.mubr.msk.bf16.vlgmr.msra.gmra.mrb[232].mxu0 %vm5483_vm6, %v8523_v34 }
0x1295   :  { %18356 = vmatpush3.bf16.msra.mxu0 %v22220_v49  ;;  %18359 = vmatprep.mubr.msk.bf16.mxu0 %vm5483_vm6, %v8583_v16 }
0x1296   :  { %18357 = vmatprep.subr.bf16.mxu0 %v22226_v43 }
0x1299   :  { %18358 = vmatpush3.bf16.msra.mxu0 %v22226_v43 }
0x129a   :  { %18363 = vmatprep.subr.bf16.mxu0 %v22230_v45 }
0x12a0   :  { %18360 = vmatmul.mubr.msk.bf16.vlgmr.msra.gmra.mrb[232].mxu0 %vm5483_vm6, %v8584_v0 }
0x12a1   :  { %18364 = vmatpush3.bf16.msra.mxu0 %v22230_v45  ;;  %18367 = vmatprep.mubr.msk.bf16.mxu0 %vm5483_vm6, %v8644_v44 }
0x12a2   :  { %18365 = vmatprep.subr.bf16.mxu0 %v22236_v1 }
0x12a5   :  { %18366 = vmatpush3.bf16.msra.mxu0 %v22236_v1 }
0x12ac   :  { %18368 = vmatmul.mubr.msk.bf16.vlgmr.msra.gmra.mrb[232].mxu0 %vm5483_vm6, %v8645_v5 }
0x137f   :  { %v22241_v30 = vpop.f32.mrb[232].mxu0 }
0x1380   :  { %v22243_v27 = vpop.f32.mrb[233].mxu0  ;;  %v8721_v10 = vsel %vm5483_vm6, %v22241_v30, 0.0  ;;  %v8733_v60 = vmul.f32 %v22241_v30, %v22241_v30 }
0x1381   :  { %8722 = vadd.xlane.f32.xlu0 %v8721_v10  ;;  %v22247_v46 = vpop.f32.mrb[234].mxu0  ;;  %v8715_v4 = vsel %vm5483_vm6, %v22243_v27, 0.0  ;;  %v8731_v47 = vmul.f32 %v22243_v27, %v22243_v27 }
0x1382   :  { %8716 = vadd.xlane.f32.xlu1 %v8715_v4  ;;  %v22251_v12 = vpop.f32.mrb[235].mxu0  ;;  %v8724_v31 = vsel %vm5483_vm6, %v22247_v46, 0.0  ;;  %v8734_v8 = vmul.f32 %v22247_v46, %v22247_v46  ;;  %v8741_v55 = vsel %vm5483_vm6, %v8733_v60, 0.0 }
0x1383   :  { %v8718_v41 = vsel %vm5483_vm6, %v22251_v12, 0.0  ;;  %v8732_v26 = vmul.f32 %v22251_v12, %v22251_v12  ;;  %v8735_v38 = vsel %vm5483_vm6, %v8731_v47, 0.0 }
0x1384   :  { %v8744_v56 = vsel %vm5483_vm6, %v8734_v8, 0.0  ;;  %v16288_v8 = vld [vmem:[%s23217_s14 + $0x48] sm:$0xff] }
0x1385   :  { %8719 = vadd.xlane.f32.xlu0 %v8718_v41  ;;  %v8738_v29 = vsel %vm5483_vm6, %v8732_v26, 0.0 }
0x1386   :  { %8725 = vadd.xlane.f32.xlu1 %v8724_v31 }
0x1389   :  { %8736 = vadd.xlane.f32.xlu0 %v8735_v38 }
0x138a   :  { %8739 = vadd.xlane.f32.xlu1 %v8738_v29  ;;  %v16287_v29 = vld [vmem:[%s23217_s14 + $0x40] sm:$0xff] }
0x138d   :  { %8742 = vadd.xlane.f32.xlu0 %v8741_v55 }
0x138e   :  { %8745 = vadd.xlane.f32.xlu1 %v8744_v56 }
0x139f   :  { %8805 = vperm.xlu1 %19174, %v16291_v7  }
0x13a3   :  { %8810 = vperm.xlu0 %19175, %v16292_v54  }
0x140e   :  { %v8723_v57 = vpop.xlane.xlu0 %8722 }
0x140f   :  { %v22275_v48 = vmul.f32 0.03125, %v8723_v57  ;;  %v8717_v21 = vpop.xlane.xlu1 %8716  ;;  %v16289_v57 = vld [vmem:[%s23217_s14 + $0x50] sm:$0xff] }
0x1410   :  { %v22277_v39 = vmul.f32 0.03125, %v8717_v21  ;;  %v16290_v21 = vld [vmem:[%s23217_s14 + $0x58] sm:$0xff] }
0x1411   :  { %v8765_v22 = vsub.f32 %v22241_v30, %v22275_v48  ;;  %v8753_v2 = vmul.f32 %v22275_v48, %v22275_v48  ;;  %v19696_v30 = vld [vmem:[%s23216_s13 + $0x1b8] sm:$0xff]  }
0x1412   :  { %v8720_v37 = vpop.xlane.xlu0 %8719  ;;  %v8763_v6 = vsub.f32 %v22243_v27, %v22277_v39  ;;  %v8751_v24 = vmul.f32 %v22277_v39, %v22277_v39  ;;  %v22328_v48 = vld [vmem:[#allocation6 + $0x10] sm:$0xff]  }
0x1413   :  { %v8728_v13 = vmul.f32 0.03125, %v8720_v37  ;;  %v8726_v52 = vpop.xlane.xlu1 %8725 }
0x1414   :  { %v22283_v61 = vmul.f32 0.03125, %v8726_v52 }
0x1415   :  { %v8764_v33 = vsub.f32 %v22251_v12, %v8728_v13  ;;  %v8752_v32 = vmul.f32 %v8728_v13, %v8728_v13 }
0x1416   :  { %v8737_v34 = vpop.xlane.xlu0 %8736  ;;  %v8766_v11 = vsub.f32 %v22247_v46, %v22283_v61  ;;  %v8754_v44 = vmul.f32 %v22283_v61, %v22283_v61  ;;  %v19697_v46 = vld [vmem:[%s23216_s13 + $0x1c0] sm:$0xff]   ;;  %v19698_v61 = vld [vmem:[%s23216_s13 + $0x1c8] sm:$0xff]  }
0x1417   :  { %v8747_v25 = vmul.f32 0.03125, %v8737_v34  ;;  %v8740_v51 = vpop.xlane.xlu1 %8739  ;;  %v16294_v34 = vld [vmem:[%s23218_s15 + $0x58] sm:$0xff] }
0x1418   :  { %v8748_v0 = vmul.f32 0.03125, %v8740_v51 }
0x1419   :  { %v8755_v35 = vsub.f32 %v8747_v25, %v8751_v24  ;;  %v16293_v24 = vld [vmem:[%s23218_s15 + $0x50] sm:$0xff] }
0x141a   :  { %v8756_v16 = vsub.f32 %v8748_v0, %v8752_v32  ;;  %v8743_v9 = vpop.xlane.xlu0 %8742  ;;  %v19695_v25 = vld [vmem:[%s23216_s13 + $0x1b0] sm:$0xff]  }
0x141b   :  { %v8759_v40 = vmax.f32 %v8755_v35, 0.0  ;;  %v8749_v5 = vmul.f32 0.03125, %v8743_v9  ;;  %v8746_v42 = vpop.xlane.xlu1 %8745  ;;  %18375 = vmatprep.mubr.msk.bf16.mxu0 %vm5483_vm6, %v19695_v25 }
0x141c   :  { %v8760_v27 = vmax.f32 %v8756_v16, 0.0  ;;  %v8750_v10 = vmul.f32 0.03125, %v8746_v42 }
0x141d   :  { %v8767_v4 = vadd.f32 1e-05, %v8759_v40  ;;  %v8757_v12 = vsub.f32 %v8749_v5, %v8753_v2 }
0x141e   :  { %v8768_v41 = vadd.f32 1e-05, %v8760_v27  ;;  %v8758_v47 = vsub.f32 %v8750_v10, %v8754_v44 }
0x141f   :  { %20243 = vrsqrt.f32 %v8767_v4  ;;  %v8761_v31 = vmax.f32 %v8757_v12, 0.0  ;;  %v8806_v32 = vpop.permute.xlu1 %8805 }
0x1420   :  { %20245 = vrsqrt.f32 %v8768_v41  ;;  %v8762_v26 = vmax.f32 %v8758_v47, 0.0 }
0x1421   :  { %v8769_v38 = vadd.f32 1e-05, %v8761_v31 }
0x1422   :  { %v8770_v60 = vadd.f32 1e-05, %v8762_v26  ;;  %v8811_v51 = vpop.permute.xlu0 %8810 }
0x1423   :  { %20247 = vrsqrt.f32 %v8769_v38 }
0x1424   :  { %20249 = vrsqrt.f32 %v8770_v60  ;;  %v19700_v60 = vld [vmem:[%s23216_s13 + $0x1d8] sm:$0xff]  }
0x1429   :  { %v20244_v55 = vpop.eup %20243 }
0x142a   :  { %v20246_v56 = vpop.eup %20245  ;;  %v8775_v7 = vmul.f32 %v20244_v55, %v16287_v29  ;;  %v19701_v29 = vld [vmem:[%s23216_s13 + $0x1e0] sm:$0xff]   ;;  %v19703_v55 = vld [vmem:[%s23216_s13 + $0x1f0] sm:$0xff]  }
0x142b   :  { %v8776_v54 = vmul.f32 %v20246_v56, %v16288_v8  ;;  %v19702_v8 = vld [vmem:[%s23216_s13 + $0x1e8] sm:$0xff]   ;;  %v19704_v56 = vld [vmem:[%s23216_s13 + $0x1f8] sm:$0xff]  }
0x142c   :  { %8781 = vperm.xlu0 %19175, %v8775_v7   ;;  %v19705_v7 = vld [vmem:[%s23216_s13 + $0x200] sm:$0xff]  }
0x142d   :  { %v20248_v39 = vpop.eup %20247  ;;  %8786 = vperm.xlu1 %19174, %v8776_v54   ;;  %v19706_v54 = vld [vmem:[%s23216_s13 + $0x208] sm:$0xff]  }
0x142e   :  { %v20250_v37 = vpop.eup %20249  ;;  %v8777_v13 = vmul.f32 %v20248_v39, %v16289_v57  ;;  %v19707_v57 = vld [vmem:[%s23216_s13 + $0x210] sm:$0xff]   ;;  %v19709_v39 = vld [vmem:[%s23216_s13 + $0x220] sm:$0xff]  }
0x142f   :  { %v8778_v52 = vmul.f32 %v20250_v37, %v16290_v21  ;;  %v19708_v21 = vld [vmem:[%s23216_s13 + $0x218] sm:$0xff]   ;;  %v19710_v37 = vld [vmem:[%s23216_s13 + $0x228] sm:$0xff]  }
0x1431   :  { %8796 = vperm.xlu0 %19175, %v8778_v52   ;;  %8791 = vperm.xlu1 %19174, %v8777_v13   ;;  %v19711_v13 = vld [vmem:[%s23216_s13 + $0x230] sm:$0xff]   ;;  %v19712_v52 = vld [vmem:[%s23216_s13 + $0x238] sm:$0xff]  }
0x1435   :  { %8820 = vperm.xlu0 %19175, %v16294_v34   ;;  %8815 = vperm.xlu1 %19174, %v16293_v24  }
0x14ab   :  { %v8782_v0 = vpop.permute.xlu0 %8781 }
0x14ac   :  { %v8799_v35 = vmul.f32 %v8782_v0, %v8763_v6  ;;  %v8787_v16 = vpop.permute.xlu1 %8786 }
0x14ad   :  { %v8800_v9 = vmul.f32 %v8787_v16, %v8764_v33 }
0x14ae   :  { %v8823_v2 = vadd.f32 %v8806_v32, %v8799_v35 }
0x14af   :  { %v8824_v40 = vadd.f32 %v8811_v51, %v8800_v9 }
0x14b0   :  { %v8827_v5 = vmax.f32 %v8823_v2, 0.0  ;;  %v8792_v42 = vpop.permute.xlu1 %8791  ;;  %v8797_v44 = vpop.permute.xlu0 %8796 }
0x14b1   :  { %v8828_v27 = vmax.f32 %v8824_v40, 0.0  ;;  %v8801_v10 = vmul.f32 %v8792_v42, %v8765_v22  ;;  %v8802_v4 = vmul.f32 %v8797_v44, %v8766_v11  ;;  %v22334_v22 = vld [vmem:[#allocation6 + $0x18] sm:$0xff]   ;;  %v19699_v11 = vld [vmem:[%s23216_s13 + $0x1d0] sm:$0xff]  }
0x14b3   :  { %v8831_v12 = vpack.c.bf16 %v8828_v27, %v8827_v5 }
0x14b4   :  { %v8816_v41 = vpop.permute.xlu1 %8815  ;;  %v8821_v47 = vpop.permute.xlu0 %8820 }
0x14b5   :  { %v8825_v6 = vadd.f32 %v8816_v41, %v8801_v10  ;;  %v8826_v31 = vadd.f32 %v8821_v47, %v8802_v4  ;;  %18371 = vmatprep.subr.bf16.mxu0 %v8831_v12 }
0x14b6   :  { %18372 = vmatpush3.bf16.msra.mxu0 %v8831_v12 }
0x14b7   :  { %v8829_v33 = vmax.f32 %v8825_v6, 0.0  ;;  %v8830_v26 = vmax.f32 %v8826_v31, 0.0 }
0x14b9   :  { %v8832_v38 = vpack.c.bf16 %v8830_v26, %v8829_v33 }
0x14bb   :  { %18373 = vmatprep.subr.bf16.mxu0 %v8832_v38 }
0x14bc   :  { %18374 = vmatpush3.bf16.msra.mxu0 %v8832_v38 }
0x14bd   :  { %18411 = vmatprep.subr.bf16.mxu0 %v22328_v48 }
0x14bf   :  { %18376 = vmatmul.mubr.msk.bf16.vlgmr.msra.gmra.mrb[236].mxu0 %vm5483_vm6, %v19696_v30 }
0x14c0   :  { %18379 = vmatprep.mubr.msk.bf16.mxu0 %vm5483_vm6, %v19697_v46  ;;  %18412 = vmatpush3.bf16.msra.mxu0 %v22328_v48 }
0x14c1   :  { %18413 = vmatprep.subr.bf16.mxu0 %v22334_v22 }
0x14c4   :  { %18414 = vmatpush3.bf16.msra.mxu0 %v22334_v22 }
0x14c5   :  { %18419 = vmatprep.subr.bf16.mxu0 %v22163_v28 }
0x14c7   :  { %18380 = vmatmul.mubr.msk.bf16.gmra.mrb[240].mxu0 %vm5483_vm6, %v19698_v61 }
0x14c8   :  { %18383 = vmatprep.mubr.msk.bf16.mxu0 %vm5483_vm6, %v19699_v11 }
0x14cf   :  { %18384 = vmatmul.mubr.msk.bf16.gmra.mrb[244].mxu0 %vm5483_vm6, %v19700_v60 }
0x14d0   :  { %18387 = vmatprep.mubr.msk.bf16.mxu0 %vm5483_vm6, %v19701_v29 }
0x14d7   :  { %18388 = vmatmul.mubr.msk.bf16.gmra.mrb[248].mxu0 %vm5483_vm6, %v19702_v8 }
0x14d8   :  { %18391 = vmatprep.mubr.msk.bf16.mxu0 %vm5483_vm6, %v19703_v55 }
0x14df   :  { %18392 = vmatmul.mubr.msk.bf16.gmra.mrb[252].mxu0 %vm5483_vm6, %v19704_v56 }
0x14e0   :  { %18395 = vmatprep.mubr.msk.bf16.mxu0 %vm5483_vm6, %v19705_v7 }
0x14e7   :  { %18396 = vmatmul.mubr.msk.bf16.gmra.mrb[0].mxu0 %vm5483_vm6, %v19706_v54 }
0x14e8   :  { %18399 = vmatprep.mubr.msk.bf16.mxu0 %vm5483_vm6, %v19707_v57 }
0x14ef   :  { %18400 = vmatmul.mubr.msk.bf16.gmra.mrb[4].mxu0 %vm5483_vm6, %v19708_v21 }
0x14f0   :  { %18403 = vmatprep.mubr.msk.bf16.mxu0 %vm5483_vm6, %v19709_v39 }
0x14f7   :  { %18404 = vmatmul.mubr.msk.bf16.gmra.mrb[8].mxu0 %vm5483_vm6, %v19710_v37 }
0x14f8   :  { %18407 = vmatprep.mubr.msk.bf16.mxu0 %vm5483_vm6, %v19711_v13 }
0x14ff   :  { %18408 = vmatmul.mubr.msk.bf16.gmra.mrb[12].mxu0 %vm5483_vm6, %v19712_v52 }
0x1592   :  { %v18377_v34 = vpop.f32.mrb[236].mxu0 }
0x1593   :  { %v9048_v24 = vpop.f32.mrb[237].mxu0 }
0x1594   :  { %v18378_v25 = vpop.f32.mrb[238].mxu0 }
0x1595   :  { %v9192_v51 = vpack.c.bf16 %v18378_v25, %v18377_v34  ;;  %v9051_v32 = vpop.f32.mrb[239].mxu0 }
0x1596   :  { %v9191_v0 = vpack.c.bf16 %v9051_v32, %v9048_v24 }
0x159a   :  { %v18381_v35 = vpop.f32.mrb[240].mxu0 }
0x159b   :  { %v9064_v16 = vpop.f32.mrb[241].mxu0 }
0x159c   :  { %v18382_v9 = vpop.f32.mrb[242].mxu0 }
0x159d   :  { %v9194_v2 = vpack.c.bf16 %v18382_v9, %v18381_v35  ;;  %v9067_v40 = vpop.f32.mrb[243].mxu0 }
0x159e   :  { %v9193_v5 = vpack.c.bf16 %v9067_v40, %v9064_v16 }
0x15a0   :  { %18415 = vmatprep.mubr.msk.bf16.mxu0 %vm5483_vm6, %v9193_v5 }
0x15a1   :  { %18416 = vmatmul.mubr.msk.bf16.vlgmr.msra.gmra.mrb[16].mxu0 %vm5483_vm6, %v9194_v2 }
0x15a2   :  { %18423 = vmatprep.mubr.msk.bf16.mxu0 %vm5483_vm6, %v9191_v0  ;;  %18420 = vmatpush3.bf16.msra.mxu0 %v22163_v28  ;;  %v18385_v42 = vpop.f32.mrb[244].mxu0 }
0x15a3   :  { %18421 = vmatprep.subr.bf16.mxu0 %v22166_v3  ;;  %v9080_v44 = vpop.f32.mrb[245].mxu0 }
0x15a4   :  { %v18386_v27 = vpop.f32.mrb[246].mxu0 }
0x15a5   :  { %v9306_v10 = vpack.c.bf16 %v18386_v27, %v18385_v42  ;;  %v9083_v4 = vpop.f32.mrb[247].mxu0  ;;  %v16390_v27 = vld [vmem:[%s23218_s15 + $0x68] sm:$0xff] }
0x15a6   :  { %18422 = vmatpush3.bf16.msra.mxu0 %v22166_v3  ;;  %v9305_v12 = vpack.c.bf16 %v9083_v4, %v9080_v44  ;;  %v16389_v44 = vld [vmem:[%s23218_s15 + $0x60] sm:$0xff] }
0x15a7   :  { %18427 = vmatprep.subr.bf16.mxu0 %v22170_v50 }
0x15aa   :  { %v18389_v41 = vpop.f32.mrb[248].mxu0 }
0x15ab   :  { %v9096_v47 = vpop.f32.mrb[249].mxu0 }
0x15ac   :  { %v18390_v6 = vpop.f32.mrb[250].mxu0 }
0x15ad   :  { %18424 = vmatmul.mubr.msk.bf16.vlgmr.msra.gmra.mrb[16].mxu0 %vm5483_vm6, %v9192_v51  ;;  %v9367_v31 = vpack.c.bf16 %v18390_v6, %v18389_v41  ;;  %v9099_v33 = vpop.f32.mrb[251].mxu0 }
0x15ae   :  { %18428 = vmatpush3.bf16.msra.mxu0 %v22170_v50  ;;  %18431 = vmatprep.mubr.msk.bf16.mxu0 %vm5483_vm6, %v9305_v12  ;;  %v9366_v26 = vpack.c.bf16 %v9099_v33, %v9096_v47 }
0x15af   :  { %18429 = vmatprep.subr.bf16.mxu0 %v22176_v18 }
0x15b2   :  { %18430 = vmatpush3.bf16.msra.mxu0 %v22176_v18  ;;  %v18393_v3 = vpop.f32.mrb[252].mxu0 }
0x15b3   :  { %18435 = vmatprep.subr.bf16.mxu0 %v22180_v15  ;;  %v9112_v38 = vpop.f32.mrb[253].mxu0 }
0x15b4   :  { %v18394_v30 = vpop.f32.mrb[254].mxu0 }
0x15b5   :  { %v9428_v46 = vpack.c.bf16 %v18394_v30, %v18393_v3  ;;  %v9115_v61 = vpop.f32.mrb[255].mxu0 }
0x15b6   :  { %v9427_v11 = vpack.c.bf16 %v9115_v61, %v9112_v38 }
0x15b9   :  { %18432 = vmatmul.mubr.msk.bf16.vlgmr.msra.gmra.mrb[16].mxu0 %vm5483_vm6, %v9306_v10 }
0x15ba   :  { %18436 = vmatpush3.bf16.msra.mxu0 %v22180_v15  ;;  %18439 = vmatprep.mubr.msk.bf16.mxu0 %vm5483_vm6, %v9366_v26  ;;  %v18397_v50 = vpop.f32.mrb[0].mxu0 }
0x15bb   :  { %18437 = vmatprep.subr.bf16.mxu0 %v22186_v14  ;;  %v9128_v60 = vpop.f32.mrb[1].mxu0 }
0x15bc   :  { %v18398_v29 = vpop.f32.mrb[2].mxu0 }
0x15bd   :  { %v9489_v18 = vpack.c.bf16 %v18398_v29, %v18397_v50  ;;  %v9131_v8 = vpop.f32.mrb[3].mxu0 }
0x15be   :  { %18438 = vmatpush3.bf16.msra.mxu0 %v22186_v14  ;;  %v9488_v55 = vpack.c.bf16 %v9131_v8, %v9128_v60 }
0x15bf   :  { %18443 = vmatprep.subr.bf16.mxu0 %v22190_v53 }
0x15c2   :  { %v18401_v56 = vpop.f32.mrb[4].mxu0 }
0x15c3   :  { %v9144_v7 = vpop.f32.mrb[5].mxu0 }
0x15c4   :  { %v18402_v54 = vpop.f32.mrb[6].mxu0 }
0x15c5   :  { %18440 = vmatmul.mubr.msk.bf16.vlgmr.msra.gmra.mrb[16].mxu0 %vm5483_vm6, %v9367_v31  ;;  %v9550_v15 = vpack.c.bf16 %v18402_v54, %v18401_v56  ;;  %v9147_v57 = vpop.f32.mrb[7].mxu0 }
0x15c6   :  { %18444 = vmatpush3.bf16.msra.mxu0 %v22190_v53  ;;  %18447 = vmatprep.mubr.msk.bf16.mxu0 %vm5483_vm6, %v9427_v11  ;;  %v9549_v21 = vpack.c.bf16 %v9147_v57, %v9144_v7 }
0x15c7   :  { %18445 = vmatprep.subr.bf16.mxu0 %v22196_v59 }
0x15ca   :  { %18446 = vmatpush3.bf16.msra.mxu0 %v22196_v59  ;;  %v18405_v14 = vpop.f32.mrb[8].mxu0 }
0x15cb   :  { %18451 = vmatprep.subr.bf16.mxu0 %v22200_v20  ;;  %v9160_v39 = vpop.f32.mrb[9].mxu0 }
0x15cc   :  { %v18406_v37 = vpop.f32.mrb[10].mxu0 }
0x15cd   :  { %v9611_v13 = vpack.c.bf16 %v18406_v37, %v18405_v14  ;;  %v9163_v52 = vpop.f32.mrb[11].mxu0 }
0x15ce   :  { %v9610_v34 = vpack.c.bf16 %v9163_v52, %v9160_v39 }
0x15d1   :  { %18448 = vmatmul.mubr.msk.bf16.vlgmr.msra.gmra.mrb[16].mxu0 %vm5483_vm6, %v9428_v46 }
0x15d2   :  { %18452 = vmatpush3.bf16.msra.mxu0 %v22200_v20  ;;  %18455 = vmatprep.mubr.msk.bf16.mxu0 %vm5483_vm6, %v9488_v55  ;;  %v18409_v53 = vpop.f32.mrb[12].mxu0 }
0x15d3   :  { %18453 = vmatprep.subr.bf16.mxu0 %v22206_v19  ;;  %v9176_v24 = vpop.f32.mrb[13].mxu0 }
0x15d4   :  { %v18410_v25 = vpop.f32.mrb[14].mxu0 }
0x15d5   :  { %v9672_v59 = vpack.c.bf16 %v18410_v25, %v18409_v53  ;;  %v9179_v51 = vpop.f32.mrb[15].mxu0 }
0x15d6   :  { %18454 = vmatpush3.bf16.msra.mxu0 %v22206_v19  ;;  %v9671_v32 = vpack.c.bf16 %v9179_v51, %v9176_v24  ;;  %v16386_v51 = vld [vmem:[%s23217_s14 + $0x68] sm:$0xff] }
0x15d7   :  { %18459 = vmatprep.subr.bf16.mxu0 %v22210_v23 }
0x15dd   :  { %18456 = vmatmul.mubr.msk.bf16.vlgmr.msra.gmra.mrb[16].mxu0 %vm5483_vm6, %v9489_v18 }
0x15de   :  { %18460 = vmatpush3.bf16.msra.mxu0 %v22210_v23  ;;  %18463 = vmatprep.mubr.msk.bf16.mxu0 %vm5483_vm6, %v9549_v21 }
0x15df   :  { %18461 = vmatprep.subr.bf16.mxu0 %v22216_v63 }
0x15e2   :  { %18462 = vmatpush3.bf16.msra.mxu0 %v22216_v63 }
0x15e3   :  { %18467 = vmatprep.subr.bf16.mxu0 %v22220_v49 }
0x15e9   :  { %18464 = vmatmul.mubr.msk.bf16.vlgmr.msra.gmra.mrb[16].mxu0 %vm5483_vm6, %v9550_v15 }
0x15ea   :  { %18468 = vmatpush3.bf16.msra.mxu0 %v22220_v49  ;;  %18471 = vmatprep.mubr.msk.bf16.mxu0 %vm5483_vm6, %v9610_v34 }
0x15eb   :  { %18469 = vmatprep.subr.bf16.mxu0 %v22226_v43 }
0x15ee   :  { %18470 = vmatpush3.bf16.msra.mxu0 %v22226_v43 }
0x15ef   :  { %18475 = vmatprep.subr.bf16.mxu0 %v22230_v45 }
0x15f5   :  { %18472 = vmatmul.mubr.msk.bf16.vlgmr.msra.gmra.mrb[16].mxu0 %vm5483_vm6, %v9611_v13 }
0x15f6   :  { %18476 = vmatpush3.bf16.msra.mxu0 %v22230_v45  ;;  %18479 = vmatprep.mubr.msk.bf16.mxu0 %vm5483_vm6, %v9671_v32 }
0x15f7   :  { %18477 = vmatprep.subr.bf16.mxu0 %v22236_v1 }
0x15fa   :  { %18478 = vmatpush3.bf16.msra.mxu0 %v22236_v1 }
0x1601   :  { %18480 = vmatmul.mubr.msk.bf16.vlgmr.msra.gmra.mrb[16].mxu0 %vm5483_vm6, %v9672_v59  ;;  %v16385_v59 = vld [vmem:[%s23217_s14 + $0x60] sm:$0xff] }
0x16d4   :  { %v22448_v20 = vpop.f32.mrb[16].mxu0 }
0x16d5   :  { %v22450_v19 = vpop.f32.mrb[17].mxu0  ;;  %v9748_v23 = vsel %vm5483_vm6, %v22448_v20, 0.0  ;;  %v9760_v9 = vmul.f32 %v22448_v20, %v22448_v20 }
0x16d6   :  { %9749 = vadd.xlane.f32.xlu0 %v9748_v23  ;;  %v22454_v63 = vpop.f32.mrb[18].mxu0  ;;  %v9742_v49 = vsel %vm5483_vm6, %v22450_v19, 0.0  ;;  %v9758_v1 = vmul.f32 %v22450_v19, %v22450_v19 }
0x16d7   :  { %9743 = vadd.xlane.f32.xlu1 %v9742_v49  ;;  %v22458_v43 = vpop.f32.mrb[19].mxu0  ;;  %v9751_v0 = vsel %vm5483_vm6, %v22454_v63, 0.0  ;;  %v9761_v40 = vmul.f32 %v22454_v63, %v22454_v63  ;;  %v9768_v5 = vsel %vm5483_vm6, %v9760_v9, 0.0  ;;  %v16392_v9 = vld [vmem:[%s23218_s15 + $0x78] sm:$0xff] }
0x16d8   :  { %v9745_v45 = vsel %vm5483_vm6, %v22458_v43, 0.0  ;;  %v9759_v35 = vmul.f32 %v22458_v43, %v22458_v43  ;;  %v9762_v16 = vsel %vm5483_vm6, %v9758_v1, 0.0 }
0x16d9   :  { %v9771_v42 = vsel %vm5483_vm6, %v9761_v40, 0.0  ;;  %v19713_v40 = vld [vmem:[%s23216_s13 + $0x240] sm:$0xff]  }
0x16da   :  { %9746 = vadd.xlane.f32.xlu0 %v9745_v45  ;;  %v9765_v2 = vsel %vm5483_vm6, %v9759_v35, 0.0  ;;  %v16388_v45 = vld [vmem:[%s23217_s14 + $0x78] sm:$0xff]  ;;  %18487 = vmatprep.mubr.msk.bf16.mxu0 %vm5483_vm6, %v19713_v40 }
0x16db   :  { %9752 = vadd.xlane.f32.xlu1 %v9751_v0 }
0x16de   :  { %9763 = vadd.xlane.f32.xlu0 %v9762_v16 }
0x16df   :  { %9766 = vadd.xlane.f32.xlu1 %v9765_v2  ;;  %v16391_v2 = vld [vmem:[%s23218_s15 + $0x70] sm:$0xff] }
0x16e2   :  { %9769 = vadd.xlane.f32.xlu0 %v9768_v5 }
0x16e3   :  { %9772 = vadd.xlane.f32.xlu1 %v9771_v42 }
0x16f4   :  { %9832 = vperm.xlu1 %19174, %v16389_v44  }
0x16f8   :  { %9837 = vperm.xlu0 %19175, %v16390_v27  }
0x1763   :  { %v9750_v10 = vpop.xlane.xlu0 %9749 }
0x1764   :  { %v22482_v4 = vmul.f32 0.03125, %v9750_v10  ;;  %v9744_v12 = vpop.xlane.xlu1 %9743 }
0x1765   :  { %v22484_v41 = vmul.f32 0.03125, %v9744_v12 }
0x1766   :  { %v9792_v47 = vsub.f32 %v22448_v20, %v22482_v4  ;;  %v9780_v56 = vmul.f32 %v22482_v4, %v22482_v4  ;;  %v19715_v4 = vld [vmem:[%s23216_s13 + $0x250] sm:$0xff]  }
0x1767   :  { %v9747_v6 = vpop.xlane.xlu0 %9746  ;;  %v9790_v31 = vsub.f32 %v22450_v19, %v22484_v41  ;;  %v9778_v61 = vmul.f32 %v22484_v41, %v22484_v41 }
0x1768   :  { %v9755_v33 = vmul.f32 0.03125, %v9747_v6  ;;  %v9753_v26 = vpop.xlane.xlu1 %9752 }
0x1769   :  { %v22490_v3 = vmul.f32 0.03125, %v9753_v26 }
0x176a   :  { %v9791_v38 = vsub.f32 %v22458_v43, %v9755_v33  ;;  %v9779_v60 = vmul.f32 %v9755_v33, %v9755_v33  ;;  %v16387_v43 = vld [vmem:[%s23217_s14 + $0x70] sm:$0xff] }
0x176b   :  { %v9764_v30 = vpop.xlane.xlu0 %9763  ;;  %v9793_v46 = vsub.f32 %v22454_v63, %v22490_v3  ;;  %v9781_v57 = vmul.f32 %v22490_v3, %v22490_v3  ;;  %v19714_v63 = vld [vmem:[%s23216_s13 + $0x248] sm:$0xff]   ;;  %v19719_v3 = vld [vmem:[%s23216_s13 + $0x270] sm:$0xff]  }
0x176c   :  { %v9774_v11 = vmul.f32 0.03125, %v9764_v30  ;;  %v9767_v50 = vpop.xlane.xlu1 %9766 }
0x176d   :  { %v9775_v29 = vmul.f32 0.03125, %v9767_v50 }
0x176e   :  { %v9782_v18 = vsub.f32 %v9774_v11, %v9778_v61 }
0x176f   :  { %v9783_v8 = vsub.f32 %v9775_v29, %v9779_v60  ;;  %v9770_v55 = vpop.xlane.xlu0 %9769 }
0x1770   :  { %v9786_v7 = vmax.f32 %v9782_v18, 0.0  ;;  %v9776_v54 = vmul.f32 0.03125, %v9770_v55  ;;  %v9773_v15 = vpop.xlane.xlu1 %9772  ;;  %v19723_v55 = vld [vmem:[%s23216_s13 + $0x290] sm:$0xff]  }
0x1771   :  { %v9787_v21 = vmax.f32 %v9783_v8, 0.0  ;;  %v9777_v14 = vmul.f32 0.03125, %v9773_v15  ;;  %v19722_v8 = vld [vmem:[%s23216_s13 + $0x288] sm:$0xff]   ;;  %v19727_v15 = vld [vmem:[%s23216_s13 + $0x2b0] sm:$0xff]  }
0x1772   :  { %v9794_v39 = vadd.f32 1e-05, %v9786_v7  ;;  %v9784_v37 = vsub.f32 %v9776_v54, %v9780_v56  ;;  %v19724_v56 = vld [vmem:[%s23216_s13 + $0x298] sm:$0xff]   ;;  %v19725_v7 = vld [vmem:[%s23216_s13 + $0x2a0] sm:$0xff]   ;;  %v19726_v54 = vld [vmem:[%s23216_s13 + $0x2a8] sm:$0xff]  }
0x1773   :  { %v9795_v13 = vadd.f32 1e-05, %v9787_v21  ;;  %v9785_v52 = vsub.f32 %v9777_v14, %v9781_v57  ;;  %v19728_v57 = vld [vmem:[%s23216_s13 + $0x2b8] sm:$0xff]   ;;  %v19729_v21 = vld [vmem:[%s23216_s13 + $0x2c0] sm:$0xff]   ;;  %v19730_v14 = vld [vmem:[%s23216_s13 + $0x2c8] sm:$0xff]  }
0x1774   :  { %20251 = vrsqrt.f32 %v9794_v39  ;;  %v9788_v34 = vmax.f32 %v9784_v37, 0.0  ;;  %v9833_v42 = vpop.permute.xlu1 %9832 }
0x1775   :  { %20253 = vrsqrt.f32 %v9795_v13  ;;  %v9789_v53 = vmax.f32 %v9785_v52, 0.0 }
0x1776   :  { %v9796_v24 = vadd.f32 1e-05, %v9788_v34 }
0x1777   :  { %v9797_v25 = vadd.f32 1e-05, %v9789_v53  ;;  %v9838_v5 = vpop.permute.xlu0 %9837 }
0x1778   :  { %20255 = vrsqrt.f32 %v9796_v24 }
0x1779   :  { %20257 = vrsqrt.f32 %v9797_v25 }
0x177e   :  { %v20252_v32 = vpop.eup %20251 }
0x177f   :  { %v20254_v19 = vpop.eup %20253  ;;  %v9802_v23 = vmul.f32 %v20252_v32, %v16385_v59 }
0x1780   :  { %v9803_v49 = vmul.f32 %v20254_v19, %v16386_v51 }
0x1781   :  { %9808 = vperm.xlu0 %19175, %v9802_v23   ;;  %v22621_v23 = vld [vmem:[#allocation6] sm:$0xff]  }
0x1782   :  { %v20256_v1 = vpop.eup %20255  ;;  %9813 = vperm.xlu1 %19174, %v9803_v49  }
0x1783   :  { %v20258_v0 = vpop.eup %20257  ;;  %v9804_v35 = vmul.f32 %v20256_v1, %v16387_v43  ;;  %v22624_v43 = vld [vmem:[#allocation6 + $0x8] sm:$0xff]  }
0x1784   :  { %v9805_v16 = vmul.f32 %v20258_v0, %v16388_v45 }
0x1786   :  { %9823 = vperm.xlu0 %19175, %v9805_v16   ;;  %9818 = vperm.xlu1 %19174, %v9804_v35  }
0x178a   :  { %9847 = vperm.xlu0 %19175, %v16392_v9   ;;  %9842 = vperm.xlu1 %19174, %v16391_v2   ;;  %v22628_v9 = vld [vmem:[#allocation6 + $0x20] sm:$0xff]  }
0x1800   :  { %v9809_v44 = vpop.permute.xlu0 %9808 }
0x1801   :  { %v9826_v27 = vmul.f32 %v9809_v44, %v9790_v31  ;;  %v9814_v10 = vpop.permute.xlu1 %9813 }
0x1802   :  { %v9827_v12 = vmul.f32 %v9814_v10, %v9791_v38  ;;  %v22634_v10 = vld [vmem:[#allocation6 + $0x28] sm:$0xff]  }
0x1803   :  { %v9850_v41 = vadd.f32 %v9833_v42, %v9826_v27 }
0x1804   :  { %v9851_v6 = vadd.f32 %v9838_v5, %v9827_v12 }
0x1805   :  { %v22524_v33 = vadd.f32 %v9850_v41, %v22063_v17  ;;  %v9819_v26 = vpop.permute.xlu1 %9818  ;;  %v9824_v30 = vpop.permute.xlu0 %9823  ;;  %v22638_v41 = vld [vmem:[#allocation6 + $0x30] sm:$0xff]  }
0x1806   :  { %v22527_v61 = vadd.f32 %v9851_v6, %v22067_v62  ;;  %v9828_v11 = vmul.f32 %v9819_v26, %v9792_v47  ;;  %v9829_v31 = vmul.f32 %v9824_v30, %v9793_v46  ;;  %v19718_v47 = vld [vmem:[%s23216_s13 + $0x268] sm:$0xff]   ;;  %v19721_v46 = vld [vmem:[%s23216_s13 + $0x280] sm:$0xff]  }
0x1808   :  { %v9858_v38 = vpack.c.bf16 %v22527_v61, %v22524_v33 }
0x1809   :  { %v9843_v50 = vpop.permute.xlu1 %9842  ;;  %v9848_v60 = vpop.permute.xlu0 %9847 }
0x180a   :  { %v9852_v17 = vadd.f32 %v9843_v50, %v9828_v11  ;;  %v9853_v29 = vadd.f32 %v9848_v60, %v9829_v31  ;;  %18483 = vmatprep.subr.bf16.mxu0 %v9858_v38  ;;  %v22644_v50 = vld [vmem:[#allocation6 + $0x38] sm:$0xff]  }
0x180b   :  { %18484 = vmatpush3.bf16.msra.mxu0 %v9858_v38 }
0x180c   :  { %v22538_v62 = vadd.f32 %v9852_v17, %v22079_v36  ;;  %v22541_v18 = vadd.f32 %v9853_v29, %v22083_v58  ;;  %v19716_v36 = vld [vmem:[%s23216_s13 + $0x258] sm:$0xff]   ;;  %v19717_v58 = vld [vmem:[%s23216_s13 + $0x260] sm:$0xff]  }
0x180e   :  { %v9859_v20 = vpack.c.bf16 %v22541_v18, %v22538_v62 }
0x1810   :  { %18485 = vmatprep.subr.bf16.mxu0 %v9859_v20 }
0x1811   :  { %18486 = vmatpush3.bf16.msra.mxu0 %v9859_v20 }
0x1812   :  { %18523 = vmatprep.subr.bf16.mxu0 %v22328_v48 }
0x1814   :  { %18488 = vmatmul.mubr.msk.bf16.vlgmr.msra.gmra.mrb[20].mxu0 %vm5483_vm6, %v19714_v63 }
0x1815   :  { %18491 = vmatprep.mubr.msk.bf16.mxu0 %vm5483_vm6, %v19715_v4  ;;  %18524 = vmatpush3.bf16.msra.mxu0 %v22328_v48  ;;  %v22648_v4 = vld [vmem:[#allocation6 + $0x40] sm:$0xff]  }
0x1816   :  { %18525 = vmatprep.subr.bf16.mxu0 %v22334_v22 }
0x1819   :  { %18526 = vmatpush3.bf16.msra.mxu0 %v22334_v22 }
0x181a   :  { %18531 = vmatprep.subr.bf16.mxu0 %v22163_v28  ;;  %v19720_v28 = vld [vmem:[%s23216_s13 + $0x278] sm:$0xff]  }
0x181c   :  { %18492 = vmatmul.mubr.msk.bf16.gmra.mrb[24].mxu0 %vm5483_vm6, %v19716_v36 }
0x181d   :  { %18495 = vmatprep.mubr.msk.bf16.mxu0 %vm5483_vm6, %v19717_v58 }
0x1824   :  { %18496 = vmatmul.mubr.msk.bf16.gmra.mrb[28].mxu0 %vm5483_vm6, %v19718_v47 }
0x1825   :  { %18499 = vmatprep.mubr.msk.bf16.mxu0 %vm5483_vm6, %v19719_v3 }
0x182c   :  { %18500 = vmatmul.mubr.msk.bf16.gmra.mrb[32].mxu0 %vm5483_vm6, %v19720_v28 }
0x182d   :  { %18503 = vmatprep.mubr.msk.bf16.mxu0 %vm5483_vm6, %v19721_v46 }
0x1834   :  { %18504 = vmatmul.mubr.msk.bf16.gmra.mrb[36].mxu0 %vm5483_vm6, %v19722_v8  ;;  %v22654_v8 = vld [vmem:[#allocation6 + $0x48] sm:$0xff]  }
0x1835   :  { %18507 = vmatprep.mubr.msk.bf16.mxu0 %vm5483_vm6, %v19723_v55 }
0x183c   :  { %18508 = vmatmul.mubr.msk.bf16.gmra.mrb[40].mxu0 %vm5483_vm6, %v19724_v56  ;;  %v22658_v56 = vld [vmem:[#allocation6 + $0x50] sm:$0xff]  }
0x183d   :  { %18511 = vmatprep.mubr.msk.bf16.mxu0 %vm5483_vm6, %v19725_v7 }
0x1844   :  { %18512 = vmatmul.mubr.msk.bf16.gmra.mrb[44].mxu0 %vm5483_vm6, %v19726_v54 }
0x1845   :  { %18515 = vmatprep.mubr.msk.bf16.mxu0 %vm5483_vm6, %v19727_v15 }
0x184c   :  { %18516 = vmatmul.mubr.msk.bf16.gmra.mrb[48].mxu0 %vm5483_vm6, %v19728_v57 }
0x184d   :  { %18519 = vmatprep.mubr.msk.bf16.mxu0 %vm5483_vm6, %v19729_v21 }
0x1854   :  { %18520 = vmatmul.mubr.msk.bf16.gmra.mrb[52].mxu0 %vm5483_vm6, %v19730_v14 }
0x18e7   :  { %v18489_v39 = vpop.f32.mrb[20].mxu0 }
0x18e8   :  { %v10075_v37 = vpop.f32.mrb[21].mxu0 }
0x18e9   :  { %v18490_v13 = vpop.f32.mrb[22].mxu0 }
0x18ea   :  { %v10219_v52 = vpack.c.bf16 %v18490_v13, %v18489_v39  ;;  %v10078_v34 = vpop.f32.mrb[23].mxu0  ;;  %v22664_v39 = vld [vmem:[#allocation6 + $0x58] sm:$0xff]  }
0x18eb   :  { %v10218_v53 = vpack.c.bf16 %v10078_v34, %v10075_v37 }
0x18ef   :  { %v18493_v24 = vpop.f32.mrb[24].mxu0 }
0x18f0   :  { %v10091_v25 = vpop.f32.mrb[25].mxu0 }
0x18f1   :  { %v18494_v59 = vpop.f32.mrb[26].mxu0 }
0x18f2   :  { %v10221_v51 = vpack.c.bf16 %v18494_v59, %v18493_v24  ;;  %v10094_v32 = vpop.f32.mrb[27].mxu0  ;;  %v22668_v24 = vld [vmem:[#allocation6 + $0x60] sm:$0xff]   ;;  %v22678_v59 = vld [vmem:[#allocation6 + $0x70] sm:$0xff]  }
0x18f3   :  { %v10220_v19 = vpack.c.bf16 %v10094_v32, %v10091_v25  ;;  %v22674_v25 = vld [vmem:[#allocation6 + $0x68] sm:$0xff]   ;;  %v22688_v32 = vld [vmem:[#allocation6 + $0x80] sm:$0xff]  }
0x18f5   :  { %18527 = vmatprep.mubr.msk.bf16.mxu0 %vm5483_vm6, %v10220_v19  ;;  %v22694_v19 = vld [vmem:[#allocation6 + $0x88] sm:$0xff]  }
0x18f6   :  { %18528 = vmatmul.mubr.msk.bf16.vlgmr.msra.gmra.mrb[56].mxu0 %vm5483_vm6, %v10221_v51  ;;  %v22684_v51 = vld [vmem:[#allocation6 + $0x78] sm:$0xff]  }
0x18f7   :  { %18535 = vmatprep.mubr.msk.bf16.mxu0 %vm5483_vm6, %v10218_v53  ;;  %18532 = vmatpush3.bf16.msra.mxu0 %v22621_v23  ;;  %v18497_v49 = vpop.f32.mrb[28].mxu0 }
0x18f8   :  { %18533 = vmatprep.subr.bf16.mxu0 %v22624_v43  ;;  %v10107_v45 = vpop.f32.mrb[29].mxu0 }
0x18f9   :  { %v18498_v1 = vpop.f32.mrb[30].mxu0 }
0x18fa   :  { %v10333_v0 = vpack.c.bf16 %v18498_v1, %v18497_v49  ;;  %v10110_v35 = vpop.f32.mrb[31].mxu0 }
0x18fb   :  { %18534 = vmatpush3.bf16.msra.mxu0 %v22624_v43  ;;  %v10332_v16 = vpack.c.bf16 %v10110_v35, %v10107_v45 }
0x18fc   :  { %18539 = vmatprep.subr.bf16.mxu0 %v22628_v9 }
0x18ff   :  { %v18501_v2 = vpop.f32.mrb[32].mxu0 }
0x1900   :  { %v10123_v40 = vpop.f32.mrb[33].mxu0 }
0x1901   :  { %v18502_v5 = vpop.f32.mrb[34].mxu0 }
0x1902   :  { %18536 = vmatmul.mubr.msk.bf16.vlgmr.msra.gmra.mrb[56].mxu0 %vm5483_vm6, %v10219_v52  ;;  %v10394_v42 = vpack.c.bf16 %v18502_v5, %v18501_v2  ;;  %v10126_v44 = vpop.f32.mrb[35].mxu0 }
0x1903   :  { %18540 = vmatpush3.bf16.msra.mxu0 %v22628_v9  ;;  %18543 = vmatprep.mubr.msk.bf16.mxu0 %vm5483_vm6, %v10332_v16  ;;  %v10393_v27 = vpack.c.bf16 %v10126_v44, %v10123_v40 }
0x1904   :  { %18541 = vmatprep.subr.bf16.mxu0 %v22634_v10 }
0x1907   :  { %18542 = vmatpush3.bf16.msra.mxu0 %v22634_v10  ;;  %v18505_v12 = vpop.f32.mrb[36].mxu0 }
0x1908   :  { %18547 = vmatprep.subr.bf16.mxu0 %v22638_v41  ;;  %v10139_v6 = vpop.f32.mrb[37].mxu0 }
0x1909   :  { %v18506_v26 = vpop.f32.mrb[38].mxu0 }
0x190a   :  { %v10455_v30 = vpack.c.bf16 %v18506_v26, %v18505_v12  ;;  %v10142_v11 = vpop.f32.mrb[39].mxu0  ;;  %v16487_v26 = vld [vmem:[%s23218_s15 + $0x80] sm:$0xff] }
0x190b   :  { %v10454_v31 = vpack.c.bf16 %v10142_v11, %v10139_v6 }
0x190e   :  { %18544 = vmatmul.mubr.msk.bf16.vlgmr.msra.gmra.mrb[56].mxu0 %vm5483_vm6, %v10333_v0 }
0x190f   :  { %18548 = vmatpush3.bf16.msra.mxu0 %v22638_v41  ;;  %18551 = vmatprep.mubr.msk.bf16.mxu0 %vm5483_vm6, %v10393_v27  ;;  %v18509_v38 = vpop.f32.mrb[40].mxu0 }
0x1910   :  { %18549 = vmatprep.subr.bf16.mxu0 %v22644_v50  ;;  %v10155_v60 = vpop.f32.mrb[41].mxu0 }
0x1911   :  { %v18510_v17 = vpop.f32.mrb[42].mxu0 }
0x1912   :  { %v10516_v29 = vpack.c.bf16 %v18510_v17, %v18509_v38  ;;  %v10158_v20 = vpop.f32.mrb[43].mxu0 }
0x1913   :  { %18550 = vmatpush3.bf16.msra.mxu0 %v22644_v50  ;;  %v10515_v63 = vpack.c.bf16 %v10158_v20, %v10155_v60 }
0x1914   :  { %18555 = vmatprep.subr.bf16.mxu0 %v22648_v4 }
0x1917   :  { %v18513_v36 = vpop.f32.mrb[44].mxu0 }
0x1918   :  { %v10171_v58 = vpop.f32.mrb[45].mxu0 }
0x1919   :  { %v18514_v47 = vpop.f32.mrb[46].mxu0 }
0x191a   :  { %18552 = vmatmul.mubr.msk.bf16.vlgmr.msra.gmra.mrb[56].mxu0 %vm5483_vm6, %v10394_v42  ;;  %v10577_v3 = vpack.c.bf16 %v18514_v47, %v18513_v36  ;;  %v10174_v28 = vpop.f32.mrb[47].mxu0 }
0x191b   :  { %18556 = vmatpush3.bf16.msra.mxu0 %v22648_v4  ;;  %18559 = vmatprep.mubr.msk.bf16.mxu0 %vm5483_vm6, %v10454_v31  ;;  %v10576_v46 = vpack.c.bf16 %v10174_v28, %v10171_v58 }
0x191c   :  { %18557 = vmatprep.subr.bf16.mxu0 %v22654_v8 }
0x191f   :  { %18558 = vmatpush3.bf16.msra.mxu0 %v22654_v8  ;;  %v18517_v55 = vpop.f32.mrb[48].mxu0 }
0x1920   :  { %18563 = vmatprep.subr.bf16.mxu0 %v22658_v56  ;;  %v10187_v7 = vpop.f32.mrb[49].mxu0 }
0x1921   :  { %v18518_v54 = vpop.f32.mrb[50].mxu0 }
0x1922   :  { %v10638_v15 = vpack.c.bf16 %v18518_v54, %v18517_v55  ;;  %v10190_v57 = vpop.f32.mrb[51].mxu0 }
0x1923   :  { %v10637_v21 = vpack.c.bf16 %v10190_v57, %v10187_v7 }
0x1926   :  { %18560 = vmatmul.mubr.msk.bf16.vlgmr.msra.gmra.mrb[56].mxu0 %vm5483_vm6, %v10455_v30  ;;  %v16488_v30 = vld [vmem:[%s23218_s15 + $0x88] sm:$0xff] }
0x1927   :  { %18564 = vmatpush3.bf16.msra.mxu0 %v22658_v56  ;;  %18567 = vmatprep.mubr.msk.bf16.mxu0 %vm5483_vm6, %v10515_v63  ;;  %v18521_v14 = vpop.f32.mrb[52].mxu0 }
0x1928   :  { %18565 = vmatprep.subr.bf16.mxu0 %v22664_v39  ;;  %v10203_v37 = vpop.f32.mrb[53].mxu0 }
0x1929   :  { %v18522_v13 = vpop.f32.mrb[54].mxu0 }
0x192a   :  { %v10699_v52 = vpack.c.bf16 %v18522_v13, %v18521_v14  ;;  %v10206_v34 = vpop.f32.mrb[55].mxu0 }
0x192b   :  { %18566 = vmatpush3.bf16.msra.mxu0 %v22664_v39  ;;  %v10698_v53 = vpack.c.bf16 %v10206_v34, %v10203_v37 }
0x192c   :  { %18571 = vmatprep.subr.bf16.mxu0 %v22668_v24 }
0x1932   :  { %18568 = vmatmul.mubr.msk.bf16.vlgmr.msra.gmra.mrb[56].mxu0 %vm5483_vm6, %v10516_v29 }
0x1933   :  { %18572 = vmatpush3.bf16.msra.mxu0 %v22668_v24  ;;  %18575 = vmatprep.mubr.msk.bf16.mxu0 %vm5483_vm6, %v10576_v46 }
0x1934   :  { %18573 = vmatprep.subr.bf16.mxu0 %v22674_v25 }
0x1937   :  { %18574 = vmatpush3.bf16.msra.mxu0 %v22674_v25 }
0x1938   :  { %18579 = vmatprep.subr.bf16.mxu0 %v22678_v59 }
0x193e   :  { %18576 = vmatmul.mubr.msk.bf16.vlgmr.msra.gmra.mrb[56].mxu0 %vm5483_vm6, %v10577_v3 }
0x193f   :  { %18580 = vmatpush3.bf16.msra.mxu0 %v22678_v59  ;;  %18583 = vmatprep.mubr.msk.bf16.mxu0 %vm5483_vm6, %v10637_v21 }
0x1940   :  { %18581 = vmatprep.subr.bf16.mxu0 %v22684_v51 }
0x1943   :  { %18582 = vmatpush3.bf16.msra.mxu0 %v22684_v51 }
0x1944   :  { %18587 = vmatprep.subr.bf16.mxu0 %v22688_v32 }
0x194a   :  { %18584 = vmatmul.mubr.msk.bf16.vlgmr.msra.gmra.mrb[56].mxu0 %vm5483_vm6, %v10638_v15 }
0x194b   :  { %18588 = vmatpush3.bf16.msra.mxu0 %v22688_v32  ;;  %18591 = vmatprep.mubr.msk.bf16.mxu0 %vm5483_vm6, %v10698_v53 }
0x194c   :  { %18589 = vmatprep.subr.bf16.mxu0 %v22694_v19 }
0x194f   :  { %18590 = vmatpush3.bf16.msra.mxu0 %v22694_v19 }
0x1950   :  { %18635 = vmatprep.subr.bf16.mxu0 %v22328_v48 }
0x1956   :  { %18592 = vmatmul.mubr.msk.bf16.vlgmr.msra.gmra.mrb[56].mxu0 %vm5483_vm6, %v10699_v52 }
0x1957   :  { %18636 = vmatpush3.bf16.msra.mxu0 %v22328_v48 }
0x1958   :  { %18637 = vmatprep.subr.bf16.mxu0 %v22334_v22 }
0x195b   :  { %18638 = vmatpush3.bf16.msra.mxu0 %v22334_v22 }
0x195c   :  { %18643 = vmatprep.subr.bf16.mxu0 %v22621_v23 }
0x1a29   :  { %v22704_v49 = vpop.f32.mrb[56].mxu0 }
0x1a2a   :  { %v22706_v45 = vpop.f32.mrb[57].mxu0  ;;  %v10775_v1 = vsel %vm5483_vm6, %v22704_v49, 0.0  ;;  %v10787_v5 = vmul.f32 %v22704_v49, %v22704_v49 }
0x1a2b   :  { %10776 = vadd.xlane.f32.xlu0 %v10775_v1  ;;  %v22710_v0 = vpop.f32.mrb[58].mxu0  ;;  %v10769_v35 = vsel %vm5483_vm6, %v22706_v45, 0.0  ;;  %v10785_v16 = vmul.f32 %v22706_v45, %v22706_v45 }
0x1a2c   :  { %10770 = vadd.xlane.f32.xlu1 %v10769_v35  ;;  %v22714_v48 = vpop.f32.mrb[59].mxu0  ;;  %v10778_v2 = vsel %vm5483_vm6, %v22710_v0, 0.0  ;;  %v10788_v27 = vmul.f32 %v22710_v0, %v22710_v0  ;;  %v10795_v12 = vsel %vm5483_vm6, %v10787_v5, 0.0 }
0x1a2d   :  { %v10772_v22 = vsel %vm5483_vm6, %v22714_v48, 0.0  ;;  %v10786_v40 = vmul.f32 %v22714_v48, %v22714_v48  ;;  %v10789_v42 = vsel %vm5483_vm6, %v10785_v16, 0.0 }
0x1a2e   :  { %v10798_v6 = vsel %vm5483_vm6, %v10788_v27, 0.0  ;;  %v16484_v27 = vld [vmem:[%s23217_s14 + $0x88] sm:$0xff] }
0x1a2f   :  { %10773 = vadd.xlane.f32.xlu0 %v10772_v22  ;;  %v10792_v44 = vsel %vm5483_vm6, %v10786_v40, 0.0 }
0x1a30   :  { %10779 = vadd.xlane.f32.xlu1 %v10778_v2 }
0x1a33   :  { %10790 = vadd.xlane.f32.xlu0 %v10789_v42 }
0x1a34   :  { %10793 = vadd.xlane.f32.xlu1 %v10792_v44  ;;  %v16483_v44 = vld [vmem:[%s23217_s14 + $0x80] sm:$0xff] }
0x1a37   :  { %10796 = vadd.xlane.f32.xlu0 %v10795_v12 }
0x1a38   :  { %10799 = vadd.xlane.f32.xlu1 %v10798_v6 }
0x1a49   :  { %10859 = vperm.xlu1 %19174, %v16487_v26  }
0x1a4d   :  { %10864 = vperm.xlu0 %19175, %v16488_v30  }
0x1ab8   :  { %v10777_v11 = vpop.xlane.xlu0 %10776 }
0x1ab9   :  { %v22738_v31 = vmul.f32 0.03125, %v10777_v11  ;;  %v10771_v38 = vpop.xlane.xlu1 %10770  ;;  %v16485_v11 = vld [vmem:[%s23217_s14 + $0x90] sm:$0xff] }
0x1aba   :  { %v22740_v60 = vmul.f32 0.03125, %v10771_v38  ;;  %v16486_v38 = vld [vmem:[%s23217_s14 + $0x98] sm:$0xff] }
0x1abb   :  { %v10819_v17 = vsub.f32 %v22704_v49, %v22738_v31  ;;  %v10807_v37 = vmul.f32 %v22738_v31, %v22738_v31  ;;  %v19732_v49 = vld [vmem:[%s23216_s13 + $0x2d8] sm:$0xff]   ;;  %v19734_v31 = vld [vmem:[%s23216_s13 + $0x2e8] sm:$0xff]  }
0x1abc   :  { %v10774_v29 = vpop.xlane.xlu0 %10773  ;;  %v10817_v20 = vsub.f32 %v22706_v45, %v22740_v60  ;;  %v10805_v46 = vmul.f32 %v22740_v60, %v22740_v60 }
0x1abd   :  { %v10782_v63 = vmul.f32 0.03125, %v10774_v29  ;;  %v10780_v36 = vpop.xlane.xlu1 %10779 }
0x1abe   :  { %v22746_v58 = vmul.f32 0.03125, %v10780_v36 }
0x1abf   :  { %v10818_v47 = vsub.f32 %v22714_v48, %v10782_v63  ;;  %v10806_v54 = vmul.f32 %v10782_v63, %v10782_v63 }
0x1ac0   :  { %v10791_v3 = vpop.xlane.xlu0 %10790  ;;  %v10820_v28 = vsub.f32 %v22710_v0, %v22746_v58  ;;  %v10808_v53 = vmul.f32 %v22746_v58, %v22746_v58  ;;  %v19733_v0 = vld [vmem:[%s23216_s13 + $0x2e0] sm:$0xff]   ;;  %v19736_v58 = vld [vmem:[%s23216_s13 + $0x2f8] sm:$0xff]  }
0x1ac1   :  { %v10801_v55 = vmul.f32 0.03125, %v10791_v3  ;;  %v10794_v7 = vpop.xlane.xlu1 %10793  ;;  %v16490_v3 = vld [vmem:[%s23218_s15 + $0x98] sm:$0xff] }
0x1ac2   :  { %v10802_v15 = vmul.f32 0.03125, %v10794_v7 }
0x1ac3   :  { %v10809_v57 = vsub.f32 %v10801_v55, %v10805_v46  ;;  %v16489_v46 = vld [vmem:[%s23218_s15 + $0x90] sm:$0xff] }
0x1ac4   :  { %v10810_v21 = vsub.f32 %v10802_v15, %v10806_v54  ;;  %v10797_v14 = vpop.xlane.xlu0 %10796  ;;  %v19731_v55 = vld [vmem:[%s23216_s13 + $0x2d0] sm:$0xff]  }
0x1ac5   :  { %v10813_v13 = vmax.f32 %v10809_v57, 0.0  ;;  %v10803_v52 = vmul.f32 0.03125, %v10797_v14  ;;  %v10800_v34 = vpop.xlane.xlu1 %10799  ;;  %18599 = vmatprep.mubr.msk.bf16.mxu1 %vm5483_vm6, %v19731_v55 }
0x1ac6   :  { %v10814_v45 = vmax.f32 %v10810_v21, 0.0  ;;  %v10804_v1 = vmul.f32 0.03125, %v10800_v34 }
0x1ac7   :  { %v10821_v35 = vadd.f32 1e-05, %v10813_v13  ;;  %v10811_v48 = vsub.f32 %v10803_v52, %v10807_v37 }
0x1ac8   :  { %v10822_v22 = vadd.f32 1e-05, %v10814_v45  ;;  %v10812_v16 = vsub.f32 %v10804_v1, %v10808_v53 }
0x1ac9   :  { %20259 = vrsqrt.f32 %v10821_v35  ;;  %v10815_v2 = vmax.f32 %v10811_v48, 0.0  ;;  %v10860_v54 = vpop.permute.xlu1 %10859 }
0x1aca   :  { %20261 = vrsqrt.f32 %v10822_v22  ;;  %v10816_v40 = vmax.f32 %v10812_v16, 0.0 }
0x1acb   :  { %v10823_v5 = vadd.f32 1e-05, %v10815_v2 }
0x1acc   :  { %v10824_v42 = vadd.f32 1e-05, %v10816_v40  ;;  %v10865_v7 = vpop.permute.xlu0 %10864 }
0x1acd   :  { %20263 = vrsqrt.f32 %v10823_v5 }
0x1ace   :  { %20265 = vrsqrt.f32 %v10824_v42  ;;  %v19738_v42 = vld [vmem:[%s23216_s13 + $0x308] sm:$0xff]  }
0x1ad3   :  { %v20260_v12 = vpop.eup %20259 }
0x1ad4   :  { %v20262_v6 = vpop.eup %20261  ;;  %v10829_v26 = vmul.f32 %v20260_v12, %v16483_v44  ;;  %v19739_v44 = vld [vmem:[%s23216_s13 + $0x310] sm:$0xff]   ;;  %v19741_v12 = vld [vmem:[%s23216_s13 + $0x320] sm:$0xff]  }
0x1ad5   :  { %v10830_v30 = vmul.f32 %v20262_v6, %v16484_v27  ;;  %v19740_v27 = vld [vmem:[%s23216_s13 + $0x318] sm:$0xff]   ;;  %v19742_v6 = vld [vmem:[%s23216_s13 + $0x328] sm:$0xff]  }
0x1ad6   :  { %10835 = vperm.xlu0 %19175, %v10829_v26   ;;  %v19743_v26 = vld [vmem:[%s23216_s13 + $0x330] sm:$0xff]  }
0x1ad7   :  { %v20264_v60 = vpop.eup %20263  ;;  %10840 = vperm.xlu1 %19174, %v10830_v30   ;;  %v19744_v30 = vld [vmem:[%s23216_s13 + $0x338] sm:$0xff]  }
0x1ad8   :  { %v20266_v29 = vpop.eup %20265  ;;  %v10831_v63 = vmul.f32 %v20264_v60, %v16485_v11  ;;  %v19745_v11 = vld [vmem:[%s23216_s13 + $0x340] sm:$0xff]   ;;  %v19747_v60 = vld [vmem:[%s23216_s13 + $0x350] sm:$0xff]  }
0x1ad9   :  { %v10832_v36 = vmul.f32 %v20266_v29, %v16486_v38  ;;  %v19746_v38 = vld [vmem:[%s23216_s13 + $0x348] sm:$0xff]   ;;  %v19748_v29 = vld [vmem:[%s23216_s13 + $0x358] sm:$0xff]  }
0x1adb   :  { %10850 = vperm.xlu0 %19175, %v10832_v36   ;;  %10845 = vperm.xlu1 %19174, %v10831_v63  }
0x1adf   :  { %10874 = vperm.xlu0 %19175, %v16490_v3   ;;  %10869 = vperm.xlu1 %19174, %v16489_v46  }
0x1b55   :  { %v10836_v15 = vpop.permute.xlu0 %10835 }
0x1b56   :  { %v10853_v57 = vmul.f32 %v10836_v15, %v10817_v20  ;;  %v10841_v21 = vpop.permute.xlu1 %10840 }
0x1b57   :  { %v10854_v14 = vmul.f32 %v10841_v21, %v10818_v47 }
0x1b58   :  { %v10877_v37 = vadd.f32 %v10860_v54, %v10853_v57 }
0x1b59   :  { %v10878_v13 = vadd.f32 %v10865_v7, %v10854_v14 }
0x1b5a   :  { %v10881_v52 = vmax.f32 %v10877_v37, 0.0  ;;  %v10846_v34 = vpop.permute.xlu1 %10845  ;;  %v10851_v53 = vpop.permute.xlu0 %10850 }
0x1b5b   :  { %v10882_v45 = vmax.f32 %v10878_v13, 0.0  ;;  %v10855_v1 = vmul.f32 %v10846_v34, %v10819_v17  ;;  %v10856_v35 = vmul.f32 %v10851_v53, %v10820_v28  ;;  %v19735_v17 = vld [vmem:[%s23216_s13 + $0x2f0] sm:$0xff]   ;;  %v19737_v28 = vld [vmem:[%s23216_s13 + $0x300] sm:$0xff]   ;;  %s23275_s13 = sld [smem:[#allocation22_spill]] }
0x1b5d   :  { %v10885_v48 = vpack.c.bf16 %v10882_v45, %v10881_v52 }
0x1b5e   :  { %v10870_v22 = vpop.permute.xlu1 %10869  ;;  %v10875_v16 = vpop.permute.xlu0 %10874 }
0x1b5f   :  { %v10879_v20 = vadd.f32 %v10870_v22, %v10855_v1  ;;  %v10880_v2 = vadd.f32 %v10875_v16, %v10856_v35  ;;  %18595 = vmatprep.subr.bf16.mxu1 %v10885_v48 }
0x1b60   :  { %18596 = vmatpush3.bf16.msra.mxu1 %v10885_v48 }
0x1b61   :  { %v10883_v47 = vmax.f32 %v10879_v20, 0.0  ;;  %v10884_v40 = vmax.f32 %v10880_v2, 0.0 }
0x1b63   :  { %v10886_v5 = vpack.c.bf16 %v10884_v40, %v10883_v47 }
0x1b65   :  { %18597 = vmatprep.subr.bf16.mxu1 %v10886_v5 }
0x1b66   :  { %18598 = vmatpush3.bf16.msra.mxu1 %v10886_v5 }
0x1b69   :  { %18600 = vmatmul.mubr.msk.bf16.vlgmr.msra.gmra.mrb[76].mxu1 %vm5483_vm6, %v19732_v49 }
0x1b6a   :  { %18603 = vmatprep.mubr.msk.bf16.mxu1 %vm5483_vm6, %v19733_v0 }
0x1b71   :  { %18604 = vmatmul.mubr.msk.bf16.gmra.mrb[80].mxu1 %vm5483_vm6, %v19734_v31 }
0x1b72   :  { %18607 = vmatprep.mubr.msk.bf16.mxu1 %vm5483_vm6, %v19735_v17 }
0x1b79   :  { %18608 = vmatmul.mubr.msk.bf16.gmra.mrb[84].mxu1 %vm5483_vm6, %v19736_v58 }
0x1b7a   :  { %18611 = vmatprep.mubr.msk.bf16.mxu1 %vm5483_vm6, %v19737_v28 }
0x1b81   :  { %18612 = vmatmul.mubr.msk.bf16.gmra.mrb[88].mxu1 %vm5483_vm6, %v19738_v42 }
0x1b82   :  { %18615 = vmatprep.mubr.msk.bf16.mxu1 %vm5483_vm6, %v19739_v44 }
0x1b89   :  { %18616 = vmatmul.mubr.msk.bf16.gmra.mrb[92].mxu1 %vm5483_vm6, %v19740_v27 }
0x1b8a   :  { %18619 = vmatprep.mubr.msk.bf16.mxu1 %vm5483_vm6, %v19741_v12 }
0x1b91   :  { %18620 = vmatmul.mubr.msk.bf16.gmra.mrb[96].mxu1 %vm5483_vm6, %v19742_v6 }
0x1b92   :  { %18623 = vmatprep.mubr.msk.bf16.mxu1 %vm5483_vm6, %v19743_v26 }
0x1b99   :  { %18624 = vmatmul.mubr.msk.bf16.gmra.mrb[100].mxu1 %vm5483_vm6, %v19744_v30 }
0x1b9a   :  { %18627 = vmatprep.mubr.msk.bf16.mxu1 %vm5483_vm6, %v19745_v11 }
0x1ba1   :  { %18628 = vmatmul.mubr.msk.bf16.gmra.mrb[104].mxu1 %vm5483_vm6, %v19746_v38 }
0x1ba2   :  { %18631 = vmatprep.mubr.msk.bf16.mxu1 %vm5483_vm6, %v19747_v60 }
0x1ba9   :  { %18632 = vmatmul.mubr.msk.bf16.gmra.mrb[108].mxu1 %vm5483_vm6, %v19748_v29 }
0x1c3c   :  { %v18601_v63 = vpop.f32.mrb[76].mxu1 }
0x1c3d   :  { %v11102_v36 = vpop.f32.mrb[77].mxu1 }
0x1c3e   :  { %v18602_v3 = vpop.f32.mrb[78].mxu1 }
0x1c3f   :  { %v11246_v46 = vpack.c.bf16 %v18602_v3, %v18601_v63  ;;  %v11105_v55 = vpop.f32.mrb[79].mxu1 }
0x1c40   :  { %v11245_v7 = vpack.c.bf16 %v11105_v55, %v11102_v36 }
0x1c44   :  { %v18605_v54 = vpop.f32.mrb[80].mxu1 }
0x1c45   :  { %v11118_v15 = vpop.f32.mrb[81].mxu1 }
0x1c46   :  { %v18606_v57 = vpop.f32.mrb[82].mxu1 }
0x1c47   :  { %v11248_v21 = vpack.c.bf16 %v18606_v57, %v18605_v54  ;;  %v11121_v14 = vpop.f32.mrb[83].mxu1 }
0x1c48   :  { %v11247_v37 = vpack.c.bf16 %v11121_v14, %v11118_v15  ;;  %v16585_v14 = vld [vmem:[%s23218_s15 + $0xa0] sm:$0xff] }
0x1c4a   :  { %18639 = vmatprep.mubr.msk.bf16.mxu0 %vm5483_vm6, %v11247_v37  ;;  %v16586_v37 = vld [vmem:[%s23218_s15 + $0xa8] sm:$0xff] }
0x1c4b   :  { %18640 = vmatmul.mubr.msk.bf16.vlgmr.msra.gmra.mrb[60].mxu0 %vm5483_vm6, %v11248_v21 }
0x1c4c   :  { %18647 = vmatprep.mubr.msk.bf16.mxu0 %vm5483_vm6, %v11245_v7  ;;  %18644 = vmatpush3.bf16.msra.mxu0 %v22621_v23  ;;  %v18609_v13 = vpop.f32.mrb[84].mxu1 }
0x1c4d   :  { %18645 = vmatprep.subr.bf16.mxu0 %v22624_v43  ;;  %v11134_v52 = vpop.f32.mrb[85].mxu1 }
0x1c4e   :  { %v18610_v34 = vpop.f32.mrb[86].mxu1 }
0x1c4f   :  { %v11360_v53 = vpack.c.bf16 %v18610_v34, %v18609_v13  ;;  %v11137_v45 = vpop.f32.mrb[87].mxu1 }
0x1c50   :  { %18646 = vmatpush3.bf16.msra.mxu0 %v22624_v43  ;;  %v11359_v1 = vpack.c.bf16 %v11137_v45, %v11134_v52 }
0x1c51   :  { %18651 = vmatprep.subr.bf16.mxu0 %v22628_v9 }
0x1c54   :  { %v18613_v35 = vpop.f32.mrb[88].mxu1 }
0x1c55   :  { %v11150_v48 = vpop.f32.mrb[89].mxu1 }
0x1c56   :  { %v18614_v22 = vpop.f32.mrb[90].mxu1 }
0x1c57   :  { %18648 = vmatmul.mubr.msk.bf16.vlgmr.msra.gmra.mrb[60].mxu0 %vm5483_vm6, %v11246_v46  ;;  %v11421_v16 = vpack.c.bf16 %v18614_v22, %v18613_v35  ;;  %v11153_v20 = vpop.f32.mrb[91].mxu1 }
0x1c58   :  { %18652 = vmatpush3.bf16.msra.mxu0 %v22628_v9  ;;  %18655 = vmatprep.mubr.msk.bf16.mxu0 %vm5483_vm6, %v11359_v1  ;;  %v11420_v23 = vpack.c.bf16 %v11153_v20, %v11150_v48 }
0x1c59   :  { %18653 = vmatprep.subr.bf16.mxu0 %v22634_v10 }
0x1c5c   :  { %18654 = vmatpush3.bf16.msra.mxu0 %v22634_v10  ;;  %v18617_v43 = vpop.f32.mrb[92].mxu1 }
0x1c5d   :  { %18659 = vmatprep.subr.bf16.mxu0 %v22638_v41  ;;  %v11166_v2 = vpop.f32.mrb[93].mxu1 }
0x1c5e   :  { %v18618_v47 = vpop.f32.mrb[94].mxu1 }
0x1c5f   :  { %v11482_v40 = vpack.c.bf16 %v18618_v47, %v18617_v43  ;;  %v11169_v5 = vpop.f32.mrb[95].mxu1 }
0x1c60   :  { %v11481_v49 = vpack.c.bf16 %v11169_v5, %v11166_v2 }
0x1c63   :  { %18656 = vmatmul.mubr.msk.bf16.vlgmr.msra.gmra.mrb[60].mxu0 %vm5483_vm6, %v11360_v53 }
0x1c64   :  { %18660 = vmatpush3.bf16.msra.mxu0 %v22638_v41  ;;  %18663 = vmatprep.mubr.msk.bf16.mxu0 %vm5483_vm6, %v11420_v23  ;;  %v18621_v9 = vpop.f32.mrb[96].mxu1 }
0x1c65   :  { %18661 = vmatprep.subr.bf16.mxu0 %v22644_v50  ;;  %v11182_v0 = vpop.f32.mrb[97].mxu1 }
0x1c66   :  { %v18622_v31 = vpop.f32.mrb[98].mxu1 }
0x1c67   :  { %v11543_v10 = vpack.c.bf16 %v18622_v31, %v18621_v9  ;;  %v11185_v17 = vpop.f32.mrb[99].mxu1 }
0x1c68   :  { %18662 = vmatpush3.bf16.msra.mxu0 %v22644_v50  ;;  %v11542_v58 = vpack.c.bf16 %v11185_v17, %v11182_v0 }
0x1c69   :  { %18667 = vmatprep.subr.bf16.mxu0 %v22648_v4 }
0x1c6c   :  { %v18625_v28 = vpop.f32.mrb[100].mxu1 }
0x1c6d   :  { %v11198_v42 = vpop.f32.mrb[101].mxu1 }
0x1c6e   :  { %v18626_v44 = vpop.f32.mrb[102].mxu1 }
0x1c6f   :  { %18664 = vmatmul.mubr.msk.bf16.vlgmr.msra.gmra.mrb[60].mxu0 %vm5483_vm6, %v11421_v16  ;;  %v11604_v41 = vpack.c.bf16 %v18626_v44, %v18625_v28  ;;  %v11201_v27 = vpop.f32.mrb[103].mxu1 }
0x1c70   :  { %18668 = vmatpush3.bf16.msra.mxu0 %v22648_v4  ;;  %18671 = vmatprep.mubr.msk.bf16.mxu0 %vm5483_vm6, %v11481_v49  ;;  %v11603_v12 = vpack.c.bf16 %v11201_v27, %v11198_v42 }
0x1c71   :  { %18669 = vmatprep.subr.bf16.mxu0 %v22654_v8 }
0x1c74   :  { %18670 = vmatpush3.bf16.msra.mxu0 %v22654_v8  ;;  %v18629_v50 = vpop.f32.mrb[104].mxu1 }
0x1c75   :  { %18675 = vmatprep.subr.bf16.mxu0 %v22658_v56  ;;  %v11214_v6 = vpop.f32.mrb[105].mxu1 }
0x1c76   :  { %v18630_v26 = vpop.f32.mrb[106].mxu1 }
0x1c77   :  { %v11665_v30 = vpack.c.bf16 %v18630_v26, %v18629_v50  ;;  %v11217_v11 = vpop.f32.mrb[107].mxu1 }
0x1c78   :  { %v11664_v38 = vpack.c.bf16 %v11217_v11, %v11214_v6 }
0x1c7b   :  { %18672 = vmatmul.mubr.msk.bf16.vlgmr.msra.gmra.mrb[60].mxu0 %vm5483_vm6, %v11482_v40 }
0x1c7c   :  { %18676 = vmatpush3.bf16.msra.mxu0 %v22658_v56  ;;  %18679 = vmatprep.mubr.msk.bf16.mxu0 %vm5483_vm6, %v11542_v58  ;;  %v18633_v4 = vpop.f32.mrb[108].mxu1 }
0x1c7d   :  { %18677 = vmatprep.subr.bf16.mxu0 %v22664_v39  ;;  %v11230_v60 = vpop.f32.mrb[109].mxu1 }
0x1c7e   :  { %v18634_v29 = vpop.f32.mrb[110].mxu1 }
0x1c7f   :  { %v11726_v8 = vpack.c.bf16 %v18634_v29, %v18633_v4  ;;  %v11233_v63 = vpop.f32.mrb[111].mxu1  ;;  %v16581_v4 = vld [vmem:[%s23217_s14 + $0xa0] sm:$0xff] }
0x1c80   :  { %18678 = vmatpush3.bf16.msra.mxu0 %v22664_v39  ;;  %v11725_v36 = vpack.c.bf16 %v11233_v63, %v11230_v60  ;;  %v16582_v60 = vld [vmem:[%s23217_s14 + $0xa8] sm:$0xff] }
0x1c81   :  { %18683 = vmatprep.subr.bf16.mxu0 %v22668_v24 }
0x1c87   :  { %18680 = vmatmul.mubr.msk.bf16.vlgmr.msra.gmra.mrb[60].mxu0 %vm5483_vm6, %v11543_v10 }
0x1c88   :  { %18684 = vmatpush3.bf16.msra.mxu0 %v22668_v24  ;;  %18687 = vmatprep.mubr.msk.bf16.mxu0 %vm5483_vm6, %v11603_v12 }
0x1c89   :  { %18685 = vmatprep.subr.bf16.mxu0 %v22674_v25 }
0x1c8c   :  { %18686 = vmatpush3.bf16.msra.mxu0 %v22674_v25 }
0x1c8d   :  { %18691 = vmatprep.subr.bf16.mxu0 %v22678_v59 }
0x1c93   :  { %18688 = vmatmul.mubr.msk.bf16.vlgmr.msra.gmra.mrb[60].mxu0 %vm5483_vm6, %v11604_v41 }
0x1c94   :  { %18692 = vmatpush3.bf16.msra.mxu0 %v22678_v59  ;;  %18695 = vmatprep.mubr.msk.bf16.mxu0 %vm5483_vm6, %v11664_v38 }
0x1c95   :  { %18693 = vmatprep.subr.bf16.mxu0 %v22684_v51 }
0x1c98   :  { %18694 = vmatpush3.bf16.msra.mxu0 %v22684_v51 }
0x1c99   :  { %18699 = vmatprep.subr.bf16.mxu0 %v22688_v32 }
0x1c9f   :  { %18696 = vmatmul.mubr.msk.bf16.vlgmr.msra.gmra.mrb[60].mxu0 %vm5483_vm6, %v11665_v30 }
0x1ca0   :  { %18700 = vmatpush3.bf16.msra.mxu0 %v22688_v32  ;;  %18703 = vmatprep.mubr.msk.bf16.mxu0 %vm5483_vm6, %v11725_v36 }
0x1ca1   :  { %18701 = vmatprep.subr.bf16.mxu0 %v22694_v19 }
0x1ca4   :  { %18702 = vmatpush3.bf16.msra.mxu0 %v22694_v19 }
0x1cab   :  { %18704 = vmatmul.mubr.msk.bf16.vlgmr.msra.gmra.mrb[60].mxu0 %vm5483_vm6, %v11726_v8 }
0x1d7e   :  { %v22902_v56 = vpop.f32.mrb[60].mxu0 }
0x1d7f   :  { %v22904_v39 = vpop.f32.mrb[61].mxu0  ;;  %v11802_v24 = vsel %vm5483_vm6, %v22902_v56, 0.0  ;;  %v11814_v55 = vmul.f32 %v22902_v56, %v22902_v56 }
0x1d80   :  { %11803 = vadd.xlane.f32.xlu0 %v11802_v24  ;;  %v22908_v25 = vpop.f32.mrb[62].mxu0  ;;  %v11796_v59 = vsel %vm5483_vm6, %v22904_v39, 0.0  ;;  %v11812_v19 = vmul.f32 %v22904_v39, %v22904_v39  ;;  %v16583_v24 = vld [vmem:[%s23217_s14 + $0xb0] sm:$0xff] }
0x1d81   :  { %11797 = vadd.xlane.f32.xlu1 %v11796_v59  ;;  %v22912_v51 = vpop.f32.mrb[63].mxu0  ;;  %v11805_v46 = vsel %vm5483_vm6, %v22908_v25, 0.0  ;;  %v11815_v54 = vmul.f32 %v22908_v25, %v22908_v25  ;;  %v11822_v57 = vsel %vm5483_vm6, %v11814_v55, 0.0  ;;  %v16584_v59 = vld [vmem:[%s23217_s14 + $0xb8] sm:$0xff]  ;;  %v16587_v55 = vld [vmem:[%s23218_s15 + $0xb0] sm:$0xff] }
0x1d82   :  { %v11799_v32 = vsel %vm5483_vm6, %v22912_v51, 0.0  ;;  %v11813_v3 = vmul.f32 %v22912_v51, %v22912_v51  ;;  %v11816_v7 = vsel %vm5483_vm6, %v11812_v19, 0.0 }
0x1d83   :  { %v11825_v21 = vsel %vm5483_vm6, %v11815_v54, 0.0 }
0x1d84   :  { %11800 = vadd.xlane.f32.xlu0 %v11799_v32  ;;  %v11819_v15 = vsel %vm5483_vm6, %v11813_v3, 0.0 }
0x1d85   :  { %11806 = vadd.xlane.f32.xlu1 %v11805_v46  ;;  %v16588_v46 = vld [vmem:[%s23218_s15 + $0xb8] sm:$0xff] }
0x1d88   :  { %11817 = vadd.xlane.f32.xlu0 %v11816_v7  ;;  %v20442_v7 = vmov 0.0  }
0x1d89   :  { %11820 = vadd.xlane.f32.xlu1 %v11819_v15  ;;  %18707 = vmatprep.subr.bf16.mxu1 %v20442_v7 }
0x1d8a   :  { %18747 = vmatprep.subr.bf16.mxu0 %v20442_v7  ;;  %18711 = vmatprep.mubr.msk.bf16.mxu1 %vm20443_vm7, %v20442_v7 }
0x1d8b   :  { %18751 = vmatprep.mubr.msk.bf16.mxu0 %vm20443_vm7, %v20442_v7 }
0x1d8c   :  { %11823 = vadd.xlane.f32.xlu0 %v11822_v57 }
0x1d8d   :  { %11826 = vadd.xlane.f32.xlu1 %v11825_v21 }
0x1d9e   :  { %11886 = vperm.xlu1 %19174, %v16585_v14  }
0x1da2   :  { %11891 = vperm.xlu0 %19175, %v16586_v37  }
0x1e0d   :  { %v11804_v13 = vpop.xlane.xlu0 %11803 }
0x1e0e   :  { %v22936_v52 = vmul.f32 0.03125, %v11804_v13  ;;  %v11798_v34 = vpop.xlane.xlu1 %11797 }
0x1e0f   :  { %v22938_v53 = vmul.f32 0.03125, %v11798_v34 }
0x1e10   :  { %v11846_v45 = vsub.f32 %v22902_v56, %v22936_v52  ;;  %v11834_v10 = vmul.f32 %v22936_v52, %v22936_v52  ;;  %v19749_v56 = vld [vmem:[%s23219_s16] sm:$0xff]  }
0x1e11   :  { %v11801_v1 = vpop.xlane.xlu0 %11800  ;;  %v11844_v35 = vsub.f32 %v22904_v39, %v22938_v53  ;;  %v11832_v2 = vmul.f32 %v22938_v53, %v22938_v53  ;;  %v19753_v52 = vld [vmem:[%s23219_s16 + $0x20] sm:$0xff]  }
0x1e12   :  { %v22944_v48 = vmul.f32 0.03125, %v11801_v1  ;;  %v11807_v22 = vpop.xlane.xlu1 %11806 }
0x1e13   :  { %v22946_v16 = vmul.f32 0.03125, %v11807_v22 }
0x1e14   :  { %v11845_v20 = vsub.f32 %v22912_v51, %v22944_v48  ;;  %v11833_v5 = vmul.f32 %v22944_v48, %v22944_v48 }
0x1e15   :  { %v11818_v23 = vpop.xlane.xlu0 %11817  ;;  %v11847_v43 = vsub.f32 %v22908_v25, %v22946_v16  ;;  %v11835_v42 = vmul.f32 %v22946_v16, %v22946_v16  ;;  %v19750_v25 = vld [vmem:[%s23219_s16 + $0x8] sm:$0xff]   ;;  %v19755_v16 = vld [vmem:[%s23219_s16 + $0x30] sm:$0xff]  }
0x1e16   :  { %v11828_v47 = vmul.f32 0.03125, %v11818_v23  ;;  %v11821_v40 = vpop.xlane.xlu1 %11820 }
0x1e17   :  { %v11829_v49 = vmul.f32 0.03125, %v11821_v40 }
0x1e18   :  { %v11836_v9 = vsub.f32 %v11828_v47, %v11832_v2 }
0x1e19   :  { %v11837_v0 = vsub.f32 %v11829_v49, %v11833_v5  ;;  %v11824_v31 = vpop.xlane.xlu0 %11823  ;;  %v19757_v49 = vld [vmem:[%s23219_s16 + $0x40] sm:$0xff]  }
0x1e1a   :  { %v11840_v17 = vmax.f32 %v11836_v9, 0.0  ;;  %v11830_v58 = vmul.f32 0.03125, %v11824_v31  ;;  %v11827_v28 = vpop.xlane.xlu1 %11826  ;;  %v19758_v9 = vld [vmem:[#allocation7 + $0x10] sm:$0xff]  }
0x1e1b   :  { %v11841_v44 = vmax.f32 %v11837_v0, 0.0  ;;  %v11831_v41 = vmul.f32 0.03125, %v11827_v28  ;;  %18748 = vmatpush3.bf16.msra.mxu0 %v19758_v9  ;;  %v19759_v0 = vld [vmem:[#allocation7 + $0x18] sm:$0xff]  }
0x1e1c   :  { %v11848_v27 = vadd.f32 1e-05, %v11840_v17  ;;  %v11838_v12 = vsub.f32 %v11830_v58, %v11834_v10  ;;  %18749 = vmatprep.subr.bf16.mxu0 %v20442_v7 }
0x1e1d   :  { %v11849_v50 = vadd.f32 1e-05, %v11841_v44  ;;  %v11839_v6 = vsub.f32 %v11831_v41, %v11835_v42 }
0x1e1e   :  { %20267 = vrsqrt.f32 %v11848_v27  ;;  %v11842_v26 = vmax.f32 %v11838_v12, 0.0  ;;  %v11887_v15 = vpop.permute.xlu1 %11886  ;;  %v19760_v27 = vld [vmem:[#allocation7] sm:$0xff]  }
0x1e1f   :  { %20269 = vrsqrt.f32 %v11849_v50  ;;  %v11843_v30 = vmax.f32 %v11839_v6, 0.0  ;;  %18750 = vmatpush3.bf16.msra.mxu0 %v19759_v0  ;;  %v19761_v6 = vld [vmem:[#allocation7 + $0x8] sm:$0xff]  }
0x1e20   :  { %v11850_v11 = vadd.f32 1e-05, %v11842_v26  ;;  %18755 = vmatprep.subr.bf16.mxu0 %v20442_v7 }
0x1e21   :  { %v11851_v38 = vadd.f32 1e-05, %v11843_v30  ;;  %v11892_v54 = vpop.permute.xlu0 %11891 }
0x1e22   :  { %20271 = vrsqrt.f32 %v11850_v11 }
0x1e23   :  { %20273 = vrsqrt.f32 %v11851_v38 }
0x1e28   :  { %v20268_v29 = vpop.eup %20267 }
0x1e29   :  { %v20270_v8 = vpop.eup %20269  ;;  %v11856_v63 = vmul.f32 %v20268_v29, %v16581_v4 }
0x1e2a   :  { %v11857_v36 = vmul.f32 %v20270_v8, %v16582_v60  ;;  %v19762_v60 = vld [vmem:[#allocation7 + $0x20] sm:$0xff]  }
0x1e2b   :  { %11862 = vperm.xlu0 %19175, %v11856_v63   ;;  %v19763_v63 = vld [vmem:[#allocation7 + $0x28] sm:$0xff]  }
0x1e2c   :  { %v20272_v51 = vpop.eup %20271  ;;  %11867 = vperm.xlu1 %19174, %v11857_v36  }
0x1e2d   :  { %v20274_v32 = vpop.eup %20273  ;;  %v11858_v19 = vmul.f32 %v20272_v51, %v16583_v24 }
0x1e2e   :  { %v11859_v3 = vmul.f32 %v20274_v32, %v16584_v59 }
0x1e30   :  { %11877 = vperm.xlu0 %19175, %v11859_v3   ;;  %11872 = vperm.xlu1 %19174, %v11858_v19   ;;  %v19764_v19 = vld [vmem:[#allocation7 + $0x30] sm:$0xff]  }
0x1e34   :  { %11901 = vperm.xlu0 %19175, %v16588_v46   ;;  %11896 = vperm.xlu1 %19174, %v16587_v55  }
0x1eaa   :  { %v11863_v57 = vpop.permute.xlu0 %11862 }
0x1eab   :  { %v11880_v21 = vmul.f32 %v11863_v57, %v11844_v35  ;;  %v11868_v14 = vpop.permute.xlu1 %11867 }
0x1eac   :  { %v11881_v37 = vmul.f32 %v11868_v14, %v11845_v20 }
0x1ead   :  { %v11904_v13 = vadd.f32 %v11887_v15, %v11880_v21 }
0x1eae   :  { %v11905_v34 = vadd.f32 %v11892_v54, %v11881_v37  ;;  %v19765_v54 = vld [vmem:[#allocation7 + $0x38] sm:$0xff]  }
0x1eaf   :  { %v11908_v1 = vadd.f32 %v11904_v13, %v22524_v33  ;;  %v11873_v48 = vpop.permute.xlu1 %11872  ;;  %v11878_v22 = vpop.permute.xlu0 %11877  ;;  %v19766_v13 = vld [vmem:[#allocation7 + $0x40] sm:$0xff]  }
0x1eb0   :  { %v11909_v23 = vadd.f32 %v11905_v34, %v22527_v61  ;;  %v11882_v47 = vmul.f32 %v11873_v48, %v11846_v45  ;;  %v11883_v39 = vmul.f32 %v11878_v22, %v11847_v43  ;;  %v19754_v45 = vld [vmem:[%s23219_s16 + $0x28] sm:$0xff]   ;;  %v19756_v43 = vld [vmem:[%s23219_s16 + $0x38] sm:$0xff]   ;;  %v19767_v48 = vld [vmem:[#allocation7 + $0x48] sm:$0xff]  }
0x1eb2   :  { %v11912_v2 = vpack.c.bf16 %v11909_v23, %v11908_v1 }
0x1eb3   :  { %v11897_v53 = vpop.permute.xlu1 %11896  ;;  %v11902_v35 = vpop.permute.xlu0 %11901 }
0x1eb4   :  { %v11906_v20 = vadd.f32 %v11897_v53, %v11882_v47  ;;  %v11907_v40 = vadd.f32 %v11902_v35, %v11883_v39  ;;  %18708 = vmatpush3.bf16.msra.mxu1 %v11912_v2  ;;  %v19768_v53 = vld [vmem:[#allocation7 + $0x50] sm:$0xff]  }
0x1eb5   :  { %18709 = vmatprep.subr.bf16.mxu1 %v20442_v7 }
0x1eb6   :  { %v11910_v33 = vadd.f32 %v11906_v20, %v22538_v62  ;;  %v11911_v61 = vadd.f32 %v11907_v40, %v22541_v18  ;;  %v19751_v62 = vld [vmem:[%s23219_s16 + $0x10] sm:$0xff]   ;;  %v19752_v18 = vld [vmem:[%s23219_s16 + $0x18] sm:$0xff]  }
0x1eb8   :  { %v11913_v5 = vpack.c.bf16 %v11911_v61, %v11910_v33  ;;  %v19769_v33 = vld [vmem:[#allocation7 + $0x58] sm:$0xff]  }
0x1eba   :  { %18710 = vmatpush3.bf16.msra.mxu1 %v11913_v5 }
0x1ebb   :  { %18819 = vmatprep.subr.bf16.mxu1 %v20442_v7 }
0x1ebd   :  { %18712 = vmatmul.mubr.msk.bf16.vlgmr.msra.gmra.mrb[112].mxu1 %vm5483_vm6, %v19749_v56 }
0x1ebe   :  { %18715 = vmatprep.mubr.msk.bf16.mxu1 %vm20443_vm7, %v20442_v7 }
0x1ec5   :  { %18716 = vmatmul.mubr.msk.bf16.gmra.mrb[116].mxu1 %vm5483_vm6, %v19750_v25 }
0x1ec6   :  { %18719 = vmatprep.mubr.msk.bf16.mxu1 %vm20443_vm7, %v20442_v7 }
0x1ecd   :  { %18720 = vmatmul.mubr.msk.bf16.gmra.mrb[120].mxu1 %vm5483_vm6, %v19751_v62 }
0x1ece   :  { %18723 = vmatprep.mubr.msk.bf16.mxu1 %vm20443_vm7, %v20442_v7 }
0x1ed5   :  { %18724 = vmatmul.mubr.msk.bf16.gmra.mrb[124].mxu1 %vm5483_vm6, %v19752_v18  ;;  %v19770_v18 = vld [vmem:[#allocation7 + $0x60] sm:$0xff]  }
0x1ed6   :  { %18727 = vmatprep.mubr.msk.bf16.mxu1 %vm20443_vm7, %v20442_v7 }
0x1edd   :  { %18728 = vmatmul.mubr.msk.bf16.gmra.mrb[128].mxu1 %vm5483_vm6, %v19753_v52  ;;  %v19771_v52 = vld [vmem:[#allocation7 + $0x68] sm:$0xff]  }
0x1ede   :  { %18731 = vmatprep.mubr.msk.bf16.mxu1 %vm20443_vm7, %v20442_v7 }
0x1ee5   :  { %18732 = vmatmul.mubr.msk.bf16.gmra.mrb[132].mxu1 %vm5483_vm6, %v19754_v45  ;;  %v19772_v45 = vld [vmem:[#allocation7 + $0x70] sm:$0xff]  }
0x1ee6   :  { %18735 = vmatprep.mubr.msk.bf16.mxu1 %vm20443_vm7, %v20442_v7 }
0x1eed   :  { %18736 = vmatmul.mubr.msk.bf16.gmra.mrb[136].mxu1 %vm5483_vm6, %v19755_v16  ;;  %v19773_v16 = vld [vmem:[#allocation7 + $0x78] sm:$0xff]  }
0x1eee   :  { %18739 = vmatprep.mubr.msk.bf16.mxu1 %vm20443_vm7, %v20442_v7 }
0x1ef5   :  { %18740 = vmatmul.mubr.msk.bf16.gmra.mrb[140].mxu1 %vm5483_vm6, %v19756_v43  ;;  %v19774_v43 = vld [vmem:[#allocation7 + $0x80] sm:$0xff]  }
0x1ef6   :  { %18743 = vmatprep.mubr.msk.bf16.mxu1 %vm20443_vm7, %v20442_v7 }
0x1efd   :  { %18744 = vmatmul.mubr.msk.bf16.gmra.mrb[144].mxu1 %vm5483_vm6, %v19757_v49  ;;  %v19775_v49 = vld [vmem:[#allocation7 + $0x88] sm:$0xff]  }
0x1efe   :  { %18821 = vmatprep.mubr.msk.bf16.mxu1 %vm20443_vm7, %v20442_v7 }
0x1f90   :  { %v12038_v31 = vpop.f32.mrb[112].mxu1 }
0x1f91   :  { %v18713_v10 = vpop.f32.mrb[113].mxu1 }
0x1f92   :  { %v12041_v17 = vpop.f32.mrb[114].mxu1 }
0x1f93   :  { %v12109_v58 = vpack.c.bf16 %v12041_v17, %v12038_v31  ;;  %v18714_v28 = vpop.f32.mrb[115].mxu1 }
0x1f98   :  { %v12046_v42 = vpop.f32.mrb[116].mxu1 }
0x1f99   :  { %v18717_v44 = vpop.f32.mrb[117].mxu1 }
0x1f9a   :  { %v12049_v41 = vpop.f32.mrb[118].mxu1 }
0x1f9b   :  { %v12114_v12 = vpack.c.bf16 %v12049_v41, %v12046_v42  ;;  %v18718_v50 = vpop.f32.mrb[119].mxu1 }
0x1f9d   :  { %18752 = vmatmul.mubr.msk.bf16.vlgmr.msra.gmra.mrb[64].mxu0 %vm5483_vm6, %v12114_v12 }
0x1f9e   :  { %18756 = vmatpush3.bf16.msra.mxu0 %v19760_v27  ;;  %18759 = vmatprep.mubr.msk.bf16.mxu0 %vm20443_vm7, %v20442_v7 }
0x1f9f   :  { %18757 = vmatprep.subr.bf16.mxu0 %v20442_v7 }
0x1fa0   :  { %v12054_v26 = vpop.f32.mrb[120].mxu1 }
0x1fa1   :  { %v18721_v30 = vpop.f32.mrb[121].mxu1 }
0x1fa2   :  { %18758 = vmatpush3.bf16.msra.mxu0 %v19761_v6  ;;  %v12057_v11 = vpop.f32.mrb[122].mxu1 }
0x1fa3   :  { %18763 = vmatprep.subr.bf16.mxu0 %v20442_v7  ;;  %v12232_v38 = vpack.c.bf16 %v12057_v11, %v12054_v26  ;;  %v18722_v4 = vpop.f32.mrb[123].mxu1 }
0x1fa8   :  { %v12062_v29 = vpop.f32.mrb[124].mxu1 }
0x1fa9   :  { %18760 = vmatmul.mubr.msk.bf16.vlgmr.msra.gmra.mrb[64].mxu0 %vm5483_vm6, %v12109_v58  ;;  %v18725_v8 = vpop.f32.mrb[125].mxu1 }
0x1faa   :  { %18764 = vmatpush3.bf16.msra.mxu0 %v19762_v60  ;;  %18767 = vmatprep.mubr.msk.bf16.mxu0 %vm20443_vm7, %v20442_v7  ;;  %v12065_v36 = vpop.f32.mrb[126].mxu1 }
0x1fab   :  { %18765 = vmatprep.subr.bf16.mxu0 %v20442_v7  ;;  %v12296_v24 = vpack.c.bf16 %v12065_v36, %v12062_v29  ;;  %v18726_v59 = vpop.f32.mrb[127].mxu1 }
0x1fae   :  { %18766 = vmatpush3.bf16.msra.mxu0 %v19763_v63 }
0x1faf   :  { %18771 = vmatprep.subr.bf16.mxu0 %v20442_v7 }
0x1fb0   :  { %v12070_v51 = vpop.f32.mrb[128].mxu1 }
0x1fb1   :  { %v18729_v32 = vpop.f32.mrb[129].mxu1 }
0x1fb2   :  { %v12073_v3 = vpop.f32.mrb[130].mxu1 }
0x1fb3   :  { %v12360_v46 = vpack.c.bf16 %v12073_v3, %v12070_v51  ;;  %v18730_v55 = vpop.f32.mrb[131].mxu1  ;;  %v12680_v51 = vld [vmem:[%s23220_s17] sm:$0xff] }
0x1fb4   :  { %v12683_v55 = vld [vmem:[%s23221_s18 + $0x8] sm:$0xff] }
0x1fb5   :  { %18768 = vmatmul.mubr.msk.bf16.vlgmr.msra.gmra.mrb[64].mxu0 %vm5483_vm6, %v12232_v38 }
0x1fb6   :  { %18772 = vmatpush3.bf16.msra.mxu0 %v19764_v19  ;;  %18775 = vmatprep.mubr.msk.bf16.mxu0 %vm20443_vm7, %v20442_v7 }
0x1fb7   :  { %18773 = vmatprep.subr.bf16.mxu0 %v20442_v7 }
0x1fb8   :  { %v12078_v15 = vpop.f32.mrb[132].mxu1 }
0x1fb9   :  { %v18733_v57 = vpop.f32.mrb[133].mxu1 }
0x1fba   :  { %18774 = vmatpush3.bf16.msra.mxu0 %v19765_v54  ;;  %v12081_v21 = vpop.f32.mrb[134].mxu1 }
0x1fbb   :  { %18779 = vmatprep.subr.bf16.mxu0 %v20442_v7  ;;  %v12424_v14 = vpack.c.bf16 %v12081_v21, %v12078_v15  ;;  %v18734_v37 = vpop.f32.mrb[135].mxu1 }
0x1fc0   :  { %v12086_v34 = vpop.f32.mrb[136].mxu1 }
0x1fc1   :  { %18776 = vmatmul.mubr.msk.bf16.vlgmr.msra.gmra.mrb[64].mxu0 %vm5483_vm6, %v12296_v24  ;;  %v18737_v1 = vpop.f32.mrb[137].mxu1  ;;  %v12681_v24 = vld [vmem:[%s23220_s17 + $0x8] sm:$0xff] }
0x1fc2   :  { %18780 = vmatpush3.bf16.msra.mxu0 %v19766_v13  ;;  %18783 = vmatprep.mubr.msk.bf16.mxu0 %vm20443_vm7, %v20442_v7  ;;  %v12089_v22 = vpop.f32.mrb[138].mxu1 }
0x1fc3   :  { %18781 = vmatprep.subr.bf16.mxu0 %v20442_v7  ;;  %v12488_v23 = vpack.c.bf16 %v12089_v22, %v12086_v34  ;;  %v18738_v2 = vpop.f32.mrb[139].mxu1  ;;  %v19780_v22 = vld [vmem:[#allocation9 + $0x104] ss:$16 sps:$4 sm:$0xff]  }
0x1fc4   :  { %v19776_v2 = vld [vmem:[%s23223_s20] sm:$0xff]  }
0x1fc6   :  { %18782 = vmatpush3.bf16.msra.mxu0 %v19767_v48 }
0x1fc7   :  { %18787 = vmatprep.subr.bf16.mxu0 %v20442_v7 }
0x1fc8   :  { %v12094_v47 = vpop.f32.mrb[140].mxu1 }
0x1fc9   :  { %v18741_v39 = vpop.f32.mrb[141].mxu1 }
0x1fca   :  { %v12097_v35 = vpop.f32.mrb[142].mxu1  ;;  %v19783_v39 = vld [vmem:[#allocation9 + $0x124] ss:$16 sps:$4 sm:$0xff]  }
0x1fcb   :  { %v12552_v20 = vpack.c.bf16 %v12097_v35, %v12094_v47  ;;  %v18742_v40 = vpop.f32.mrb[143].mxu1  ;;  %v19778_v47 = vld [vmem:[#allocation9 + $0x100] ss:$16 sps:$4 sm:$0xff]   ;;  %v19786_v35 = vld [vmem:[#allocation9 + $0x144] ss:$16 sps:$4 sm:$0xff]  }
0x1fcc   :  { %v19784_v40 = vld [vmem:[#allocation9 + $0x140] ss:$16 sps:$4 sm:$0xff]  }
0x1fcd   :  { %18784 = vmatmul.mubr.msk.bf16.vlgmr.msra.gmra.mrb[64].mxu0 %vm5483_vm6, %v12360_v46  ;;  %v12682_v46 = vld [vmem:[%s23221_s18] sm:$0xff] }
0x1fce   :  { %18788 = vmatpush3.bf16.msra.mxu0 %v19768_v53  ;;  %18791 = vmatprep.mubr.msk.bf16.mxu0 %vm20443_vm7, %v20442_v7  ;;  %v19781_v53 = vld [vmem:[#allocation9 + $0x120] ss:$16 sps:$4 sm:$0xff]  }
0x1fcf   :  { %18789 = vmatprep.subr.bf16.mxu0 %v20442_v7 }
0x1fd0   :  { %v12102_v61 = vpop.f32.mrb[144].mxu1 }
0x1fd1   :  { %v18745_v5 = vpop.f32.mrb[145].mxu1 }
0x1fd2   :  { %18790 = vmatpush3.bf16.msra.mxu0 %v19769_v33  ;;  %v12105_v56 = vpop.f32.mrb[146].mxu1  ;;  %v19790_v33 = vld [vmem:[#allocation9 + $0x164] ss:$16 sps:$4 sm:$0xff]  }
0x1fd3   :  { %18795 = vmatprep.subr.bf16.mxu0 %v20442_v7  ;;  %v12616_v25 = vpack.c.bf16 %v12105_v56, %v12102_v61  ;;  %v18746_v62 = vpop.f32.mrb[147].mxu1  ;;  %v19788_v61 = vld [vmem:[#allocation9 + $0x160] ss:$16 sps:$4 sm:$0xff]   ;;  %v19793_v5 = vld [vmem:[#allocation9 + $0x184] ss:$16 sps:$4 sm:$0xff]   ;;  %v19787_v56 = vld [vmem:[%s23223_s20 + $0x10] sm:$0xff]  }
0x1fd4   :  { %v19797_v62 = vld [vmem:[#allocation9 + $0x1a4] ss:$16 sps:$4 sm:$0xff]  }
0x1fd9   :  { %18792 = vmatmul.mubr.msk.bf16.vlgmr.msra.gmra.mrb[64].mxu0 %vm5483_vm6, %v12424_v14 }
0x1fda   :  { %18796 = vmatpush3.bf16.msra.mxu0 %v19770_v18  ;;  %18799 = vmatprep.mubr.msk.bf16.mxu0 %vm20443_vm7, %v20442_v7  ;;  %v19795_v18 = vld [vmem:[#allocation9 + $0x1a0] ss:$16 sps:$4 sm:$0xff]  }
0x1fdb   :  { %18797 = vmatprep.subr.bf16.mxu0 %v20442_v7 }
0x1fde   :  { %18798 = vmatpush3.bf16.msra.mxu0 %v19771_v52  ;;  %v19800_v52 = vld [vmem:[#allocation9 + $0x1c4] ss:$16 sps:$4 sm:$0xff]  }
0x1fdf   :  { %18803 = vmatprep.subr.bf16.mxu0 %v20442_v7 }
0x1fe5   :  { %18800 = vmatmul.mubr.msk.bf16.vlgmr.msra.gmra.mrb[64].mxu0 %vm5483_vm6, %v12488_v23 }
0x1fe6   :  { %18804 = vmatpush3.bf16.msra.mxu0 %v19772_v45  ;;  %18807 = vmatprep.mubr.msk.bf16.mxu0 %vm20443_vm7, %v20442_v7  ;;  %v19794_v45 = vld [vmem:[%s23223_s20 + $0x18] sm:$0xff]  }
0x1fe7   :  { %18805 = vmatprep.subr.bf16.mxu0 %v20442_v7 }
0x1fea   :  { %18806 = vmatpush3.bf16.msra.mxu0 %v19773_v16  ;;  %v19798_v16 = vld [vmem:[#allocation9 + $0x1c0] ss:$16 sps:$4 sm:$0xff]  }
0x1feb   :  { %18811 = vmatprep.subr.bf16.mxu0 %v20442_v7 }
0x1ff1   :  { %18808 = vmatmul.mubr.msk.bf16.vlgmr.msra.gmra.mrb[64].mxu0 %vm5483_vm6, %v12552_v20  ;;  %v19777_v20 = vld [vmem:[%s23223_s20 + $0x8] sm:$0xff]  }
0x1ff2   :  { %18812 = vmatpush3.bf16.msra.mxu0 %v19774_v43  ;;  %18815 = vmatprep.mubr.msk.bf16.mxu0 %vm20443_vm7, %v20442_v7  ;;  %v19801_v43 = vld [vmem:[%s23223_s20 + $0x20] ss:$0 sps:$4 sm:$0xff]  }
0x1ff3   :  { %18813 = vmatprep.subr.bf16.mxu0 %v20442_v7 }
0x1ff6   :  { %18814 = vmatpush3.bf16.msra.mxu0 %v19775_v49  ;;  %v23274_v49 = vmov 0  }
0x1ffd   :  { %18816 = vmatmul.mubr.msk.bf16.vlgmr.msra.gmra.mrb[64].mxu0 %vm5483_vm6, %v12616_v25  ;;  %v19791_v25 = vld [vmem:[#allocation9 + $0x180] ss:$16 sps:$4 sm:$0xff]  }
0x20d0   :  { %v12671_v9 = vpop.f32.mrb[64].mxu0 }
0x20d1   :  { %12684 = vadd.xlane.f32.xlu1 %v12671_v9  ;;  %v18817_v0 = vpop.f32.mrb[65].mxu0  ;;  %v12690_v58 = vmul.f32 %v12671_v9, %v12671_v9 }
0x20d2   :  { %v12674_v31 = vpop.f32.mrb[66].mxu0  ;;  %v19802_v0 = vld [vmem:[#allocation9 + $0x1e0] ss:$16 sps:$4 sm:$0xff]  }
0x20d3   :  { %v12691_v10 = vmul.f32 %v12674_v31, %v12674_v31  ;;  %12686 = vadd.xlane.f32.xlu0 %v12674_v31  ;;  %v18818_v17 = vpop.f32.mrb[67].mxu0 }
0x20d5   :  { %12694 = vadd.xlane.f32.xlu1 %v12691_v10 }
0x20d7   :  { %12692 = vadd.xlane.f32.xlu0 %v12690_v58 }
0x215e   :  { %v12685_v28 = vpop.xlane.xlu1 %12684 }
0x215f   :  { %v12688_v42 = vmul.f32 0.0078125, %v12685_v28 }
0x2160   :  { %v12687_v44 = vpop.xlane.xlu0 %12686 }
0x2161   :  { %v12689_v41 = vmul.f32 0.0078125, %v12687_v44  ;;  %v12704_v27 = vsub.f32 %v12671_v9, %v12688_v42  ;;  %v12698_v11 = vmul.f32 %v12688_v42, %v12688_v42  ;;  %v19804_v9 = vld [vmem:[#allocation9 + $0x1e4] ss:$16 sps:$4 sm:$0xff]   ;;  %v19810_v42 = vld [vmem:[#allocation9 + $0x12c] ss:$16 sps:$4 sm:$0xff]  }
0x2162   :  { %v12695_v12 = vpop.xlane.xlu1 %12694 }
0x2163   :  { %v12699_v50 = vmul.f32 %v12689_v41, %v12689_v41  ;;  %v12697_v6 = vmul.f32 0.0078125, %v12695_v12  ;;  %v12705_v26 = vsub.f32 %v12674_v31, %v12689_v41  ;;  %v19807_v31 = vld [vmem:[#allocation9 + $0x10c] ss:$16 sps:$4 sm:$0xff]   ;;  %v19808_v41 = vld [vmem:[#allocation9 + $0x128] ss:$16 sps:$4 sm:$0xff]  }
0x2164   :  { %v12693_v30 = vpop.xlane.xlu0 %12692 }
0x2165   :  { %v12701_v38 = vsub.f32 %v12697_v6, %v12699_v50  ;;  %v12696_v4 = vmul.f32 0.0078125, %v12693_v30  ;;  %v19811_v6 = vld [vmem:[#allocation9 + $0x148] ss:$16 sps:$4 sm:$0xff]   ;;  %v19816_v30 = vld [vmem:[#allocation9 + $0x16c] ss:$16 sps:$4 sm:$0xff]  }
0x2167   :  { %v12703_v60 = vmax.f32 %v12701_v38, 0.0  ;;  %v12700_v29 = vsub.f32 %v12696_v4, %v12698_v11  ;;  %v19814_v38 = vld [vmem:[#allocation9 + $0x168] ss:$16 sps:$4 sm:$0xff]   ;;  %v19819_v4 = vld [vmem:[#allocation9 + $0x18c] ss:$16 sps:$4 sm:$0xff]  }
0x2169   :  { %v12707_v8 = vadd.f32 1e-05, %v12703_v60  ;;  %v12702_v63 = vmax.f32 %v12700_v29, 0.0  ;;  %v19817_v60 = vld [vmem:[#allocation9 + $0x188] ss:$16 sps:$4 sm:$0xff]  }
0x216a   :  { %v19822_v29 = vld [vmem:[#allocation9 + $0x1ac] ss:$16 sps:$4 sm:$0xff]  }
0x216b   :  { %20275 = vrsqrt.f32 %v12707_v8  ;;  %v12706_v36 = vadd.f32 1e-05, %v12702_v63  ;;  %v19820_v8 = vld [vmem:[#allocation9 + $0x1a8] ss:$16 sps:$4 sm:$0xff]   ;;  %v19825_v63 = vld [vmem:[#allocation9 + $0x1cc] ss:$16 sps:$4 sm:$0xff]  }
0x216d   :  { %20277 = vrsqrt.f32 %v12706_v36  ;;  %v19823_v36 = vld [vmem:[#allocation9 + $0x1c8] ss:$16 sps:$4 sm:$0xff]  }
0x2175   :  { %v20276_v59 = vpop.eup %20275 }
0x2176   :  { %v12711_v32 = vmul.f32 %v20276_v59, %v12681_v24  ;;  %v19828_v24 = vld [vmem:[#allocation9 + $0x1ec] ss:$16 sps:$4 sm:$0xff]   ;;  %v19826_v59 = vld [vmem:[#allocation9 + $0x1e8] ss:$16 sps:$4 sm:$0xff]  }
0x2177   :  { %v20278_v19 = vpop.eup %20277 }
0x2178   :  { %12719 = vperm.xlu1 %19174, %v12711_v32   ;;  %v12710_v3 = vmul.f32 %v20278_v19, %v12680_v51  ;;  %v19831_v51 = vld [vmem:[#allocation9 + $0x4] ss:$16 sps:$4 sm:$0xff]   ;;  %v19829_v32 = vld [vmem:[#allocation9] ss:$16 sps:$4 sm:$0xff]  }
0x2179   :  { %v19834_v19 = vld [vmem:[#allocation9 + $0x24] ss:$16 sps:$4 sm:$0xff]  }
0x217a   :  { %12714 = vperm.xlu0 %19175, %v12710_v3   ;;  %v19832_v3 = vld [vmem:[#allocation9 + $0x20] ss:$16 sps:$4 sm:$0xff]  }
0x217c   :  { %12726 = vperm.xlu1 %19174, %v12682_v46   ;;  %v19837_v46 = vld [vmem:[#allocation9 + $0x44] ss:$16 sps:$4 sm:$0xff]  }
0x217e   :  { %12731 = vperm.xlu0 %19175, %v12683_v55   ;;  %v19835_v55 = vld [vmem:[#allocation9 + $0x40] ss:$16 sps:$4 sm:$0xff]  }
0x21f7   :  { %v12720_v54 = vpop.permute.xlu1 %12719 }
0x21f8   :  { %v12723_v14 = vmul.f32 %v12720_v54, %v12705_v26  ;;  %v19840_v54 = vld [vmem:[#allocation9 + $0x64] ss:$16 sps:$4 sm:$0xff]  }
0x21f9   :  { %v12715_v15 = vpop.permute.xlu0 %12714 }
0x21fa   :  { %v12722_v57 = vmul.f32 %v12715_v15, %v12704_v27  ;;  %v19813_v27 = vld [vmem:[#allocation9 + $0x14c] ss:$16 sps:$4 sm:$0xff]   ;;  %v19838_v15 = vld [vmem:[#allocation9 + $0x60] ss:$16 sps:$4 sm:$0xff]  }
0x21fb   :  { %v12727_v21 = vpop.permute.xlu1 %12726 }
0x21fc   :  { %v12734_v37 = vadd.f32 %v12727_v21, %v12722_v57  ;;  %v19843_v57 = vld [vmem:[#allocation9 + $0x84] ss:$16 sps:$4 sm:$0xff]   ;;  %v19841_v21 = vld [vmem:[#allocation9 + $0x80] ss:$16 sps:$4 sm:$0xff]  }
0x21fd   :  { %v12732_v13 = vpop.permute.xlu0 %12731 }
0x21fe   :  { %v12735_v34 = vadd.f32 %v12732_v13, %v12723_v14  ;;  %v12736_v1 = vmax.f32 %v12734_v37, 0.0  ;;  %v19846_v14 = vld [vmem:[#allocation9 + $0xa4] ss:$16 sps:$4 sm:$0xff]   ;;  %v19844_v37 = vld [vmem:[#allocation9 + $0xa0] ss:$16 sps:$4 sm:$0xff]  }
0x21ff   :  { %v19849_v13 = vld [vmem:[#allocation9 + $0xc4] ss:$16 sps:$4 sm:$0xff]  }
0x2200   :  { %v12737_v48 = vmax.f32 %v12735_v34, 0.0  ;;  %v19847_v34 = vld [vmem:[#allocation9 + $0xc0] ss:$16 sps:$4 sm:$0xff]  }
0x2202   :  { %v12738_v23 = vpack.c.bf16 %v12737_v48, %v12736_v1  ;;  %v19852_v1 = vld [vmem:[#allocation9 + $0xe4] ss:$16 sps:$4 sm:$0xff]   ;;  %v19850_v48 = vld [vmem:[#allocation9 + $0xe0] ss:$16 sps:$4 sm:$0xff]  }
0x2204   :  { %18820 = vmatpush3.bf16.msra.mxu1 %v12738_v23  ;;  %v19855_v23 = vld [vmem:[#allocation9 + $0xc] ss:$16 sps:$4 sm:$0xff]  }
0x2205   :  { %13085 = vmatprep.subr.bf16.mxu1 %v19780_v22 }
0x2207   :  { %18822 = vmatmul.mubr.msk.bf16.vlgmr.msra.gmra.mrb[148].mxu1 %vm4172_vm5, %v19776_v2 }
0x2208   :  { %18825 = vmatprep.mubr.msk.bf16.mxu1 %vm20443_vm7, %v20442_v7  ;;  %13086 = vmatpush1.bf16.msra.mxu1 %v19778_v47 }
0x2209   :  { %13087 = vmatprep.subr.bf16.mxu1 %v19783_v39 }
0x220c   :  { %13088 = vmatpush1.bf16.msra.mxu1 %v19781_v53  ;;  %v19853_v53 = vld [vmem:[#allocation9 + $0x8] ss:$16 sps:$4 sm:$0xff]  }
0x220d   :  { %13089 = vmatprep.subr.bf16.mxu1 %v19786_v35 }
0x220f   :  { %18826 = vmatmul.mubr.msk.bf16.gmra.mrb[152].mxu1 %vm4172_vm5, %v19777_v20  ;;  %v19858_v20 = vld [vmem:[#allocation9 + $0x2c] ss:$16 sps:$4 sm:$0xff]  }
0x2210   :  { %18829 = vmatprep.mubr.msk.bf16.mxu1 %vm20443_vm7, %v20442_v7  ;;  %13090 = vmatpush1.bf16.msra.mxu1 %v19784_v40  ;;  %v19856_v40 = vld [vmem:[#allocation9 + $0x28] ss:$16 sps:$4 sm:$0xff]  }
0x2211   :  { %13091 = vmatprep.subr.bf16.mxu1 %v19790_v33 }
0x2214   :  { %13092 = vmatpush1.bf16.msra.mxu1 %v19788_v61  ;;  %v19861_v61 = vld [vmem:[#allocation9 + $0x4c] ss:$16 sps:$4 sm:$0xff]  }
0x2215   :  { %13093 = vmatprep.subr.bf16.mxu1 %v19793_v5 }
0x2217   :  { %18830 = vmatmul.mubr.msk.bf16.gmra.mrb[156].mxu1 %vm4172_vm5, %v19787_v56 }
0x2218   :  { %18833 = vmatprep.mubr.msk.bf16.mxu1 %vm20443_vm7, %v20442_v7  ;;  %13094 = vmatpush1.bf16.msra.mxu1 %v19791_v25 }
0x2219   :  { %13095 = vmatprep.subr.bf16.mxu1 %v19797_v62  ;;  %v19859_v62 = vld [vmem:[#allocation9 + $0x48] ss:$16 sps:$4 sm:$0xff]  }
0x221c   :  { %13096 = vmatpush1.bf16.msra.mxu1 %v19795_v18  ;;  %v19864_v18 = vld [vmem:[#allocation9 + $0x6c] ss:$16 sps:$4 sm:$0xff]  }
0x221d   :  { %13097 = vmatprep.subr.bf16.mxu1 %v19800_v52  ;;  %v19862_v52 = vld [vmem:[#allocation9 + $0x68] ss:$16 sps:$4 sm:$0xff]  }
0x221f   :  { %18834 = vmatmul.mubr.msk.bf16.gmra.mrb[160].mxu1 %vm4172_vm5, %v19794_v45 }
0x2220   :  { %18837 = vmatprep.mubr.msk.bf16.mxu1 %vm20443_vm7, %v20442_v7  ;;  %13098 = vmatpush1.bf16.msra.mxu1 %v19798_v16  ;;  %v19805_v7 = vld [vmem:[#allocation9 + $0x108] ss:$16 sps:$4 sm:$0xff]   ;;  %v19867_v16 = vld [vmem:[#allocation9 + $0x8c] ss:$16 sps:$4 sm:$0xff]  }
0x2221   :  { %13099 = vmatprep.subr.bf16.mxu1 %v19804_v9 }
0x2224   :  { %13100 = vmatpush1.bf16.msra.mxu1 %v19802_v0 }
0x2225   :  { %13126 = vmatprep.subr.bf16.mxu1 %v19807_v31  ;;  %v19865_v31 = vld [vmem:[#allocation9 + $0x88] ss:$16 sps:$4 sm:$0xff]  }
0x2227   :  { %18838 = vmatmul.mubr.msk.bf16.gmra.mrb[164].mxu1 %vm4172_vm5, %v19801_v43 }
0x2228   :  { %13117 = vmatprep.mubr.bf16.mxu1 %v23274_v49 }
0x22da   :  { %v23136_v10 = vpop.f32.mrb[148].mxu1 }
0x22db   :  { %v18823_v17 = vpop.f32.mrb[149].mxu1  ;;  %v12858_v35 = vpack.c.bf16 %v23136_v10, %v23136_v10  ;;  %v19870_v10 = vld [vmem:[#allocation9 + $0xac] ss:$16 sps:$4 sm:$0xff]  }
0x22dc   :  { %v12823_v58 = vpop.f32.mrb[150].mxu1  ;;  %v19868_v17 = vld [vmem:[#allocation9 + $0xa8] ss:$16 sps:$4 sm:$0xff]  }
0x22dd   :  { %v12891_v28 = vpack.c.bf16 %v12823_v58, %v12823_v58  ;;  %v18824_v44 = vpop.f32.mrb[151].mxu1  ;;  %v19873_v58 = vld [vmem:[#allocation9 + $0xcc] ss:$16 sps:$4 sm:$0xff]  }
0x22de   :  { %v19879_v44 = vld [vmem:[#allocation9 + $0x204] ss:$16 sps:$4 sm:$0xff]  }
0x22df   :  { %13118 = vmatmul.mubr.bf16.vlgmr.msra.gmra.mrb[168].mxu1 %v12891_v28 }
0x22e0   :  { %13127 = vmatpush1.bf16.msra.mxu1 %v19805_v7  ;;  %13158 = vmatprep.mubr.bf16.mxu1 %v23274_v49  ;;  %v19871_v7 = vld [vmem:[#allocation9 + $0xc8] ss:$16 sps:$4 sm:$0xff]  }
0x22e1   :  { %13128 = vmatprep.subr.bf16.mxu1 %v19810_v42  ;;  %v19874_v42 = vld [vmem:[#allocation9 + $0xe8] ss:$16 sps:$4 sm:$0xff]  }
0x22e2   :  { %v23139_v12 = vpop.f32.mrb[152].mxu1 }
0x22e3   :  { %v18827_v50 = vpop.f32.mrb[153].mxu1 }
0x22e4   :  { %13129 = vmatpush1.bf16.msra.mxu1 %v19808_v41  ;;  %v23141_v26 = vpop.f32.mrb[154].mxu1  ;;  %v19877_v41 = vld [vmem:[#allocation9 + $0x200] ss:$16 sps:$4 sm:$0xff]  }
0x22e5   :  { %13130 = vmatprep.subr.bf16.mxu1 %v19813_v27  ;;  %v18828_v11 = vpop.f32.mrb[155].mxu1  ;;  %v19882_v27 = vld [vmem:[#allocation9 + $0x224] ss:$16 sps:$4 sm:$0xff]   ;;  %v19880_v50 = vld [vmem:[#allocation9 + $0x220] ss:$16 sps:$4 sm:$0xff]  }
0x22e6   :  { %v19888_v11 = vld [vmem:[#allocation9 + $0x264] ss:$16 sps:$4 sm:$0xff]  }
0x22e8   :  { %13131 = vmatpush1.bf16.msra.mxu1 %v19811_v6  ;;  %v19885_v6 = vld [vmem:[#allocation9 + $0x244] ss:$16 sps:$4 sm:$0xff]  }
0x22e9   :  { %13132 = vmatprep.subr.bf16.mxu1 %v19816_v30  ;;  %v19883_v30 = vld [vmem:[#allocation9 + $0x240] ss:$16 sps:$4 sm:$0xff]  }
0x22ea   :  { %v23144_v22 = vpop.f32.mrb[156].mxu1 }
0x22eb   :  { %v18831_v2 = vpop.f32.mrb[157].mxu1 }
0x22ec   :  { %13133 = vmatpush1.bf16.msra.mxu1 %v19814_v38  ;;  %v23146_v47 = vpop.f32.mrb[158].mxu1  ;;  %v19886_v38 = vld [vmem:[#allocation9 + $0x260] ss:$16 sps:$4 sm:$0xff]  }
0x22ed   :  { %13134 = vmatprep.subr.bf16.mxu1 %v19819_v4  ;;  %v18832_v39 = vpop.f32.mrb[159].mxu1  ;;  %v19891_v4 = vld [vmem:[#allocation9 + $0x284] ss:$16 sps:$4 sm:$0xff]   ;;  %v19925_v2 = vld [vmem:[#allocation9 + $0x300] ss:$16 sps:$4 sm:$0xff]  }
0x22ee   :  { %v19930_v39 = vld [vmem:[#allocation9 + $0x324] ss:$16 sps:$4 sm:$0xff]  }
0x22f0   :  { %13135 = vmatpush1.bf16.msra.mxu1 %v19817_v60  ;;  %v19889_v60 = vld [vmem:[#allocation9 + $0x280] ss:$16 sps:$4 sm:$0xff]  }
0x22f1   :  { %13136 = vmatprep.subr.bf16.mxu1 %v19822_v29  ;;  %v19894_v29 = vld [vmem:[#allocation9 + $0x2a4] ss:$16 sps:$4 sm:$0xff]  }
0x22f2   :  { %v23151_v33 = vpop.f32.mrb[160].mxu1 }
0x22f3   :  { %v18835_v5 = vpop.f32.mrb[161].mxu1 }
0x22f4   :  { %13137 = vmatpush1.bf16.msra.mxu1 %v19820_v8  ;;  %v23153_v56 = vpop.f32.mrb[162].mxu1  ;;  %v19892_v8 = vld [vmem:[#allocation9 + $0x2a0] ss:$16 sps:$4 sm:$0xff]   ;;  %v19939_v5 = vld [vmem:[#allocation9 + $0x384] ss:$16 sps:$4 sm:$0xff]  }
0x22f5   :  { %13138 = vmatprep.subr.bf16.mxu1 %v19825_v63  ;;  %v18836_v25 = vpop.f32.mrb[163].mxu1  ;;  %v19897_v63 = vld [vmem:[#allocation9 + $0x2c4] ss:$16 sps:$4 sm:$0xff]  }
0x22f6   :  { %v19937_v25 = vld [vmem:[#allocation9 + $0x380] ss:$16 sps:$4 sm:$0xff]  }
0x22f8   :  { %13139 = vmatpush1.bf16.msra.mxu1 %v19823_v36  ;;  %v19895_v36 = vld [vmem:[#allocation9 + $0x2c0] ss:$16 sps:$4 sm:$0xff]  }
0x22f9   :  { %13140 = vmatprep.subr.bf16.mxu1 %v19828_v24  ;;  %v19900_v24 = vld [vmem:[#allocation9 + $0x2e4] ss:$16 sps:$4 sm:$0xff]  }
0x22fa   :  { %v23155_v45 = vpop.f32.mrb[164].mxu1 }
0x22fb   :  { %v18839_v43 = vpop.f32.mrb[165].mxu1 }
0x22fc   :  { %13141 = vmatpush1.bf16.msra.mxu1 %v19826_v59  ;;  %v12855_v9 = vpop.f32.mrb[166].mxu1  ;;  %v19898_v59 = vld [vmem:[#allocation9 + $0x2e0] ss:$16 sps:$4 sm:$0xff]   ;;  %v19948_v43 = vld [vmem:[#allocation9 + $0x3e4] ss:$16 sps:$4 sm:$0xff]  }
0x22fd   :  { %13327 = vmatprep.subr.bf16.mxu1 %v19831_v51  ;;  %v18840_v0 = vpop.f32.mrb[167].mxu1  ;;  %v19903_v51 = vld [vmem:[#allocation9 + $0x20c] ss:$16 sps:$4 sm:$0xff]   ;;  %v19946_v9 = vld [vmem:[#allocation9 + $0x3e0] ss:$16 sps:$4 sm:$0xff]  }
0x22fe   :  { %v19951_v0 = vld [vmem:[#allocation9 + $0x30c] ss:$16 sps:$4 sm:$0xff]  }
0x22ff   :  { %13159 = vmatmul.mubr.bf16.vlgmr.msra.gmra.mrb[172].mxu1 %v12891_v28  ;;  %v19876_v28 = vld [vmem:[#allocation9 + $0xec] ss:$16 sps:$4 sm:$0xff]  }
0x2300   :  { %13328 = vmatpush1.bf16.msra.mxu1 %v19829_v32  ;;  %13359 = vmatprep.mubr.bf16.mxu1 %v23274_v49  ;;  %v13409_v32 = vpack.c.bf16 %v23139_v12, %v23139_v12  ;;  %v19913_v12 = vld [vmem:[#allocation9 + $0x288] ss:$16 sps:$4 sm:$0xff]  }
0x2301   :  { %13329 = vmatprep.subr.bf16.mxu1 %v19834_v19  ;;  %v19901_v19 = vld [vmem:[#allocation9 + $0x208] ss:$16 sps:$4 sm:$0xff]  }
0x2304   :  { %13330 = vmatpush1.bf16.msra.mxu1 %v19832_v3  ;;  %v19906_v3 = vld [vmem:[#allocation9 + $0x22c] ss:$16 sps:$4 sm:$0xff]  }
0x2305   :  { %13331 = vmatprep.subr.bf16.mxu1 %v19837_v46  ;;  %v19904_v46 = vld [vmem:[#allocation9 + $0x228] ss:$16 sps:$4 sm:$0xff]  }
0x2308   :  { %13332 = vmatpush1.bf16.msra.mxu1 %v19835_v55  ;;  %v19909_v55 = vld [vmem:[#allocation9 + $0x24c] ss:$16 sps:$4 sm:$0xff]  }
0x2309   :  { %13333 = vmatprep.subr.bf16.mxu1 %v19840_v54  ;;  %v19907_v54 = vld [vmem:[#allocation9 + $0x248] ss:$16 sps:$4 sm:$0xff]  }
0x230c   :  { %13334 = vmatpush1.bf16.msra.mxu1 %v19838_v15  ;;  %v19912_v15 = vld [vmem:[#allocation9 + $0x26c] ss:$16 sps:$4 sm:$0xff]  }
0x230d   :  { %13335 = vmatprep.subr.bf16.mxu1 %v19843_v57  ;;  %v19910_v57 = vld [vmem:[#allocation9 + $0x268] ss:$16 sps:$4 sm:$0xff]  }
0x2310   :  { %13336 = vmatpush1.bf16.msra.mxu1 %v19841_v21  ;;  %v19915_v21 = vld [vmem:[#allocation9 + $0x28c] ss:$16 sps:$4 sm:$0xff]  }
0x2311   :  { %13337 = vmatprep.subr.bf16.mxu1 %v19846_v14  ;;  %v19918_v14 = vld [vmem:[#allocation9 + $0x2ac] ss:$16 sps:$4 sm:$0xff]  }
0x2314   :  { %13338 = vmatpush1.bf16.msra.mxu1 %v19844_v37  ;;  %v19916_v37 = vld [vmem:[#allocation9 + $0x2a8] ss:$16 sps:$4 sm:$0xff]  }
0x2315   :  { %13339 = vmatprep.subr.bf16.mxu1 %v19849_v13  ;;  %v19921_v13 = vld [vmem:[#allocation9 + $0x2cc] ss:$16 sps:$4 sm:$0xff]  }
0x2318   :  { %13340 = vmatpush1.bf16.msra.mxu1 %v19847_v34  ;;  %v19919_v34 = vld [vmem:[#allocation9 + $0x2c8] ss:$16 sps:$4 sm:$0xff]  }
0x2319   :  { %13341 = vmatprep.subr.bf16.mxu1 %v19852_v1  ;;  %v19924_v1 = vld [vmem:[#allocation9 + $0x2ec] ss:$16 sps:$4 sm:$0xff]  }
0x231c   :  { %13342 = vmatpush1.bf16.msra.mxu1 %v19850_v48  ;;  %v19922_v48 = vld [vmem:[#allocation9 + $0x2e8] ss:$16 sps:$4 sm:$0xff]  }
0x231d   :  { %13368 = vmatprep.subr.bf16.mxu1 %v19855_v23  ;;  %v19927_v23 = vld [vmem:[#allocation9 + $0x304] ss:$16 sps:$4 sm:$0xff]  }
0x231f   :  { %13360 = vmatmul.mubr.bf16.vlgmr.msra.gmra.mrb[168].mxu1 %v12858_v35 }
0x2320   :  { %13369 = vmatpush1.bf16.msra.mxu1 %v19853_v53  ;;  %13400 = vmatprep.mubr.bf16.mxu1 %v23274_v49  ;;  %v19928_v53 = vld [vmem:[#allocation9 + $0x320] ss:$16 sps:$4 sm:$0xff]  }
0x2321   :  { %13370 = vmatprep.subr.bf16.mxu1 %v19858_v20  ;;  %v19931_v20 = vld [vmem:[#allocation9 + $0x340] ss:$16 sps:$4 sm:$0xff]  }
0x2324   :  { %13371 = vmatpush1.bf16.msra.mxu1 %v19856_v40  ;;  %v19936_v40 = vld [vmem:[#allocation9 + $0x364] ss:$16 sps:$4 sm:$0xff]  }
0x2325   :  { %13372 = vmatprep.subr.bf16.mxu1 %v19861_v61  ;;  %v19934_v61 = vld [vmem:[#allocation9 + $0x360] ss:$16 sps:$4 sm:$0xff]  }
0x2328   :  { %13373 = vmatpush1.bf16.msra.mxu1 %v19859_v62  ;;  %v19942_v62 = vld [vmem:[#allocation9 + $0x3a4] ss:$16 sps:$4 sm:$0xff]  }
0x2329   :  { %13374 = vmatprep.subr.bf16.mxu1 %v19864_v18  ;;  %v19940_v18 = vld [vmem:[#allocation9 + $0x3a0] ss:$16 sps:$4 sm:$0xff]  }
0x232c   :  { %13375 = vmatpush1.bf16.msra.mxu1 %v19862_v52  ;;  %v19945_v52 = vld [vmem:[#allocation9 + $0x3c4] ss:$16 sps:$4 sm:$0xff]  }
0x232d   :  { %13376 = vmatprep.subr.bf16.mxu1 %v19867_v16  ;;  %v19943_v16 = vld [vmem:[#allocation9 + $0x3c0] ss:$16 sps:$4 sm:$0xff]  }
0x2330   :  { %13377 = vmatpush1.bf16.msra.mxu1 %v19865_v31  ;;  %v19949_v31 = vld [vmem:[#allocation9 + $0x308] ss:$16 sps:$4 sm:$0xff]  }
0x2331   :  { %13378 = vmatprep.subr.bf16.mxu1 %v19870_v10  ;;  %v13689_v10 = vpack.c.bf16 %v23141_v26, %v23141_v26  ;;  %v19966_v26 = vld [vmem:[#allocation9 + $0x3ac] ss:$16 sps:$4 sm:$0xff]  }
0x2334   :  { %13379 = vmatpush1.bf16.msra.mxu1 %v19868_v17  ;;  %v19954_v17 = vld [vmem:[#allocation9 + $0x32c] ss:$16 sps:$4 sm:$0xff]  }
0x2335   :  { %13380 = vmatprep.subr.bf16.mxu1 %v19873_v58  ;;  %v19952_v58 = vld [vmem:[#allocation9 + $0x328] ss:$16 sps:$4 sm:$0xff]  }
0x2338   :  { %13381 = vmatpush1.bf16.msra.mxu1 %v19871_v7  ;;  %v19957_v7 = vld [vmem:[#allocation9 + $0x34c] ss:$16 sps:$4 sm:$0xff]  }
0x2339   :  { %13382 = vmatprep.subr.bf16.mxu1 %v19876_v28  ;;  %v19955_v28 = vld [vmem:[#allocation9 + $0x348] ss:$16 sps:$4 sm:$0xff]  }
0x233c   :  { %13383 = vmatpush1.bf16.msra.mxu1 %v19874_v42  ;;  %v19960_v42 = vld [vmem:[#allocation9 + $0x36c] ss:$16 sps:$4 sm:$0xff]  }
0x233d   :  { %13603 = vmatprep.subr.bf16.mxu1 %v19879_v44  ;;  %v19958_v44 = vld [vmem:[#allocation9 + $0x368] ss:$16 sps:$4 sm:$0xff]  }
0x233f   :  { %13401 = vmatmul.mubr.bf16.vlgmr.msra.gmra.mrb[172].mxu1 %v12858_v35  ;;  %v19933_v35 = vld [vmem:[#allocation9 + $0x344] ss:$16 sps:$4 sm:$0xff]  }
0x2340   :  { %13604 = vmatpush1.bf16.msra.mxu1 %v19877_v41  ;;  %13635 = vmatprep.mubr.bf16.mxu1 %v23274_v49  ;;  %v19963_v41 = vld [vmem:[#allocation9 + $0x38c] ss:$16 sps:$4 sm:$0xff]  }
0x2341   :  { %13605 = vmatprep.subr.bf16.mxu1 %v19882_v27  ;;  %v19961_v27 = vld [vmem:[#allocation9 + $0x388] ss:$16 sps:$4 sm:$0xff]  }
0x2344   :  { %13606 = vmatpush1.bf16.msra.mxu1 %v19880_v50  ;;  %v19964_v50 = vld [vmem:[#allocation9 + $0x3a8] ss:$16 sps:$4 sm:$0xff]  }
0x2345   :  { %13607 = vmatprep.subr.bf16.mxu1 %v19885_v6  ;;  %v19969_v6 = vld [vmem:[#allocation9 + $0x3cc] ss:$16 sps:$4 sm:$0xff]  }
0x2348   :  { %13608 = vmatpush1.bf16.msra.mxu1 %v19883_v30  ;;  %v19967_v30 = vld [vmem:[#allocation9 + $0x3c8] ss:$16 sps:$4 sm:$0xff]  }
0x2349   :  { %13609 = vmatprep.subr.bf16.mxu1 %v19888_v11  ;;  %v19972_v11 = vld [vmem:[#allocation9 + $0x3ec] ss:$16 sps:$4 sm:$0xff]  }
0x234c   :  { %13610 = vmatpush1.bf16.msra.mxu1 %v19886_v38  ;;  %v19970_v38 = vld [vmem:[#allocation9 + $0x3e8] ss:$16 sps:$4 sm:$0xff]  }
0x234d   :  { %13611 = vmatprep.subr.bf16.mxu1 %v19891_v4  ;;  %v19975_v4 = vld [vmem:[#allocation9 + $0x404] ss:$16 sps:$4 sm:$0xff]  }
0x2350   :  { %13612 = vmatpush1.bf16.msra.mxu1 %v19889_v60  ;;  %v19973_v60 = vld [vmem:[#allocation9 + $0x400] ss:$16 sps:$4 sm:$0xff]  }
0x2351   :  { %13613 = vmatprep.subr.bf16.mxu1 %v19894_v29  ;;  %v19978_v29 = vld [vmem:[#allocation9 + $0x424] ss:$16 sps:$4 sm:$0xff]  }
0x2354   :  { %13614 = vmatpush1.bf16.msra.mxu1 %v19892_v8  ;;  %v19976_v8 = vld [vmem:[#allocation9 + $0x420] ss:$16 sps:$4 sm:$0xff]  }
0x2355   :  { %13615 = vmatprep.subr.bf16.mxu1 %v19897_v63  ;;  %v19981_v63 = vld [vmem:[#allocation9 + $0x444] ss:$16 sps:$4 sm:$0xff]  }
0x2358   :  { %13616 = vmatpush1.bf16.msra.mxu1 %v19895_v36  ;;  %v19979_v36 = vld [vmem:[#allocation9 + $0x440] ss:$16 sps:$4 sm:$0xff]  }
0x2359   :  { %13617 = vmatprep.subr.bf16.mxu1 %v19900_v24  ;;  %v19984_v24 = vld [vmem:[#allocation9 + $0x464] ss:$16 sps:$4 sm:$0xff]  }
0x235c   :  { %13618 = vmatpush1.bf16.msra.mxu1 %v19898_v59  ;;  %v19982_v59 = vld [vmem:[#allocation9 + $0x460] ss:$16 sps:$4 sm:$0xff]  }
0x235d   :  { %13644 = vmatprep.subr.bf16.mxu1 %v19903_v51  ;;  %v19987_v51 = vld [vmem:[#allocation9 + $0x484] ss:$16 sps:$4 sm:$0xff]  }
0x235f   :  { %13636 = vmatmul.mubr.bf16.vlgmr.msra.gmra.mrb[168].mxu1 %v13409_v32 }
0x2360   :  { %13645 = vmatpush1.bf16.msra.mxu1 %v19901_v19  ;;  %13676 = vmatprep.mubr.bf16.mxu1 %v23274_v49  ;;  %v19990_v19 = vld [vmem:[#allocation9 + $0x4a4] ss:$16 sps:$4 sm:$0xff]  }
0x2361   :  { %13646 = vmatprep.subr.bf16.mxu1 %v19906_v3  ;;  %v19988_v3 = vld [vmem:[#allocation9 + $0x4a0] ss:$16 sps:$4 sm:$0xff]  }
0x2364   :  { %13647 = vmatpush1.bf16.msra.mxu1 %v19904_v46  ;;  %v19993_v46 = vld [vmem:[#allocation9 + $0x4c4] ss:$16 sps:$4 sm:$0xff]  }
0x2365   :  { %13648 = vmatprep.subr.bf16.mxu1 %v19909_v55  ;;  %v19991_v55 = vld [vmem:[#allocation9 + $0x4c0] ss:$16 sps:$4 sm:$0xff]  }
0x2368   :  { %13649 = vmatpush1.bf16.msra.mxu1 %v19907_v54  ;;  %v19996_v54 = vld [vmem:[#allocation9 + $0x4e4] ss:$16 sps:$4 sm:$0xff]  }
0x2369   :  { %13650 = vmatprep.subr.bf16.mxu1 %v19912_v15  ;;  %v19994_v15 = vld [vmem:[#allocation9 + $0x4e0] ss:$16 sps:$4 sm:$0xff]  }
0x236c   :  { %13651 = vmatpush1.bf16.msra.mxu1 %v19910_v57  ;;  %v19999_v57 = vld [vmem:[#allocation9 + $0x40c] ss:$16 sps:$4 sm:$0xff]  }
0x236d   :  { %13652 = vmatprep.subr.bf16.mxu1 %v19915_v21  ;;  %v19997_v21 = vld [vmem:[#allocation9 + $0x408] ss:$16 sps:$4 sm:$0xff]  }
0x2370   :  { %13653 = vmatpush1.bf16.msra.mxu1 %v19913_v12  ;;  %v13969_v12 = vpack.c.bf16 %v23144_v22, %v23144_v22  ;;  %v20014_v22 = vld [vmem:[#allocation9 + $0x4ac] ss:$16 sps:$4 sm:$0xff]  }
0x2371   :  { %13654 = vmatprep.subr.bf16.mxu1 %v19918_v14  ;;  %v20002_v14 = vld [vmem:[#allocation9 + $0x42c] ss:$16 sps:$4 sm:$0xff]  }
0x2374   :  { %13655 = vmatpush1.bf16.msra.mxu1 %v19916_v37  ;;  %v20000_v37 = vld [vmem:[#allocation9 + $0x428] ss:$16 sps:$4 sm:$0xff]  }
0x2375   :  { %13656 = vmatprep.subr.bf16.mxu1 %v19921_v13  ;;  %v20005_v13 = vld [vmem:[#allocation9 + $0x44c] ss:$16 sps:$4 sm:$0xff]  }
0x2378   :  { %13657 = vmatpush1.bf16.msra.mxu1 %v19919_v34  ;;  %v20003_v34 = vld [vmem:[#allocation9 + $0x448] ss:$16 sps:$4 sm:$0xff]  }
0x2379   :  { %13658 = vmatprep.subr.bf16.mxu1 %v19924_v1  ;;  %v20008_v1 = vld [vmem:[#allocation9 + $0x46c] ss:$16 sps:$4 sm:$0xff]  }
0x237c   :  { %13659 = vmatpush1.bf16.msra.mxu1 %v19922_v48  ;;  %v20006_v48 = vld [vmem:[#allocation9 + $0x468] ss:$16 sps:$4 sm:$0xff]  }
0x237d   :  { %13883 = vmatprep.subr.bf16.mxu1 %v19927_v23  ;;  %v20011_v23 = vld [vmem:[#allocation9 + $0x48c] ss:$16 sps:$4 sm:$0xff]  }
0x237f   :  { %13677 = vmatmul.mubr.bf16.vlgmr.msra.gmra.mrb[172].mxu1 %v13409_v32  ;;  %v19985_v32 = vld [vmem:[#allocation9 + $0x480] ss:$16 sps:$4 sm:$0xff]  }
0x2380   :  { %13884 = vmatpush1.bf16.msra.mxu1 %v19925_v2  ;;  %13915 = vmatprep.mubr.bf16.mxu1 %v23274_v49  ;;  %v20009_v2 = vld [vmem:[#allocation9 + $0x488] ss:$16 sps:$4 sm:$0xff]  }
0x2381   :  { %13885 = vmatprep.subr.bf16.mxu1 %v19930_v39  ;;  %v20012_v39 = vld [vmem:[#allocation9 + $0x4a8] ss:$16 sps:$4 sm:$0xff]  }
0x2384   :  { %13886 = vmatpush1.bf16.msra.mxu1 %v19928_v53  ;;  %v20017_v53 = vld [vmem:[#allocation9 + $0x4cc] ss:$16 sps:$4 sm:$0xff]  }
0x2385   :  { %13887 = vmatprep.subr.bf16.mxu1 %v19933_v35  ;;  %v20015_v35 = vld [vmem:[#allocation9 + $0x4c8] ss:$16 sps:$4 sm:$0xff]  }
0x2388   :  { %13888 = vmatpush1.bf16.msra.mxu1 %v19931_v20  ;;  %v20020_v20 = vld [vmem:[#allocation9 + $0x4ec] ss:$16 sps:$4 sm:$0xff]  }
0x2389   :  { %13889 = vmatprep.subr.bf16.mxu1 %v19936_v40  ;;  %v20018_v40 = vld [vmem:[#allocation9 + $0x4e8] ss:$16 sps:$4 sm:$0xff]  }
0x238c   :  { %13890 = vmatpush1.bf16.msra.mxu1 %v19934_v61  ;;  %v20023_v61 = vld [vmem:[#allocation9 + $0x504] ss:$16 sps:$4 sm:$0xff]  }
0x238d   :  { %13891 = vmatprep.subr.bf16.mxu1 %v19939_v5  ;;  %v20021_v5 = vld [vmem:[#allocation9 + $0x500] ss:$16 sps:$4 sm:$0xff]  }
0x2390   :  { %13892 = vmatpush1.bf16.msra.mxu1 %v19937_v25  ;;  %v20026_v25 = vld [vmem:[#allocation9 + $0x524] ss:$16 sps:$4 sm:$0xff]  }
0x2391   :  { %13893 = vmatprep.subr.bf16.mxu1 %v19942_v62  ;;  %v20024_v62 = vld [vmem:[#allocation9 + $0x520] ss:$16 sps:$4 sm:$0xff]  }
0x2394   :  { %13894 = vmatpush1.bf16.msra.mxu1 %v19940_v18  ;;  %v20029_v18 = vld [vmem:[#allocation9 + $0x544] ss:$16 sps:$4 sm:$0xff]  }
0x2395   :  { %13895 = vmatprep.subr.bf16.mxu1 %v19945_v52  ;;  %v20027_v52 = vld [vmem:[#allocation9 + $0x540] ss:$16 sps:$4 sm:$0xff]  }
0x2398   :  { %13896 = vmatpush1.bf16.msra.mxu1 %v19943_v16  ;;  %v20032_v16 = vld [vmem:[#allocation9 + $0x564] ss:$16 sps:$4 sm:$0xff]  }
0x2399   :  { %13897 = vmatprep.subr.bf16.mxu1 %v19948_v43  ;;  %v20030_v43 = vld [vmem:[#allocation9 + $0x560] ss:$16 sps:$4 sm:$0xff]  }
0x239c   :  { %13898 = vmatpush1.bf16.msra.mxu1 %v19946_v9  ;;  %v20035_v9 = vld [vmem:[#allocation9 + $0x584] ss:$16 sps:$4 sm:$0xff]  }
0x239d   :  { %13924 = vmatprep.subr.bf16.mxu1 %v19951_v0  ;;  %v20033_v0 = vld [vmem:[#allocation9 + $0x580] ss:$16 sps:$4 sm:$0xff]  }
0x239f   :  { %13916 = vmatmul.mubr.bf16.vlgmr.msra.gmra.mrb[168].mxu1 %v13689_v10 }
0x23a0   :  { %13925 = vmatpush1.bf16.msra.mxu1 %v19949_v31  ;;  %13956 = vmatprep.mubr.bf16.mxu1 %v23274_v49  ;;  %v20038_v31 = vld [vmem:[#allocation9 + $0x5a4] ss:$16 sps:$4 sm:$0xff]  }
0x23a1   :  { %13926 = vmatprep.subr.bf16.mxu1 %v19954_v17  ;;  %v20041_v17 = vld [vmem:[#allocation9 + $0x5c4] ss:$16 sps:$4 sm:$0xff]  }
0x23a4   :  { %13927 = vmatpush1.bf16.msra.mxu1 %v19952_v58  ;;  %v20039_v58 = vld [vmem:[#allocation9 + $0x5c0] ss:$16 sps:$4 sm:$0xff]  }
0x23a5   :  { %13928 = vmatprep.subr.bf16.mxu1 %v19957_v7  ;;  %v20044_v7 = vld [vmem:[#allocation9 + $0x5e4] ss:$16 sps:$4 sm:$0xff]  }
0x23a8   :  { %13929 = vmatpush1.bf16.msra.mxu1 %v19955_v28  ;;  %v20042_v28 = vld [vmem:[#allocation9 + $0x5e0] ss:$16 sps:$4 sm:$0xff]  }
0x23a9   :  { %13930 = vmatprep.subr.bf16.mxu1 %v19960_v42  ;;  %v20047_v42 = vld [vmem:[#allocation9 + $0x50c] ss:$16 sps:$4 sm:$0xff]  }
0x23ac   :  { %13931 = vmatpush1.bf16.msra.mxu1 %v19958_v44  ;;  %v20045_v44 = vld [vmem:[#allocation9 + $0x508] ss:$16 sps:$4 sm:$0xff]  }
0x23ad   :  { %13932 = vmatprep.subr.bf16.mxu1 %v19963_v41  ;;  %v14249_v41 = vpack.c.bf16 %v23146_v47, %v23146_v47  ;;  %v20062_v47 = vld [vmem:[#allocation9 + $0x5ac] ss:$16 sps:$4 sm:$0xff]  }
0x23b0   :  { %13933 = vmatpush1.bf16.msra.mxu1 %v19961_v27  ;;  %v20050_v27 = vld [vmem:[#allocation9 + $0x52c] ss:$16 sps:$4 sm:$0xff]  }
0x23b1   :  { %13934 = vmatprep.subr.bf16.mxu1 %v19966_v26  ;;  %v20048_v26 = vld [vmem:[#allocation9 + $0x528] ss:$16 sps:$4 sm:$0xff]  }
0x23b4   :  { %13935 = vmatpush1.bf16.msra.mxu1 %v19964_v50  ;;  %v20053_v50 = vld [vmem:[#allocation9 + $0x54c] ss:$16 sps:$4 sm:$0xff]  }
0x23b5   :  { %13936 = vmatprep.subr.bf16.mxu1 %v19969_v6  ;;  %v20051_v6 = vld [vmem:[#allocation9 + $0x548] ss:$16 sps:$4 sm:$0xff]  }
0x23b8   :  { %13937 = vmatpush1.bf16.msra.mxu1 %v19967_v30  ;;  %v20056_v30 = vld [vmem:[#allocation9 + $0x56c] ss:$16 sps:$4 sm:$0xff]  }
0x23b9   :  { %13938 = vmatprep.subr.bf16.mxu1 %v19972_v11  ;;  %v20054_v11 = vld [vmem:[#allocation9 + $0x568] ss:$16 sps:$4 sm:$0xff]  }
0x23bc   :  { %13939 = vmatpush1.bf16.msra.mxu1 %v19970_v38  ;;  %v20059_v38 = vld [vmem:[#allocation9 + $0x58c] ss:$16 sps:$4 sm:$0xff]  }
0x23bd   :  { %14163 = vmatprep.subr.bf16.mxu1 %v19975_v4  ;;  %v20057_v4 = vld [vmem:[#allocation9 + $0x588] ss:$16 sps:$4 sm:$0xff]  }
0x23bf   :  { %13957 = vmatmul.mubr.bf16.vlgmr.msra.gmra.mrb[172].mxu1 %v13689_v10  ;;  %v20036_v10 = vld [vmem:[#allocation9 + $0x5a0] ss:$16 sps:$4 sm:$0xff]  }
0x23c0   :  { %14164 = vmatpush1.bf16.msra.mxu1 %v19973_v60  ;;  %14195 = vmatprep.mubr.bf16.mxu1 %v23274_v49  ;;  %v20060_v60 = vld [vmem:[#allocation9 + $0x5a8] ss:$16 sps:$4 sm:$0xff]  }
0x23c1   :  { %14165 = vmatprep.subr.bf16.mxu1 %v19978_v29  ;;  %v20065_v29 = vld [vmem:[#allocation9 + $0x5cc] ss:$16 sps:$4 sm:$0xff]  }
0x23c4   :  { %14166 = vmatpush1.bf16.msra.mxu1 %v19976_v8  ;;  %v20063_v8 = vld [vmem:[#allocation9 + $0x5c8] ss:$16 sps:$4 sm:$0xff]  }
0x23c5   :  { %14167 = vmatprep.subr.bf16.mxu1 %v19981_v63  ;;  %v20068_v63 = vld [vmem:[#allocation9 + $0x5ec] ss:$16 sps:$4 sm:$0xff]  }
0x23c8   :  { %14168 = vmatpush1.bf16.msra.mxu1 %v19979_v36  ;;  %v20066_v36 = vld [vmem:[#allocation9 + $0x5e8] ss:$16 sps:$4 sm:$0xff]  }
0x23c9   :  { %14169 = vmatprep.subr.bf16.mxu1 %v19984_v24  ;;  %v20071_v24 = vld [vmem:[#allocation9 + $0x604] ss:$16 sps:$4 sm:$0xff]  }
0x23cc   :  { %14170 = vmatpush1.bf16.msra.mxu1 %v19982_v59  ;;  %v20069_v59 = vld [vmem:[#allocation9 + $0x600] ss:$16 sps:$4 sm:$0xff]  }
0x23cd   :  { %14171 = vmatprep.subr.bf16.mxu1 %v19987_v51  ;;  %v20074_v51 = vld [vmem:[#allocation9 + $0x624] ss:$16 sps:$4 sm:$0xff]  }
0x23d0   :  { %14172 = vmatpush1.bf16.msra.mxu1 %v19985_v32  ;;  %v20072_v32 = vld [vmem:[#allocation9 + $0x620] ss:$16 sps:$4 sm:$0xff]  }
0x23d1   :  { %14173 = vmatprep.subr.bf16.mxu1 %v19990_v19  ;;  %v20077_v19 = vld [vmem:[#allocation9 + $0x644] ss:$16 sps:$4 sm:$0xff]  }
0x23d4   :  { %14174 = vmatpush1.bf16.msra.mxu1 %v19988_v3  ;;  %v20075_v3 = vld [vmem:[#allocation9 + $0x640] ss:$16 sps:$4 sm:$0xff]  }
0x23d5   :  { %14175 = vmatprep.subr.bf16.mxu1 %v19993_v46  ;;  %v20080_v46 = vld [vmem:[#allocation9 + $0x664] ss:$16 sps:$4 sm:$0xff]  }
0x23d8   :  { %14176 = vmatpush1.bf16.msra.mxu1 %v19991_v55  ;;  %v20078_v55 = vld [vmem:[#allocation9 + $0x660] ss:$16 sps:$4 sm:$0xff]  }
0x23d9   :  { %14177 = vmatprep.subr.bf16.mxu1 %v19996_v54  ;;  %v20083_v54 = vld [vmem:[#allocation9 + $0x684] ss:$16 sps:$4 sm:$0xff]  }
0x23dc   :  { %14178 = vmatpush1.bf16.msra.mxu1 %v19994_v15  ;;  %v20081_v15 = vld [vmem:[#allocation9 + $0x680] ss:$16 sps:$4 sm:$0xff]  }
0x23dd   :  { %14204 = vmatprep.subr.bf16.mxu1 %v19999_v57  ;;  %v20086_v57 = vld [vmem:[#allocation9 + $0x6a4] ss:$16 sps:$4 sm:$0xff]  }
0x23df   :  { %14196 = vmatmul.mubr.bf16.vlgmr.msra.gmra.mrb[168].mxu1 %v13969_v12 }
0x23e0   :  { %14205 = vmatpush1.bf16.msra.mxu1 %v19997_v21  ;;  %14236 = vmatprep.mubr.bf16.mxu1 %v23274_v49  ;;  %v20084_v21 = vld [vmem:[#allocation9 + $0x6a0] ss:$16 sps:$4 sm:$0xff]  }
0x23e1   :  { %14206 = vmatprep.subr.bf16.mxu1 %v20002_v14  ;;  %v20087_v14 = vld [vmem:[#allocation9 + $0x6c0] ss:$16 sps:$4 sm:$0xff]  }
0x23e4   :  { %14207 = vmatpush1.bf16.msra.mxu1 %v20000_v37  ;;  %v20092_v37 = vld [vmem:[#allocation9 + $0x6e4] ss:$16 sps:$4 sm:$0xff]  }
0x23e5   :  { %14208 = vmatprep.subr.bf16.mxu1 %v20005_v13  ;;  %v20090_v13 = vld [vmem:[#allocation9 + $0x6e0] ss:$16 sps:$4 sm:$0xff]  }
0x23e8   :  { %14209 = vmatpush1.bf16.msra.mxu1 %v20003_v34  ;;  %v20095_v34 = vld [vmem:[#allocation9 + $0x60c] ss:$16 sps:$4 sm:$0xff]  }
0x23e9   :  { %14210 = vmatprep.subr.bf16.mxu1 %v20008_v1  ;;  %v20093_v1 = vld [vmem:[#allocation9 + $0x608] ss:$16 sps:$4 sm:$0xff]  }
0x23ec   :  { %14211 = vmatpush1.bf16.msra.mxu1 %v20006_v48  ;;  %v14529_v48 = vpack.c.bf16 %v23151_v33, %v23151_v33  ;;  %v20110_v33 = vld [vmem:[#allocation9 + $0x6ac] ss:$16 sps:$4 sm:$0xff]  }
0x23ed   :  { %14212 = vmatprep.subr.bf16.mxu1 %v20011_v23  ;;  %v20098_v23 = vld [vmem:[#allocation9 + $0x62c] ss:$16 sps:$4 sm:$0xff]  }
0x23f0   :  { %14213 = vmatpush1.bf16.msra.mxu1 %v20009_v2  ;;  %v20096_v2 = vld [vmem:[#allocation9 + $0x628] ss:$16 sps:$4 sm:$0xff]  }
0x23f1   :  { %14214 = vmatprep.subr.bf16.mxu1 %v20014_v22  ;;  %v20101_v22 = vld [vmem:[#allocation9 + $0x64c] ss:$16 sps:$4 sm:$0xff]  }
0x23f4   :  { %14215 = vmatpush1.bf16.msra.mxu1 %v20012_v39  ;;  %v20099_v39 = vld [vmem:[#allocation9 + $0x648] ss:$16 sps:$4 sm:$0xff]  }
0x23f5   :  { %14216 = vmatprep.subr.bf16.mxu1 %v20017_v53  ;;  %v20104_v53 = vld [vmem:[#allocation9 + $0x66c] ss:$16 sps:$4 sm:$0xff]  }
0x23f8   :  { %14217 = vmatpush1.bf16.msra.mxu1 %v20015_v35  ;;  %v20102_v35 = vld [vmem:[#allocation9 + $0x668] ss:$16 sps:$4 sm:$0xff]  }
0x23f9   :  { %14218 = vmatprep.subr.bf16.mxu1 %v20020_v20  ;;  %v20107_v20 = vld [vmem:[#allocation9 + $0x68c] ss:$16 sps:$4 sm:$0xff]  }
0x23fc   :  { %14219 = vmatpush1.bf16.msra.mxu1 %v20018_v40  ;;  %v20105_v40 = vld [vmem:[#allocation9 + $0x688] ss:$16 sps:$4 sm:$0xff]  }
0x23fd   :  { %14443 = vmatprep.subr.bf16.mxu1 %v20023_v61  ;;  %v20108_v61 = vld [vmem:[#allocation9 + $0x6a8] ss:$16 sps:$4 sm:$0xff]  }
0x23ff   :  { %14237 = vmatmul.mubr.bf16.vlgmr.msra.gmra.mrb[172].mxu1 %v13969_v12  ;;  %v20089_v12 = vld [vmem:[#allocation9 + $0x6c4] ss:$16 sps:$4 sm:$0xff]  }
0x2400   :  { %14444 = vmatpush1.bf16.msra.mxu1 %v20021_v5  ;;  %14475 = vmatprep.mubr.bf16.mxu1 %v23274_v49  ;;  %v20113_v5 = vld [vmem:[#allocation9 + $0x6cc] ss:$16 sps:$4 sm:$0xff]  }
0x2401   :  { %14445 = vmatprep.subr.bf16.mxu1 %v20026_v25  ;;  %v20111_v25 = vld [vmem:[#allocation9 + $0x6c8] ss:$16 sps:$4 sm:$0xff]  }
0x2404   :  { %14446 = vmatpush1.bf16.msra.mxu1 %v20024_v62  ;;  %v20116_v62 = vld [vmem:[#allocation9 + $0x6ec] ss:$16 sps:$4 sm:$0xff]  }
0x2405   :  { %14447 = vmatprep.subr.bf16.mxu1 %v20029_v18  ;;  %v20114_v18 = vld [vmem:[#allocation9 + $0x6e8] ss:$16 sps:$4 sm:$0xff]  }
0x2408   :  { %14448 = vmatpush1.bf16.msra.mxu1 %v20027_v52  ;;  %v20119_v52 = vld [vmem:[#allocation9 + $0x704] ss:$16 sps:$4 sm:$0xff]  }
0x2409   :  { %14449 = vmatprep.subr.bf16.mxu1 %v20032_v16  ;;  %v20117_v16 = vld [vmem:[#allocation9 + $0x700] ss:$16 sps:$4 sm:$0xff]  }
0x240c   :  { %14450 = vmatpush1.bf16.msra.mxu1 %v20030_v43  ;;  %v20122_v43 = vld [vmem:[#allocation9 + $0x724] ss:$16 sps:$4 sm:$0xff]  }
0x240d   :  { %14451 = vmatprep.subr.bf16.mxu1 %v20035_v9  ;;  %v20120_v9 = vld [vmem:[#allocation9 + $0x720] ss:$16 sps:$4 sm:$0xff]  }
0x2410   :  { %14452 = vmatpush1.bf16.msra.mxu1 %v20033_v0  ;;  %v20125_v0 = vld [vmem:[#allocation9 + $0x744] ss:$16 sps:$4 sm:$0xff]  }
0x2411   :  { %14453 = vmatprep.subr.bf16.mxu1 %v20038_v31  ;;  %v20123_v31 = vld [vmem:[#allocation9 + $0x740] ss:$16 sps:$4 sm:$0xff]  }
0x2414   :  { %14454 = vmatpush1.bf16.msra.mxu1 %v20036_v10  ;;  %v20128_v10 = vld [vmem:[#allocation9 + $0x764] ss:$16 sps:$4 sm:$0xff]  }
0x2415   :  { %14455 = vmatprep.subr.bf16.mxu1 %v20041_v17  ;;  %v20126_v17 = vld [vmem:[#allocation9 + $0x760] ss:$16 sps:$4 sm:$0xff]  }
0x2418   :  { %14456 = vmatpush1.bf16.msra.mxu1 %v20039_v58  ;;  %v20131_v58 = vld [vmem:[#allocation9 + $0x784] ss:$16 sps:$4 sm:$0xff]  }
0x2419   :  { %14457 = vmatprep.subr.bf16.mxu1 %v20044_v7  ;;  %v20129_v7 = vld [vmem:[#allocation9 + $0x780] ss:$16 sps:$4 sm:$0xff]  }
0x241c   :  { %14458 = vmatpush1.bf16.msra.mxu1 %v20042_v28  ;;  %v20134_v28 = vld [vmem:[#allocation9 + $0x7a4] ss:$16 sps:$4 sm:$0xff]  }
0x241d   :  { %14484 = vmatprep.subr.bf16.mxu1 %v20047_v42  ;;  %v20132_v42 = vld [vmem:[#allocation9 + $0x7a0] ss:$16 sps:$4 sm:$0xff]  }
0x241f   :  { %14476 = vmatmul.mubr.bf16.vlgmr.msra.gmra.mrb[168].mxu1 %v14249_v41 }
0x2420   :  { %14485 = vmatpush1.bf16.msra.mxu1 %v20045_v44  ;;  %14516 = vmatprep.mubr.bf16.mxu1 %v23274_v49  ;;  %v20137_v44 = vld [vmem:[#allocation9 + $0x7c4] ss:$16 sps:$4 sm:$0xff]  }
0x2421   :  { %14486 = vmatprep.subr.bf16.mxu1 %v20050_v27  ;;  %v20140_v27 = vld [vmem:[#allocation9 + $0x7e4] ss:$16 sps:$4 sm:$0xff]  }
0x2424   :  { %14487 = vmatpush1.bf16.msra.mxu1 %v20048_v26  ;;  %v20138_v26 = vld [vmem:[#allocation9 + $0x7e0] ss:$16 sps:$4 sm:$0xff]  }
0x2425   :  { %14488 = vmatprep.subr.bf16.mxu1 %v20053_v50  ;;  %v20143_v50 = vld [vmem:[#allocation9 + $0x70c] ss:$16 sps:$4 sm:$0xff]  }
0x2428   :  { %14489 = vmatpush1.bf16.msra.mxu1 %v20051_v6  ;;  %v20141_v6 = vld [vmem:[#allocation9 + $0x708] ss:$16 sps:$4 sm:$0xff]  }
0x2429   :  { %14490 = vmatprep.subr.bf16.mxu1 %v20056_v30  ;;  %v14809_v30 = vpack.c.bf16 %v23153_v56, %v23153_v56  ;;  %v20158_v56 = vld [vmem:[#allocation9 + $0x7ac] ss:$16 sps:$4 sm:$0xff]  }
0x242c   :  { %14491 = vmatpush1.bf16.msra.mxu1 %v20054_v11  ;;  %v20146_v11 = vld [vmem:[#allocation9 + $0x72c] ss:$16 sps:$4 sm:$0xff]  }
0x242d   :  { %14492 = vmatprep.subr.bf16.mxu1 %v20059_v38  ;;  %v20144_v38 = vld [vmem:[#allocation9 + $0x728] ss:$16 sps:$4 sm:$0xff]  }
0x2430   :  { %14493 = vmatpush1.bf16.msra.mxu1 %v20057_v4  ;;  %v20149_v4 = vld [vmem:[#allocation9 + $0x74c] ss:$16 sps:$4 sm:$0xff]  }
0x2431   :  { %14494 = vmatprep.subr.bf16.mxu1 %v20062_v47  ;;  %v20147_v47 = vld [vmem:[#allocation9 + $0x748] ss:$16 sps:$4 sm:$0xff]  }
0x2434   :  { %14495 = vmatpush1.bf16.msra.mxu1 %v20060_v60  ;;  %v20152_v60 = vld [vmem:[#allocation9 + $0x76c] ss:$16 sps:$4 sm:$0xff]  }
0x2435   :  { %14496 = vmatprep.subr.bf16.mxu1 %v20065_v29  ;;  %v20150_v29 = vld [vmem:[#allocation9 + $0x768] ss:$16 sps:$4 sm:$0xff]  }
0x2438   :  { %14497 = vmatpush1.bf16.msra.mxu1 %v20063_v8  ;;  %v20155_v8 = vld [vmem:[#allocation9 + $0x78c] ss:$16 sps:$4 sm:$0xff]  }
0x2439   :  { %14498 = vmatprep.subr.bf16.mxu1 %v20068_v63  ;;  %v20153_v63 = vld [vmem:[#allocation9 + $0x788] ss:$16 sps:$4 sm:$0xff]  }
0x243c   :  { %14499 = vmatpush1.bf16.msra.mxu1 %v20066_v36  ;;  %v20156_v36 = vld [vmem:[#allocation9 + $0x7a8] ss:$16 sps:$4 sm:$0xff]  }
0x243d   :  { %14723 = vmatprep.subr.bf16.mxu1 %v20071_v24  ;;  %v20161_v24 = vld [vmem:[#allocation9 + $0x7cc] ss:$16 sps:$4 sm:$0xff]  }
0x243f   :  { %14517 = vmatmul.mubr.bf16.vlgmr.msra.gmra.mrb[172].mxu1 %v14249_v41  ;;  %v20135_v41 = vld [vmem:[#allocation9 + $0x7c0] ss:$16 sps:$4 sm:$0xff]  }
0x2440   :  { %14724 = vmatpush1.bf16.msra.mxu1 %v20069_v59  ;;  %14755 = vmatprep.mubr.bf16.mxu1 %v23274_v49  ;;  %v20159_v59 = vld [vmem:[#allocation9 + $0x7c8] ss:$16 sps:$4 sm:$0xff]  }
0x2441   :  { %14725 = vmatprep.subr.bf16.mxu1 %v20074_v51  ;;  %v20164_v51 = vld [vmem:[#allocation9 + $0x7ec] ss:$16 sps:$4 sm:$0xff]  }
0x2444   :  { %14726 = vmatpush1.bf16.msra.mxu1 %v20072_v32  ;;  %v20162_v32 = vld [vmem:[#allocation9 + $0x7e8] ss:$16 sps:$4 sm:$0xff]  }
0x2445   :  { %14727 = vmatprep.subr.bf16.mxu1 %v20077_v19  ;;  %v20167_v19 = vld [vmem:[#allocation9 + $0x804] ss:$16 sps:$4 sm:$0xff]  }
0x2448   :  { %14728 = vmatpush1.bf16.msra.mxu1 %v20075_v3  ;;  %v20165_v3 = vld [vmem:[#allocation9 + $0x800] ss:$16 sps:$4 sm:$0xff]  }
0x2449   :  { %14729 = vmatprep.subr.bf16.mxu1 %v20080_v46  ;;  %v20170_v46 = vld [vmem:[#allocation9 + $0x824] ss:$16 sps:$4 sm:$0xff]  }
0x244c   :  { %14730 = vmatpush1.bf16.msra.mxu1 %v20078_v55  ;;  %v20168_v55 = vld [vmem:[#allocation9 + $0x820] ss:$16 sps:$4 sm:$0xff]  }
0x244d   :  { %14731 = vmatprep.subr.bf16.mxu1 %v20083_v54  ;;  %v20173_v54 = vld [vmem:[#allocation9 + $0x844] ss:$16 sps:$4 sm:$0xff]  }
0x2450   :  { %14732 = vmatpush1.bf16.msra.mxu1 %v20081_v15  ;;  %v20171_v15 = vld [vmem:[#allocation9 + $0x840] ss:$16 sps:$4 sm:$0xff]  }
0x2451   :  { %14733 = vmatprep.subr.bf16.mxu1 %v20086_v57  ;;  %v20176_v57 = vld [vmem:[#allocation9 + $0x864] ss:$16 sps:$4 sm:$0xff]  }
0x2454   :  { %14734 = vmatpush1.bf16.msra.mxu1 %v20084_v21  ;;  %v20174_v21 = vld [vmem:[#allocation9 + $0x860] ss:$16 sps:$4 sm:$0xff]  }
0x2455   :  { %14735 = vmatprep.subr.bf16.mxu1 %v20089_v12  ;;  %v20179_v12 = vld [vmem:[#allocation9 + $0x884] ss:$16 sps:$4 sm:$0xff]  }
0x2458   :  { %14736 = vmatpush1.bf16.msra.mxu1 %v20087_v14  ;;  %v20177_v14 = vld [vmem:[#allocation9 + $0x880] ss:$16 sps:$4 sm:$0xff]  }
0x2459   :  { %14737 = vmatprep.subr.bf16.mxu1 %v20092_v37  ;;  %v20182_v37 = vld [vmem:[#allocation9 + $0x8a4] ss:$16 sps:$4 sm:$0xff]  }
0x245c   :  { %14738 = vmatpush1.bf16.msra.mxu1 %v20090_v13  ;;  %v20180_v13 = vld [vmem:[#allocation9 + $0x8a0] ss:$16 sps:$4 sm:$0xff]  }
0x245d   :  { %14764 = vmatprep.subr.bf16.mxu1 %v20095_v34  ;;  %v20185_v34 = vld [vmem:[#allocation9 + $0x8c4] ss:$16 sps:$4 sm:$0xff]  }
0x245f   :  { %14756 = vmatmul.mubr.bf16.vlgmr.msra.gmra.mrb[168].mxu1 %v14529_v48 }
0x2460   :  { %14765 = vmatpush1.bf16.msra.mxu1 %v20093_v1  ;;  %14796 = vmatprep.mubr.bf16.mxu1 %v23274_v49  ;;  %v20183_v1 = vld [vmem:[#allocation9 + $0x8c0] ss:$16 sps:$4 sm:$0xff]  }
0x2461   :  { %14766 = vmatprep.subr.bf16.mxu1 %v20098_v23  ;;  %v20186_v23 = vld [vmem:[#allocation9 + $0x8e0] ss:$16 sps:$4 sm:$0xff]  }
0x2464   :  { %14767 = vmatpush1.bf16.msra.mxu1 %v20096_v2  ;;  %v20191_v2 = vld [vmem:[#allocation9 + $0x80c] ss:$16 sps:$4 sm:$0xff]  }
0x2465   :  { %14768 = vmatprep.subr.bf16.mxu1 %v20101_v22  ;;  %v20189_v22 = vld [vmem:[#allocation9 + $0x808] ss:$16 sps:$4 sm:$0xff]  }
0x2468   :  { %14769 = vmatpush1.bf16.msra.mxu1 %v20099_v39  ;;  %v15089_v39 = vpack.c.bf16 %v23155_v45, %v23155_v45  ;;  %v20206_v45 = vld [vmem:[#allocation9 + $0x8ac] ss:$16 sps:$4 sm:$0xff]  }
0x2469   :  { %14770 = vmatprep.subr.bf16.mxu1 %v20104_v53  ;;  %v20194_v53 = vld [vmem:[#allocation9 + $0x82c] ss:$16 sps:$4 sm:$0xff]  }
0x246c   :  { %14771 = vmatpush1.bf16.msra.mxu1 %v20102_v35  ;;  %v20192_v35 = vld [vmem:[#allocation9 + $0x828] ss:$16 sps:$4 sm:$0xff]  }
0x246d   :  { %14772 = vmatprep.subr.bf16.mxu1 %v20107_v20  ;;  %v20197_v20 = vld [vmem:[#allocation9 + $0x84c] ss:$16 sps:$4 sm:$0xff]  }
0x2470   :  { %14773 = vmatpush1.bf16.msra.mxu1 %v20105_v40  ;;  %v20195_v40 = vld [vmem:[#allocation9 + $0x848] ss:$16 sps:$4 sm:$0xff]  }
0x2471   :  { %14774 = vmatprep.subr.bf16.mxu1 %v20110_v33  ;;  %v20200_v33 = vld [vmem:[#allocation9 + $0x86c] ss:$16 sps:$4 sm:$0xff]  }
0x2474   :  { %14775 = vmatpush1.bf16.msra.mxu1 %v20108_v61  ;;  %v20198_v61 = vld [vmem:[#allocation9 + $0x868] ss:$16 sps:$4 sm:$0xff]  }
0x2475   :  { %14776 = vmatprep.subr.bf16.mxu1 %v20113_v5  ;;  %v20203_v5 = vld [vmem:[#allocation9 + $0x88c] ss:$16 sps:$4 sm:$0xff]  }
0x2478   :  { %14777 = vmatpush1.bf16.msra.mxu1 %v20111_v25  ;;  %v20201_v25 = vld [vmem:[#allocation9 + $0x888] ss:$16 sps:$4 sm:$0xff]  }
0x2479   :  { %14778 = vmatprep.subr.bf16.mxu1 %v20116_v62  ;;  %v20204_v62 = vld [vmem:[#allocation9 + $0x8a8] ss:$16 sps:$4 sm:$0xff]  }
0x247c   :  { %14779 = vmatpush1.bf16.msra.mxu1 %v20114_v18  ;;  %v20209_v18 = vld [vmem:[#allocation9 + $0x8cc] ss:$16 sps:$4 sm:$0xff]  }
0x247d   :  { %15003 = vmatprep.subr.bf16.mxu1 %v20119_v52  ;;  %v20212_v52 = vld [vmem:[#allocation9 + $0x8ec] ss:$16 sps:$4 sm:$0xff]  }
0x247f   :  { %14797 = vmatmul.mubr.bf16.vlgmr.msra.gmra.mrb[172].mxu1 %v14529_v48  ;;  %v20188_v48 = vld [vmem:[#allocation9 + $0x8e4] ss:$16 sps:$4 sm:$0xff]  }
0x2480   :  { %15004 = vmatpush1.bf16.msra.mxu1 %v20117_v16  ;;  %15035 = vmatprep.mubr.bf16.mxu1 %v23274_v49  ;;  %v20210_v16 = vld [vmem:[#allocation9 + $0x8e8] ss:$16 sps:$4 sm:$0xff]  }
0x2481   :  { %15005 = vmatprep.subr.bf16.mxu1 %v20122_v43 }
0x2484   :  { %15006 = vmatpush1.bf16.msra.mxu1 %v20120_v9 }
0x2485   :  { %15007 = vmatprep.subr.bf16.mxu1 %v20125_v0 }
0x2488   :  { %15008 = vmatpush1.bf16.msra.mxu1 %v20123_v31 }
0x2489   :  { %15009 = vmatprep.subr.bf16.mxu1 %v20128_v10 }
0x248c   :  { %15010 = vmatpush1.bf16.msra.mxu1 %v20126_v17 }
0x248d   :  { %15011 = vmatprep.subr.bf16.mxu1 %v20131_v58 }
0x2490   :  { %15012 = vmatpush1.bf16.msra.mxu1 %v20129_v7 }
0x2491   :  { %15013 = vmatprep.subr.bf16.mxu1 %v20134_v28 }
0x2494   :  { %15014 = vmatpush1.bf16.msra.mxu1 %v20132_v42 }
0x2495   :  { %15015 = vmatprep.subr.bf16.mxu1 %v20137_v44 }
0x2498   :  { %15016 = vmatpush1.bf16.msra.mxu1 %v20135_v41 }
0x2499   :  { %15017 = vmatprep.subr.bf16.mxu1 %v20140_v27 }
0x249c   :  { %15018 = vmatpush1.bf16.msra.mxu1 %v20138_v26 }
0x249d   :  { %15044 = vmatprep.subr.bf16.mxu1 %v20143_v50 }
0x249f   :  { %15036 = vmatmul.mubr.bf16.vlgmr.msra.gmra.mrb[168].mxu1 %v14809_v30 }
0x24a0   :  { %15045 = vmatpush1.bf16.msra.mxu1 %v20141_v6  ;;  %15076 = vmatprep.mubr.bf16.mxu1 %v23274_v49 }
0x24a1   :  { %15046 = vmatprep.subr.bf16.mxu1 %v20146_v11 }
0x24a4   :  { %15047 = vmatpush1.bf16.msra.mxu1 %v20144_v38  ;;  %v15370_v38 = vld [vmem:[%s23225_s22] sm:$0xff] }
0x24a5   :  { %15048 = vmatprep.subr.bf16.mxu1 %v20149_v4 }
0x24a8   :  { %15049 = vmatpush1.bf16.msra.mxu1 %v20147_v47 }
0x24a9   :  { %15050 = vmatprep.subr.bf16.mxu1 %v20152_v60 }
0x24ac   :  { %15051 = vmatpush1.bf16.msra.mxu1 %v20150_v29 }
0x24ad   :  { %15052 = vmatprep.subr.bf16.mxu1 %v20155_v8 }
0x24b0   :  { %15053 = vmatpush1.bf16.msra.mxu1 %v20153_v63 }
0x24b1   :  { %15054 = vmatprep.subr.bf16.mxu1 %v20158_v56 }
0x24b4   :  { %15055 = vmatpush1.bf16.msra.mxu1 %v20156_v36 }
0x24b5   :  { %15056 = vmatprep.subr.bf16.mxu1 %v20161_v24 }
0x24b8   :  { %15057 = vmatpush1.bf16.msra.mxu1 %v20159_v59 }
0x24b9   :  { %15058 = vmatprep.subr.bf16.mxu1 %v20164_v51 }
0x24bc   :  { %15059 = vmatpush1.bf16.msra.mxu1 %v20162_v32 }
0x24bd   :  { %15283 = vmatprep.subr.bf16.mxu1 %v20167_v19  ;;  %v15369_v19 = vld [vmem:[%s23275_s13] sm:$0xff] }
0x24bf   :  { %15077 = vmatmul.mubr.bf16.vlgmr.msra.gmra.mrb[172].mxu1 %v14809_v30 }
0x24c0   :  { %15284 = vmatpush1.bf16.msra.mxu1 %v20165_v3  ;;  %15315 = vmatprep.mubr.bf16.mxu1 %v23274_v49 }
0x24c1   :  { %15285 = vmatprep.subr.bf16.mxu1 %v20170_v46 }
0x24c4   :  { %15286 = vmatpush1.bf16.msra.mxu1 %v20168_v55 }
0x24c5   :  { %15287 = vmatprep.subr.bf16.mxu1 %v20173_v54 }
0x24c8   :  { %15288 = vmatpush1.bf16.msra.mxu1 %v20171_v15 }
0x24c9   :  { %15289 = vmatprep.subr.bf16.mxu1 %v20176_v57 }
0x24cc   :  { %15290 = vmatpush1.bf16.msra.mxu1 %v20174_v21 }
0x24cd   :  { %15291 = vmatprep.subr.bf16.mxu1 %v20179_v12 }
0x24d0   :  { %15292 = vmatpush1.bf16.msra.mxu1 %v20177_v14 }
0x24d1   :  { %15293 = vmatprep.subr.bf16.mxu1 %v20182_v37 }
0x24d4   :  { %15294 = vmatpush1.bf16.msra.mxu1 %v20180_v13 }
0x24d5   :  { %15295 = vmatprep.subr.bf16.mxu1 %v20185_v34 }
0x24d8   :  { %15296 = vmatpush1.bf16.msra.mxu1 %v20183_v1 }
0x24d9   :  { %15297 = vmatprep.subr.bf16.mxu1 %v20188_v48 }
0x24dc   :  { %15298 = vmatpush1.bf16.msra.mxu1 %v20186_v23 }
0x24dd   :  { %15324 = vmatprep.subr.bf16.mxu1 %v20191_v2 }
0x24df   :  { %15316 = vmatmul.mubr.bf16.vlgmr.msra.gmra.mrb[168].mxu1 %v15089_v39 }
0x24e0   :  { %15325 = vmatpush1.bf16.msra.mxu1 %v20189_v22  ;;  %15356 = vmatprep.mubr.bf16.mxu1 %v23274_v49  ;;  %v20207_v49 = vld [vmem:[#allocation9 + $0x8c8] ss:$16 sps:$4 sm:$0xff]  }
0x24e1   :  { %15326 = vmatprep.subr.bf16.mxu1 %v20194_v53 }
0x24e4   :  { %15327 = vmatpush1.bf16.msra.mxu1 %v20192_v35 }
0x24e5   :  { %15328 = vmatprep.subr.bf16.mxu1 %v20197_v20 }
0x24e8   :  { %15329 = vmatpush1.bf16.msra.mxu1 %v20195_v40 }
0x24e9   :  { %15330 = vmatprep.subr.bf16.mxu1 %v20200_v33 }
0x24ec   :  { %15331 = vmatpush1.bf16.msra.mxu1 %v20198_v61 }
0x24ed   :  { %15332 = vmatprep.subr.bf16.mxu1 %v20203_v5 }
0x24f0   :  { %15333 = vmatpush1.bf16.msra.mxu1 %v20201_v25 }
0x24f1   :  { %15334 = vmatprep.subr.bf16.mxu1 %v20206_v45 }
0x24f4   :  { %15335 = vmatpush1.bf16.msra.mxu1 %v20204_v62 }
0x24f5   :  { %15336 = vmatprep.subr.bf16.mxu1 %v20209_v18 }
0x24f8   :  { %15337 = vmatpush1.bf16.msra.mxu1 %v20207_v49 }
0x24f9   :  { %15338 = vmatprep.subr.bf16.mxu1 %v20212_v52 }
0x24fc   :  { %15339 = vmatpush1.bf16.msra.mxu1 %v20210_v16 }
0x24ff   :  { %15357 = vmatmul.mubr.bf16.vlgmr.msra.gmra.mrb[172].mxu1 %v15089_v39 }
0x25b2   :  { %v15317_v43 = vpop.f32.mrb[168].mxu1 }
0x25b3   :  { %v15377_v9 = vmul.f32 %v15317_v43, %v15317_v43  ;;  %v15319_v0 = vpop.f32.mrb[169].mxu1 }
0x25b4   :  { %v15371_v31 = vadd.f32 %v15319_v0, %v15317_v43  ;;  %v15378_v10 = vmul.f32 %v15319_v0, %v15319_v0  ;;  %v15321_v17 = vpop.f32.mrb[170].mxu1 }
0x25b5   :  { %v15322_v58 = vpop.f32.mrb[171].mxu1 }
0x25b6   :  { %v15381_v7 = vadd.f32 %v15378_v10, %v15377_v9 }
0x25d2   :  { %v15358_v28 = vpop.f32.mrb[172].mxu1 }
0x25d3   :  { %v15372_v42 = vadd.f32 %v15371_v31, %v15358_v28  ;;  %v15379_v44 = vmul.f32 %v15358_v28, %v15358_v28  ;;  %v15360_v41 = vpop.f32.mrb[173].mxu1 }
0x25d4   :  { %v15380_v27 = vmul.f32 %v15360_v41, %v15360_v41  ;;  %v15362_v26 = vpop.f32.mrb[174].mxu1 }
0x25d5   :  { %v15382_v50 = vadd.f32 %v15381_v7, %v15379_v44  ;;  %v15373_v6 = vadd.f32 %v15372_v42, %v15360_v41  ;;  %v15363_v30 = vpop.f32.mrb[175].mxu1 }
0x25d7   :  { %15374 = vadd.xlane.f32.xlu1 %v15373_v6  ;;  %v15383_v11 = vadd.f32 %v15382_v50, %v15380_v27 }
0x25d9   :  { %15384 = vadd.xlane.f32.xlu0 %v15383_v11 }
0x25e8   :  { %15408 = vperm.xlu1 %19174, %v15370_v38  }
0x2664   :  { %v15375_v4 = vpop.xlane.xlu1 %15374 }
0x2665   :  { %v15376_v47 = vmul.f32 0.001953125, %v15375_v4 }
0x2666   :  { %v15385_v60 = vpop.xlane.xlu0 %15384 }
0x2667   :  { %v15386_v29 = vmul.f32 0.001953125, %v15385_v60  ;;  %v15387_v8 = vmul.f32 %v15376_v47, %v15376_v47  ;;  %v15390_v63 = vsub.f32 %v15317_v43, %v15376_v47  ;;  %v15391_v56 = vsub.f32 %v15319_v0, %v15376_v47 }
0x2668   :  { %v15392_v36 = vsub.f32 %v15358_v28, %v15376_v47  ;;  %v15393_v24 = vsub.f32 %v15360_v41, %v15376_v47  ;;  %v15409_v12 = vpop.permute.xlu1 %15408 }
0x2669   :  { %v15388_v59 = vsub.f32 %v15386_v29, %v15387_v8 }
0x266b   :  { %v15389_v51 = vmax.f32 %v15388_v59, 0.0 }
0x266d   :  { %v15394_v32 = vadd.f32 1e-05, %v15389_v51 }
0x266f   :  { %20279 = vrsqrt.f32 %v15394_v32 }
0x2679   :  { %v20280_v3 = vpop.eup %20279 }
0x267a   :  { %v15396_v46 = vmul.f32 %v20280_v3, %v15369_v19 }
0x267c   :  { %15399 = vperm.xlu0 %19175, %v15396_v46  }
0x26fb   :  { %v15400_v55 = vpop.permute.xlu0 %15399 }
0x26fc   :  { %v15402_v54 = vmul.f32 %v15400_v55, %v15390_v63  ;;  %v15403_v15 = vmul.f32 %v15400_v55, %v15391_v56  ;;  %v15404_v57 = vmul.f32 %v15400_v55, %v15392_v36  ;;  %v15405_v21 = vmul.f32 %v15400_v55, %v15393_v24 }
0x26fe   :  { %v15411_v14 = vadd.f32 %v15409_v12, %v15402_v54  ;;  %v15412_v37 = vadd.f32 %v15409_v12, %v15403_v15  ;;  %v15413_v13 = vadd.f32 %v15409_v12, %v15404_v57  ;;  %v15414_v34 = vadd.f32 %v15409_v12, %v15405_v21 }
0x2700   :  { %v15415_v1 = vmax.f32 %v15411_v14, 0.0  ;;  %v15416_v48 = vmax.f32 %v15412_v37, 0.0  ;;  %v15417_v23 = vmax.f32 %v15413_v13, 0.0  ;;  %v15418_v2 = vmax.f32 %v15414_v34, 0.0 }
0x2702   :  { %15419 = vst [vmem:[%s23276_s6] sm:$0xff] %v15415_v1  ;;  %15420 = vst [vmem:[%s23276_s6 + $0x8] sm:$0xff] %v15416_v48 }
0x2703   :  { %15421 = vst [vmem:[%s23276_s6 + $0x10] sm:$0xff] %v15417_v23  ;;  %15422 = vst [vmem:[%s23276_s6 + $0x18] sm:$0xff] %v15418_v2 }
0x2704   :  { %15427 = vsyncpa [#allocation3], 1 }
0x2705   :  { %15428 = vsyncpa [#allocation5], 1 }
0x2706   :  { %15429 = vsyncpa [#allocation8], 1 }

</bundles_post_ra>
